<compile_context>
chip_gen: v7x
topology: tpu7x:2x2x1
jax: 0.10.0
libtpu: 0.0.40
codegen_flags: <defaults>
</compile_context>

<pallas_src>
import math
import jax
import jax.numpy as jnp
from jax.experimental import pallas as pl
from jax.experimental.pallas import tpu as pltpu

EMB_DIM = 512      # embedding_dim of the module (keep a multiple of 128 -> lane-dense stores)
FEAT_DIM = 512     # backbone feature dim
ATT_DIM = 128      # attention hidden dim
B_TILE = 128       # batch rows per grid step (MXU-friendly on v5e/v6e/v7x)
K_TILE = 512       # backbone reduction (in_dim) streamed in (K_TILE, 512) weight blocks
VMEM_LIMIT_BYTES = 48 * 1024 * 1024   # <= v7x 64 MiB/TC physical VMEM


def _kin_kernel(x_ref, wb_ref, bb_ref,
                w1_ref, b1_ref, w2_ref, b2_ref,
                wa1_ref, ba1_ref, wa2_ref, ba2_ref,
                we_ref, be_ref,
                out_ref, feat_acc):
    k = pl.program_id(1)
    nk = pl.num_programs(1)

    # --- backbone stand-in: flatten(NCHW) @ Wb, streamed over the reduction axis ---
    @pl.when(k == 0)
    def _():
        feat_acc[...] = jnp.zeros_like(feat_acc)

    feat_acc[...] += jnp.dot(x_ref[...], wb_ref[...],
                             preferred_element_type=jnp.float32)

    # --- head: only on the last reduction step (accumulator is complete) ---
    @pl.when(k == nk - 1)
    def _():
        feats = (feat_acc[...] + bb_ref[...]).astype(jnp.bfloat16)

        # feature_layers: Linear+BN+ReLU (+Dropout=identity) + Linear+BN+ReLU
        # (BN scale/shift already folded into w1/b1 and w2/b2)
        h = jnp.dot(feats, w1_ref[...], preferred_element_type=jnp.float32) + b1_ref[...]
        h = jnp.maximum(h, 0.0)
        h = jnp.dot(h.astype(jnp.bfloat16), w2_ref[...],
                    preferred_element_type=jnp.float32) + b2_ref[...]
        h = jnp.maximum(h, 0.0)

        # attention: Linear(512->128)+ReLU + Linear(128->512)+Sigmoid (epilogue in f32)
        a = jnp.dot(h.astype(jnp.bfloat16), wa1_ref[...],
                    preferred_element_type=jnp.float32) + ba1_ref[...]
        a = jnp.maximum(a, 0.0)
        a = jnp.dot(a.astype(jnp.bfloat16), wa2_ref[...],
                    preferred_element_type=jnp.float32) + ba2_ref[...]
        a = jax.nn.sigmoid(a)

        attended = (h * a).astype(jnp.bfloat16)

        # embedding: Linear(512->emb)+BN (BN folded into we/be)
        e = jnp.dot(attended, we_ref[...], preferred_element_type=jnp.float32) + be_ref[...]

        # F.normalize(p=2, dim=1):  x / max(||x||, 1e-12)  ==  x * rsqrt(max(sumsq, 1e-24))
        sumsq = jnp.sum(e * e, axis=1, keepdims=True)
        out_ref[...] = e * jax.lax.rsqrt(jnp.maximum(sumsq, 1e-24))


def _round_up(n, m):
    return ((n + m - 1) // m) * m


def _const_spec(shape):
    # grid-invariant weight/bias block (whole array each step).
    # NOTE: these could use pipeline_mode=pl.Buffered(1) to halve their VMEM footprint;
    # left at the default for portability across jax versions.
    return pl.BlockSpec(shape, lambda i, k: tuple(0 for _ in shape))


def forward_features_pallas(x_flat, p):
    """Run the (stubbed-backbone + head) pipeline for one flattened image batch.

    x_flat: (B, in_dim) float32. p: folded/bf16 params. Returns (B, EMB_DIM) f32, unit-norm rows.
    """
    B, in_dim = x_flat.shape
    B_pad = _round_up(B, B_TILE)
    K_pad = _round_up(in_dim, K_TILE)

    x = x_flat.astype(jnp.bfloat16)
    if B_pad != B or K_pad != in_dim:
        x = jnp.pad(x, ((0, B_pad - B), (0, K_pad - in_dim)))

    wb = p["wb"]
    if K_pad != wb.shape[0]:
        wb = jnp.pad(wb, ((0, K_pad - wb.shape[0]), (0, 0)))

    weights = (wb, p["bb"],
               p["w1"], p["b1"], p["w2"], p["b2"],
               p["wa1"], p["ba1"], p["wa2"], p["ba2"],
               p["we"], p["be"])

    in_specs = [
        pl.BlockSpec((B_TILE, K_TILE), lambda i, k: (i, k)),        # x rows, K-streamed
        pl.BlockSpec((K_TILE, FEAT_DIM), lambda i, k: (k, 0)),      # backbone weight, K-streamed
    ] + [_const_spec(w.shape) for w in weights[1:]]

    out = pl.pallas_call(
        _kin_kernel,
        out_shape=jax.ShapeDtypeStruct((B_pad, EMB_DIM), jnp.float32),
        grid_spec=pltpu.PrefetchScalarGridSpec(
            num_scalar_prefetch=0,
            grid=(B_pad // B_TILE, K_pad // K_TILE),
            in_specs=in_specs,
            out_specs=pl.BlockSpec((B_TILE, EMB_DIM), lambda i, k: (i, 0)),
            scratch_shapes=[pltpu.VMEM((B_TILE, FEAT_DIM), jnp.float32)],
        ),
        compiler_params=pltpu.CompilerParams(
            dimension_semantics=("parallel", "arbitrary"),
            vmem_limit_bytes=VMEM_LIMIT_BYTES,
        ),
    )(x, *weights)
    return out[:B]


def kinship_verification_forward(x1, x2, folded_params):
    """KinshipVerificationModel.forward: shared feature extractor on both inputs.

    x1 and x2 are concatenated on the batch axis so both run through a single
    pallas_call (one weight stream, one launch), then split.
    """
    b1, b2 = x1.shape[0], x2.shape[0]
    xf = jnp.concatenate(
        [x1.reshape(b1, -1), x2.reshape(b2, -1)], axis=0).astype(jnp.float32)
    emb = forward_features_pallas(xf, folded_params)
    return emb[:b1], emb[b1:b1 + b2]


# ---------------------------------------------------------------------------
# deterministic parameter initialization (synthetic; no checkpoint loading)
# ---------------------------------------------------------------------------
def _linear(key, din, dout):
    bound = 1.0 / math.sqrt(din)
    kw, kb = jax.random.split(key)
    w = jax.random.uniform(kw, (din, dout), jnp.float32, -bound, bound)
    b = jax.random.uniform(kb, (1, dout), jnp.float32, -bound, bound)
    return w, b


def _bn_folded(key, d, eps=1e-5):
    kg, kb, km, kv = jax.random.split(key, 4)
    gamma = 1.0 + 0.1 * jax.random.normal(kg, (1, d), jnp.float32)
    beta = 0.1 * jax.random.normal(kb, (1, d), jnp.float32)
    mean = 0.1 * jax.random.normal(km, (1, d), jnp.float32)
    var = jnp.abs(jax.random.normal(kv, (1, d), jnp.float32)) + 0.5
    scale = gamma / jnp.sqrt(var + eps)
    shift = beta - mean * scale
    return scale, shift


def init_params(key, in_dim):
    ks = jax.random.split(key, 9)
    wb, bb = _linear(ks[0], in_dim, FEAT_DIM)       # backbone stand-in
    w1, b1 = _linear(ks[1], FEAT_DIM, 512)
    s1, t1 = _bn_folded(ks[2], 512)
    w2, b2 = _linear(ks[3], 512, 512)
    s2, t2 = _bn_folded(ks[4], 512)
    wa1, ba1 = _linear(ks[5], 512, ATT_DIM)
    wa2, ba2 = _linear(ks[6], ATT_DIM, 512)
    we, be = _linear(ks[7], 512, EMB_DIM)
    s3, t3 = _bn_folded(ks[8], EMB_DIM)
    return dict(wb=wb, bb=bb, w1=w1, b1=b1, s1=s1, t1=t1,
                w2=w2, b2=b2, s2=s2, t2=t2,
                wa1=wa1, ba1=ba1, wa2=wa2, ba2=ba2,
                we=we, be=be, s3=s3, t3=t3)


def prepare_params(p):
    """Fold eval-mode BatchNorm (scale, shift) into the preceding Linear layers
    (exact: W' = W*s, b' = b*s + t) and cast matmul weights to bf16 for the MXU."""
    def fold(w, b, s, t):
        return w * s, b * s + t
    w1, b1 = fold(p["w1"], p["b1"], p["s1"], p["t1"])
    w2, b2 = fold(p["w2"], p["b2"], p["s2"], p["t2"])
    we, be = fold(p["we"], p["be"], p["s3"], p["t3"])
    bf = jnp.bfloat16
    f32 = jnp.float32
    return dict(
        wb=p["wb"].astype(bf), bb=p["bb"].astype(f32),
        w1=w1.astype(bf), b1=b1.astype(f32),
        w2=w2.astype(bf), b2=b2.astype(f32),
        wa1=p["wa1"].astype(bf), ba1=p["ba1"].astype(f32),
        wa2=p["wa2"].astype(bf), ba2=p["ba2"].astype(f32),
        we=we.astype(bf), be=be.astype(f32),
    )


# pure-JAX f32 reference (unfolded params) for a correctness sanity check
def _reference(x_nchw, p):
    x = x_nchw.reshape(x_nchw.shape[0], -1).astype(jnp.float32)
    f = x @ p["wb"] + p["bb"]
    h = jnp.maximum((f @ p["w1"] + p["b1"]) * p["s1"] + p["t1"], 0.0)
    h = jnp.maximum((h @ p["w2"] + p["b2"]) * p["s2"] + p["t2"], 0.0)
    a = jnp.maximum(h @ p["wa1"] + p["ba1"], 0.0)
    a = jax.nn.sigmoid(a @ p["wa2"] + p["ba2"])
    e = ((h * a) @ p["we"] + p["be"]) * p["s3"] + p["t3"]
    n = jnp.sqrt(jnp.sum(e * e, axis=1, keepdims=True))
    return e / jnp.maximum(n, 1e-12)


if __name__ == "__main__":
    key = jax.random.PRNGKey(0)
    k1, k2, kp = jax.random.split(key, 3)

    # small NCHW image pair, consistent with the module's image inputs
    B, C, H, W = 2, 4, 16, 16
    x1 = jax.random.normal(k1, (B, C, H, W), jnp.float32)
    x2 = jax.random.normal(k2, (B, C, H, W), jnp.float32)

    params = init_params(kp, in_dim=C * H * W)
    folded = prepare_params(params)

    emb1, emb2 = kinship_verification_forward(x1, x2, folded)
    emb1 = jax.block_until_ready(emb1)
    emb2 = jax.block_until_ready(emb2)

    assert emb1.shape == (B, EMB_DIM) and emb2.shape == (B, EMB_DIM)

    # sanity check vs. pure-JAX f32 reference (loose tolerance: bf16 MXU operands)
    r1 = _reference(x1, params)
    r2 = _reference(x2, params)
    assert jnp.max(jnp.abs(emb1 - r1)) < 5e-2
    assert jnp.max(jnp.abs(emb2 - r2)) < 5e-2

    print("KERNEL_OK")
</pallas_src>

<mosaic_0001>
module attributes {stable_mosaic.version = 11 : i64} {
  func.func @_kin_kernel(%arg0: i32, %arg1: i32, %arg2: memref<128x512xbf16, #tpu.memory_space<vmem>>, %arg3: memref<512x512xbf16, #tpu.memory_space<vmem>>, %arg4: memref<1x512xf32, #tpu.memory_space<vmem>>, %arg5: memref<512x512xbf16, #tpu.memory_space<vmem>>, %arg6: memref<1x512xf32, #tpu.memory_space<vmem>>, %arg7: memref<512x512xbf16, #tpu.memory_space<vmem>>, %arg8: memref<1x512xf32, #tpu.memory_space<vmem>>, %arg9: memref<512x128xbf16, #tpu.memory_space<vmem>>, %arg10: memref<1x128xf32, #tpu.memory_space<vmem>>, %arg11: memref<128x512xbf16, #tpu.memory_space<vmem>>, %arg12: memref<1x512xf32, #tpu.memory_space<vmem>>, %arg13: memref<512x512xbf16, #tpu.memory_space<vmem>>, %arg14: memref<1x512xf32, #tpu.memory_space<vmem>>, %arg15: memref<128x512xf32, #tpu.memory_space<vmem>>, %arg16: memref<128x512xf32, #tpu.memory_space<vmem>>) attributes {dimension_semantics = [#tpu.dimension_semantics<parallel>, #tpu.dimension_semantics<arbitrary>], iteration_bounds = array<i64: 1, 2>, scalar_prefetch = 0 : i64, scratch_operands = 1 : i64, tpu.core_type = #tpu.core_type<tc>, window_params = [{transform_indices = @transform_0, window_bounds = array<i64: 128, 512>}, {transform_indices = @transform_1, window_bounds = array<i64: 512, 512>}, {pipeline_mode = #tpu.pipeline_mode<synchronous>, transform_indices = @transform_2, window_bounds = array<i64: 1, 512>}, {pipeline_mode = #tpu.pipeline_mode<synchronous>, transform_indices = @transform_3, window_bounds = array<i64: 512, 512>}, {pipeline_mode = #tpu.pipeline_mode<synchronous>, transform_indices = @transform_4, window_bounds = array<i64: 1, 512>}, {pipeline_mode = #tpu.pipeline_mode<synchronous>, transform_indices = @transform_5, window_bounds = array<i64: 512, 512>}, {pipeline_mode = #tpu.pipeline_mode<synchronous>, transform_indices = @transform_6, window_bounds = array<i64: 1, 512>}, {pipeline_mode = #tpu.pipeline_mode<synchronous>, transform_indices = @transform_7, window_bounds = array<i64: 512, 128>}, {pipeline_mode = #tpu.pipeline_mode<synchronous>, transform_indices = @transform_8, window_bounds = array<i64: 1, 128>}, {pipeline_mode = #tpu.pipeline_mode<synchronous>, transform_indices = @transform_9, window_bounds = array<i64: 128, 512>}, {pipeline_mode = #tpu.pipeline_mode<synchronous>, transform_indices = @transform_10, window_bounds = array<i64: 1, 512>}, {pipeline_mode = #tpu.pipeline_mode<synchronous>, transform_indices = @transform_11, window_bounds = array<i64: 512, 512>}, {pipeline_mode = #tpu.pipeline_mode<synchronous>, transform_indices = @transform_12, window_bounds = array<i64: 1, 512>}, {transform_indices = @transform_13, window_bounds = array<i64: 128, 512>}]} {
    %c0_i32 = arith.constant 0 : i32
    %0 = arith.cmpi eq, %arg1, %c0_i32 : i32
    %1 = arith.extui %0 : i1 to i32
    %c0_i32_0 = arith.constant 0 : i32
    %2 = arith.cmpi ne, %1, %c0_i32_0 : i32
    scf.if %2 {
      %cst_9 = arith.constant 0.000000e+00 : f32
      %12 = vector.broadcast %cst_9 : f32 to vector<128x512xf32>
      %c0_10 = arith.constant 0 : index
      %c0_11 = arith.constant 0 : index
      %13 = vector.load %arg16[%c0_10, %c0_11] : memref<128x512xf32, #tpu.memory_space<vmem>>, vector<128x512xf32>
      tpu.vector_store %arg16[%c0_10, %c0_11], %12 {strides = array<i32>} : memref<128x512xf32, #tpu.memory_space<vmem>>, vector<128x512xf32>,
    } else {
    }
    %c0 = arith.constant 0 : index
    %c0_1 = arith.constant 0 : index
    %3 = vector.load %arg16[%c0, %c0_1] : memref<128x512xf32, #tpu.memory_space<vmem>>, vector<128x512xf32>
    %c0_2 = arith.constant 0 : index
    %c0_3 = arith.constant 0 : index
    %4 = vector.load %arg2[%c0_2, %c0_3] : memref<128x512xbf16, #tpu.memory_space<vmem>>, vector<128x512xbf16>
    %c0_4 = arith.constant 0 : index
    %c0_5 = arith.constant 0 : index
    %5 = vector.load %arg3[%c0_4, %c0_5] : memref<512x512xbf16, #tpu.memory_space<vmem>>, vector<512x512xbf16>
    %cst = arith.constant dense<0.000000e+00> : vector<128x512xf32>
    %6 = tpu.matmul %4, %5, %cst {dimension_numbers = #tpu.dot_dimension_numbers<[1], [0], [0], [1], [0, 0, 1, 1], [], []>} : vector<128x512xbf16>, vector<512x512xbf16>, vector<128x512xf32> -> vector<128x512xf32>
    %7 = arith.addf %3, %6 : vector<128x512xf32>
    %c0_6 = arith.constant 0 : index
    %c0_7 = arith.constant 0 : index
    %8 = vector.load %arg16[%c0_6, %c0_7] : memref<128x512xf32, #tpu.memory_space<vmem>>, vector<128x512xf32>
    tpu.vector_store %arg16[%c0_6, %c0_7], %7 {strides = array<i32>} : memref<128x512xf32, #tpu.memory_space<vmem>>, vector<128x512xf32>,
    %c1_i32 = arith.constant 1 : i32
    %9 = arith.cmpi eq, %arg1, %c1_i32 : i32
    %10 = arith.extui %9 : i1 to i32
    %c0_i32_8 = arith.constant 0 : i32
    %11 = arith.cmpi ne, %10, %c0_i32_8 : i32
    scf.if %11 {
      %c0_9 = arith.constant 0 : index
      %c0_10 = arith.constant 0 : index
      %12 = vector.load %arg16[%c0_9, %c0_10] : memref<128x512xf32, #tpu.memory_space<vmem>>, vector<128x512xf32>
      %c0_11 = arith.constant 0 : index
      %c0_12 = arith.constant 0 : index
      %13 = vector.load %arg4[%c0_11, %c0_12] : memref<1x512xf32, #tpu.memory_space<vmem>>, vector<1x512xf32>
      %14 = vector.broadcast %13 : vector<1x512xf32> to vector<128x512xf32>
      %15 = arith.addf %12, %14 : vector<128x512xf32>
      %16 = arith.truncf %15 : vector<128x512xf32> to vector<128x512xbf16>
      %c0_13 = arith.constant 0 : index
      %c0_14 = arith.constant 0 : index
      %17 = vector.load %arg5[%c0_13, %c0_14] : memref<512x512xbf16, #tpu.memory_space<vmem>>, vector<512x512xbf16>
      %cst_15 = arith.constant dense<0.000000e+00> : vector<128x512xf32>
      %18 = tpu.matmul %16, %17, %cst_15 {dimension_numbers = #tpu.dot_dimension_numbers<[1], [0], [0], [1], [0, 0, 1, 1], [], []>} : vector<128x512xbf16>, vector<512x512xbf16>, vector<128x512xf32> -> vector<128x512xf32>
      %c0_16 = arith.constant 0 : index
      %c0_17 = arith.constant 0 : index
      %19 = vector.load %arg6[%c0_16, %c0_17] : memref<1x512xf32, #tpu.memory_space<vmem>>, vector<1x512xf32>
      %20 = vector.broadcast %19 : vector<1x512xf32> to vector<128x512xf32>
      %21 = arith.addf %18, %20 : vector<128x512xf32>
      %cst_18 = arith.constant 0.000000e+00 : f32
      %22 = vector.broadcast %cst_18 : f32 to vector<128x512xf32>
      %23 = arith.maximumf %21, %22 : vector<128x512xf32>
      %24 = arith.truncf %23 : vector<128x512xf32> to vector<128x512xbf16>
      %c0_19 = arith.constant 0 : index
      %c0_20 = arith.constant 0 : index
      %25 = vector.load %arg7[%c0_19, %c0_20] : memref<512x512xbf16, #tpu.memory_space<vmem>>, vector<512x512xbf16>
      %cst_21 = arith.constant dense<0.000000e+00> : vector<128x512xf32>
      %26 = tpu.matmul %24, %25, %cst_21 {dimension_numbers = #tpu.dot_dimension_numbers<[1], [0], [0], [1], [0, 0, 1, 1], [], []>} : vector<128x512xbf16>, vector<512x512xbf16>, vector<128x512xf32> -> vector<128x512xf32>
      %c0_22 = arith.constant 0 : index
      %c0_23 = arith.constant 0 : index
      %27 = vector.load %arg8[%c0_22, %c0_23] : memref<1x512xf32, #tpu.memory_space<vmem>>, vector<1x512xf32>
      %28 = vector.broadcast %27 : vector<1x512xf32> to vector<128x512xf32>
      %29 = arith.addf %26, %28 : vector<128x512xf32>
      %cst_24 = arith.constant 0.000000e+00 : f32
      %30 = vector.broadcast %cst_24 : f32 to vector<128x512xf32>
      %31 = arith.maximumf %29, %30 : vector<128x512xf32>
      %32 = arith.truncf %31 : vector<128x512xf32> to vector<128x512xbf16>
      %c0_25 = arith.constant 0 : index
      %c0_26 = arith.constant 0 : index
      %33 = vector.load %arg9[%c0_25, %c0_26] : memref<512x128xbf16, #tpu.memory_space<vmem>>, vector<512x128xbf16>
      %cst_27 = arith.constant dense<0.000000e+00> : vector<128x128xf32>
      %34 = tpu.matmul %32, %33, %cst_27 {dimension_numbers = #tpu.dot_dimension_numbers<[1], [0], [0], [1], [0, 0, 1, 1], [], []>} : vector<128x512xbf16>, vector<512x128xbf16>, vector<128x128xf32> -> vector<128x128xf32>
      %c0_28 = arith.constant 0 : index
      %c0_29 = arith.constant 0 : index
      %35 = vector.load %arg10[%c0_28, %c0_29] : memref<1x128xf32, #tpu.memory_space<vmem>>, vector<1x128xf32>
      %36 = vector.broadcast %35 : vector<1x128xf32> to vector<128x128xf32>
      %37 = arith.addf %34, %36 : vector<128x128xf32>
      %cst_30 = arith.constant 0.000000e+00 : f32
      %38 = vector.broadcast %cst_30 : f32 to vector<128x128xf32>
      %39 = arith.maximumf %37, %38 : vector<128x128xf32>
      %40 = arith.truncf %39 : vector<128x128xf32> to vector<128x128xbf16>
      %c0_31 = arith.constant 0 : index
      %c0_32 = arith.constant 0 : index
      %41 = vector.load %arg11[%c0_31, %c0_32] : memref<128x512xbf16, #tpu.memory_space<vmem>>, vector<128x512xbf16>
      %cst_33 = arith.constant dense<0.000000e+00> : vector<128x512xf32>
      %42 = tpu.matmul %40, %41, %cst_33 {dimension_numbers = #tpu.dot_dimension_numbers<[1], [0], [0], [1], [0, 0, 1, 1], [], []>} : vector<128x128xbf16>, vector<128x512xbf16>, vector<128x512xf32> -> vector<128x512xf32>
      %c0_34 = arith.constant 0 : index
      %c0_35 = arith.constant 0 : index
      %43 = vector.load %arg12[%c0_34, %c0_35] : memref<1x512xf32, #tpu.memory_space<vmem>>, vector<1x512xf32>
      %44 = vector.broadcast %43 : vector<1x512xf32> to vector<128x512xf32>
      %45 = arith.addf %42, %44 : vector<128x512xf32>
      %46 = arith.negf %45 : vector<128x512xf32>
      %47 = math.exp %46 : vector<128x512xf32>
      %cst_36 = arith.constant 1.000000e+00 : f32
      %48 = vector.broadcast %cst_36 : f32 to vector<128x512xf32>
      %49 = arith.addf %48, %47 : vector<128x512xf32>
      %50 = arith.divf %48, %49 : vector<128x512xf32>
      %51 = arith.mulf %31, %50 : vector<128x512xf32>
      %52 = arith.truncf %51 : vector<128x512xf32> to vector<128x512xbf16>
      %c0_37 = arith.constant 0 : index
      %c0_38 = arith.constant 0 : index
      %53 = vector.load %arg13[%c0_37, %c0_38] : memref<512x512xbf16, #tpu.memory_space<vmem>>, vector<512x512xbf16>
      %cst_39 = arith.constant dense<0.000000e+00> : vector<128x512xf32>
      %54 = tpu.matmul %52, %53, %cst_39 {dimension_numbers = #tpu.dot_dimension_numbers<[1], [0], [0], [1], [0, 0, 1, 1], [], []>} : vector<128x512xbf16>, vector<512x512xbf16>, vector<128x512xf32> -> vector<128x512xf32>
      %c0_40 = arith.constant 0 : index
      %c0_41 = arith.constant 0 : index
      %55 = vector.load %arg14[%c0_40, %c0_41] : memref<1x512xf32, #tpu.memory_space<vmem>>, vector<1x512xf32>
      %56 = vector.broadcast %55 : vector<1x512xf32> to vector<128x512xf32>
      %57 = arith.addf %54, %56 : vector<128x512xf32>
      %58 = arith.mulf %57, %57 : vector<128x512xf32>
      %cst_42 = arith.constant dense<0.000000e+00> : vector<128xf32>
      %59 = vector.multi_reduction <add>, %58, %cst_42 [1] : vector<128x512xf32> to vector<128xf32>
      %60 = vector.shape_cast %59 : vector<128xf32> to vector<128x1xf32>
      %cst_43 = arith.constant 1.000000e-24 : f32
      %61 = vector.broadcast %cst_43 : f32 to vector<128x1xf32>
      %62 = arith.maximumf %60, %61 : vector<128x1xf32>
      %63 = math.rsqrt %62 : vector<128x1xf32>
      %64 = vector.broadcast %63 : vector<128x1xf32> to vector<128x512xf32>
      %65 = arith.mulf %57, %64 : vector<128x512xf32>
      %c0_44 = arith.constant 0 : index
      %c0_45 = arith.constant 0 : index
      %66 = vector.load %arg15[%c0_44, %c0_45] : memref<128x512xf32, #tpu.memory_space<vmem>>, vector<128x512xf32>
      tpu.vector_store %arg15[%c0_44, %c0_45], %65 {strides = array<i32>} : memref<128x512xf32, #tpu.memory_space<vmem>>, vector<128x512xf32>,
    } else {
    }
    return
  }
  func.func @transform_0(%arg0: i32, %arg1: i32) -> (i32, i32) {
    %c0_i32 = arith.constant 0 : i32
    return %arg0, %arg1 : i32, i32
  }
  func.func @transform_1(%arg0: i32, %arg1: i32) -> (i32, i32) {
    %c0_i32 = arith.constant 0 : i32
    %c0_i32_0 = arith.constant 0 : i32
    return %arg1, %c0_i32 : i32, i32
  }
  func.func @transform_2(%arg0: i32, %arg1: i32) -> (i32, i32) {
    %c0_i32 = arith.constant 0 : i32
    %c0_i32_0 = arith.constant 0 : i32
    %c0_i32_1 = arith.constant 0 : i32
    return %c0_i32, %c0_i32_0 : i32, i32
  }
  func.func @transform_3(%arg0: i32, %arg1: i32) -> (i32, i32) {
    %c0_i32 = arith.constant 0 : i32
    %c0_i32_0 = arith.constant 0 : i32
    %c0_i32_1 = arith.constant 0 : i32
    return %c0_i32, %c0_i32_0 : i32, i32
  }
  func.func @transform_4(%arg0: i32, %arg1: i32) -> (i32, i32) {
    %c0_i32 = arith.constant 0 : i32
    %c0_i32_0 = arith.constant 0 : i32
    %c0_i32_1 = arith.constant 0 : i32
    return %c0_i32, %c0_i32_0 : i32, i32
  }
  func.func @transform_5(%arg0: i32, %arg1: i32) -> (i32, i32) {
    %c0_i32 = arith.constant 0 : i32
    %c0_i32_0 = arith.constant 0 : i32
    %c0_i32_1 = arith.constant 0 : i32
    return %c0_i32, %c0_i32_0 : i32, i32
  }
  func.func @transform_6(%arg0: i32, %arg1: i32) -> (i32, i32) {
    %c0_i32 = arith.constant 0 : i32
    %c0_i32_0 = arith.constant 0 : i32
    %c0_i32_1 = arith.constant 0 : i32
    return %c0_i32, %c0_i32_0 : i32, i32
  }
  func.func @transform_7(%arg0: i32, %arg1: i32) -> (i32, i32) {
    %c0_i32 = arith.constant 0 : i32
    %c0_i32_0 = arith.constant 0 : i32
    %c0_i32_1 = arith.constant 0 : i32
    return %c0_i32, %c0_i32_0 : i32, i32
  }
  func.func @transform_8(%arg0: i32, %arg1: i32) -> (i32, i32) {
    %c0_i32 = arith.constant 0 : i32
    %c0_i32_0 = arith.constant 0 : i32
    %c0_i32_1 = arith.constant 0 : i32
    return %c0_i32, %c0_i32_0 : i32, i32
  }
  func.func @transform_9(%arg0: i32, %arg1: i32) -> (i32, i32) {
    %c0_i32 = arith.constant 0 : i32
    %c0_i32_0 = arith.constant 0 : i32
    %c0_i32_1 = arith.constant 0 : i32
    return %c0_i32, %c0_i32_0 : i32, i32
  }
  func.func @transform_10(%arg0: i32, %arg1: i32) -> (i32, i32) {
    %c0_i32 = arith.constant 0 : i32
    %c0_i32_0 = arith.constant 0 : i32
    %c0_i32_1 = arith.constant 0 : i32
    return %c0_i32, %c0_i32_0 : i32, i32
  }
  func.func @transform_11(%arg0: i32, %arg1: i32) -> (i32, i32) {
    %c0_i32 = arith.constant 0 : i32
    %c0_i32_0 = arith.constant 0 : i32
    %c0_i32_1 = arith.constant 0 : i32
    return %c0_i32, %c0_i32_0 : i32, i32
  }
  func.func @transform_12(%arg0: i32, %arg1: i32) -> (i32, i32) {
    %c0_i32 = arith.constant 0 : i32
    %c0_i32_0 = arith.constant 0 : i32
    %c0_i32_1 = arith.constant 0 : i32
    return %c0_i32, %c0_i32_0 : i32, i32
  }
  func.func @transform_13(%arg0: i32, %arg1: i32) -> (i32, i32) {
    %c0_i32 = arith.constant 0 : i32
    %c0_i32_0 = arith.constant 0 : i32
    return %arg0, %c0_i32 : i32, i32
  }
}

</mosaic_0001>

<bundles_post_ra>
// kernel: tpu_custom_call.1
= control target key start
LH: loop header
LB: loop body
LE: loop exit
PB: predicated region body
PF: predicated region fallthrough
CT: control target
= control target key end

     0   :  { %s13263_s0 = inlined_call_operand.hbm [shape: bf16[128,1024], index: 0, kind: input, shape index: {}]   ;;  %s13264_s1 = inlined_call_operand.hbm [shape: bf16[1024,512], index: 1, kind: input, shape index: {}]   ;;  %s13265_s2 = inlined_call_operand.vmem [shape: f32[1,512], index: 2, kind: input, shape index: {}]   ;;  %s13266_s3 = inlined_call_operand.hbm [shape: bf16[512,512], index: 3, kind: input, shape index: {}]   ;;  %s13267_s4 = inlined_call_operand.vmem [shape: f32[1,512], index: 4, kind: input, shape index: {}]   ;;  %s13268_s5 = inlined_call_operand.hbm [shape: bf16[512,512], index: 5, kind: input, shape index: {}]   ;;  %s13269_s6 = inlined_call_operand.vmem [shape: f32[1,512], index: 6, kind: input, shape index: {}]   ;;  %s13270_s7 = inlined_call_operand.hbm [shape: bf16[512,128], index: 7, kind: input, shape index: {}]   ;;  %s13271_s8 = inlined_call_operand.vmem [shape: f32[1,128], index: 8, kind: input, shape index: {}]   ;;  %s13272_s9 = inlined_call_operand.hbm [shape: bf16[128,512], index: 9, kind: input, shape index: {}]   ;;  %s13273_s10 = inlined_call_operand.vmem [shape: f32[1,512], index: 10, kind: input, shape index: {}]   ;;  %s13274_s11 = inlined_call_operand.hbm [shape: bf16[512,512], index: 11, kind: input, shape index: {}]   ;;  %s13275_s12 = inlined_call_operand.vmem [shape: f32[1,512], index: 12, kind: input, shape index: {}]   ;;  %s13276_s13 = inlined_call_operand.hbm [shape: f32[128,512], index: 13, kind: output, shape index: {}]  }
   0x1   :  { %13417 = sst [smem:[#allocation81_spill]] %s13263_s0 }
   0x2   :  { %13418 = sst [smem:[#allocation82_spill]] %s13265_s2 }
   0x3   :  { %13419 = sst [smem:[#allocation83_spill]] %s13266_s3 }
   0x4   :  { %13420 = sst [smem:[#allocation84_spill]] %s13267_s4 }
   0x5   :  { %13421 = sst [smem:[#allocation85_spill]] %s13268_s5 }
   0x6   :  { %13422 = sst [smem:[#allocation86_spill]] %s13269_s6 }
   0x7   :  { %13423 = sst [smem:[#allocation87_spill]] %s13270_s7 }
   0x8   :  { %13424 = sst [smem:[#allocation88_spill]] %s13271_s8 }
   0x9   :  { %13425 = sst [smem:[#allocation89_spill]] %s13273_s10 }
   0xa   :  { %13426 = sst [smem:[#allocation90_spill]] %s13275_s12 }
   0xb   :  { %13427 = sst [smem:[#allocation91_spill]] %s13276_s13 }
   0xc   :  { %18 = vsyncpa [#allocation4], 0 }
   0xd   :  { %20 = vsyncpa [#allocation4 + $0x1], 0 }
   0xe   :  { %21 = vsyncpa [#allocation7], 0 }
   0xf   :  { %23 = vsyncpa [#allocation7 + $0x1], 0 }
  0x10   :  { %24 = vsyncpa [#allocation10], 0 }
  0x11   :  { %25 = vsyncpa [#allocation13], 0 }
  0x12   :  { %26 = vsyncpa [#allocation5], 0  ;;  %s11192_s25 = smov 0   ;;  %s11194_s26 = smov 0  }
  0x13   :  { %s11196_s27 = smov 0   ;;  %s11198_s28 = smov 0  }
  0x14   :  { %s11200_s29 = smov 0   ;;  %s11202_s30 = smov 0  }
  0x15 LB: > { %s11221_s14 = sadd.s32 4294967295, %s11103_s30   ;;  %p66_p0 = scmp.ne.s32.totalorder %s11087_s26, %s11083_s25  ;;  %s11103_s30 = sphi %s11202_s30, %s32_s30   ;;  %s11099_s29 = sphi %s11200_s29, %s13682_s29   ;;  %s11095_s28 = sphi %s11198_s28, %s13681_s28   ;;  %s11091_s27 = sphi %s11196_s27, %s13680_s27   ;;  %s11087_s26 = sphi %s11194_s26, %s13679_s26   ;;  %s11083_s25 = sphi %s11192_s25, %s13678_s25  }
  0x16   : > { %p13278_p1 = scmp.eq.s32.totalorder %s11221_s14, 0  ;;  %p8216_p2 = scmp.ge.s32.totalorder %s11103_s30, 1 }
  0x17   : > { %p360_p3 = scmp.lt.s32.totalorder %s11103_s30, 3  ;;  %s11105_s17 = smov [#allocation8]  }
  0x18   : > { %p11229_p4 = por %p13278_p1, %p66_p0  ;;  %s375_s18 = sshll.u32 %s11105_s17, 4  ;;  %s11237_s18 = int_to_ptr.vmem [resolvable:$true] %s375_s18 }
  0x19   : > { %p11233_p5 = pnand %p8216_p2, %p360_p3  ;;  %s11106_s20 = smov [#allocation9]  }
  0x1a   : > { %s13428_s15 = scalar_select %p11229_p4, 1, 0 }
  0x1b   : > { %s13429_s16 = scalar_select %p11233_p5, 1, 0 }
  0x1c   : > { %p9524_p6 = pneg %p11233_p5  ;;  %s391_s21 = sshll.u32 %s11106_s20, 4  ;;  %s11247_s21 = int_to_ptr.vmem [resolvable:$true] %s391_s21 }
  0x1d   : > { %s11107_s22 = smov [#allocation12]   ;;  %s13431_s3 = sld [smem:[#allocation83_spill]] }
  0x1e   : > { %p11243_p7 = pnand %p9524_p6, %p13278_p1  ;;  %s11249_s23 = sshll.u32 %s11107_s22, 4  ;;  %s424_s23 = int_to_ptr.vmem [resolvable:$true] %s11249_s23 }
  0x20   : > { %p11259_p9 = pneg %p11243_p7 }
  0x23   : > { %s10807_s17 = scalar_lea.hbm %s13431_s3, 16384 }
  0x24   : > { %p10808_p8 = scmp.ne.s32.totalorder %s13431_s3, %s10807_s17  ;;  %p10814_p12 = scmp.lt.u32.totalorder %s10807_s17, %s13431_s3 }
  0x26   : > { %p10810_p10 = pnand %p11259_p9, %p10808_p8 }
  0x28   : > { %p10811_p11 = pneg %p10810_p10 }
  0x2a   : > { %p10816_p13 = pnand %p10814_p12, %p10811_p11 }
  0x2c   : > { %10819 = shalt.err (!%p10816_p13)
}
  0x2d   : > { %s10820_s12 = scalar_lea.vmem %s11237_s18, 16384  ;;  %p10828_p6 = scmp.lt.s32.totalorder %s11237_s18, %s11237_s18 }
  0x2e   : > { %p10821_p0 = scmp.ne.s32.totalorder %s11237_s18, %s10820_s12  ;;  %p10829_p1 = scmp.lt.s32.totalorder %s10820_s12, %s10820_s12 }
  0x30   : > { %p10823_p2 = pnand %p10821_p0, %p11259_p9  ;;  %p10830_p8 = por %p10829_p1, %p10828_p6 }
  0x32   : > { %p10824_p3 = pneg %p10823_p2 }
  0x34   : > { %p10831_p10 = pnand %p10830_p8, %p10824_p3 }
  0x36   : > { %10834 = shalt.err (!%p10831_p10)
}
  0x37   : > { %s13281_s13 = smov 256   ;;  %s13283_s24 = smov 16  }
  0x38   : > { %9527 = dma.hbm_to_vmem [thread:$0]  (!%p11243_p7), %s13431_s3, 16384, %s11237_s18, [#allocation7], %s13281_s13, %s13281_s13, %s13283_s24  }
  0x39   : > { %s13433_s5 = sld [smem:[#allocation85_spill]] }
  0x3f   : > { %s10835_s12 = scalar_lea.hbm %s13433_s5, 16384 }
  0x40   : > { %p10836_p1 = scmp.ne.s32.totalorder %s13433_s5, %s10835_s12  ;;  %p10842_p13 = scmp.lt.u32.totalorder %s10835_s12, %s13433_s5 }
  0x42   : > { %p10838_p11 = pnand %p10836_p1, %p11259_p9 }
  0x44   : > { %p10839_p12 = pneg %p10838_p11 }
  0x46   : > { %p10844_p0 = pnand %p10842_p13, %p10839_p12 }
  0x48   : > { %10847 = shalt.err (!%p10844_p0)
}
  0x49   : > { %s10848_s18 = scalar_lea.vmem %s11247_s21, 16384  ;;  %p10856_p8 = scmp.lt.s32.totalorder %s11247_s21, %s11247_s21 }
  0x4a   : > { %p10849_p2 = scmp.ne.s32.totalorder %s11247_s21, %s10848_s18  ;;  %p10857_p10 = scmp.lt.s32.totalorder %s10848_s18, %s10848_s18 }
  0x4c   : > { %p10851_p3 = pnand %p10849_p2, %p11259_p9  ;;  %p10858_p1 = por %p10857_p10, %p10856_p8 }
  0x4e   : > { %p10852_p6 = pneg %p10851_p3 }
  0x50   : > { %p10859_p11 = pnand %p10858_p1, %p10852_p6 }
  0x52   : > { %10862 = shalt.err (!%p10859_p11)
}
  0x53   : > { %9530 = dma.hbm_to_vmem [thread:$0]  (!%p11243_p7), %s13433_s5, 16384, %s11247_s21, [#allocation10], %s13281_s13, %s13281_s13, %s13283_s24  }
  0x54   : > { %s10863_s25 = scalar_lea.hbm %s13272_s9, 4096 }
  0x55   : > { %p10864_p12 = scmp.ne.s32.totalorder %s13272_s9, %s10863_s25  ;;  %p10870_p2 = scmp.lt.u32.totalorder %s10863_s25, %s13272_s9 }
  0x57   : > { %p10866_p13 = pnand %p10864_p12, %p11259_p9 }
  0x59   : > { %p10867_p0 = pneg %p10866_p13 }
  0x5b   : > { %p10872_p3 = pnand %p10870_p2, %p10867_p0 }
  0x5d   : > { %10875 = shalt.err (!%p10872_p3)
}
  0x5e   : > { %s10876_s18 = scalar_lea.vmem %s424_s23, 4096  ;;  %p10884_p1 = scmp.lt.s32.totalorder %s424_s23, %s424_s23 }
  0x5f   : > { %p10877_p6 = scmp.ne.s32.totalorder %s424_s23, %s10876_s18  ;;  %p10885_p11 = scmp.lt.s32.totalorder %s10876_s18, %s10876_s18 }
  0x61   : > { %p10879_p8 = pnand %p10877_p6, %p11259_p9  ;;  %p10886_p4 = por %p10885_p11, %p10884_p1 }
  0x63   : > { %p10880_p10 = pneg %p10879_p8 }
  0x65   : > { %p10887_p5 = pnand %p10886_p4, %p10880_p10 }
  0x67   : > { %10890 = shalt.err (!%p10887_p5)
}
  0x68   : > { %9536 = dma.hbm_to_vmem [thread:$0]  (!%p11243_p7), %s13272_s9, 4096, %s424_s23, [#allocation13], %s13281_s13, %s13281_s13, %s13283_s24  }
  0x69   : > { %s11110_s4 = smov [#allocation11]   ;;  %s13434_s7 = sld [smem:[#allocation87_spill]] }
  0x6a   : > { %s407_s6 = sshll.u32 %s11110_s4, 4  ;;  %s408_s6 = int_to_ptr.vmem [resolvable:$true] %s407_s6 }
  0x6f   : > { %s10891_s17 = scalar_lea.hbm %s13434_s7, 4096 }
  0x70   : > { %p10892_p4 = scmp.ne.s32.totalorder %s13434_s7, %s10891_s17  ;;  %p10898_p13 = scmp.lt.u32.totalorder %s10891_s17, %s13434_s7 }
  0x72   : > { %p10894_p5 = pnand %p10892_p4, %p11259_p9 }
  0x74   : > { %p10895_p12 = pneg %p10894_p5 }
  0x76   : > { %p10900_p0 = pnand %p10898_p13, %p10895_p12 }
  0x78   : > { %10903 = shalt.err (!%p10900_p0)
}
  0x79   : > { %s10904_s23 = scalar_lea.vmem %s408_s6, 4096  ;;  %p10912_p8 = scmp.lt.s32.totalorder %s408_s6, %s408_s6 }
  0x7a   : > { %p10905_p2 = scmp.ne.s32.totalorder %s408_s6, %s10904_s23  ;;  %p10913_p10 = scmp.lt.s32.totalorder %s10904_s23, %s10904_s23 }
  0x7c   : > { %p10907_p3 = pnand %p10905_p2, %p11259_p9  ;;  %p10914_p1 = por %p10913_p10, %p10912_p8 }
  0x7e   : > { %p10908_p6 = pneg %p10907_p3 }
  0x80   : > { %p10915_p11 = pnand %p10914_p1, %p10908_p6 }
  0x82   : > { %10918 = shalt.err (!%p10915_p11)
}
  0x83   : > { %s11111_s21 = smov 64   ;;  %s11112_s2 = smov 4  }
  0x84   : > { %9533 = dma.hbm_to_vmem [thread:$0]  (!%p11243_p7), %s13434_s7, 4096, %s408_s6, [#allocation10], %s11111_s21, %s11111_s21, %s11112_s2  }
  0x85   : > { %s11113_s25 = smov [#allocation14]   ;;  %s10919_s12 = scalar_lea.hbm %s13274_s11, 16384 }
  0x86   : > { %s439_s17 = sshll.u32 %s11113_s25, 4  ;;  %p10920_p4 = scmp.ne.s32.totalorder %s13274_s11, %s10919_s12  ;;  %s440_s17 = int_to_ptr.vmem [resolvable:$true] %s439_s17 }
  0x87   : > { %p10926_p13 = scmp.lt.u32.totalorder %s10919_s12, %s13274_s11 }
  0x88   : > { %p10922_p5 = pnand %p10920_p4, %p11259_p9 }
  0x8a   : > { %p10923_p12 = pneg %p10922_p5 }
  0x8c   : > { %p10928_p0 = pnand %p10926_p13, %p10923_p12 }
  0x8e   : > { %10931 = shalt.err (!%p10928_p0)
}
  0x8f   : > { %s10932_s6 = scalar_lea.vmem %s440_s17, 16384  ;;  %p10940_p8 = scmp.lt.s32.totalorder %s440_s17, %s440_s17 }
  0x90   : > { %p10933_p2 = scmp.ne.s32.totalorder %s440_s17, %s10932_s6  ;;  %p10941_p10 = scmp.lt.s32.totalorder %s10932_s6, %s10932_s6 }
  0x92   : > { %p10935_p3 = pnand %p10933_p2, %p11259_p9  ;;  %p10942_p1 = por %p10941_p10, %p10940_p8 }
  0x94   : > { %p10936_p6 = pneg %p10935_p3 }
  0x96   : > { %p10943_p11 = pnand %p10942_p1, %p10936_p6 }
  0x98   : > { %10946 = shalt.err (!%p10943_p11)
}
  0x99   : > { %s13435_s21 = smov 16   ;;  %s13436_s2 = smov 256  }
  0x9a   : > { %9539 = dma.hbm_to_vmem [thread:$0]  (!%p11243_p7), %s13274_s11, 16384, %s440_s17, [#allocation13], %s13436_s2, %s13436_s2, %s13435_s21  }
  0x9b   : > { %s41_s10 = sadd.s32 1, %s11099_s29  ;;  %s53_s19 = sadd.s32 1, %s11091_s27 }
  0x9c   : > { %p42_p9 = scmp.ge.s32.totalorder %s41_s10, 2  ;;  %p60_p4 = scmp.ne.s32.totalorder %s11091_s27, %s11087_s26 }
  0x9d   : > { %p61_p5 = scmp.eq.s32.totalorder %s11103_s30, 0  ;;  %p9552_p13 = scmp.lt.s32.totalorder %s11103_s30, 2 }
  0x9e   : > { %s13684_s10 = smov (%p42_p9, %s41_s10), 0  ;;  %s11381_s8 = sand.u32 1, %s11091_s27  }
  0x9f   : > { %p62_p12 = por %p61_p5, %p60_p4  ;;  %s49_s4 = ssub.s32 %s11099_s29, %s13684_s10 }
  0xa0   : > { %p51_p0 = scmp.eq.s32.totalorder %s49_s4, 0  ;;  %s8223_s25 = sshll.u32 %s11381_s8, 8 }
  0xa1   : > { %s8917_s20 = sshll.u32 %s11099_s29, 8  ;;  %s13437_s0 = sld [smem:[#allocation81_spill]] }
  0xa2   : > { %s11386_s17 = scalar_select %p51_p0, %s11091_s27, %s53_s19  }
  0xa3   : > { %s460_s23 = scalar_lea.vmem [#allocation3], %s8223_s25  ;;  %p11393_p7 = pnand %p9552_p13, %p62_p12 }
  0xa4   : > { %s470_s6 = sshll.u32 %s460_s23, 4  ;;  %s457_s19 = scalar_lea.sflag [#allocation4], %s11381_s8  ;;  %s11397_s6 = int_to_ptr.vmem [resolvable:$true] %s470_s6 }
  0xa5   : > { %p10949_p3 = pneg %p11393_p7 }
  0xa7   : > { %s11391_s18 = scalar_lea.hbm %s13437_s0, %s8917_s20  ;;  %s10952_s22 = scalar_lea.hbm %s13437_s0, 8192 }
  0xa8   : > { %s10947_s4 = scalar_lea.hbm %s11391_s18, 4096  ;;  %p10953_p10 = scmp.lt.u32.totalorder %s11391_s18, %s13437_s0 }
  0xa9   : > { %p10948_p2 = scmp.ne.s32.totalorder %s11391_s18, %s10947_s4  ;;  %p10954_p1 = scmp.lt.u32.totalorder %s10952_s22, %s10947_s4 }
  0xaa   : > { %p10956_p9 = scmp.lt.u32.totalorder %s10947_s4, %s11391_s18 }
  0xab   : > { %p10950_p6 = pnand %p10949_p3, %p10948_p2  ;;  %p10955_p11 = por %p10954_p1, %p10953_p10 }
  0xad   : > { %p10951_p8 = pneg %p10950_p6  ;;  %p10957_p4 = por %p10956_p9, %p10955_p11 }
  0xaf   : > { %p10958_p5 = pnand %p10957_p4, %p10951_p8 }
  0xb1   : > { %10961 = shalt.err (!%p10958_p5)
}
  0xb2   : > { %s10962_s24 = scalar_lea.vmem %s11397_s6, 4096  ;;  %s11114_s25 = smov [#allocation3]  }
  0xb3   : > { %p10963_p12 = scmp.ne.s32.totalorder %s11397_s6, %s10962_s24  ;;  %s10967_s20 = sshll.u32 %s11114_s25, 4  ;;  %s10968_s20 = int_to_ptr.vmem [resolvable:$false] %s10967_s20 }
  0xb4   : > { %s10969_s12 = scalar_lea.vmem %s10968_s20, 8192  ;;  %p10970_p2 = scmp.lt.s32.totalorder %s11397_s6, %s10968_s20 }
  0xb5   : > { %p10965_p13 = pnand %p10963_p12, %p10949_p3  ;;  %p10971_p6 = scmp.lt.s32.totalorder %s10969_s12, %s10962_s24 }
  0xb7   : > { %p10966_p0 = pneg %p10965_p13  ;;  %p10972_p10 = por %p10971_p6, %p10970_p2 }
  0xb9   : > { %p10973_p1 = pnand %p10972_p10, %p10966_p0 }
  0xbb   : > { %10976 = shalt.err (!%p10973_p1)
}
  0xbc   : > { %s11115_s4 = smov 512   ;;  %s8226_s22 = sshll.u32 %s11381_s8, 10 }
  0xbd   : > { %9543 = dma.hbm_to_vmem [thread:$0]  (!%p11393_p7), %s11391_s18, 4096, %s11397_s6, %s457_s19, %s11115_s4, %s13436_s2, %s13435_s21  }
  0xbe   : > { %s8919_s23 = sshll.u32 %s11099_s29, 14  ;;  %s484_s12 = scalar_lea.vmem [#allocation6], %s8226_s22 }
  0xbf   : > { %s11435_s20 = scalar_lea.hbm %s13264_s1, %s8919_s23  ;;  %s492_s0 = sshll.u32 %s484_s12, 4  ;;  %s11437_s0 = int_to_ptr.vmem [resolvable:$true] %s492_s0 }
  0xc0   : > { %s13439_s3 = sand.u32 1, %s11103_s30   ;;  %s10977_s7 = scalar_lea.hbm %s11435_s20, 16384 }
  0xc1   : > { %s11441_s5 = scalar_lea.sflag [#allocation7], %s13439_s3  ;;  %p10978_p8 = scmp.ne.s32.totalorder %s11435_s20, %s10977_s7 }
  0xc2   : > { %s10982_s6 = scalar_lea.hbm %s13264_s1, 32768  ;;  %p10983_p4 = scmp.lt.u32.totalorder %s11435_s20, %s13264_s1 }
  0xc3   : > { %p10980_p11 = pnand %p10978_p8, %p10949_p3  ;;  %p10984_p5 = scmp.lt.u32.totalorder %s10982_s6, %s10977_s7 }
  0xc4   : > { %p10986_p13 = scmp.lt.u32.totalorder %s10977_s7, %s11435_s20 }
  0xc5   : > { %p10981_p9 = pneg %p10980_p11  ;;  %p10985_p12 = por %p10984_p5, %p10983_p4 }
  0xc7   : > { %p10987_p0 = por %p10986_p13, %p10985_p12 }
  0xc9   : > { %p10988_p2 = pnand %p10987_p0, %p10981_p9 }
  0xcb   : > { %10991 = shalt.err (!%p10988_p2)
}
  0xcc   : > { %s10992_s3 = scalar_lea.vmem %s11437_s0, 16384  ;;  %s11116_s22 = smov [#allocation6]  }
  0xcd   : > { %p10993_p6 = scmp.ne.s32.totalorder %s11437_s0, %s10992_s3  ;;  %s10997_s23 = sshll.u32 %s11116_s22, 4  ;;  %s10998_s23 = int_to_ptr.vmem [resolvable:$false] %s10997_s23 }
  0xce   : > { %s10999_s24 = scalar_lea.vmem %s10998_s23, 32768  ;;  %p11000_p8 = scmp.lt.s32.totalorder %s11437_s0, %s10998_s23 }
  0xcf   : > { %p10995_p10 = pnand %p10993_p6, %p10949_p3  ;;  %p11001_p11 = scmp.lt.s32.totalorder %s10999_s24, %s10992_s3 }
  0xd1   : > { %p10996_p1 = pneg %p10995_p10  ;;  %p11002_p4 = por %p11001_p11, %p11000_p8 }
  0xd3   : > { %p11003_p5 = pnand %p11002_p4, %p10996_p1 }
  0xd5   : > { %11006 = shalt.err (!%p11003_p5)
}
  0xd6   : > { %9546 = dma.hbm_to_vmem [thread:$0]  (!%p11393_p7), %s11435_s20, 16384, %s11437_s0, %s11441_s5, %s13436_s2, %s13436_s2, %s13435_s21  }
  0xd7   : > { %p13440_p3 = scmp.ne.s32.totalorder %s13429_s16, 0 }
  0xd8   : > { %s506_s7 = sand.u32 (!%p13440_p3), 1, %s11087_s26   ;;  %p13441_p9 = scmp.ne.s32.totalorder (!%p13440_p3), %s13428_s15, 0 }
  0xd9   : > { %504 = sbr.rel (%p13440_p3) target bundleno = 2381 (0x94d), region = 72  ;;  %s8231_s25 = sshll.u32 (!%p13440_p3), %s506_s7, 8 }
  0xda   : > { %s507_s12 = scalar_lea.sflag (!%p13440_p3), [#allocation4], %s506_s7  ;;  %s11473_s8 = scalar_lea.vmem (!%p13440_p3), [#allocation3], %s8231_s25 }
  0xe0   : > { %11058 = dma.done.wait (%p13441_p9), %s507_s12, 4096  }
  0xe1   : > { %11060 = vsyncadd (%p13441_p9), %s507_s12, 4294963200  ;;  %s515_s13 = sand.u32 1, %s11221_s14   ;;  %s8232_s18 = sshll.u32 %s506_s7, 10 }
  0xe2   : > { %s516_s0 = scalar_lea.sflag [#allocation7], %s515_s13  ;;  %s11480_s5 = scalar_lea.vmem [#allocation6], %s8232_s18 }
  0xe3   : > { %11062 = dma.done.wait (%p13441_p9), %s516_s0, 16384  }
  0xe4   : > { %11064 = vsyncadd (%p13441_p9), %s516_s0, 4294950912  ;;  %p13442_p7 = scmp.eq.s32.totalorder %s11221_s14, 0 }
  0xe6   : > { %11066 = dma.done.wait (%p13442_p7), [#allocation7], 16384   ;;  %p13443_p12 = pmov %p13442_p7 }
  0xe7   : > { %p13444_p13 = pmov %p13442_p7 }
  0xe8   : > { %11068 = vsyncadd (%p13443_p12), [#allocation7], 4294950912 }
  0xe9   : > { %11070 = dma.done.wait (%p13444_p13), [#allocation10], 20480   ;;  %p13445_p0 = pmov %p13442_p7 }
  0xeb   : > { %11072 = vsyncadd (%p13445_p0), [#allocation10], 4294946816  ;;  %p13446_p2 = pmov %p13445_p0 }
  0xec   : > { %p13447_p6 = pmov %p13445_p0 }
  0xed   : > { %11074 = dma.done.wait (%p13446_p2), [#allocation13], 20480  }
  0xee   : > { %11076 = vsyncadd (%p13447_p6), [#allocation13], 4294946816  ;;  %p8238_p10 = scmp.ne.s32.totalorder %s11095_s28, 0 }
  0xef   : > { %v11117_v0 = vmov (!%p8238_p10), 0.0  }
  0xf0   : > { %590 = sbr.rel (%p8238_p10) target bundleno = 272 (0x110), region = 104  ;;  %591 = vst [vmem:[#allocation2] sm:$0xff] (!%p8238_p10), %v11117_v0  ;;  %592 = vst [vmem:[#allocation2 + $0x8] sm:$0xff] (!%p8238_p10), %v11117_v0 }
  0xf1   : > { %593 = vst [vmem:[#allocation2 + $0x10] sm:$0xff] (!%p8238_p10), %v11117_v0  ;;  %594 = vst [vmem:[#allocation2 + $0x18] sm:$0xff] (!%p8238_p10), %v11117_v0 }
  0xf2   : > { %595 = vst [vmem:[#allocation2 + $0x20] sm:$0xff] (!%p8238_p10), %v11117_v0  ;;  %596 = vst [vmem:[#allocation2 + $0x28] sm:$0xff] (!%p8238_p10), %v11117_v0 }
  0xf3   : > { %597 = vst [vmem:[#allocation2 + $0x30] sm:$0xff] (!%p8238_p10), %v11117_v0  ;;  %598 = vst [vmem:[#allocation2 + $0x38] sm:$0xff] (!%p8238_p10), %v11117_v0 }
  0xf4   : > { %599 = vst [vmem:[#allocation2 + $0x40] sm:$0xff] (!%p8238_p10), %v11117_v0  ;;  %600 = vst [vmem:[#allocation2 + $0x48] sm:$0xff] (!%p8238_p10), %v11117_v0 }
  0xf5   : > { %601 = vst [vmem:[#allocation2 + $0x50] sm:$0xff] (!%p8238_p10), %v11117_v0  ;;  %602 = vst [vmem:[#allocation2 + $0x58] sm:$0xff] (!%p8238_p10), %v11117_v0 }
  0xf6   : > { %603 = vst [vmem:[#allocation2 + $0x60] sm:$0xff] (!%p8238_p10), %v11117_v0  ;;  %604 = vst [vmem:[#allocation2 + $0x68] sm:$0xff] (!%p8238_p10), %v11117_v0 }
  0xf7   : > { %605 = vst [vmem:[#allocation2 + $0x70] sm:$0xff] %v11117_v0  ;;  %606 = vst [vmem:[#allocation2 + $0x78] sm:$0xff] %v11117_v0 }
  0xf8   : > { %607 = vst [vmem:[#allocation2 + $0x80] sm:$0xff] %v11117_v0  ;;  %608 = vst [vmem:[#allocation2 + $0x88] sm:$0xff] %v11117_v0 }
  0xf9   : > { %609 = vst [vmem:[#allocation2 + $0x90] sm:$0xff] %v11117_v0  ;;  %610 = vst [vmem:[#allocation2 + $0x98] sm:$0xff] %v11117_v0 }
  0xfa   : > { %611 = vst [vmem:[#allocation2 + $0xa0] sm:$0xff] %v11117_v0  ;;  %612 = vst [vmem:[#allocation2 + $0xa8] sm:$0xff] %v11117_v0 }
  0xfb   : > { %613 = vst [vmem:[#allocation2 + $0xb0] sm:$0xff] %v11117_v0  ;;  %614 = vst [vmem:[#allocation2 + $0xb8] sm:$0xff] %v11117_v0 }
  0xfc   : > { %615 = vst [vmem:[#allocation2 + $0xc0] sm:$0xff] %v11117_v0  ;;  %616 = vst [vmem:[#allocation2 + $0xc8] sm:$0xff] %v11117_v0 }
  0xfd   : > { %617 = vst [vmem:[#allocation2 + $0xd0] sm:$0xff] %v11117_v0  ;;  %618 = vst [vmem:[#allocation2 + $0xd8] sm:$0xff] %v11117_v0 }
  0xfe   : > { %619 = vst [vmem:[#allocation2 + $0xe0] sm:$0xff] %v11117_v0  ;;  %620 = vst [vmem:[#allocation2 + $0xe8] sm:$0xff] %v11117_v0 }
  0xff   : > { %621 = vst [vmem:[#allocation2 + $0xf0] sm:$0xff] %v11117_v0  ;;  %622 = vst [vmem:[#allocation2 + $0xf8] sm:$0xff] %v11117_v0 }
 0x100   : > { %623 = vst [vmem:[#allocation2 + $0x100] sm:$0xff] %v11117_v0  ;;  %624 = vst [vmem:[#allocation2 + $0x108] sm:$0xff] %v11117_v0 }
 0x101   : > { %625 = vst [vmem:[#allocation2 + $0x110] sm:$0xff] %v11117_v0  ;;  %626 = vst [vmem:[#allocation2 + $0x118] sm:$0xff] %v11117_v0 }
 0x102   : > { %627 = vst [vmem:[#allocation2 + $0x120] sm:$0xff] %v11117_v0  ;;  %628 = vst [vmem:[#allocation2 + $0x128] sm:$0xff] %v11117_v0 }
 0x103   : > { %629 = vst [vmem:[#allocation2 + $0x130] sm:$0xff] %v11117_v0  ;;  %630 = vst [vmem:[#allocation2 + $0x138] sm:$0xff] %v11117_v0 }
 0x104   : > { %631 = vst [vmem:[#allocation2 + $0x140] sm:$0xff] %v11117_v0  ;;  %632 = vst [vmem:[#allocation2 + $0x148] sm:$0xff] %v11117_v0 }
 0x105   : > { %633 = vst [vmem:[#allocation2 + $0x150] sm:$0xff] %v11117_v0  ;;  %634 = vst [vmem:[#allocation2 + $0x158] sm:$0xff] %v11117_v0 }
 0x106   : > { %635 = vst [vmem:[#allocation2 + $0x160] sm:$0xff] %v11117_v0  ;;  %636 = vst [vmem:[#allocation2 + $0x168] sm:$0xff] %v11117_v0 }
 0x107   : > { %637 = vst [vmem:[#allocation2 + $0x170] sm:$0xff] %v11117_v0  ;;  %638 = vst [vmem:[#allocation2 + $0x178] sm:$0xff] %v11117_v0 }
 0x108   : > { %639 = vst [vmem:[#allocation2 + $0x180] sm:$0xff] %v11117_v0  ;;  %640 = vst [vmem:[#allocation2 + $0x188] sm:$0xff] %v11117_v0 }
 0x109   : > { %641 = vst [vmem:[#allocation2 + $0x190] sm:$0xff] %v11117_v0  ;;  %642 = vst [vmem:[#allocation2 + $0x198] sm:$0xff] %v11117_v0 }
 0x10a   : > { %643 = vst [vmem:[#allocation2 + $0x1a0] sm:$0xff] %v11117_v0  ;;  %644 = vst [vmem:[#allocation2 + $0x1a8] sm:$0xff] %v11117_v0 }
 0x10b   : > { %645 = vst [vmem:[#allocation2 + $0x1b0] sm:$0xff] %v11117_v0  ;;  %646 = vst [vmem:[#allocation2 + $0x1b8] sm:$0xff] %v11117_v0 }
 0x10c   : > { %647 = vst [vmem:[#allocation2 + $0x1c0] sm:$0xff] %v11117_v0  ;;  %648 = vst [vmem:[#allocation2 + $0x1c8] sm:$0xff] %v11117_v0 }
 0x10d   : > { %649 = vst [vmem:[#allocation2 + $0x1d0] sm:$0xff] %v11117_v0  ;;  %650 = vst [vmem:[#allocation2 + $0x1d8] sm:$0xff] %v11117_v0 }
 0x10e   : > { %651 = vst [vmem:[#allocation2 + $0x1e0] sm:$0xff] %v11117_v0  ;;  %652 = vst [vmem:[#allocation2 + $0x1e8] sm:$0xff] %v11117_v0 }
 0x10f   : > { %653 = vst [vmem:[#allocation2 + $0x1f0] sm:$0xff] %v11117_v0  ;;  %654 = vst [vmem:[#allocation2 + $0x1f8] sm:$0xff] %v11117_v0 }
 0x110 PF: > { %v9623_v1 = vld [vmem:[%s11480_s5 + $0x4] ss:$16 sps:$4 sm:$0xff]   ;;  %v9625_v2 = vld [vmem:[%s11480_s5 + $0xc] ss:$16 sps:$4 sm:$0xff]   ;;  %v9627_v3 = vld [vmem:[%s11480_s5] ss:$16 sps:$4 sm:$0xff]  }
 0x111   : > { %1679 = vmatprep.subr.bf16.mxu0 %v9623_v1  ;;  %v9628_v4 = vld [vmem:[%s11480_s5 + $0x8] ss:$16 sps:$4 sm:$0xff]   ;;  %1905 = vmatprep.subr.bf16.mxu1 %v9625_v2  ;;  %v9629_v5 = vld [vmem:[%s11480_s5 + $0x24] ss:$16 sps:$4 sm:$0xff]   ;;  %v9631_v6 = vld [vmem:[%s11480_s5 + $0x2c] ss:$16 sps:$4 sm:$0xff]  }
 0x112   : > { %1680 = vmatpush1.bf16.msra.mxu0 %v9627_v3  ;;  %1906 = vmatpush1.bf16.msra.mxu1 %v9628_v4  ;;  %v9633_v7 = vld [vmem:[%s11480_s5 + $0x20] ss:$16 sps:$4 sm:$0xff]   ;;  %v9634_v8 = vld [vmem:[%s11480_s5 + $0x28] ss:$16 sps:$4 sm:$0xff]   ;;  %v9635_v9 = vld [vmem:[%s11480_s5 + $0x44] ss:$16 sps:$4 sm:$0xff]  }
 0x113   : > { %1681 = vmatprep.subr.bf16.mxu0 %v9629_v5  ;;  %1907 = vmatprep.subr.bf16.mxu1 %v9631_v6  ;;  %v9637_v10 = vld [vmem:[%s11480_s5 + $0x4c] ss:$16 sps:$4 sm:$0xff]   ;;  %v9639_v11 = vld [vmem:[%s11480_s5 + $0x40] ss:$16 sps:$4 sm:$0xff]   ;;  %v9640_v12 = vld [vmem:[%s11480_s5 + $0x48] ss:$16 sps:$4 sm:$0xff]  }
 0x114   : > { %v9641_v13 = vld [vmem:[%s11480_s5 + $0x64] ss:$16 sps:$4 sm:$0xff]   ;;  %v9643_v14 = vld [vmem:[%s11480_s5 + $0x6c] ss:$16 sps:$4 sm:$0xff]   ;;  %v9645_v15 = vld [vmem:[%s11480_s5 + $0x60] ss:$16 sps:$4 sm:$0xff]  }
 0x115   : > { %v9646_v16 = vld [vmem:[%s11480_s5 + $0x68] ss:$16 sps:$4 sm:$0xff]   ;;  %v9647_v17 = vld [vmem:[%s11480_s5 + $0x84] ss:$16 sps:$4 sm:$0xff]   ;;  %v9649_v18 = vld [vmem:[%s11480_s5 + $0x8c] ss:$16 sps:$4 sm:$0xff]  }
 0x116   : > { %1682 = vmatpush1.bf16.msra.mxu0 %v9633_v7  ;;  %1908 = vmatpush1.bf16.msra.mxu1 %v9634_v8  ;;  %v9651_v19 = vld [vmem:[%s11480_s5 + $0x80] ss:$16 sps:$4 sm:$0xff]   ;;  %v9652_v20 = vld [vmem:[%s11480_s5 + $0x88] ss:$16 sps:$4 sm:$0xff]   ;;  %v9653_v21 = vld [vmem:[%s11480_s5 + $0xa4] ss:$16 sps:$4 sm:$0xff]  }
 0x117   : > { %1683 = vmatprep.subr.bf16.mxu0 %v9635_v9  ;;  %1909 = vmatprep.subr.bf16.mxu1 %v9637_v10  ;;  %v9655_v22 = vld [vmem:[%s11480_s5 + $0xac] ss:$16 sps:$4 sm:$0xff]   ;;  %v9657_v23 = vld [vmem:[%s11480_s5 + $0xa0] ss:$16 sps:$4 sm:$0xff]   ;;  %v9658_v24 = vld [vmem:[%s11480_s5 + $0xa8] ss:$16 sps:$4 sm:$0xff]  }
 0x118   : > { %v9659_v25 = vld [vmem:[%s11480_s5 + $0xc4] ss:$16 sps:$4 sm:$0xff]   ;;  %v9661_v26 = vld [vmem:[%s11480_s5 + $0xcc] ss:$16 sps:$4 sm:$0xff]   ;;  %v9663_v27 = vld [vmem:[%s11480_s5 + $0xc0] ss:$16 sps:$4 sm:$0xff]  }
 0x119   : > { %v9664_v28 = vld [vmem:[%s11480_s5 + $0xc8] ss:$16 sps:$4 sm:$0xff]   ;;  %v9665_v29 = vld [vmem:[%s11480_s5 + $0xe4] ss:$16 sps:$4 sm:$0xff]   ;;  %v9667_v30 = vld [vmem:[%s11480_s5 + $0xec] ss:$16 sps:$4 sm:$0xff]  }
 0x11a   : > { %1684 = vmatpush1.bf16.msra.mxu0 %v9639_v11  ;;  %1910 = vmatpush1.bf16.msra.mxu1 %v9640_v12  ;;  %v9669_v31 = vld [vmem:[%s11480_s5 + $0xe0] ss:$16 sps:$4 sm:$0xff]   ;;  %v9670_v32 = vld [vmem:[%s11480_s5 + $0xe8] ss:$16 sps:$4 sm:$0xff]   ;;  %v9671_v33 = vld [vmem:[%s11480_s5 + $0x104] ss:$16 sps:$4 sm:$0xff]  }
 0x11b   : > { %1685 = vmatprep.subr.bf16.mxu0 %v9641_v13  ;;  %1911 = vmatprep.subr.bf16.mxu1 %v9643_v14  ;;  %v9673_v34 = vld [vmem:[%s11480_s5 + $0x10c] ss:$16 sps:$4 sm:$0xff]   ;;  %v9675_v35 = vld [vmem:[%s11480_s5 + $0x100] ss:$16 sps:$4 sm:$0xff]   ;;  %v9676_v36 = vld [vmem:[%s11480_s5 + $0x108] ss:$16 sps:$4 sm:$0xff]  }
 0x11c   : > { %v9677_v37 = vld [vmem:[%s11480_s5 + $0x124] ss:$16 sps:$4 sm:$0xff]   ;;  %v9679_v38 = vld [vmem:[%s11480_s5 + $0x12c] ss:$16 sps:$4 sm:$0xff]   ;;  %v9681_v39 = vld [vmem:[%s11480_s5 + $0x120] ss:$16 sps:$4 sm:$0xff]  }
 0x11d   : > { %v9682_v40 = vld [vmem:[%s11480_s5 + $0x128] ss:$16 sps:$4 sm:$0xff]   ;;  %v9683_v41 = vld [vmem:[%s11480_s5 + $0x144] ss:$16 sps:$4 sm:$0xff]   ;;  %v9685_v42 = vld [vmem:[%s11480_s5 + $0x14c] ss:$16 sps:$4 sm:$0xff]  }
 0x11e   : > { %1686 = vmatpush1.bf16.msra.mxu0 %v9645_v15  ;;  %1912 = vmatpush1.bf16.msra.mxu1 %v9646_v16  ;;  %v9687_v43 = vld [vmem:[%s11480_s5 + $0x140] ss:$16 sps:$4 sm:$0xff]   ;;  %v9688_v44 = vld [vmem:[%s11480_s5 + $0x148] ss:$16 sps:$4 sm:$0xff]   ;;  %v9689_v45 = vld [vmem:[%s11480_s5 + $0x164] ss:$16 sps:$4 sm:$0xff]  }
 0x11f   : > { %1687 = vmatprep.subr.bf16.mxu0 %v9647_v17  ;;  %1913 = vmatprep.subr.bf16.mxu1 %v9649_v18  ;;  %v9691_v46 = vld [vmem:[%s11480_s5 + $0x16c] ss:$16 sps:$4 sm:$0xff]   ;;  %v9693_v47 = vld [vmem:[%s11480_s5 + $0x160] ss:$16 sps:$4 sm:$0xff]   ;;  %v9694_v48 = vld [vmem:[%s11480_s5 + $0x168] ss:$16 sps:$4 sm:$0xff]  }
 0x120   : > { %v9721_v49 = vld [vmem:[%s11473_s8 + $0x4] ss:$16 sps:$4 sm:$0xff]   ;;  %v9697_v51 = vld [vmem:[%s11480_s5 + $0x18c] ss:$16 sps:$4 sm:$0xff]   ;;  %v9699_v52 = vld [vmem:[%s11480_s5 + $0x180] ss:$16 sps:$4 sm:$0xff]  }
 0x121   : > { %v9695_v50 = vld [vmem:[%s11480_s5 + $0x184] ss:$16 sps:$4 sm:$0xff]   ;;  %1711 = vmatprep.mubr.bf16.mxu0 %v9721_v49  ;;  %1937 = vmatprep.mubr.bf16.mxu1 %v9721_v49  ;;  %v9700_v53 = vld [vmem:[%s11480_s5 + $0x188] ss:$16 sps:$4 sm:$0xff]   ;;  %v9703_v55 = vld [vmem:[%s11480_s5 + $0x1ac] ss:$16 sps:$4 sm:$0xff]  }
 0x122   : > { %1688 = vmatpush1.bf16.msra.mxu0 %v9651_v19  ;;  %1914 = vmatpush1.bf16.msra.mxu1 %v9652_v20  ;;  %v9701_v54 = vld [vmem:[%s11480_s5 + $0x1a4] ss:$16 sps:$4 sm:$0xff]   ;;  %v9705_v56 = vld [vmem:[%s11480_s5 + $0x1a0] ss:$16 sps:$4 sm:$0xff]   ;;  %v9706_v57 = vld [vmem:[%s11480_s5 + $0x1a8] ss:$16 sps:$4 sm:$0xff]  }
 0x123   : > { %1689 = vmatprep.subr.bf16.mxu0 %v9653_v21  ;;  %1915 = vmatprep.subr.bf16.mxu1 %v9655_v22  ;;  %v9707_v58 = vld [vmem:[%s11480_s5 + $0x1c4] ss:$16 sps:$4 sm:$0xff]   ;;  %v9709_v59 = vld [vmem:[%s11480_s5 + $0x1cc] ss:$16 sps:$4 sm:$0xff]   ;;  %v9711_v60 = vld [vmem:[%s11480_s5 + $0x1c0] ss:$16 sps:$4 sm:$0xff]  }
 0x124   : > { %v9712_v61 = vld [vmem:[%s11480_s5 + $0x1c8] ss:$16 sps:$4 sm:$0xff]   ;;  %v9713_v62 = vld [vmem:[%s11480_s5 + $0x1e4] ss:$16 sps:$4 sm:$0xff]   ;;  %v9715_v63 = vld [vmem:[%s11480_s5 + $0x1ec] ss:$16 sps:$4 sm:$0xff]  }
 0x125   : > { %v9717_v0 = vld [vmem:[%s11480_s5 + $0x1e0] ss:$16 sps:$4 sm:$0xff]   ;;  %v9718_v1 = vld [vmem:[%s11480_s5 + $0x1e8] ss:$16 sps:$4 sm:$0xff]   ;;  %v9724_v2 = vld [vmem:[%s11480_s5 + $0x204] ss:$16 sps:$4 sm:$0xff]  }
 0x126   : > { %1690 = vmatpush1.bf16.msra.mxu0 %v9657_v23  ;;  %1916 = vmatpush1.bf16.msra.mxu1 %v9658_v24  ;;  %v9727_v3 = vld [vmem:[%s11480_s5 + $0x20c] ss:$16 sps:$4 sm:$0xff]   ;;  %v9719_v4 = vld [vmem:[%s11473_s8] ss:$16 sps:$4 sm:$0xff]   ;;  %v9725_v6 = vld [vmem:[%s11480_s5 + $0x208] ss:$16 sps:$4 sm:$0xff]  }
 0x127   : > { %1691 = vmatprep.subr.bf16.mxu0 %v9659_v25  ;;  %1917 = vmatprep.subr.bf16.mxu1 %v9661_v26  ;;  %v9722_v5 = vld [vmem:[%s11480_s5 + $0x200] ss:$16 sps:$4 sm:$0xff]   ;;  %v9730_v7 = vld [vmem:[%s11480_s5 + $0x224] ss:$16 sps:$4 sm:$0xff]   ;;  %v9733_v8 = vld [vmem:[%s11480_s5 + $0x22c] ss:$16 sps:$4 sm:$0xff]  }
 0x128   : > { %v9734_v9 = vld [vmem:[%s11473_s8 + $0x24] ss:$16 sps:$4 sm:$0xff]   ;;  %v9728_v10 = vld [vmem:[%s11480_s5 + $0x220] ss:$16 sps:$4 sm:$0xff]   ;;  %v9731_v11 = vld [vmem:[%s11480_s5 + $0x228] ss:$16 sps:$4 sm:$0xff]  }
 0x129   : > { %v9739_v12 = vld [vmem:[%s11480_s5 + $0x244] ss:$16 sps:$4 sm:$0xff]   ;;  %v9742_v13 = vld [vmem:[%s11480_s5 + $0x24c] ss:$16 sps:$4 sm:$0xff]   ;;  %v9736_v14 = vld [vmem:[%s11473_s8 + $0x20] ss:$16 sps:$4 sm:$0xff]  }
 0x12a   : > { %1692 = vmatpush1.bf16.msra.mxu0 %v9663_v27  ;;  %1918 = vmatpush1.bf16.msra.mxu1 %v9664_v28  ;;  %v9737_v15 = vld [vmem:[%s11480_s5 + $0x240] ss:$16 sps:$4 sm:$0xff]   ;;  %v9740_v16 = vld [vmem:[%s11480_s5 + $0x248] ss:$16 sps:$4 sm:$0xff]   ;;  %v9745_v17 = vld [vmem:[%s11480_s5 + $0x264] ss:$16 sps:$4 sm:$0xff]  }
 0x12b   : > { %1693 = vmatprep.subr.bf16.mxu0 %v9665_v29  ;;  %1919 = vmatprep.subr.bf16.mxu1 %v9667_v30  ;;  %v9748_v18 = vld [vmem:[%s11480_s5 + $0x26c] ss:$16 sps:$4 sm:$0xff]   ;;  %v9749_v19 = vld [vmem:[%s11473_s8 + $0x44] ss:$16 sps:$4 sm:$0xff]   ;;  %v9743_v20 = vld [vmem:[%s11480_s5 + $0x260] ss:$16 sps:$4 sm:$0xff]  }
 0x12c   : > { %v9746_v21 = vld [vmem:[%s11480_s5 + $0x268] ss:$16 sps:$4 sm:$0xff]   ;;  %v9754_v22 = vld [vmem:[%s11480_s5 + $0x284] ss:$16 sps:$4 sm:$0xff]   ;;  %v9757_v23 = vld [vmem:[%s11480_s5 + $0x28c] ss:$16 sps:$4 sm:$0xff]  }
 0x12d   : > { %v9751_v24 = vld [vmem:[%s11473_s8 + $0x40] ss:$16 sps:$4 sm:$0xff]   ;;  %v9755_v26 = vld [vmem:[%s11480_s5 + $0x288] ss:$16 sps:$4 sm:$0xff]   ;;  %v9760_v27 = vld [vmem:[%s11480_s5 + $0x2a4] ss:$16 sps:$4 sm:$0xff]  }
 0x12e   : > { %1694 = vmatpush1.bf16.msra.mxu0 %v9669_v31  ;;  %1920 = vmatpush1.bf16.msra.mxu1 %v9670_v32  ;;  %v9752_v25 = vld [vmem:[%s11480_s5 + $0x280] ss:$16 sps:$4 sm:$0xff]   ;;  %v9763_v28 = vld [vmem:[%s11480_s5 + $0x2ac] ss:$16 sps:$4 sm:$0xff]   ;;  %v9764_v29 = vld [vmem:[%s11473_s8 + $0x64] ss:$16 sps:$4 sm:$0xff]  }
 0x12f   : > { %1695 = vmatprep.subr.bf16.mxu0 %v9671_v33  ;;  %1921 = vmatprep.subr.bf16.mxu1 %v9673_v34  ;;  %v9758_v30 = vld [vmem:[%s11480_s5 + $0x2a0] ss:$16 sps:$4 sm:$0xff]   ;;  %v9761_v31 = vld [vmem:[%s11480_s5 + $0x2a8] ss:$16 sps:$4 sm:$0xff]   ;;  %v9769_v32 = vld [vmem:[%s11480_s5 + $0x2c4] ss:$16 sps:$4 sm:$0xff]  }
 0x130   : > { %v9772_v33 = vld [vmem:[%s11480_s5 + $0x2cc] ss:$16 sps:$4 sm:$0xff]   ;;  %v9766_v34 = vld [vmem:[%s11473_s8 + $0x60] ss:$16 sps:$4 sm:$0xff]   ;;  %v9794_v49 = vld [vmem:[%s11473_s8 + $0xa4] ss:$16 sps:$4 sm:$0xff]  }
 0x131   : > { %p8399_p1 = scmp.ne.s32.totalorder %s11095_s28, 1 }
 0x132   : > { %1696 = vmatpush1.bf16.msra.mxu0 %v9675_v35  ;;  %1922 = vmatpush1.bf16.msra.mxu1 %v9676_v36  ;;  %v9767_v35 = vld [vmem:[%s11480_s5 + $0x2c0] ss:$16 sps:$4 sm:$0xff]   ;;  %v9770_v36 = vld [vmem:[%s11480_s5 + $0x2c8] ss:$16 sps:$4 sm:$0xff]  }
 0x133   : > { %1697 = vmatprep.subr.bf16.mxu0 %v9677_v37  ;;  %1923 = vmatprep.subr.bf16.mxu1 %v9679_v38  ;;  %v9775_v37 = vld [vmem:[%s11480_s5 + $0x2e4] ss:$16 sps:$4 sm:$0xff]   ;;  %v9778_v38 = vld [vmem:[%s11480_s5 + $0x2ec] ss:$16 sps:$4 sm:$0xff]  }
 0x136   : > { %1698 = vmatpush1.bf16.msra.mxu0 %v9681_v39  ;;  %1924 = vmatpush1.bf16.msra.mxu1 %v9682_v40  ;;  %v9779_v39 = vld [vmem:[%s11473_s8 + $0x84] ss:$16 sps:$4 sm:$0xff]   ;;  %v9773_v40 = vld [vmem:[%s11480_s5 + $0x2e0] ss:$16 sps:$4 sm:$0xff]  }
 0x137   : > { %1699 = vmatprep.subr.bf16.mxu0 %v9683_v41  ;;  %1925 = vmatprep.subr.bf16.mxu1 %v9685_v42  ;;  %v9776_v41 = vld [vmem:[%s11480_s5 + $0x2e8] ss:$16 sps:$4 sm:$0xff]   ;;  %v9784_v42 = vld [vmem:[%s11480_s5 + $0x304] ss:$16 sps:$4 sm:$0xff]  }
 0x13a   : > { %1700 = vmatpush1.bf16.msra.mxu0 %v9687_v43  ;;  %1926 = vmatpush1.bf16.msra.mxu1 %v9688_v44  ;;  %v9787_v43 = vld [vmem:[%s11480_s5 + $0x30c] ss:$16 sps:$4 sm:$0xff]   ;;  %v9781_v44 = vld [vmem:[%s11473_s8 + $0x80] ss:$16 sps:$4 sm:$0xff]  }
 0x13b   : > { %1701 = vmatprep.subr.bf16.mxu0 %v9689_v45  ;;  %1927 = vmatprep.subr.bf16.mxu1 %v9691_v46  ;;  %v9782_v45 = vld [vmem:[%s11480_s5 + $0x300] ss:$16 sps:$4 sm:$0xff]   ;;  %v9785_v46 = vld [vmem:[%s11480_s5 + $0x308] ss:$16 sps:$4 sm:$0xff]  }
 0x13e   : > { %1702 = vmatpush1.bf16.msra.mxu0 %v9693_v47  ;;  %1928 = vmatpush1.bf16.msra.mxu1 %v9694_v48  ;;  %v9790_v47 = vld [vmem:[%s11480_s5 + $0x324] ss:$16 sps:$4 sm:$0xff]   ;;  %v9793_v48 = vld [vmem:[%s11480_s5 + $0x32c] ss:$16 sps:$4 sm:$0xff]  }
 0x13f   : > { %1703 = vmatprep.subr.bf16.mxu0 %v9695_v50  ;;  %1929 = vmatprep.subr.bf16.mxu1 %v9697_v51  ;;  %v9788_v50 = vld [vmem:[%s11480_s5 + $0x320] ss:$16 sps:$4 sm:$0xff]   ;;  %v9791_v51 = vld [vmem:[%s11480_s5 + $0x328] ss:$16 sps:$4 sm:$0xff]  }
 0x142   : > { %1704 = vmatpush1.bf16.msra.mxu0 %v9699_v52  ;;  %1930 = vmatpush1.bf16.msra.mxu1 %v9700_v53  ;;  %v9799_v52 = vld [vmem:[%s11480_s5 + $0x344] ss:$16 sps:$4 sm:$0xff]   ;;  %v9802_v53 = vld [vmem:[%s11480_s5 + $0x34c] ss:$16 sps:$4 sm:$0xff]  }
 0x143   : > { %1705 = vmatprep.subr.bf16.mxu0 %v9701_v54  ;;  %1931 = vmatprep.subr.bf16.mxu1 %v9703_v55  ;;  %v9796_v54 = vld [vmem:[%s11473_s8 + $0xa0] ss:$16 sps:$4 sm:$0xff]  }
 0x144   : > { %v9797_v55 = vld [vmem:[%s11480_s5 + $0x340] ss:$16 sps:$4 sm:$0xff]  }
 0x146   : > { %1706 = vmatpush1.bf16.msra.mxu0 %v9705_v56  ;;  %1932 = vmatpush1.bf16.msra.mxu1 %v9706_v57  ;;  %v9800_v56 = vld [vmem:[%s11480_s5 + $0x348] ss:$16 sps:$4 sm:$0xff]   ;;  %v9805_v57 = vld [vmem:[%s11480_s5 + $0x364] ss:$16 sps:$4 sm:$0xff]  }
 0x147   : > { %1707 = vmatprep.subr.bf16.mxu0 %v9707_v58  ;;  %1933 = vmatprep.subr.bf16.mxu1 %v9709_v59  ;;  %v9808_v58 = vld [vmem:[%s11480_s5 + $0x36c] ss:$16 sps:$4 sm:$0xff]   ;;  %v9809_v59 = vld [vmem:[%s11473_s8 + $0xc4] ss:$16 sps:$4 sm:$0xff]  }
 0x14a   : > { %1708 = vmatpush1.bf16.msra.mxu0 %v9711_v60  ;;  %1934 = vmatpush1.bf16.msra.mxu1 %v9712_v61  ;;  %v9803_v60 = vld [vmem:[%s11480_s5 + $0x360] ss:$16 sps:$4 sm:$0xff]   ;;  %v9806_v61 = vld [vmem:[%s11480_s5 + $0x368] ss:$16 sps:$4 sm:$0xff]  }
 0x14b   : > { %1709 = vmatprep.subr.bf16.mxu0 %v9713_v62  ;;  %1935 = vmatprep.subr.bf16.mxu1 %v9715_v63  ;;  %v9814_v62 = vld [vmem:[%s11480_s5 + $0x384] ss:$16 sps:$4 sm:$0xff]   ;;  %v9817_v63 = vld [vmem:[%s11480_s5 + $0x38c] ss:$16 sps:$4 sm:$0xff]  }
 0x14e   : > { %1710 = vmatpush1.bf16.msra.mxu0 %v9717_v0  ;;  %1936 = vmatpush1.bf16.msra.mxu1 %v9718_v1  ;;  %v9811_v0 = vld [vmem:[%s11473_s8 + $0xc0] ss:$16 sps:$4 sm:$0xff]  }
 0x14f   : > { %1792 = vmatprep.subr.bf16.mxu0 %v9724_v2  ;;  %2018 = vmatprep.subr.bf16.mxu1 %v9727_v3  ;;  %v9812_v1 = vld [vmem:[%s11480_s5 + $0x380] ss:$16 sps:$4 sm:$0xff]   ;;  %v9815_v2 = vld [vmem:[%s11480_s5 + $0x388] ss:$16 sps:$4 sm:$0xff]   ;;  %v9820_v3 = vld [vmem:[%s11480_s5 + $0x3a4] ss:$16 sps:$4 sm:$0xff]  }
 0x151   : > { %1712 = vmatmul.mubr.bf16.vlgmr.msra.gmra.mrb[0].mxu0 %v9719_v4  ;;  %1938 = vmatmul.mubr.bf16.vlgmr.msra.gmra.mrb[0].mxu1 %v9719_v4  ;;  %v9823_v4 = vld [vmem:[%s11480_s5 + $0x3ac] ss:$16 sps:$4 sm:$0xff]  }
 0x152   : > { %1793 = vmatpush1.bf16.msra.mxu0 %v9722_v5  ;;  %2019 = vmatpush1.bf16.msra.mxu1 %v9725_v6  ;;  %v9824_v5 = vld [vmem:[%s11473_s8 + $0xe4] ss:$16 sps:$4 sm:$0xff]   ;;  %v9818_v6 = vld [vmem:[%s11480_s5 + $0x3a0] ss:$16 sps:$4 sm:$0xff]  }
 0x153   : > { %1794 = vmatprep.subr.bf16.mxu0 %v9730_v7  ;;  %2020 = vmatprep.subr.bf16.mxu1 %v9733_v8  ;;  %v9821_v7 = vld [vmem:[%s11480_s5 + $0x3a8] ss:$16 sps:$4 sm:$0xff]   ;;  %v9829_v8 = vld [vmem:[%s11480_s5 + $0x3c4] ss:$16 sps:$4 sm:$0xff]  }
 0x154   : > { %1721 = vmatprep.mubr.bf16.mxu0 %v9734_v9  ;;  %1947 = vmatprep.mubr.bf16.mxu1 %v9734_v9  ;;  %v9832_v9 = vld [vmem:[%s11480_s5 + $0x3cc] ss:$16 sps:$4 sm:$0xff]  }
 0x156   : > { %1795 = vmatpush1.bf16.msra.mxu0 %v9728_v10  ;;  %2021 = vmatpush1.bf16.msra.mxu1 %v9731_v11  ;;  %v9826_v10 = vld [vmem:[%s11473_s8 + $0xe0] ss:$16 sps:$4 sm:$0xff]  }
 0x157   : > { %1796 = vmatprep.subr.bf16.mxu0 %v9739_v12  ;;  %2022 = vmatprep.subr.bf16.mxu1 %v9742_v13  ;;  %v9827_v11 = vld [vmem:[%s11480_s5 + $0x3c0] ss:$16 sps:$4 sm:$0xff]   ;;  %v9830_v12 = vld [vmem:[%s11480_s5 + $0x3c8] ss:$16 sps:$4 sm:$0xff]   ;;  %v9835_v13 = vld [vmem:[%s11480_s5 + $0x3e4] ss:$16 sps:$4 sm:$0xff]  }
 0x159   : > { %1722 = vmatmul.mubr.bf16.gmra.mrb[4].mxu0 %v9736_v14  ;;  %1948 = vmatmul.mubr.bf16.gmra.mrb[4].mxu1 %v9736_v14  ;;  %v9838_v14 = vld [vmem:[%s11480_s5 + $0x3ec] ss:$16 sps:$4 sm:$0xff]  }
 0x15a   : > { %1797 = vmatpush1.bf16.msra.mxu0 %v9737_v15  ;;  %2023 = vmatpush1.bf16.msra.mxu1 %v9740_v16  ;;  %v9841_v15 = vld [vmem:[%s11473_s8 + $0xc] ss:$16 sps:$4 sm:$0xff]   ;;  %v9833_v16 = vld [vmem:[%s11480_s5 + $0x3e0] ss:$16 sps:$4 sm:$0xff]  }
 0x15b   : > { %1798 = vmatprep.subr.bf16.mxu0 %v9745_v17  ;;  %2024 = vmatprep.subr.bf16.mxu1 %v9748_v18  ;;  %v9836_v17 = vld [vmem:[%s11480_s5 + $0x3e8] ss:$16 sps:$4 sm:$0xff]  }
 0x15c   : > { %1731 = vmatprep.mubr.bf16.mxu0 %v9749_v19  ;;  %1957 = vmatprep.mubr.bf16.mxu1 %v9749_v19  ;;  %v9839_v18 = vld [vmem:[%s11473_s8 + $0x8] ss:$16 sps:$4 sm:$0xff]   ;;  %v9842_v19 = vld [vmem:[%s11473_s8 + $0x2c] ss:$16 sps:$4 sm:$0xff]  }
 0x15e   : > { %1799 = vmatpush1.bf16.msra.mxu0 %v9743_v20  ;;  %2025 = vmatpush1.bf16.msra.mxu1 %v9746_v21  ;;  %v9844_v20 = vld [vmem:[%s11473_s8 + $0x28] ss:$16 sps:$4 sm:$0xff]   ;;  %v9845_v21 = vld [vmem:[%s11473_s8 + $0x4c] ss:$16 sps:$4 sm:$0xff]  }
 0x15f   : > { %1800 = vmatprep.subr.bf16.mxu0 %v9754_v22  ;;  %2026 = vmatprep.subr.bf16.mxu1 %v9757_v23  ;;  %v9847_v22 = vld [vmem:[%s11473_s8 + $0x48] ss:$16 sps:$4 sm:$0xff]   ;;  %v9848_v23 = vld [vmem:[%s11473_s8 + $0x6c] ss:$16 sps:$4 sm:$0xff]  }
 0x161   : > { %1732 = vmatmul.mubr.bf16.gmra.mrb[8].mxu0 %v9751_v24  ;;  %1958 = vmatmul.mubr.bf16.gmra.mrb[8].mxu1 %v9751_v24  ;;  %v9850_v24 = vld [vmem:[%s11473_s8 + $0x68] ss:$16 sps:$4 sm:$0xff]  }
 0x162   : > { %1801 = vmatpush1.bf16.msra.mxu0 %v9752_v25  ;;  %2027 = vmatpush1.bf16.msra.mxu1 %v9755_v26  ;;  %v9851_v25 = vld [vmem:[%s11473_s8 + $0x8c] ss:$16 sps:$4 sm:$0xff]   ;;  %v9853_v26 = vld [vmem:[%s11473_s8 + $0x88] ss:$16 sps:$4 sm:$0xff]  }
 0x163   : > { %1802 = vmatprep.subr.bf16.mxu0 %v9760_v27  ;;  %2028 = vmatprep.subr.bf16.mxu1 %v9763_v28  ;;  %v9854_v27 = vld [vmem:[%s11473_s8 + $0xac] ss:$16 sps:$4 sm:$0xff]   ;;  %v9856_v28 = vld [vmem:[%s11473_s8 + $0xa8] ss:$16 sps:$4 sm:$0xff]  }
 0x164   : > { %1741 = vmatprep.mubr.bf16.mxu0 %v9764_v29  ;;  %1967 = vmatprep.mubr.bf16.mxu1 %v9764_v29  ;;  %v9857_v29 = vld [vmem:[%s11473_s8 + $0xcc] ss:$16 sps:$4 sm:$0xff]  }
 0x166   : > { %1803 = vmatpush1.bf16.msra.mxu0 %v9758_v30  ;;  %2029 = vmatpush1.bf16.msra.mxu1 %v9761_v31  ;;  %v9859_v30 = vld [vmem:[%s11473_s8 + $0xc8] ss:$16 sps:$4 sm:$0xff]   ;;  %v9860_v31 = vld [vmem:[%s11473_s8 + $0xec] ss:$16 sps:$4 sm:$0xff]  }
 0x167   : > { %1804 = vmatprep.subr.bf16.mxu0 %v9769_v32  ;;  %2030 = vmatprep.subr.bf16.mxu1 %v9772_v33  ;;  %v9862_v32 = vld [vmem:[%s11473_s8 + $0xe8] ss:$16 sps:$4 sm:$0xff]   ;;  %v655_v33 = vld [vmem:[#allocation2] sm:$0xff] }
 0x169   : > { %1742 = vmatmul.mubr.bf16.gmra.mrb[12].mxu0 %v9766_v34  ;;  %1968 = vmatmul.mubr.bf16.gmra.mrb[12].mxu1 %v9766_v34  ;;  %v657_v34 = vld [vmem:[#allocation2 + $0x10] sm:$0xff] }
 0x16a   : > { %1805 = vmatpush1.bf16.msra.mxu0 %v9767_v35  ;;  %2031 = vmatpush1.bf16.msra.mxu1 %v9770_v36  ;;  %v656_v35 = vld [vmem:[#allocation2 + $0x8] sm:$0xff]  ;;  %v658_v36 = vld [vmem:[#allocation2 + $0x18] sm:$0xff] }
 0x16b   : > { %1806 = vmatprep.subr.bf16.mxu0 %v9775_v37  ;;  %2032 = vmatprep.subr.bf16.mxu1 %v9778_v38 }
 0x16c   : > { %1751 = vmatprep.mubr.bf16.mxu0 %v9779_v39  ;;  %1977 = vmatprep.mubr.bf16.mxu1 %v9779_v39  ;;  %v659_v39 = vld [vmem:[#allocation2 + $0x20] sm:$0xff] }
 0x16e   : > { %1807 = vmatpush1.bf16.msra.mxu0 %v9773_v40  ;;  %2033 = vmatpush1.bf16.msra.mxu1 %v9776_v41  ;;  %v661_v40 = vld [vmem:[#allocation2 + $0x30] sm:$0xff] }
 0x16f   : > { %1808 = vmatprep.subr.bf16.mxu0 %v9784_v42  ;;  %2034 = vmatprep.subr.bf16.mxu1 %v9787_v43 }
 0x171   : > { %1752 = vmatmul.mubr.bf16.gmra.mrb[16].mxu0 %v9781_v44  ;;  %1978 = vmatmul.mubr.bf16.gmra.mrb[16].mxu1 %v9781_v44 }
 0x172   : > { %1809 = vmatpush1.bf16.msra.mxu0 %v9782_v45  ;;  %2035 = vmatpush1.bf16.msra.mxu1 %v9785_v46  ;;  %v660_v45 = vld [vmem:[#allocation2 + $0x28] sm:$0xff]  ;;  %v662_v46 = vld [vmem:[#allocation2 + $0x38] sm:$0xff] }
 0x173   : > { %1810 = vmatprep.subr.bf16.mxu0 %v9790_v47  ;;  %2036 = vmatprep.subr.bf16.mxu1 %v9793_v48 }
 0x174   : > { %1761 = vmatprep.mubr.bf16.mxu0 %v9794_v49  ;;  %1987 = vmatprep.mubr.bf16.mxu1 %v9794_v49 }
 0x176   : > { %1811 = vmatpush1.bf16.msra.mxu0 %v9788_v50  ;;  %2037 = vmatpush1.bf16.msra.mxu1 %v9791_v51 }
 0x177   : > { %1812 = vmatprep.subr.bf16.mxu0 %v9799_v52  ;;  %2038 = vmatprep.subr.bf16.mxu1 %v9802_v53 }
 0x179   : > { %1762 = vmatmul.mubr.bf16.gmra.mrb[20].mxu0 %v9796_v54  ;;  %1988 = vmatmul.mubr.bf16.gmra.mrb[20].mxu1 %v9796_v54 }
 0x17a   : > { %1813 = vmatpush1.bf16.msra.mxu0 %v9797_v55  ;;  %2039 = vmatpush1.bf16.msra.mxu1 %v9800_v56 }
 0x17b   : > { %1814 = vmatprep.subr.bf16.mxu0 %v9805_v57  ;;  %2040 = vmatprep.subr.bf16.mxu1 %v9808_v58  ;;  %v663_v57 = vld [vmem:[#allocation2 + $0x40] sm:$0xff]  ;;  %v665_v58 = vld [vmem:[#allocation2 + $0x50] sm:$0xff] }
 0x17c   : > { %1771 = vmatprep.mubr.bf16.mxu0 %v9809_v59  ;;  %1997 = vmatprep.mubr.bf16.mxu1 %v9809_v59  ;;  %v664_v59 = vld [vmem:[#allocation2 + $0x48] sm:$0xff] }
 0x17e   : > { %1815 = vmatpush1.bf16.msra.mxu0 %v9803_v60  ;;  %2041 = vmatpush1.bf16.msra.mxu1 %v9806_v61  ;;  %v666_v60 = vld [vmem:[#allocation2 + $0x58] sm:$0xff] }
 0x17f   : > { %1816 = vmatprep.subr.bf16.mxu0 %v9814_v62  ;;  %2042 = vmatprep.subr.bf16.mxu1 %v9817_v63  ;;  %v667_v63 = vld [vmem:[#allocation2 + $0x60] sm:$0xff] }
 0x181   : > { %1772 = vmatmul.mubr.bf16.gmra.mrb[24].mxu0 %v9811_v0  ;;  %1998 = vmatmul.mubr.bf16.gmra.mrb[24].mxu1 %v9811_v0  ;;  %v669_v0 = vld [vmem:[#allocation2 + $0x70] sm:$0xff] }
 0x182   : > { %1817 = vmatpush1.bf16.msra.mxu0 %v9812_v1  ;;  %2043 = vmatpush1.bf16.msra.mxu1 %v9815_v2 }
 0x183   : > { %1818 = vmatprep.subr.bf16.mxu0 %v9820_v3  ;;  %2044 = vmatprep.subr.bf16.mxu1 %v9823_v4 }
 0x184   : > { %1781 = vmatprep.mubr.bf16.mxu0 %v9824_v5  ;;  %2007 = vmatprep.mubr.bf16.mxu1 %v9824_v5  ;;  %v668_v5 = vld [vmem:[#allocation2 + $0x68] sm:$0xff] }
 0x186   : > { %1819 = vmatpush1.bf16.msra.mxu0 %v9818_v6  ;;  %2045 = vmatpush1.bf16.msra.mxu1 %v9821_v7  ;;  %v670_v6 = vld [vmem:[#allocation2 + $0x78] sm:$0xff] }
 0x187   : > { %1820 = vmatprep.subr.bf16.mxu0 %v9829_v8  ;;  %2046 = vmatprep.subr.bf16.mxu1 %v9832_v9 }
 0x189   : > { %1782 = vmatmul.mubr.bf16.gmra.mrb[28].mxu0 %v9826_v10  ;;  %2008 = vmatmul.mubr.bf16.gmra.mrb[28].mxu1 %v9826_v10 }
 0x18a   : > { %1821 = vmatpush1.bf16.msra.mxu0 %v9827_v11  ;;  %2047 = vmatpush1.bf16.msra.mxu1 %v9830_v12 }
 0x18b   : > { %1822 = vmatprep.subr.bf16.mxu0 %v9835_v13  ;;  %2048 = vmatprep.subr.bf16.mxu1 %v9838_v14 }
 0x18c   : > { %1824 = vmatprep.mubr.bf16.mxu0 %v9841_v15  ;;  %2050 = vmatprep.mubr.bf16.mxu1 %v9841_v15 }
 0x18e   : > { %1823 = vmatpush1.bf16.msra.mxu0 %v9833_v16  ;;  %2049 = vmatpush1.bf16.msra.mxu1 %v9836_v17  ;;  %v671_v17 = vld [vmem:[#allocation2 + $0x80] sm:$0xff] }
 0x191   : > { %1825 = vmatmul.mubr.bf16.vlgmr.msra.gmra.mrb[0].mxu0 %v9839_v18  ;;  %2051 = vmatmul.mubr.bf16.vlgmr.msra.gmra.mrb[0].mxu1 %v9839_v18  ;;  %v673_v18 = vld [vmem:[#allocation2 + $0x90] sm:$0xff] }
 0x192   : > { %1834 = vmatprep.mubr.bf16.mxu0 %v9842_v19  ;;  %2060 = vmatprep.mubr.bf16.mxu1 %v9842_v19  ;;  %v672_v19 = vld [vmem:[#allocation2 + $0x88] sm:$0xff] }
 0x199   : > { %1835 = vmatmul.mubr.bf16.gmra.mrb[4].mxu0 %v9844_v20  ;;  %2061 = vmatmul.mubr.bf16.gmra.mrb[4].mxu1 %v9844_v20  ;;  %v674_v20 = vld [vmem:[#allocation2 + $0x98] sm:$0xff] }
 0x19a   : > { %1844 = vmatprep.mubr.bf16.mxu0 %v9845_v21  ;;  %2070 = vmatprep.mubr.bf16.mxu1 %v9845_v21 }
 0x1a1   : > { %1845 = vmatmul.mubr.bf16.gmra.mrb[8].mxu0 %v9847_v22  ;;  %2071 = vmatmul.mubr.bf16.gmra.mrb[8].mxu1 %v9847_v22 }
 0x1a2   : > { %1854 = vmatprep.mubr.bf16.mxu0 %v9848_v23  ;;  %2080 = vmatprep.mubr.bf16.mxu1 %v9848_v23  ;;  %v675_v23 = vld [vmem:[#allocation2 + $0xa0] sm:$0xff] }
 0x1a9   : > { %1855 = vmatmul.mubr.bf16.gmra.mrb[12].mxu0 %v9850_v24  ;;  %2081 = vmatmul.mubr.bf16.gmra.mrb[12].mxu1 %v9850_v24  ;;  %v677_v24 = vld [vmem:[#allocation2 + $0xb0] sm:$0xff] }
 0x1aa   : > { %1864 = vmatprep.mubr.bf16.mxu0 %v9851_v25  ;;  %2090 = vmatprep.mubr.bf16.mxu1 %v9851_v25 }
 0x1b1   : > { %1865 = vmatmul.mubr.bf16.gmra.mrb[16].mxu0 %v9853_v26  ;;  %2091 = vmatmul.mubr.bf16.gmra.mrb[16].mxu1 %v9853_v26 }
 0x1b2   : > { %1874 = vmatprep.mubr.bf16.mxu0 %v9854_v27  ;;  %2100 = vmatprep.mubr.bf16.mxu1 %v9854_v27 }
 0x1b9   : > { %1875 = vmatmul.mubr.bf16.gmra.mrb[20].mxu0 %v9856_v28  ;;  %2101 = vmatmul.mubr.bf16.gmra.mrb[20].mxu1 %v9856_v28 }
 0x1ba   : > { %1884 = vmatprep.mubr.bf16.mxu0 %v9857_v29  ;;  %2110 = vmatprep.mubr.bf16.mxu1 %v9857_v29  ;;  %v676_v29 = vld [vmem:[#allocation2 + $0xa8] sm:$0xff] }
 0x1c1   : > { %1885 = vmatmul.mubr.bf16.gmra.mrb[24].mxu0 %v9859_v30  ;;  %2111 = vmatmul.mubr.bf16.gmra.mrb[24].mxu1 %v9859_v30  ;;  %v678_v30 = vld [vmem:[#allocation2 + $0xb8] sm:$0xff] }
 0x1c2   : > { %1894 = vmatprep.mubr.bf16.mxu0 %v9860_v31  ;;  %2120 = vmatprep.mubr.bf16.mxu1 %v9860_v31 }
 0x1c9   : > { %1895 = vmatmul.mubr.bf16.gmra.mrb[28].mxu0 %v9862_v32  ;;  %2121 = vmatmul.mubr.bf16.gmra.mrb[28].mxu1 %v9862_v32 }
 0x264   : > { %v1826_v37 = vpop.f32.mrb[0].mxu0  ;;  %v2052_v38 = vpop.f32.mrb[0].mxu1 }
 0x265   : > { %v2131_v41 = vadd.f32 %v1826_v37, %v655_v33  ;;  %v2133_v42 = vadd.f32 %v2052_v38, %v657_v34  ;;  %v1828_v43 = vpop.f32.mrb[1].mxu0  ;;  %v2054_v44 = vpop.f32.mrb[1].mxu1 }
 0x266   : > { %v2132_v47 = vadd.f32 %v1828_v43, %v656_v35  ;;  %v2134_v48 = vadd.f32 %v2054_v44, %v658_v36  ;;  %v1830_v49 = vpop.f32.mrb[2].mxu0  ;;  %v2056_v50 = vpop.f32.mrb[2].mxu1  ;;  %v680_v43 = vld [vmem:[#allocation2 + $0xc8] sm:$0xff]  ;;  %v682_v44 = vld [vmem:[#allocation2 + $0xd8] sm:$0xff] }
 0x267   : > { %2195 = vst [vmem:[#allocation2] sm:$0xff] %v2131_v41  ;;  %2197 = vst [vmem:[#allocation2 + $0x10] sm:$0xff] %v2133_v42  ;;  %v2135_v51 = vadd.f32 %v1830_v49, %v659_v39  ;;  %v2137_v52 = vadd.f32 %v2056_v50, %v661_v40  ;;  %v1832_v53 = vpop.f32.mrb[3].mxu0  ;;  %v2058_v54 = vpop.f32.mrb[3].mxu1  ;;  %v679_v41 = vld [vmem:[#allocation2 + $0xc0] sm:$0xff]  ;;  %v681_v42 = vld [vmem:[#allocation2 + $0xd0] sm:$0xff] }
 0x268   : > { %2196 = vst [vmem:[#allocation2 + $0x8] sm:$0xff] %v2132_v47  ;;  %2198 = vst [vmem:[#allocation2 + $0x18] sm:$0xff] %v2134_v48  ;;  %v2136_v55 = vadd.f32 %v1832_v53, %v660_v45  ;;  %v2138_v56 = vadd.f32 %v2058_v54, %v662_v46  ;;  %v683_v47 = vld [vmem:[#allocation2 + $0xe0] sm:$0xff]  ;;  %v685_v48 = vld [vmem:[#allocation2 + $0xf0] sm:$0xff] }
 0x269   : > { %2199 = vst [vmem:[#allocation2 + $0x20] sm:$0xff] %v2135_v51  ;;  %2201 = vst [vmem:[#allocation2 + $0x30] sm:$0xff] %v2137_v52  ;;  %v684_v53 = vld [vmem:[#allocation2 + $0xe8] sm:$0xff]  ;;  %v686_v54 = vld [vmem:[#allocation2 + $0xf8] sm:$0xff] }
 0x26a   : > { %2200 = vst [vmem:[#allocation2 + $0x28] sm:$0xff] %v2136_v55  ;;  %2202 = vst [vmem:[#allocation2 + $0x38] sm:$0xff] %v2138_v56 }
 0x26c   : > { %v1836_v61 = vpop.f32.mrb[4].mxu0  ;;  %v2062_v62 = vpop.f32.mrb[4].mxu1 }
 0x26d   : > { %v2139_v1 = vadd.f32 %v1836_v61, %v663_v57  ;;  %v2141_v2 = vadd.f32 %v2062_v62, %v665_v58  ;;  %v1838_v3 = vpop.f32.mrb[5].mxu0  ;;  %v2064_v4 = vpop.f32.mrb[5].mxu1 }
 0x26e   : > { %v2140_v7 = vadd.f32 %v1838_v3, %v664_v59  ;;  %v2142_v8 = vadd.f32 %v2064_v4, %v666_v60  ;;  %v1840_v9 = vpop.f32.mrb[6].mxu0  ;;  %v2066_v10 = vpop.f32.mrb[6].mxu1  ;;  %v688_v3 = vld [vmem:[#allocation2 + $0x108] sm:$0xff]  ;;  %v690_v4 = vld [vmem:[#allocation2 + $0x118] sm:$0xff] }
 0x26f   : > { %2203 = vst [vmem:[#allocation2 + $0x40] sm:$0xff] %v2139_v1  ;;  %2205 = vst [vmem:[#allocation2 + $0x50] sm:$0xff] %v2141_v2  ;;  %v2143_v11 = vadd.f32 %v1840_v9, %v667_v63  ;;  %v2145_v12 = vadd.f32 %v2066_v10, %v669_v0  ;;  %v1842_v13 = vpop.f32.mrb[7].mxu0  ;;  %v2068_v14 = vpop.f32.mrb[7].mxu1  ;;  %v687_v1 = vld [vmem:[#allocation2 + $0x100] sm:$0xff]  ;;  %v689_v2 = vld [vmem:[#allocation2 + $0x110] sm:$0xff] }
 0x270   : > { %2204 = vst [vmem:[#allocation2 + $0x48] sm:$0xff] %v2140_v7  ;;  %2206 = vst [vmem:[#allocation2 + $0x58] sm:$0xff] %v2142_v8  ;;  %v2144_v15 = vadd.f32 %v1842_v13, %v668_v5  ;;  %v2146_v16 = vadd.f32 %v2068_v14, %v670_v6  ;;  %v691_v7 = vld [vmem:[#allocation2 + $0x120] sm:$0xff]  ;;  %v693_v8 = vld [vmem:[#allocation2 + $0x130] sm:$0xff] }
 0x271   : > { %2207 = vst [vmem:[#allocation2 + $0x60] sm:$0xff] %v2143_v11  ;;  %2209 = vst [vmem:[#allocation2 + $0x70] sm:$0xff] %v2145_v12  ;;  %v692_v13 = vld [vmem:[#allocation2 + $0x128] sm:$0xff]  ;;  %v694_v14 = vld [vmem:[#allocation2 + $0x138] sm:$0xff] }
 0x272   : > { %2208 = vst [vmem:[#allocation2 + $0x68] sm:$0xff] %v2144_v15  ;;  %2210 = vst [vmem:[#allocation2 + $0x78] sm:$0xff] %v2146_v16 }
 0x274   : > { %v1846_v21 = vpop.f32.mrb[8].mxu0  ;;  %v2072_v22 = vpop.f32.mrb[8].mxu1 }
 0x275   : > { %v2147_v25 = vadd.f32 %v1846_v21, %v671_v17  ;;  %v2149_v26 = vadd.f32 %v2072_v22, %v673_v18  ;;  %v1848_v27 = vpop.f32.mrb[9].mxu0  ;;  %v2074_v28 = vpop.f32.mrb[9].mxu1 }
 0x276   : > { %v2148_v31 = vadd.f32 %v1848_v27, %v672_v19  ;;  %v2150_v32 = vadd.f32 %v2074_v28, %v674_v20  ;;  %v1850_v33 = vpop.f32.mrb[10].mxu0  ;;  %v2076_v34 = vpop.f32.mrb[10].mxu1  ;;  %v696_v27 = vld [vmem:[#allocation2 + $0x148] sm:$0xff]  ;;  %v698_v28 = vld [vmem:[#allocation2 + $0x158] sm:$0xff] }
 0x277   : > { %2211 = vst [vmem:[#allocation2 + $0x80] sm:$0xff] %v2147_v25  ;;  %2213 = vst [vmem:[#allocation2 + $0x90] sm:$0xff] %v2149_v26  ;;  %v2151_v35 = vadd.f32 %v1850_v33, %v675_v23  ;;  %v2153_v36 = vadd.f32 %v2076_v34, %v677_v24  ;;  %v1852_v37 = vpop.f32.mrb[11].mxu0  ;;  %v2078_v38 = vpop.f32.mrb[11].mxu1  ;;  %v695_v25 = vld [vmem:[#allocation2 + $0x140] sm:$0xff]  ;;  %v697_v26 = vld [vmem:[#allocation2 + $0x150] sm:$0xff] }
 0x278   : > { %2212 = vst [vmem:[#allocation2 + $0x88] sm:$0xff] %v2148_v31  ;;  %2214 = vst [vmem:[#allocation2 + $0x98] sm:$0xff] %v2150_v32  ;;  %v2152_v39 = vadd.f32 %v1852_v37, %v676_v29  ;;  %v2154_v40 = vadd.f32 %v2078_v38, %v678_v30  ;;  %v699_v31 = vld [vmem:[#allocation2 + $0x160] sm:$0xff]  ;;  %v701_v32 = vld [vmem:[#allocation2 + $0x170] sm:$0xff] }
 0x279   : > { %2215 = vst [vmem:[#allocation2 + $0xa0] sm:$0xff] %v2151_v35  ;;  %2217 = vst [vmem:[#allocation2 + $0xb0] sm:$0xff] %v2153_v36  ;;  %v700_v37 = vld [vmem:[#allocation2 + $0x168] sm:$0xff]  ;;  %v702_v38 = vld [vmem:[#allocation2 + $0x178] sm:$0xff] }
 0x27a   : > { %2216 = vst [vmem:[#allocation2 + $0xa8] sm:$0xff] %v2152_v39  ;;  %2218 = vst [vmem:[#allocation2 + $0xb8] sm:$0xff] %v2154_v40 }
 0x27c   : > { %v1856_v45 = vpop.f32.mrb[12].mxu0  ;;  %v2082_v46 = vpop.f32.mrb[12].mxu1 }
 0x27d   : > { %v2155_v49 = vadd.f32 %v1856_v45, %v679_v41  ;;  %v2157_v50 = vadd.f32 %v2082_v46, %v681_v42  ;;  %v1858_v51 = vpop.f32.mrb[13].mxu0  ;;  %v2084_v52 = vpop.f32.mrb[13].mxu1 }
 0x27e   : > { %v2156_v55 = vadd.f32 %v1858_v51, %v680_v43  ;;  %v2158_v56 = vadd.f32 %v2084_v52, %v682_v44  ;;  %v1860_v57 = vpop.f32.mrb[14].mxu0  ;;  %v2086_v58 = vpop.f32.mrb[14].mxu1  ;;  %v704_v51 = vld [vmem:[#allocation2 + $0x188] sm:$0xff]  ;;  %v706_v52 = vld [vmem:[#allocation2 + $0x198] sm:$0xff] }
 0x27f   : > { %2219 = vst [vmem:[#allocation2 + $0xc0] sm:$0xff] %v2155_v49  ;;  %2221 = vst [vmem:[#allocation2 + $0xd0] sm:$0xff] %v2157_v50  ;;  %v2159_v59 = vadd.f32 %v1860_v57, %v683_v47  ;;  %v2161_v60 = vadd.f32 %v2086_v58, %v685_v48  ;;  %v1862_v61 = vpop.f32.mrb[15].mxu0  ;;  %v2088_v62 = vpop.f32.mrb[15].mxu1  ;;  %v703_v49 = vld [vmem:[#allocation2 + $0x180] sm:$0xff]  ;;  %v705_v50 = vld [vmem:[#allocation2 + $0x190] sm:$0xff] }
 0x280   : > { %2220 = vst [vmem:[#allocation2 + $0xc8] sm:$0xff] %v2156_v55  ;;  %2222 = vst [vmem:[#allocation2 + $0xd8] sm:$0xff] %v2158_v56  ;;  %v2160_v63 = vadd.f32 %v1862_v61, %v684_v53  ;;  %v2162_v0 = vadd.f32 %v2088_v62, %v686_v54  ;;  %v707_v55 = vld [vmem:[#allocation2 + $0x1a0] sm:$0xff]  ;;  %v709_v56 = vld [vmem:[#allocation2 + $0x1b0] sm:$0xff] }
 0x281   : > { %2223 = vst [vmem:[#allocation2 + $0xe0] sm:$0xff] %v2159_v59  ;;  %2225 = vst [vmem:[#allocation2 + $0xf0] sm:$0xff] %v2161_v60  ;;  %v708_v61 = vld [vmem:[#allocation2 + $0x1a8] sm:$0xff]  ;;  %v710_v62 = vld [vmem:[#allocation2 + $0x1b8] sm:$0xff] }
 0x282   : > { %2224 = vst [vmem:[#allocation2 + $0xe8] sm:$0xff] %v2160_v63  ;;  %2226 = vst [vmem:[#allocation2 + $0xf8] sm:$0xff] %v2162_v0 }
 0x284   : > { %v1866_v5 = vpop.f32.mrb[16].mxu0  ;;  %v2092_v6 = vpop.f32.mrb[16].mxu1 }
 0x285   : > { %v2163_v9 = vadd.f32 %v1866_v5, %v687_v1  ;;  %v2165_v10 = vadd.f32 %v2092_v6, %v689_v2  ;;  %v1868_v11 = vpop.f32.mrb[17].mxu0  ;;  %v2094_v12 = vpop.f32.mrb[17].mxu1 }
 0x286   : > { %v2164_v15 = vadd.f32 %v1868_v11, %v688_v3  ;;  %v2166_v16 = vadd.f32 %v2094_v12, %v690_v4  ;;  %v1870_v17 = vpop.f32.mrb[18].mxu0  ;;  %v2096_v18 = vpop.f32.mrb[18].mxu1  ;;  %v712_v11 = vld [vmem:[#allocation2 + $0x1c8] sm:$0xff]  ;;  %v714_v12 = vld [vmem:[#allocation2 + $0x1d8] sm:$0xff] }
 0x287   : > { %2227 = vst [vmem:[#allocation2 + $0x100] sm:$0xff] %v2163_v9  ;;  %2229 = vst [vmem:[#allocation2 + $0x110] sm:$0xff] %v2165_v10  ;;  %v2167_v19 = vadd.f32 %v1870_v17, %v691_v7  ;;  %v2169_v20 = vadd.f32 %v2096_v18, %v693_v8  ;;  %v1872_v21 = vpop.f32.mrb[19].mxu0  ;;  %v2098_v22 = vpop.f32.mrb[19].mxu1  ;;  %v711_v9 = vld [vmem:[#allocation2 + $0x1c0] sm:$0xff]  ;;  %v713_v10 = vld [vmem:[#allocation2 + $0x1d0] sm:$0xff] }
 0x288   : > { %2228 = vst [vmem:[#allocation2 + $0x108] sm:$0xff] %v2164_v15  ;;  %2230 = vst [vmem:[#allocation2 + $0x118] sm:$0xff] %v2166_v16  ;;  %v2168_v23 = vadd.f32 %v1872_v21, %v692_v13  ;;  %v2170_v24 = vadd.f32 %v2098_v22, %v694_v14  ;;  %v715_v15 = vld [vmem:[#allocation2 + $0x1e0] sm:$0xff]  ;;  %v717_v16 = vld [vmem:[#allocation2 + $0x1f0] sm:$0xff] }
 0x289   : > { %2231 = vst [vmem:[#allocation2 + $0x120] sm:$0xff] %v2167_v19  ;;  %2233 = vst [vmem:[#allocation2 + $0x130] sm:$0xff] %v2169_v20  ;;  %v716_v21 = vld [vmem:[#allocation2 + $0x1e8] sm:$0xff]  ;;  %v718_v22 = vld [vmem:[#allocation2 + $0x1f8] sm:$0xff] }
 0x28a   : > { %2232 = vst [vmem:[#allocation2 + $0x128] sm:$0xff] %v2168_v23  ;;  %2234 = vst [vmem:[#allocation2 + $0x138] sm:$0xff] %v2170_v24 }
 0x28c   : > { %v1876_v29 = vpop.f32.mrb[20].mxu0  ;;  %v2102_v30 = vpop.f32.mrb[20].mxu1 }
 0x28d   : > { %v2171_v33 = vadd.f32 %v1876_v29, %v695_v25  ;;  %v2173_v34 = vadd.f32 %v2102_v30, %v697_v26  ;;  %v1878_v35 = vpop.f32.mrb[21].mxu0  ;;  %v2104_v36 = vpop.f32.mrb[21].mxu1 }
 0x28e   : > { %v2172_v39 = vadd.f32 %v1878_v35, %v696_v27  ;;  %v2174_v40 = vadd.f32 %v2104_v36, %v698_v28  ;;  %v1880_v41 = vpop.f32.mrb[22].mxu0  ;;  %v2106_v42 = vpop.f32.mrb[22].mxu1 }
 0x28f   : > { %2235 = vst [vmem:[#allocation2 + $0x140] sm:$0xff] %v2171_v33  ;;  %2237 = vst [vmem:[#allocation2 + $0x150] sm:$0xff] %v2173_v34  ;;  %v2175_v43 = vadd.f32 %v1880_v41, %v699_v31  ;;  %v2177_v44 = vadd.f32 %v2106_v42, %v701_v32  ;;  %v1882_v45 = vpop.f32.mrb[23].mxu0  ;;  %v2108_v46 = vpop.f32.mrb[23].mxu1 }
 0x290   : > { %2236 = vst [vmem:[#allocation2 + $0x148] sm:$0xff] %v2172_v39  ;;  %2238 = vst [vmem:[#allocation2 + $0x158] sm:$0xff] %v2174_v40  ;;  %v2176_v47 = vadd.f32 %v1882_v45, %v700_v37  ;;  %v2178_v48 = vadd.f32 %v2108_v46, %v702_v38 }
 0x291   : > { %2239 = vst [vmem:[#allocation2 + $0x160] sm:$0xff] %v2175_v43  ;;  %2241 = vst [vmem:[#allocation2 + $0x170] sm:$0xff] %v2177_v44 }
 0x292   : > { %2240 = vst [vmem:[#allocation2 + $0x168] sm:$0xff] %v2176_v47  ;;  %2242 = vst [vmem:[#allocation2 + $0x178] sm:$0xff] %v2178_v48 }
 0x294   : > { %v1886_v53 = vpop.f32.mrb[24].mxu0  ;;  %v2112_v54 = vpop.f32.mrb[24].mxu1 }
 0x295   : > { %v2179_v57 = vadd.f32 %v1886_v53, %v703_v49  ;;  %v2181_v58 = vadd.f32 %v2112_v54, %v705_v50  ;;  %v1888_v59 = vpop.f32.mrb[25].mxu0  ;;  %v2114_v60 = vpop.f32.mrb[25].mxu1 }
 0x296   : > { %v2180_v63 = vadd.f32 %v1888_v59, %v704_v51  ;;  %v2182_v0 = vadd.f32 %v2114_v60, %v706_v52  ;;  %v1890_v1 = vpop.f32.mrb[26].mxu0  ;;  %v2116_v2 = vpop.f32.mrb[26].mxu1 }
 0x297   : > { %2243 = vst [vmem:[#allocation2 + $0x180] sm:$0xff] %v2179_v57  ;;  %2245 = vst [vmem:[#allocation2 + $0x190] sm:$0xff] %v2181_v58  ;;  %v2183_v3 = vadd.f32 %v1890_v1, %v707_v55  ;;  %v2185_v4 = vadd.f32 %v2116_v2, %v709_v56  ;;  %v1892_v5 = vpop.f32.mrb[27].mxu0  ;;  %v2118_v6 = vpop.f32.mrb[27].mxu1 }
 0x298   : > { %2244 = vst [vmem:[#allocation2 + $0x188] sm:$0xff] %v2180_v63  ;;  %2246 = vst [vmem:[#allocation2 + $0x198] sm:$0xff] %v2182_v0  ;;  %v2184_v7 = vadd.f32 %v1892_v5, %v708_v61  ;;  %v2186_v8 = vadd.f32 %v2118_v6, %v710_v62 }
 0x299   : > { %2247 = vst [vmem:[#allocation2 + $0x1a0] sm:$0xff] %v2183_v3  ;;  %2249 = vst [vmem:[#allocation2 + $0x1b0] sm:$0xff] %v2185_v4 }
 0x29a   : > { %2248 = vst [vmem:[#allocation2 + $0x1a8] sm:$0xff] %v2184_v7  ;;  %2250 = vst [vmem:[#allocation2 + $0x1b8] sm:$0xff] %v2186_v8 }
 0x29c   : > { %v1896_v13 = vpop.f32.mrb[28].mxu0  ;;  %v2122_v14 = vpop.f32.mrb[28].mxu1  ;;  %2262 = sbr.rel (%p8399_p1) target bundleno = 2349 (0x92d), region = 108 }
 0x29d   : > { %v2187_v17 = vadd.f32 %v1896_v13, %v711_v9  ;;  %v2189_v18 = vadd.f32 %v2122_v14, %v713_v10  ;;  %v1898_v19 = vpop.f32.mrb[29].mxu0  ;;  %v2124_v20 = vpop.f32.mrb[29].mxu1 }
 0x29e   : > { %v2188_v23 = vadd.f32 %v1898_v19, %v712_v11  ;;  %v2190_v24 = vadd.f32 %v2124_v20, %v714_v12  ;;  %v1900_v25 = vpop.f32.mrb[30].mxu0  ;;  %v2126_v26 = vpop.f32.mrb[30].mxu1 }
 0x29f   : > { %2251 = vst [vmem:[#allocation2 + $0x1c0] sm:$0xff] %v2187_v17  ;;  %2253 = vst [vmem:[#allocation2 + $0x1d0] sm:$0xff] %v2189_v18  ;;  %v2191_v27 = vadd.f32 %v1900_v25, %v715_v15  ;;  %v2193_v28 = vadd.f32 %v2126_v26, %v717_v16  ;;  %v1902_v29 = vpop.f32.mrb[31].mxu0  ;;  %v2128_v30 = vpop.f32.mrb[31].mxu1 }
 0x2a0   : > { %2252 = vst [vmem:[#allocation2 + $0x1c8] sm:$0xff] %v2188_v23  ;;  %2254 = vst [vmem:[#allocation2 + $0x1d8] sm:$0xff] %v2190_v24  ;;  %v2192_v31 = vadd.f32 %v1902_v29, %v716_v21  ;;  %v2194_v32 = vadd.f32 %v2128_v30, %v718_v22 }
 0x2a1   : > { %2255 = vst [vmem:[#allocation2 + $0x1e0] sm:$0xff] %v2191_v27  ;;  %2257 = vst [vmem:[#allocation2 + $0x1f0] sm:$0xff] %v2193_v28 }
 0x2a2   : > { %2256 = vst [vmem:[#allocation2 + $0x1e8] sm:$0xff] %v2192_v31  ;;  %2258 = vst [vmem:[#allocation2 + $0x1f8] sm:$0xff] %v2194_v32 }
 0x2a3   : > { %v9863_v33 = vld [vmem:[#allocation8 + $0x4] ss:$16 sps:$4 sm:$0xff]   ;;  %v9865_v34 = vld [vmem:[#allocation8 + $0xc] ss:$16 sps:$4 sm:$0xff]   ;;  %v9867_v35 = vld [vmem:[#allocation8] ss:$16 sps:$4 sm:$0xff]   ;;  %v2329_v6 = vlaneseq }
 0x2a4   : > { %3235 = vmatprep.subr.bf16.mxu0 %v9863_v33  ;;  %v9868_v36 = vld [vmem:[#allocation8 + $0x8] ss:$16 sps:$4 sm:$0xff]   ;;  %3461 = vmatprep.subr.bf16.mxu1 %v9865_v34  ;;  %v9869_v37 = vld [vmem:[#allocation8 + $0x24] ss:$16 sps:$4 sm:$0xff]   ;;  %v9871_v38 = vld [vmem:[#allocation8 + $0x2c] ss:$16 sps:$4 sm:$0xff]  }
 0x2a5   : > { %3236 = vmatpush1.bf16.msra.mxu0 %v9867_v35  ;;  %3462 = vmatpush1.bf16.msra.mxu1 %v9868_v36  ;;  %v9873_v39 = vld [vmem:[#allocation8 + $0x20] ss:$16 sps:$4 sm:$0xff]   ;;  %v9874_v40 = vld [vmem:[#allocation8 + $0x28] ss:$16 sps:$4 sm:$0xff]   ;;  %v9875_v41 = vld [vmem:[#allocation8 + $0x44] ss:$16 sps:$4 sm:$0xff]  }
 0x2a6   : > { %3237 = vmatprep.subr.bf16.mxu0 %v9869_v37  ;;  %3463 = vmatprep.subr.bf16.mxu1 %v9871_v38  ;;  %v9877_v42 = vld [vmem:[#allocation8 + $0x4c] ss:$16 sps:$4 sm:$0xff]   ;;  %v9879_v43 = vld [vmem:[#allocation8 + $0x40] ss:$16 sps:$4 sm:$0xff]   ;;  %v9880_v44 = vld [vmem:[#allocation8 + $0x48] ss:$16 sps:$4 sm:$0xff]  }
 0x2a7   : > { %v9881_v45 = vld [vmem:[#allocation8 + $0x64] ss:$16 sps:$4 sm:$0xff]   ;;  %v9883_v46 = vld [vmem:[#allocation8 + $0x6c] ss:$16 sps:$4 sm:$0xff]   ;;  %v9885_v47 = vld [vmem:[#allocation8 + $0x60] ss:$16 sps:$4 sm:$0xff]  }
 0x2a8   : > { %v9886_v48 = vld [vmem:[#allocation8 + $0x68] ss:$16 sps:$4 sm:$0xff]   ;;  %v9887_v49 = vld [vmem:[#allocation8 + $0x84] ss:$16 sps:$4 sm:$0xff]   ;;  %v9889_v50 = vld [vmem:[#allocation8 + $0x8c] ss:$16 sps:$4 sm:$0xff]  }
 0x2a9   : > { %3238 = vmatpush1.bf16.msra.mxu0 %v9873_v39  ;;  %3464 = vmatpush1.bf16.msra.mxu1 %v9874_v40  ;;  %v9891_v51 = vld [vmem:[#allocation8 + $0x80] ss:$16 sps:$4 sm:$0xff]   ;;  %v9892_v52 = vld [vmem:[#allocation8 + $0x88] ss:$16 sps:$4 sm:$0xff]   ;;  %v9893_v53 = vld [vmem:[#allocation8 + $0xa4] ss:$16 sps:$4 sm:$0xff]  }
 0x2aa   : > { %3239 = vmatprep.subr.bf16.mxu0 %v9875_v41  ;;  %3465 = vmatprep.subr.bf16.mxu1 %v9877_v42  ;;  %v9895_v54 = vld [vmem:[#allocation8 + $0xac] ss:$16 sps:$4 sm:$0xff]   ;;  %v9897_v55 = vld [vmem:[#allocation8 + $0xa0] ss:$16 sps:$4 sm:$0xff]   ;;  %v9898_v56 = vld [vmem:[#allocation8 + $0xa8] ss:$16 sps:$4 sm:$0xff]  }
 0x2ab   : > { %v9899_v57 = vld [vmem:[#allocation8 + $0xc4] ss:$16 sps:$4 sm:$0xff]   ;;  %v9901_v58 = vld [vmem:[#allocation8 + $0xcc] ss:$16 sps:$4 sm:$0xff]   ;;  %v9903_v59 = vld [vmem:[#allocation8 + $0xc0] ss:$16 sps:$4 sm:$0xff]  }
 0x2ac   : > { %v9904_v60 = vld [vmem:[#allocation8 + $0xc8] ss:$16 sps:$4 sm:$0xff]   ;;  %v9905_v61 = vld [vmem:[#allocation8 + $0xe4] ss:$16 sps:$4 sm:$0xff]   ;;  %v9907_v62 = vld [vmem:[#allocation8 + $0xec] ss:$16 sps:$4 sm:$0xff]  }
 0x2ad   : > { %3240 = vmatpush1.bf16.msra.mxu0 %v9879_v43  ;;  %3466 = vmatpush1.bf16.msra.mxu1 %v9880_v44  ;;  %v9909_v63 = vld [vmem:[#allocation8 + $0xe0] ss:$16 sps:$4 sm:$0xff]   ;;  %v9910_v0 = vld [vmem:[#allocation8 + $0xe8] ss:$16 sps:$4 sm:$0xff]   ;;  %v9911_v1 = vld [vmem:[#allocation8 + $0x104] ss:$16 sps:$4 sm:$0xff]  }
 0x2ae   : > { %3241 = vmatprep.subr.bf16.mxu0 %v9881_v45  ;;  %3467 = vmatprep.subr.bf16.mxu1 %v9883_v46  ;;  %v9913_v2 = vld [vmem:[#allocation8 + $0x10c] ss:$16 sps:$4 sm:$0xff]   ;;  %v9915_v3 = vld [vmem:[#allocation8 + $0x100] ss:$16 sps:$4 sm:$0xff]   ;;  %v9916_v4 = vld [vmem:[#allocation8 + $0x108] ss:$16 sps:$4 sm:$0xff]  }
 0x2af   : > { %v9917_v5 = vld [vmem:[#allocation8 + $0x124] ss:$16 sps:$4 sm:$0xff]   ;;  %v9919_v7 = vld [vmem:[#allocation8 + $0x12c] ss:$16 sps:$4 sm:$0xff]   ;;  %v9921_v8 = vld [vmem:[#allocation8 + $0x120] ss:$16 sps:$4 sm:$0xff]  }
 0x2b0   : > { %v9922_v9 = vld [vmem:[#allocation8 + $0x128] ss:$16 sps:$4 sm:$0xff]   ;;  %v9923_v10 = vld [vmem:[#allocation8 + $0x144] ss:$16 sps:$4 sm:$0xff]   ;;  %v11724_v11 = vshrl.u32 %v2329_v6, 7  ;;  %s13449_s16 = sld [smem:[#allocation82_spill]] }
 0x2b1   : > { %3242 = vmatpush1.bf16.msra.mxu0 %v9885_v47  ;;  %3468 = vmatpush1.bf16.msra.mxu1 %v9886_v48  ;;  %v9925_v12 = vld [vmem:[#allocation8 + $0x14c] ss:$16 sps:$4 sm:$0xff]   ;;  %v9927_v13 = vld [vmem:[#allocation8 + $0x140] ss:$16 sps:$4 sm:$0xff]   ;;  %v9928_v14 = vld [vmem:[#allocation8 + $0x148] ss:$16 sps:$4 sm:$0xff]  }
 0x2b2   : > { %3243 = vmatprep.subr.bf16.mxu0 %v9887_v49  ;;  %3469 = vmatprep.subr.bf16.mxu1 %v9889_v50  ;;  %v9929_v15 = vld [vmem:[#allocation8 + $0x164] ss:$16 sps:$4 sm:$0xff]   ;;  %v11727_v16 = vsub.s32 1, %v11724_v11  ;;  %v9931_v17 = vld [vmem:[#allocation8 + $0x16c] ss:$16 sps:$4 sm:$0xff]   ;;  %v11741_v34 = vsub.s32 0, %v11724_v11 }
 0x2b3   : > { %v9933_v18 = vld [vmem:[#allocation8 + $0x160] ss:$16 sps:$4 sm:$0xff]   ;;  %v2264_v19 = vld [vmem:[#allocation2 + $0x8] sm:$0xff]  ;;  %v9935_v24 = vld [vmem:[#allocation8 + $0x184] ss:$16 sps:$4 sm:$0xff]   ;;  %s13453_s20 = sld [smem:[#allocation84_spill]] }
 0x2b4   : > { %13448 = vst [vmem:[#allocation22_spill] sm:$0xff] %v11727_v16  ;;  %v2268_v20 = vld [vmem:[#allocation2 + $0x28] sm:$0xff]  ;;  %v9939_v28 = vld [vmem:[#allocation8 + $0x180] ss:$16 sps:$4 sm:$0xff]   ;;  %v9941_v31 = vld [vmem:[#allocation8 + $0x1a4] ss:$16 sps:$4 sm:$0xff]  }
 0x2b5   : > { %3244 = vmatpush1.bf16.msra.mxu0 %v9891_v51  ;;  %3470 = vmatpush1.bf16.msra.mxu1 %v9892_v52  ;;  %v9934_v22 = vld [vmem:[#allocation8 + $0x168] ss:$16 sps:$4 sm:$0xff]   ;;  %v9937_v25 = vld [vmem:[#allocation8 + $0x18c] ss:$16 sps:$4 sm:$0xff]   ;;  %v9945_v33 = vld [vmem:[#allocation8 + $0x1a0] ss:$16 sps:$4 sm:$0xff]  }
 0x2b6   : > { %3245 = vmatprep.subr.bf16.mxu0 %v9893_v53  ;;  %3471 = vmatprep.subr.bf16.mxu1 %v9895_v54  ;;  %v11732_v21 = vld [vmem:[%s13449_s16] sm:$0xf]  ;;  %v9940_v29 = vld [vmem:[#allocation8 + $0x188] ss:$16 sps:$4 sm:$0xff]   ;;  %v9943_v32 = vld [vmem:[#allocation8 + $0x1ac] ss:$16 sps:$4 sm:$0xff]  }
 0x2b7   : > { %v11736_v23 = vrot.slane %v11732_v21, %v11727_v16  ;;  %13450 = vst [vmem:[#allocation23_spill] sm:$0xff] %v11741_v34  ;;  %v9946_v35 = vld [vmem:[#allocation8 + $0x1a8] ss:$16 sps:$4 sm:$0xff]   ;;  %v9947_v36 = vld [vmem:[#allocation8 + $0x1c4] ss:$16 sps:$4 sm:$0xff]   ;;  %v11745_v39 = vrot.slane %v11732_v21, %v11741_v34  ;;  %s13454_s4 = sld [smem:[#allocation86_spill]] }
 0x2b8   : > { %v9949_v37 = vld [vmem:[#allocation8 + $0x1cc] ss:$16 sps:$4 sm:$0xff]   ;;  %v9951_v38 = vld [vmem:[#allocation8 + $0x1c0] ss:$16 sps:$4 sm:$0xff]   ;;  %v9952_v40 = vld [vmem:[#allocation8 + $0x1c8] ss:$16 sps:$4 sm:$0xff]  }
 0x2b9   : > { %3246 = vmatpush1.bf16.msra.mxu0 %v9897_v55  ;;  %3472 = vmatpush1.bf16.msra.mxu1 %v9898_v56  ;;  %v2350_v26 = vadd.f32 %v11736_v23, %v2264_v19  ;;  %v2354_v27 = vadd.f32 %v11736_v23, %v2268_v20  ;;  %v2263_v41 = vld [vmem:[#allocation2] sm:$0xff]  ;;  %v9955_v44 = vld [vmem:[#allocation8 + $0x1ec] ss:$16 sps:$4 sm:$0xff]   ;;  %v9958_v50 = vld [vmem:[#allocation8 + $0x1e8] ss:$16 sps:$4 sm:$0xff]   ;;  %s13502_s23 = sld [smem:[#allocation88_spill]] }
 0x2ba   : > { %3247 = vmatprep.subr.bf16.mxu0 %v9899_v57  ;;  %3473 = vmatprep.subr.bf16.mxu1 %v9901_v58  ;;  %v2267_v42 = vld [vmem:[#allocation2 + $0x20] sm:$0xff]  ;;  %v2272_v46 = vld [vmem:[#allocation2 + $0x48] sm:$0xff]  ;;  %v2349_v47 = vadd.f32 %v11745_v39, %v2263_v41  ;;  %s13504_s25 = sld [smem:[#allocation89_spill]]  ;;  %s13634_s13 = sld [smem:[#allocation90_spill]] }
 0x2bb   : > { %v2414_v30 = vpack.c.bf16 %v2354_v27, %v2350_v26  ;;  %v9953_v43 = vld [vmem:[#allocation8 + $0x1e4] ss:$16 sps:$4 sm:$0xff]   ;;  %v9957_v45 = vld [vmem:[#allocation8 + $0x1e0] ss:$16 sps:$4 sm:$0xff]   ;;  %v2353_v48 = vadd.f32 %v11745_v39, %v2267_v42  ;;  %v2276_v49 = vld [vmem:[#allocation2 + $0x68] sm:$0xff]  ;;  %v2358_v53 = vadd.f32 %v11736_v23, %v2272_v46 }
 0x2bc   : > { %v9961_v51 = vld [vmem:[#allocation8 + $0x204] ss:$16 sps:$4 sm:$0xff]   ;;  %v9964_v52 = vld [vmem:[#allocation8 + $0x20c] ss:$16 sps:$4 sm:$0xff]   ;;  %v2362_v54 = vadd.f32 %v11736_v23, %v2276_v49  ;;  %v9959_v56 = vld [vmem:[#allocation8 + $0x200] ss:$16 sps:$4 sm:$0xff]  }
 0x2bd   : > { %3248 = vmatpush1.bf16.msra.mxu0 %v9903_v59  ;;  %3474 = vmatpush1.bf16.msra.mxu1 %v9904_v60  ;;  %v2413_v55 = vpack.c.bf16 %v2353_v48, %v2349_v47  ;;  %v9962_v57 = vld [vmem:[#allocation8 + $0x208] ss:$16 sps:$4 sm:$0xff]   ;;  %v2271_v58 = vld [vmem:[#allocation2 + $0x40] sm:$0xff]  ;;  %v9976_v6 = vld [vmem:[#allocation8 + $0x24c] ss:$16 sps:$4 sm:$0xff]  }
 0x2be   : > { %3249 = vmatprep.subr.bf16.mxu0 %v9905_v61  ;;  %3475 = vmatprep.subr.bf16.mxu1 %v9907_v62  ;;  %v2275_v59 = vld [vmem:[#allocation2 + $0x60] sm:$0xff]  ;;  %v9970_v61 = vld [vmem:[#allocation8 + $0x22c] ss:$16 sps:$4 sm:$0xff]   ;;  %v9980_v26 = vld [vmem:[#allocation8 + $0x268] ss:$16 sps:$4 sm:$0xff]  }
 0x2bf   : > { %3267 = vmatprep.mubr.bf16.mxu0 %v2414_v30  ;;  %3493 = vmatprep.mubr.bf16.mxu1 %v2414_v30  ;;  %v9967_v60 = vld [vmem:[#allocation8 + $0x224] ss:$16 sps:$4 sm:$0xff]   ;;  %v9965_v62 = vld [vmem:[#allocation8 + $0x220] ss:$16 sps:$4 sm:$0xff]   ;;  %v2288_v19 = vld [vmem:[#allocation2 + $0xc8] sm:$0xff] }
 0x2c0   : > { %v9985_v27 = vld [vmem:[#allocation8 + $0x284] ss:$16 sps:$4 sm:$0xff]   ;;  %v9986_v30 = vld [vmem:[#allocation8 + $0x288] ss:$16 sps:$4 sm:$0xff]   ;;  %v9989_v41 = vld [vmem:[#allocation8 + $0x2a0] ss:$16 sps:$4 sm:$0xff]  }
 0x2c1   : > { %3250 = vmatpush1.bf16.msra.mxu0 %v9909_v63  ;;  %3476 = vmatpush1.bf16.msra.mxu1 %v9910_v0  ;;  %v2418_v63 = vpack.c.bf16 %v2362_v54, %v2358_v53  ;;  %v2280_v0 = vld [vmem:[#allocation2 + $0x88] sm:$0xff]  ;;  %v9997_v47 = vld [vmem:[#allocation8 + $0x2c4] ss:$16 sps:$4 sm:$0xff]   ;;  %v9995_v49 = vld [vmem:[#allocation8 + $0x2c0] ss:$16 sps:$4 sm:$0xff]  }
 0x2c2   : > { %3251 = vmatprep.subr.bf16.mxu0 %v9911_v1  ;;  %3477 = vmatprep.subr.bf16.mxu1 %v9913_v2  ;;  %v2357_v1 = vadd.f32 %v11745_v39, %v2271_v58  ;;  %v2361_v2 = vadd.f32 %v11745_v39, %v2275_v59  ;;  %v9992_v46 = vld [vmem:[#allocation8 + $0x2a8] ss:$16 sps:$4 sm:$0xff]   ;;  %v10000_v48 = vld [vmem:[#allocation8 + $0x2cc] ss:$16 sps:$4 sm:$0xff]   ;;  %v2295_v54 = vld [vmem:[#allocation2 + $0x100] sm:$0xff] }
 0x2c3   : > { %v10001_v58 = vld [vmem:[#allocation8 + $0x2e0] ss:$16 sps:$4 sm:$0xff]  }
 0x2c5   : > { %3252 = vmatpush1.bf16.msra.mxu0 %v9915_v3  ;;  %3478 = vmatpush1.bf16.msra.mxu1 %v9916_v4  ;;  %v2284_v3 = vld [vmem:[#allocation2 + $0xa8] sm:$0xff] }
 0x2c6   : > { %3253 = vmatprep.subr.bf16.mxu0 %v9917_v5  ;;  %3479 = vmatprep.subr.bf16.mxu1 %v9919_v7  ;;  %v9968_v4 = vld [vmem:[#allocation8 + $0x228] ss:$16 sps:$4 sm:$0xff]   ;;  %v9973_v5 = vld [vmem:[#allocation8 + $0x244] ss:$16 sps:$4 sm:$0xff]   ;;  %v9971_v7 = vld [vmem:[#allocation8 + $0x240] ss:$16 sps:$4 sm:$0xff]  }
 0x2c9   : > { %3254 = vmatpush1.bf16.msra.mxu0 %v9921_v8  ;;  %3480 = vmatpush1.bf16.msra.mxu1 %v9922_v9  ;;  %v9974_v8 = vld [vmem:[#allocation8 + $0x248] ss:$16 sps:$4 sm:$0xff]   ;;  %v2366_v9 = vadd.f32 %v11736_v23, %v2280_v0 }
 0x2ca   : > { %3255 = vmatprep.subr.bf16.mxu0 %v9923_v10  ;;  %3481 = vmatprep.subr.bf16.mxu1 %v9925_v12  ;;  %v2370_v10 = vadd.f32 %v11736_v23, %v2284_v3  ;;  %v2417_v12 = vpack.c.bf16 %v2361_v2, %v2357_v1  ;;  %v10004_v0 = vld [vmem:[#allocation8 + $0x2e8] ss:$16 sps:$4 sm:$0xff]   ;;  %v10009_v1 = vld [vmem:[#allocation8 + $0x304] ss:$16 sps:$4 sm:$0xff]   ;;  %v10012_v2 = vld [vmem:[#allocation8 + $0x30c] ss:$16 sps:$4 sm:$0xff]  }
 0x2cd   : > { %3256 = vmatpush1.bf16.msra.mxu0 %v9927_v13  ;;  %3482 = vmatpush1.bf16.msra.mxu1 %v9928_v14  ;;  %v2279_v13 = vld [vmem:[#allocation2 + $0x80] sm:$0xff] }
 0x2ce   : > { %3257 = vmatprep.subr.bf16.mxu0 %v9929_v15  ;;  %3483 = vmatprep.subr.bf16.mxu1 %v9931_v17  ;;  %v2283_v14 = vld [vmem:[#allocation2 + $0xa0] sm:$0xff]  ;;  %v9982_v17 = vld [vmem:[#allocation8 + $0x26c] ss:$16 sps:$4 sm:$0xff]   ;;  %v2365_v20 = vadd.f32 %v11745_v39, %v2279_v13 }
 0x2cf   : > { %v9979_v15 = vld [vmem:[#allocation8 + $0x264] ss:$16 sps:$4 sm:$0xff]  }
 0x2d1   : > { %3258 = vmatpush1.bf16.msra.mxu0 %v9933_v18  ;;  %3484 = vmatpush1.bf16.msra.mxu1 %v9934_v22  ;;  %v2422_v18 = vpack.c.bf16 %v2370_v10, %v2366_v9  ;;  %v2369_v22 = vadd.f32 %v11745_v39, %v2283_v14  ;;  %v2307_v9 = vld [vmem:[#allocation2 + $0x160] sm:$0xff] }
 0x2d2   : > { %3259 = vmatprep.subr.bf16.mxu0 %v9935_v24  ;;  %3485 = vmatprep.subr.bf16.mxu1 %v9937_v25  ;;  %v2292_v24 = vld [vmem:[#allocation2 + $0xe8] sm:$0xff]  ;;  %v9977_v25 = vld [vmem:[#allocation8 + $0x260] ss:$16 sps:$4 sm:$0xff]   ;;  %v10015_v10 = vld [vmem:[#allocation8 + $0x324] ss:$16 sps:$4 sm:$0xff]  }
 0x2d5   : > { %3260 = vmatpush1.bf16.msra.mxu0 %v9939_v28  ;;  %3486 = vmatpush1.bf16.msra.mxu1 %v9940_v29  ;;  %v9988_v28 = vld [vmem:[#allocation8 + $0x28c] ss:$16 sps:$4 sm:$0xff]   ;;  %v9983_v29 = vld [vmem:[#allocation8 + $0x280] ss:$16 sps:$4 sm:$0xff]  }
 0x2d6   : > { %3261 = vmatprep.subr.bf16.mxu0 %v9941_v31  ;;  %3487 = vmatprep.subr.bf16.mxu1 %v9943_v32  ;;  %v2374_v31 = vadd.f32 %v11736_v23, %v2288_v19  ;;  %v2378_v32 = vadd.f32 %v11736_v23, %v2292_v24  ;;  %v10013_v19 = vld [vmem:[#allocation8 + $0x320] ss:$16 sps:$4 sm:$0xff]   ;;  %v10024_v24 = vld [vmem:[#allocation8 + $0x34c] ss:$16 sps:$4 sm:$0xff]  }
 0x2d9   : > { %3262 = vmatpush1.bf16.msra.mxu0 %v9945_v33  ;;  %3488 = vmatpush1.bf16.msra.mxu1 %v9946_v35  ;;  %v2421_v33 = vpack.c.bf16 %v2369_v22, %v2365_v20  ;;  %v2287_v35 = vld [vmem:[#allocation2 + $0xc0] sm:$0xff]  ;;  %v10016_v20 = vld [vmem:[#allocation8 + $0x328] ss:$16 sps:$4 sm:$0xff]  }
 0x2da   : > { %3263 = vmatprep.subr.bf16.mxu0 %v9947_v36  ;;  %3489 = vmatprep.subr.bf16.mxu1 %v9949_v37  ;;  %v2291_v36 = vld [vmem:[#allocation2 + $0xe0] sm:$0xff]  ;;  %v2373_v42 = vadd.f32 %v11745_v39, %v2287_v35 }
 0x2db   : > { %v9991_v37 = vld [vmem:[#allocation8 + $0x2a4] ss:$16 sps:$4 sm:$0xff]   ;;  %v10025_v35 = vld [vmem:[#allocation8 + $0x360] ss:$16 sps:$4 sm:$0xff]  }
 0x2dc   : > { %v10021_v22 = vld [vmem:[#allocation8 + $0x344] ss:$16 sps:$4 sm:$0xff]  }
 0x2dd   : > { %3264 = vmatpush1.bf16.msra.mxu0 %v9951_v38  ;;  %3490 = vmatpush1.bf16.msra.mxu1 %v9952_v40  ;;  %v9994_v38 = vld [vmem:[#allocation8 + $0x2ac] ss:$16 sps:$4 sm:$0xff]   ;;  %v2426_v40 = vpack.c.bf16 %v2378_v32, %v2374_v31  ;;  %v2315_v31 = vld [vmem:[#allocation2 + $0x1a0] sm:$0xff] }
 0x2de   : > { %3265 = vmatprep.subr.bf16.mxu0 %v9953_v43  ;;  %3491 = vmatprep.subr.bf16.mxu1 %v9955_v44  ;;  %v2377_v43 = vadd.f32 %v11745_v39, %v2291_v36  ;;  %v2296_v44 = vld [vmem:[#allocation2 + $0x108] sm:$0xff]  ;;  %v10027_v32 = vld [vmem:[#allocation8 + $0x364] ss:$16 sps:$4 sm:$0xff]  }
 0x2e0   : > { %v2425_v53 = vpack.c.bf16 %v2377_v43, %v2373_v42  ;;  %v10028_v42 = vld [vmem:[#allocation8 + $0x368] ss:$16 sps:$4 sm:$0xff]   ;;  %v10033_v43 = vld [vmem:[#allocation8 + $0x384] ss:$16 sps:$4 sm:$0xff]  }
 0x2e1   : > { %3266 = vmatpush1.bf16.msra.mxu0 %v9957_v45  ;;  %3492 = vmatpush1.bf16.msra.mxu1 %v9958_v50  ;;  %v2300_v45 = vld [vmem:[#allocation2 + $0x128] sm:$0xff] }
 0x2e2   : > { %3348 = vmatprep.subr.bf16.mxu0 %v9961_v51  ;;  %3574 = vmatprep.subr.bf16.mxu1 %v9964_v52  ;;  %v9998_v50 = vld [vmem:[#allocation8 + $0x2c8] ss:$16 sps:$4 sm:$0xff]   ;;  %v2382_v51 = vadd.f32 %v11736_v23, %v2296_v44  ;;  %v2386_v52 = vadd.f32 %v11736_v23, %v2300_v45  ;;  %v10036_v44 = vld [vmem:[#allocation8 + $0x38c] ss:$16 sps:$4 sm:$0xff]   ;;  %v10031_v45 = vld [vmem:[#allocation8 + $0x380] ss:$16 sps:$4 sm:$0xff]  }
 0x2e4   : > { %3268 = vmatmul.mubr.bf16.vlgmr.msra.gmra.mrb[0].mxu0 %v2413_v55  ;;  %3494 = vmatmul.mubr.bf16.vlgmr.msra.gmra.mrb[0].mxu1 %v2413_v55  ;;  %v2299_v55 = vld [vmem:[#allocation2 + $0x120] sm:$0xff]  ;;  %v2430_v59 = vpack.c.bf16 %v2386_v52, %v2382_v51 }
 0x2e5   : > { %3349 = vmatpush1.bf16.msra.mxu0 %v9959_v56  ;;  %3575 = vmatpush1.bf16.msra.mxu1 %v9962_v57  ;;  %v10003_v56 = vld [vmem:[#allocation8 + $0x2e4] ss:$16 sps:$4 sm:$0xff]   ;;  %v10006_v57 = vld [vmem:[#allocation8 + $0x2ec] ss:$16 sps:$4 sm:$0xff]  }
 0x2e6   : > { %3350 = vmatprep.subr.bf16.mxu0 %v9967_v60  ;;  %3576 = vmatprep.subr.bf16.mxu1 %v9970_v61  ;;  %v2304_v60 = vld [vmem:[#allocation2 + $0x148] sm:$0xff]  ;;  %v2381_v61 = vadd.f32 %v11745_v39, %v2295_v54  ;;  %v2319_v51 = vld [vmem:[#allocation2 + $0x1c0] sm:$0xff] }
 0x2e7   : > { %3277 = vmatprep.mubr.bf16.mxu0 %v2418_v63  ;;  %3503 = vmatprep.mubr.bf16.mxu1 %v2418_v63  ;;  %v2308_v63 = vld [vmem:[#allocation2 + $0x168] sm:$0xff]  ;;  %v2390_v3 = vadd.f32 %v11736_v23, %v2304_v60  ;;  %v2323_v52 = vld [vmem:[#allocation2 + $0x1e0] sm:$0xff] }
 0x2e8   : > { %v10042_v54 = vld [vmem:[#allocation8 + $0x3ac] ss:$16 sps:$4 sm:$0xff]   ;;  %v2409_v60 = vadd.f32 %v11745_v39, %v2323_v52  ;;  %v10075_v52 = vld [vmem:[#allocation9 + $0x64] ss:$16 sps:$4 sm:$0xff]  }
 0x2e9   : > { %3351 = vmatpush1.bf16.msra.mxu0 %v9965_v62  ;;  %3577 = vmatpush1.bf16.msra.mxu1 %v9968_v4  ;;  %v2385_v62 = vadd.f32 %v11745_v39, %v2299_v55  ;;  %v2394_v4 = vadd.f32 %v11736_v23, %v2308_v63  ;;  %v10037_v55 = vld [vmem:[#allocation8 + $0x3a0] ss:$16 sps:$4 sm:$0xff]   ;;  %v10045_v63 = vld [vmem:[#allocation8 + $0x3c4] ss:$16 sps:$4 sm:$0xff]  }
 0x2ea   : > { %3352 = vmatprep.subr.bf16.mxu0 %v9973_v5  ;;  %3578 = vmatprep.subr.bf16.mxu1 %v9976_v6  ;;  %v10007_v6 = vld [vmem:[#allocation8 + $0x300] ss:$16 sps:$4 sm:$0xff]  }
 0x2eb   : > { %v2429_v5 = vpack.c.bf16 %v2385_v62, %v2381_v61  ;;  %v2434_v13 = vpack.c.bf16 %v2394_v4, %v2390_v3  ;;  %v2270_v61 = vld [vmem:[#allocation2 + $0x38] sm:$0xff] }
 0x2ec   : > { %3278 = vmatmul.mubr.bf16.gmra.mrb[4].mxu0 %v2417_v12  ;;  %3504 = vmatmul.mubr.bf16.gmra.mrb[4].mxu1 %v2417_v12  ;;  %v10018_v12 = vld [vmem:[#allocation8 + $0x32c] ss:$16 sps:$4 sm:$0xff]   ;;  %v10040_v62 = vld [vmem:[#allocation8 + $0x3a8] ss:$16 sps:$4 sm:$0xff]  }
 0x2ed   : > { %3353 = vmatpush1.bf16.msra.mxu0 %v9971_v7  ;;  %3579 = vmatpush1.bf16.msra.mxu1 %v9974_v8  ;;  %v10010_v7 = vld [vmem:[#allocation8 + $0x308] ss:$16 sps:$4 sm:$0xff]   ;;  %v2303_v8 = vld [vmem:[#allocation2 + $0x140] sm:$0xff] }
 0x2ee   : > { %3354 = vmatprep.subr.bf16.mxu0 %v9979_v15  ;;  %3580 = vmatprep.subr.bf16.mxu1 %v9982_v17  ;;  %v2389_v14 = vadd.f32 %v11745_v39, %v2303_v8  ;;  %v2393_v15 = vadd.f32 %v11745_v39, %v2307_v9  ;;  %v2312_v17 = vld [vmem:[#allocation2 + $0x188] sm:$0xff]  ;;  %v2269_v8 = vld [vmem:[#allocation2 + $0x30] sm:$0xff]  ;;  %v2274_v9 = vld [vmem:[#allocation2 + $0x58] sm:$0xff] }
 0x2ef   : > { %3287 = vmatprep.mubr.bf16.mxu0 %v2422_v18  ;;  %3513 = vmatprep.mubr.bf16.mxu1 %v2422_v18  ;;  %v2316_v18 = vld [vmem:[#allocation2 + $0x1a8] sm:$0xff] }
 0x2f1   : > { %3355 = vmatpush1.bf16.msra.mxu0 %v9977_v25  ;;  %3581 = vmatpush1.bf16.msra.mxu1 %v9980_v26  ;;  %v2398_v25 = vadd.f32 %v11736_v23, %v2312_v17  ;;  %v2402_v26 = vadd.f32 %v11736_v23, %v2316_v18 }
 0x2f2   : > { %3356 = vmatprep.subr.bf16.mxu0 %v9985_v27  ;;  %3582 = vmatprep.subr.bf16.mxu1 %v9988_v28  ;;  %v2433_v27 = vpack.c.bf16 %v2393_v15, %v2389_v14  ;;  %v10019_v28 = vld [vmem:[#allocation8 + $0x340] ss:$16 sps:$4 sm:$0xff]   ;;  %v10052_v15 = vld [vmem:[#allocation8 + $0x3e8] ss:$16 sps:$4 sm:$0xff]  }
 0x2f3   : > { %v2438_v36 = vpack.c.bf16 %v2402_v26, %v2398_v25  ;;  %v2282_v26 = vld [vmem:[#allocation2 + $0x98] sm:$0xff] }
 0x2f4   : > { %3288 = vmatmul.mubr.bf16.gmra.mrb[8].mxu0 %v2421_v33  ;;  %3514 = vmatmul.mubr.bf16.gmra.mrb[8].mxu1 %v2421_v33  ;;  %v10030_v33 = vld [vmem:[#allocation8 + $0x36c] ss:$16 sps:$4 sm:$0xff]  }
 0x2f5   : > { %3357 = vmatpush1.bf16.msra.mxu0 %v9983_v29  ;;  %3583 = vmatpush1.bf16.msra.mxu1 %v9986_v30  ;;  %v10022_v29 = vld [vmem:[#allocation8 + $0x348] ss:$16 sps:$4 sm:$0xff]   ;;  %v2311_v30 = vld [vmem:[#allocation2 + $0x180] sm:$0xff] }
 0x2f6   : > { %3358 = vmatprep.subr.bf16.mxu0 %v9991_v37  ;;  %3584 = vmatprep.subr.bf16.mxu1 %v9994_v38  ;;  %v2320_v37 = vld [vmem:[#allocation2 + $0x1c8] sm:$0xff]  ;;  %v2397_v38 = vadd.f32 %v11745_v39, %v2311_v30 }
 0x2f7   : > { %3297 = vmatprep.mubr.bf16.mxu0 %v2426_v40  ;;  %3523 = vmatprep.mubr.bf16.mxu1 %v2426_v40  ;;  %v2401_v40 = vadd.f32 %v11745_v39, %v2315_v31  ;;  %v10058_v30 = vld [vmem:[#allocation9 + $0x8] ss:$16 sps:$4 sm:$0xff]   ;;  %v10063_v31 = vld [vmem:[#allocation9 + $0x24] ss:$16 sps:$4 sm:$0xff]  }
 0x2f9   : > { %3359 = vmatpush1.bf16.msra.mxu0 %v9989_v41  ;;  %3585 = vmatpush1.bf16.msra.mxu1 %v9992_v46  ;;  %v2324_v41 = vld [vmem:[#allocation2 + $0x1e8] sm:$0xff] }
 0x2fa   : > { %3360 = vmatprep.subr.bf16.mxu0 %v9997_v47  ;;  %3586 = vmatprep.subr.bf16.mxu1 %v10000_v48  ;;  %v10034_v46 = vld [vmem:[#allocation8 + $0x388] ss:$16 sps:$4 sm:$0xff]   ;;  %v2406_v47 = vadd.f32 %v11736_v23, %v2320_v37  ;;  %v2410_v48 = vadd.f32 %v11736_v23, %v2324_v41  ;;  %v11783_v23 = vsub.s32 2, %v11724_v11  ;;  %v2281_v41 = vld [vmem:[#allocation2 + $0x90] sm:$0xff] }
 0x2fc   : > { %3298 = vmatmul.mubr.bf16.gmra.mrb[12].mxu0 %v2425_v53  ;;  %3524 = vmatmul.mubr.bf16.gmra.mrb[12].mxu1 %v2425_v53  ;;  %v10039_v53 = vld [vmem:[#allocation8 + $0x3a4] ss:$16 sps:$4 sm:$0xff]   ;;  %13452 = vst [vmem:[#allocation25_spill] sm:$0xff] %v11783_v23  ;;  %v11791_v4 = vrot.slane %v11732_v21, %v11783_v23 }
 0x2fd   : > { %3361 = vmatpush1.bf16.msra.mxu0 %v9995_v49  ;;  %3587 = vmatpush1.bf16.msra.mxu1 %v9998_v50  ;;  %v11776_v49 = vsub.s32 3, %v11724_v11  ;;  %v2437_v50 = vpack.c.bf16 %v2401_v40, %v2397_v38  ;;  %v10061_v38 = vld [vmem:[#allocation9 + $0x20] ss:$16 sps:$4 sm:$0xff]   ;;  %v10064_v40 = vld [vmem:[#allocation9 + $0x28] ss:$16 sps:$4 sm:$0xff]  }
 0x2fe   : > { %3362 = vmatprep.subr.bf16.mxu0 %v10003_v56  ;;  %3588 = vmatprep.subr.bf16.mxu1 %v10006_v57  ;;  %v2442_v56 = vpack.c.bf16 %v2410_v48, %v2406_v47  ;;  %v2266_v57 = vld [vmem:[#allocation2 + $0x18] sm:$0xff] }
 0x2ff   : > { %3307 = vmatprep.mubr.bf16.mxu0 %v2430_v59  ;;  %3533 = vmatprep.mubr.bf16.mxu1 %v2430_v59  ;;  %13451 = vst [vmem:[#allocation24_spill] sm:$0xff] %v11776_v49  ;;  %v2405_v59 = vadd.f32 %v11745_v39, %v2319_v51  ;;  %v2294_v48 = vld [vmem:[#allocation2 + $0xf8] sm:$0xff] }
 0x300   : > { %v10070_v51 = vld [vmem:[#allocation9 + $0x48] ss:$16 sps:$4 sm:$0xff]  }
 0x301   : > { %3363 = vmatpush1.bf16.msra.mxu0 %v10001_v58  ;;  %3589 = vmatpush1.bf16.msra.mxu1 %v10004_v0  ;;  %v11780_v58 = vrot.slane %v11732_v21, %v11776_v49  ;;  %v10048_v0 = vld [vmem:[#allocation8 + $0x3cc] ss:$16 sps:$4 sm:$0xff]   ;;  %v2441_v39 = vpack.c.bf16 %v2409_v60, %v2405_v59  ;;  %v2355_v21 = vadd.f32 %v11791_v4, %v2269_v8  ;;  %v10073_v59 = vld [vmem:[#allocation9 + $0x60] ss:$16 sps:$4 sm:$0xff]   ;;  %v10076_v60 = vld [vmem:[#allocation9 + $0x68] ss:$16 sps:$4 sm:$0xff]  }
 0x302   : > { %3364 = vmatprep.subr.bf16.mxu0 %v10009_v1  ;;  %3590 = vmatprep.subr.bf16.mxu1 %v10012_v2  ;;  %v10043_v1 = vld [vmem:[#allocation8 + $0x3c0] ss:$16 sps:$4 sm:$0xff]   ;;  %v10046_v2 = vld [vmem:[#allocation8 + $0x3c8] ss:$16 sps:$4 sm:$0xff]  }
 0x303   : > { %v2352_v11 = vadd.f32 %v11780_v58, %v2266_v57  ;;  %v2356_v3 = vadd.f32 %v11780_v58, %v2270_v61  ;;  %v2360_v17 = vadd.f32 %v11780_v58, %v2274_v9  ;;  %v2380_v57 = vadd.f32 %v11780_v58, %v2294_v48  ;;  %v2289_v61 = vld [vmem:[#allocation2 + $0xd0] sm:$0xff]  ;;  %v10114_v48 = vld [vmem:[#allocation9 + $0x12c] ss:$16 sps:$4 sm:$0xff]  }
 0x304   : > { %3308 = vmatmul.mubr.bf16.gmra.mrb[16].mxu0 %v2429_v5  ;;  %3534 = vmatmul.mubr.bf16.gmra.mrb[16].mxu1 %v2429_v5  ;;  %v10051_v5 = vld [vmem:[#allocation8 + $0x3e4] ss:$16 sps:$4 sm:$0xff]   ;;  %v2375_v8 = vadd.f32 %v11791_v4, %v2289_v61 }
 0x305   : > { %3365 = vmatpush1.bf16.msra.mxu0 %v10007_v6  ;;  %3591 = vmatpush1.bf16.msra.mxu1 %v10010_v7  ;;  %v10054_v6 = vld [vmem:[#allocation8 + $0x3ec] ss:$16 sps:$4 sm:$0xff]   ;;  %v2265_v7 = vld [vmem:[#allocation2 + $0x10] sm:$0xff] }
 0x306   : > { %3366 = vmatprep.subr.bf16.mxu0 %v10015_v10  ;;  %3592 = vmatprep.subr.bf16.mxu1 %v10018_v12  ;;  %v2278_v10 = vld [vmem:[#allocation2 + $0x78] sm:$0xff]  ;;  %v2416_v12 = vpack.c.bf16 %v2356_v3, %v2352_v11  ;;  %v2351_v14 = vadd.f32 %v11791_v4, %v2265_v7  ;;  %v10079_v3 = vld [vmem:[#allocation9 + $0x80] ss:$16 sps:$4 sm:$0xff]  }
 0x307   : > { %3317 = vmatprep.mubr.bf16.mxu0 %v2434_v13  ;;  %3543 = vmatprep.mubr.bf16.mxu1 %v2434_v13  ;;  %v10049_v13 = vld [vmem:[#allocation8 + $0x3e0] ss:$16 sps:$4 sm:$0xff]   ;;  %v2364_v18 = vadd.f32 %v11780_v58, %v2278_v10  ;;  %v2302_v11 = vld [vmem:[#allocation2 + $0x138] sm:$0xff] }
 0x308   : > { %v2415_v25 = vpack.c.bf16 %v2355_v21, %v2351_v14  ;;  %v10090_v7 = vld [vmem:[#allocation9 + $0xac] ss:$16 sps:$4 sm:$0xff]   ;;  %v10085_v10 = vld [vmem:[#allocation9 + $0xa0] ss:$16 sps:$4 sm:$0xff]   ;;  %v2388_v14 = vadd.f32 %v11780_v58, %v2302_v11  ;;  %v10093_v21 = vld [vmem:[#allocation9 + $0xc4] ss:$16 sps:$4 sm:$0xff]  }
 0x309   : > { %3367 = vmatpush1.bf16.msra.mxu0 %v10013_v19  ;;  %3593 = vmatpush1.bf16.msra.mxu1 %v10016_v20  ;;  %v10057_v19 = vld [vmem:[#allocation9 + $0x4] ss:$16 sps:$4 sm:$0xff]   ;;  %v10060_v20 = vld [vmem:[#allocation9 + $0xc] ss:$16 sps:$4 sm:$0xff]  }
 0x30a   : > { %3368 = vmatprep.subr.bf16.mxu0 %v10021_v22  ;;  %3594 = vmatprep.subr.bf16.mxu1 %v10024_v24  ;;  %v2273_v22 = vld [vmem:[#allocation2 + $0x50] sm:$0xff] }
 0x30b   : > { %v2277_v24 = vld [vmem:[#allocation2 + $0x70] sm:$0xff] }
 0x30c   : > { %3318 = vmatmul.mubr.bf16.gmra.mrb[20].mxu0 %v2433_v27  ;;  %3544 = vmatmul.mubr.bf16.gmra.mrb[20].mxu1 %v2433_v27  ;;  %v2420_v27 = vpack.c.bf16 %v2364_v18, %v2360_v17  ;;  %v2297_v17 = vld [vmem:[#allocation2 + $0x110] sm:$0xff] }
 0x30d   : > { %3369 = vmatpush1.bf16.msra.mxu0 %v10019_v28  ;;  %3595 = vmatpush1.bf16.msra.mxu1 %v10022_v29  ;;  %v2286_v28 = vld [vmem:[#allocation2 + $0xb8] sm:$0xff]  ;;  %v10055_v29 = vld [vmem:[#allocation9] ss:$16 sps:$4 sm:$0xff]   ;;  %v10123_v11 = vld [vmem:[#allocation9 + $0x164] ss:$16 sps:$4 sm:$0xff]  }
 0x30e   : > { %3370 = vmatprep.subr.bf16.mxu0 %v10027_v32  ;;  %3596 = vmatprep.subr.bf16.mxu1 %v10030_v33  ;;  %v10066_v32 = vld [vmem:[#allocation9 + $0x2c] ss:$16 sps:$4 sm:$0xff]   ;;  %v2359_v33 = vadd.f32 %v11791_v4, %v2273_v22  ;;  %v2372_v37 = vadd.f32 %v11780_v58, %v2286_v28  ;;  %v2301_v18 = vld [vmem:[#allocation2 + $0x130] sm:$0xff] }
 0x30f   : > { %3327 = vmatprep.mubr.bf16.mxu0 %v2438_v36  ;;  %3553 = vmatprep.mubr.bf16.mxu1 %v2438_v36  ;;  %v2368_v36 = vadd.f32 %v11780_v58, %v2282_v26  ;;  %v2310_v22 = vld [vmem:[#allocation2 + $0x178] sm:$0xff] }
 0x310   : > { %v10102_v28 = vld [vmem:[#allocation9 + $0xec] ss:$16 sps:$4 sm:$0xff]  }
 0x311   : > { %3371 = vmatpush1.bf16.msra.mxu0 %v10025_v35  ;;  %3597 = vmatpush1.bf16.msra.mxu1 %v10028_v42  ;;  %v2363_v35 = vadd.f32 %v11791_v4, %v2277_v24  ;;  %v2285_v42 = vld [vmem:[#allocation2 + $0xb0] sm:$0xff]  ;;  %v2424_v47 = vpack.c.bf16 %v2372_v37, %v2368_v36  ;;  %v10108_v37 = vld [vmem:[#allocation9 + $0x10c] ss:$16 sps:$4 sm:$0xff]  }
 0x312   : > { %3372 = vmatprep.subr.bf16.mxu0 %v10033_v43  ;;  %3598 = vmatprep.subr.bf16.mxu1 %v10036_v44  ;;  %v10069_v43 = vld [vmem:[#allocation9 + $0x44] ss:$16 sps:$4 sm:$0xff]   ;;  %v10072_v44 = vld [vmem:[#allocation9 + $0x4c] ss:$16 sps:$4 sm:$0xff]   ;;  %v10091_v24 = vld [vmem:[#allocation9 + $0xc0] ss:$16 sps:$4 sm:$0xff]  }
 0x313   : > { %v10105_v36 = vld [vmem:[#allocation9 + $0x104] ss:$16 sps:$4 sm:$0xff]  }
 0x314   : > { %3328 = vmatmul.mubr.bf16.gmra.mrb[24].mxu0 %v2437_v50  ;;  %3554 = vmatmul.mubr.bf16.gmra.mrb[24].mxu1 %v2437_v50  ;;  %v10067_v50 = vld [vmem:[#allocation9 + $0x40] ss:$16 sps:$4 sm:$0xff]  }
 0x315   : > { %3373 = vmatpush1.bf16.msra.mxu0 %v10031_v45  ;;  %3599 = vmatpush1.bf16.msra.mxu1 %v10034_v46  ;;  %v2419_v45 = vpack.c.bf16 %v2363_v35, %v2359_v33  ;;  %v2290_v46 = vld [vmem:[#allocation2 + $0xd8] sm:$0xff]  ;;  %v2396_v35 = vadd.f32 %v11780_v58, %v2310_v22 }
 0x316   : > { %3374 = vmatprep.subr.bf16.mxu0 %v10039_v53  ;;  %3600 = vmatprep.subr.bf16.mxu1 %v10042_v54  ;;  %v10078_v53 = vld [vmem:[#allocation9 + $0x6c] ss:$16 sps:$4 sm:$0xff]   ;;  %v2367_v54 = vadd.f32 %v11791_v4, %v2281_v41 }
 0x317   : > { %3337 = vmatprep.mubr.bf16.mxu0 %v2442_v56  ;;  %3563 = vmatprep.mubr.bf16.mxu1 %v2442_v56  ;;  %v2376_v56 = vadd.f32 %v11780_v58, %v2290_v46 }
 0x319   : > { %3375 = vmatpush1.bf16.msra.mxu0 %v10037_v55  ;;  %3601 = vmatpush1.bf16.msra.mxu1 %v10040_v62  ;;  %v2371_v55 = vadd.f32 %v11791_v4, %v2285_v42  ;;  %v2293_v62 = vld [vmem:[#allocation2 + $0xf0] sm:$0xff]  ;;  %v2314_v42 = vld [vmem:[#allocation2 + $0x198] sm:$0xff] }
 0x31a   : > { %3376 = vmatprep.subr.bf16.mxu0 %v10045_v63  ;;  %3602 = vmatprep.subr.bf16.mxu1 %v10048_v0  ;;  %v10081_v63 = vld [vmem:[#allocation9 + $0x84] ss:$16 sps:$4 sm:$0xff]   ;;  %v10084_v0 = vld [vmem:[#allocation9 + $0x8c] ss:$16 sps:$4 sm:$0xff]   ;;  %v2379_v9 = vadd.f32 %v11791_v4, %v2293_v62 }
 0x31b   : > { %v2322_v62 = vld [vmem:[#allocation2 + $0x1d8] sm:$0xff] }
 0x31c   : > { %3338 = vmatmul.mubr.bf16.gmra.mrb[28].mxu0 %v2441_v39  ;;  %3564 = vmatmul.mubr.bf16.gmra.mrb[28].mxu1 %v2441_v39  ;;  %v10082_v39 = vld [vmem:[#allocation9 + $0x88] ss:$16 sps:$4 sm:$0xff]  }
 0x31d   : > { %3377 = vmatpush1.bf16.msra.mxu0 %v10043_v1  ;;  %3603 = vmatpush1.bf16.msra.mxu1 %v10046_v2  ;;  %v2423_v1 = vpack.c.bf16 %v2371_v55, %v2367_v54  ;;  %v2298_v2 = vld [vmem:[#allocation2 + $0x118] sm:$0xff]  ;;  %v2400_v54 = vadd.f32 %v11780_v58, %v2314_v42 }
 0x31e   : > { %3378 = vmatprep.subr.bf16.mxu0 %v10051_v5  ;;  %3604 = vmatprep.subr.bf16.mxu1 %v10054_v6  ;;  %v2428_v5 = vpack.c.bf16 %v2380_v57, %v2376_v56  ;;  %v10087_v6 = vld [vmem:[#allocation9 + $0xa4] ss:$16 sps:$4 sm:$0xff]   ;;  %v10120_v57 = vld [vmem:[#allocation9 + $0x14c] ss:$16 sps:$4 sm:$0xff]  }
 0x31f   : > { %3380 = vmatprep.mubr.bf16.mxu0 %v2416_v12  ;;  %3606 = vmatprep.mubr.bf16.mxu1 %v2416_v12  ;;  %v10088_v12 = vld [vmem:[#allocation9 + $0xa8] ss:$16 sps:$4 sm:$0xff]   ;;  %v10117_v56 = vld [vmem:[#allocation9 + $0x144] ss:$16 sps:$4 sm:$0xff]  }
 0x321   : > { %3379 = vmatpush1.bf16.msra.mxu0 %v10049_v13  ;;  %3605 = vmatpush1.bf16.msra.mxu1 %v10052_v15  ;;  %v2384_v13 = vadd.f32 %v11780_v58, %v2298_v2  ;;  %v10096_v15 = vld [vmem:[#allocation9 + $0xcc] ss:$16 sps:$4 sm:$0xff]  }
 0x322   : > { %4573 = vmatprep.subr.bf16.mxu0 %v10057_v19  ;;  %4799 = vmatprep.subr.bf16.mxu1 %v10060_v20  ;;  %v2427_v19 = vpack.c.bf16 %v2379_v9, %v2375_v8  ;;  %v2306_v20 = vld [vmem:[#allocation2 + $0x158] sm:$0xff]  ;;  %v2408_v8 = vadd.f32 %v11780_v58, %v2322_v62 }
 0x323   : > { %v2432_v26 = vpack.c.bf16 %v2388_v14, %v2384_v13  ;;  %v2392_v33 = vadd.f32 %v11780_v58, %v2306_v20  ;;  %v2321_v13 = vld [vmem:[#allocation2 + $0x1d0] sm:$0xff]  ;;  %v10138_v20 = vld [vmem:[#allocation9 + $0x1ac] ss:$16 sps:$4 sm:$0xff]  }
 0x324   : > { %3381 = vmatmul.mubr.bf16.vlgmr.msra.gmra.mrb[0].mxu0 %v2415_v25  ;;  %3607 = vmatmul.mubr.bf16.vlgmr.msra.gmra.mrb[0].mxu1 %v2415_v25  ;;  %v10094_v25 = vld [vmem:[#allocation9 + $0xc8] ss:$16 sps:$4 sm:$0xff]   ;;  %v2325_v14 = vld [vmem:[#allocation2 + $0x1f0] sm:$0xff] }
 0x325   : > { %3390 = vmatprep.mubr.bf16.mxu0 %v2420_v27  ;;  %3616 = vmatprep.mubr.bf16.mxu1 %v2420_v27  ;;  %v10099_v27 = vld [vmem:[#allocation9 + $0xe4] ss:$16 sps:$4 sm:$0xff]   ;;  %v2436_v46 = vpack.c.bf16 %v2396_v35, %v2392_v33  ;;  %v2411_v22 = vadd.f32 %v11791_v4, %v2325_v14  ;;  %v10148_v33 = vld [vmem:[#allocation9 + $0x1e8] ss:$16 sps:$4 sm:$0xff]  }
 0x326   : > { %4574 = vmatpush1.bf16.msra.mxu0 %v10055_v29  ;;  %4800 = vmatpush1.bf16.msra.mxu1 %v10058_v30  ;;  %v2383_v29 = vadd.f32 %v11791_v4, %v2297_v17  ;;  %v2387_v30 = vadd.f32 %v11791_v4, %v2301_v18  ;;  %v10130_v17 = vld [vmem:[#allocation9 + $0x188] ss:$16 sps:$4 sm:$0xff]   ;;  %v10153_v35 = vld [vmem:[#allocation9 + $0x204] ss:$16 sps:$4 sm:$0xff]  }
 0x327   : > { %4575 = vmatprep.subr.bf16.mxu0 %v10063_v31  ;;  %4801 = vmatprep.subr.bf16.mxu1 %v10066_v32  ;;  %v10097_v31 = vld [vmem:[#allocation9 + $0xe0] ss:$16 sps:$4 sm:$0xff]   ;;  %v10100_v32 = vld [vmem:[#allocation9 + $0xe8] ss:$16 sps:$4 sm:$0xff]  }
 0x328   : > { %v2431_v41 = vpack.c.bf16 %v2387_v30, %v2383_v29  ;;  %v10139_v29 = vld [vmem:[#allocation9 + $0x1c0] ss:$16 sps:$4 sm:$0xff]   ;;  %v10142_v30 = vld [vmem:[#allocation9 + $0x1c8] ss:$16 sps:$4 sm:$0xff]  }
 0x32a   : > { %4576 = vmatpush1.bf16.msra.mxu0 %v10061_v38  ;;  %4802 = vmatpush1.bf16.msra.mxu1 %v10064_v40  ;;  %v2305_v38 = vld [vmem:[#allocation2 + $0x150] sm:$0xff] }
 0x32b   : > { %4577 = vmatprep.subr.bf16.mxu0 %v10069_v43  ;;  %4803 = vmatprep.subr.bf16.mxu1 %v10072_v44  ;;  %v2309_v40 = vld [vmem:[#allocation2 + $0x170] sm:$0xff]  ;;  %v2318_v43 = vld [vmem:[#allocation2 + $0x1b8] sm:$0xff] }
 0x32c   : > { %3391 = vmatmul.mubr.bf16.gmra.mrb[4].mxu0 %v2419_v45  ;;  %3617 = vmatmul.mubr.bf16.gmra.mrb[4].mxu1 %v2419_v45  ;;  %v10103_v44 = vld [vmem:[#allocation9 + $0x100] ss:$16 sps:$4 sm:$0xff]   ;;  %v10106_v45 = vld [vmem:[#allocation9 + $0x108] ss:$16 sps:$4 sm:$0xff]   ;;  %v2404_v55 = vadd.f32 %v11780_v58, %v2318_v43 }
 0x32d   : > { %3400 = vmatprep.mubr.bf16.mxu0 %v2424_v47  ;;  %3626 = vmatprep.mubr.bf16.mxu1 %v2424_v47  ;;  %v10111_v47 = vld [vmem:[#allocation9 + $0x124] ss:$16 sps:$4 sm:$0xff]  }
 0x32e   : > { %4578 = vmatpush1.bf16.msra.mxu0 %v10067_v50  ;;  %4804 = vmatpush1.bf16.msra.mxu1 %v10070_v51  ;;  %v2391_v50 = vadd.f32 %v11791_v4, %v2305_v38  ;;  %v2395_v51 = vadd.f32 %v11791_v4, %v2309_v40  ;;  %v2440_v2 = vpack.c.bf16 %v2404_v55, %v2400_v54 }
 0x32f   : > { %4579 = vmatprep.subr.bf16.mxu0 %v10075_v52  ;;  %4805 = vmatprep.subr.bf16.mxu1 %v10078_v53  ;;  %v10109_v52 = vld [vmem:[#allocation9 + $0x120] ss:$16 sps:$4 sm:$0xff]   ;;  %v10112_v53 = vld [vmem:[#allocation9 + $0x128] ss:$16 sps:$4 sm:$0xff]  }
 0x330   : > { %v2435_v61 = vpack.c.bf16 %v2395_v51, %v2391_v50 }
 0x332   : > { %4580 = vmatpush1.bf16.msra.mxu0 %v10073_v59  ;;  %4806 = vmatpush1.bf16.msra.mxu1 %v10076_v60  ;;  %v2313_v59 = vld [vmem:[#allocation2 + $0x190] sm:$0xff] }
 0x333   : > { %4581 = vmatprep.subr.bf16.mxu0 %v10081_v63  ;;  %4807 = vmatprep.subr.bf16.mxu1 %v10084_v0  ;;  %v2317_v60 = vld [vmem:[#allocation2 + $0x1b0] sm:$0xff]  ;;  %v2326_v63 = vld [vmem:[#allocation2 + $0x1f8] sm:$0xff] }
 0x334   : > { %3401 = vmatmul.mubr.bf16.gmra.mrb[8].mxu0 %v2423_v1  ;;  %3627 = vmatmul.mubr.bf16.gmra.mrb[8].mxu1 %v2423_v1  ;;  %v10115_v0 = vld [vmem:[#allocation9 + $0x140] ss:$16 sps:$4 sm:$0xff]   ;;  %v10118_v1 = vld [vmem:[#allocation9 + $0x148] ss:$16 sps:$4 sm:$0xff]   ;;  %v2412_v9 = vadd.f32 %v11780_v58, %v2326_v63  ;;  %v2407_v58 = vadd.f32 %v11791_v4, %v2321_v13 }
 0x335   : > { %3410 = vmatprep.mubr.bf16.mxu0 %v2428_v5  ;;  %3636 = vmatprep.mubr.bf16.mxu1 %v2428_v5  ;;  %v2403_v5 = vadd.f32 %v11791_v4, %v2317_v60 }
 0x336   : > { %4582 = vmatpush1.bf16.msra.mxu0 %v10079_v3  ;;  %4808 = vmatpush1.bf16.msra.mxu1 %v10082_v39  ;;  %v10126_v3 = vld [vmem:[#allocation9 + $0x16c] ss:$16 sps:$4 sm:$0xff]   ;;  %v2399_v39 = vadd.f32 %v11791_v4, %v2313_v59  ;;  %v2444_v18 = vpack.c.bf16 %v2412_v9, %v2408_v8  ;;  %v10147_v4 = vld [vmem:[#allocation9 + $0x1e4] ss:$16 sps:$4 sm:$0xff]  }
 0x337   : > { %4583 = vmatprep.subr.bf16.mxu0 %v10087_v6  ;;  %4809 = vmatprep.subr.bf16.mxu1 %v10090_v7  ;;  %v10121_v6 = vld [vmem:[#allocation9 + $0x160] ss:$16 sps:$4 sm:$0xff]   ;;  %v10124_v7 = vld [vmem:[#allocation9 + $0x168] ss:$16 sps:$4 sm:$0xff]  }
 0x33a   : > { %4584 = vmatpush1.bf16.msra.mxu0 %v10085_v10  ;;  %4810 = vmatpush1.bf16.msra.mxu1 %v10088_v12  ;;  %v10129_v10 = vld [vmem:[#allocation9 + $0x184] ss:$16 sps:$4 sm:$0xff]   ;;  %v10132_v12 = vld [vmem:[#allocation9 + $0x18c] ss:$16 sps:$4 sm:$0xff]  }
 0x33b   : > { %4585 = vmatprep.subr.bf16.mxu0 %v10093_v21  ;;  %4811 = vmatprep.subr.bf16.mxu1 %v10096_v15  ;;  %v2439_v21 = vpack.c.bf16 %v2403_v5, %v2399_v39  ;;  %v10127_v15 = vld [vmem:[#allocation9 + $0x180] ss:$16 sps:$4 sm:$0xff]  }
 0x33c   : > { %3411 = vmatmul.mubr.bf16.gmra.mrb[12].mxu0 %v2427_v19  ;;  %3637 = vmatmul.mubr.bf16.gmra.mrb[12].mxu1 %v2427_v19  ;;  %v10135_v19 = vld [vmem:[#allocation9 + $0x1a4] ss:$16 sps:$4 sm:$0xff]  }
 0x33d   : > { %3420 = vmatprep.mubr.bf16.mxu0 %v2432_v26  ;;  %3646 = vmatprep.mubr.bf16.mxu1 %v2432_v26  ;;  %v2443_v26 = vpack.c.bf16 %v2411_v22, %v2407_v58 }
 0x33e   : > { %4586 = vmatpush1.bf16.msra.mxu0 %v10091_v24  ;;  %4812 = vmatpush1.bf16.msra.mxu1 %v10094_v25  ;;  %v10133_v24 = vld [vmem:[#allocation9 + $0x1a0] ss:$16 sps:$4 sm:$0xff]   ;;  %v10136_v25 = vld [vmem:[#allocation9 + $0x1a8] ss:$16 sps:$4 sm:$0xff]  }
 0x33f   : > { %4587 = vmatprep.subr.bf16.mxu0 %v10099_v27  ;;  %4813 = vmatprep.subr.bf16.mxu1 %v10102_v28  ;;  %v10141_v27 = vld [vmem:[#allocation9 + $0x1c4] ss:$16 sps:$4 sm:$0xff]   ;;  %v10144_v28 = vld [vmem:[#allocation9 + $0x1cc] ss:$16 sps:$4 sm:$0xff]  }
 0x342   : > { %4588 = vmatpush1.bf16.msra.mxu0 %v10097_v31  ;;  %4814 = vmatpush1.bf16.msra.mxu1 %v10100_v32  ;;  %v10150_v31 = vld [vmem:[#allocation9 + $0x1ec] ss:$16 sps:$4 sm:$0xff]   ;;  %v10145_v32 = vld [vmem:[#allocation9 + $0x1e0] ss:$16 sps:$4 sm:$0xff]  }
 0x343   : > { %4589 = vmatprep.subr.bf16.mxu0 %v10105_v36  ;;  %4815 = vmatprep.subr.bf16.mxu1 %v10108_v37  ;;  %v10156_v36 = vld [vmem:[#allocation9 + $0x20c] ss:$16 sps:$4 sm:$0xff]   ;;  %v2573_v37 = vld [vmem:[%s13453_s20] sm:$0xf] }
 0x344   : > { %3421 = vmatmul.mubr.bf16.gmra.mrb[16].mxu0 %v2431_v41  ;;  %3647 = vmatmul.mubr.bf16.gmra.mrb[16].mxu1 %v2431_v41  ;;  %v11827_v38 = vrot.slane %v2573_v37, %v11741_v34  ;;  %v11830_v40 = vrot.slane %v2573_v37, %v11783_v23  ;;  %v11833_v41 = vrot.slane %v2573_v37, %v11727_v16 }
 0x345   : > { %3430 = vmatprep.mubr.bf16.mxu0 %v2436_v46  ;;  %3656 = vmatprep.mubr.bf16.mxu1 %v2436_v46  ;;  %v11836_v42 = vrot.slane %v2573_v37, %v11776_v49  ;;  %v10168_v37 = vld [vmem:[#allocation9 + $0x24c] ss:$16 sps:$4 sm:$0xff]  }
 0x346   : > { %4590 = vmatpush1.bf16.msra.mxu0 %v10103_v44  ;;  %4816 = vmatpush1.bf16.msra.mxu1 %v10106_v45 }
 0x347   : > { %4591 = vmatprep.subr.bf16.mxu0 %v10111_v47  ;;  %4817 = vmatprep.subr.bf16.mxu1 %v10114_v48 }
 0x34a   : > { %4592 = vmatpush1.bf16.msra.mxu0 %v10109_v52  ;;  %4818 = vmatpush1.bf16.msra.mxu1 %v10112_v53 }
 0x34b   : > { %4593 = vmatprep.subr.bf16.mxu0 %v10117_v56  ;;  %4819 = vmatprep.subr.bf16.mxu1 %v10120_v57 }
 0x34c   : > { %3431 = vmatmul.mubr.bf16.gmra.mrb[20].mxu0 %v2435_v61  ;;  %3657 = vmatmul.mubr.bf16.gmra.mrb[20].mxu1 %v2435_v61 }
 0x34d   : > { %3440 = vmatprep.mubr.bf16.mxu0 %v2440_v2  ;;  %3666 = vmatprep.mubr.bf16.mxu1 %v2440_v2 }
 0x34e   : > { %4594 = vmatpush1.bf16.msra.mxu0 %v10115_v0  ;;  %4820 = vmatpush1.bf16.msra.mxu1 %v10118_v1 }
 0x34f   : > { %4595 = vmatprep.subr.bf16.mxu0 %v10123_v11  ;;  %4821 = vmatprep.subr.bf16.mxu1 %v10126_v3 }
 0x352   : > { %4596 = vmatpush1.bf16.msra.mxu0 %v10121_v6  ;;  %4822 = vmatpush1.bf16.msra.mxu1 %v10124_v7 }
 0x353   : > { %4597 = vmatprep.subr.bf16.mxu0 %v10129_v10  ;;  %4823 = vmatprep.subr.bf16.mxu1 %v10132_v12  ;;  %v10151_v10 = vld [vmem:[#allocation9 + $0x200] ss:$16 sps:$4 sm:$0xff]   ;;  %v10154_v12 = vld [vmem:[#allocation9 + $0x208] ss:$16 sps:$4 sm:$0xff]  }
 0x354   : > { %3441 = vmatmul.mubr.bf16.gmra.mrb[24].mxu0 %v2439_v21  ;;  %3667 = vmatmul.mubr.bf16.gmra.mrb[24].mxu1 %v2439_v21 }
 0x355   : > { %3450 = vmatprep.mubr.bf16.mxu0 %v2444_v18  ;;  %3676 = vmatprep.mubr.bf16.mxu1 %v2444_v18  ;;  %v10162_v18 = vld [vmem:[#allocation9 + $0x22c] ss:$16 sps:$4 sm:$0xff]  }
 0x356   : > { %4598 = vmatpush1.bf16.msra.mxu0 %v10127_v15  ;;  %4824 = vmatpush1.bf16.msra.mxu1 %v10130_v17  ;;  %v10159_v17 = vld [vmem:[#allocation9 + $0x224] ss:$16 sps:$4 sm:$0xff]  }
 0x357   : > { %4599 = vmatprep.subr.bf16.mxu0 %v10135_v19  ;;  %4825 = vmatprep.subr.bf16.mxu1 %v10138_v20 }
 0x35a   : > { %4600 = vmatpush1.bf16.msra.mxu0 %v10133_v24  ;;  %4826 = vmatpush1.bf16.msra.mxu1 %v10136_v25 }
 0x35b   : > { %4601 = vmatprep.subr.bf16.mxu0 %v10141_v27  ;;  %4827 = vmatprep.subr.bf16.mxu1 %v10144_v28 }
 0x35c   : > { %3451 = vmatmul.mubr.bf16.gmra.mrb[28].mxu0 %v2443_v26  ;;  %3677 = vmatmul.mubr.bf16.gmra.mrb[28].mxu1 %v2443_v26 }
 0x35e   : > { %4602 = vmatpush1.bf16.msra.mxu0 %v10139_v29  ;;  %4828 = vmatpush1.bf16.msra.mxu1 %v10142_v30  ;;  %v10157_v30 = vld [vmem:[#allocation9 + $0x220] ss:$16 sps:$4 sm:$0xff]  }
 0x35f   : > { %4603 = vmatprep.subr.bf16.mxu0 %v10147_v4  ;;  %4829 = vmatprep.subr.bf16.mxu1 %v10150_v31  ;;  %v10160_v4 = vld [vmem:[#allocation9 + $0x228] ss:$16 sps:$4 sm:$0xff]   ;;  %v10165_v31 = vld [vmem:[#allocation9 + $0x244] ss:$16 sps:$4 sm:$0xff]  }
 0x362   : > { %4604 = vmatpush1.bf16.msra.mxu0 %v10145_v32  ;;  %4830 = vmatpush1.bf16.msra.mxu1 %v10148_v33 }
 0x363   : > { %4686 = vmatprep.subr.bf16.mxu0 %v10153_v35  ;;  %4912 = vmatprep.subr.bf16.mxu1 %v10156_v36 }
 0x3f7   : > { %v3382_v43 = vpop.f32.mrb[0].mxu0  ;;  %v3608_v44 = vpop.f32.mrb[0].mxu1 }
 0x3f8   : > { %v9112_v45 = vadd.f32 %v3382_v43, %v11827_v38  ;;  %v9144_v46 = vadd.f32 %v3608_v44, %v11830_v40  ;;  %v3384_v47 = vpop.f32.mrb[1].mxu0  ;;  %v3610_v48 = vpop.f32.mrb[1].mxu1 }
 0x3f9   : > { %v9113_v50 = vadd.f32 %v3384_v47, %v11833_v41  ;;  %v9145_v51 = vadd.f32 %v3610_v48, %v11836_v42  ;;  %v3386_v52 = vpop.f32.mrb[2].mxu0  ;;  %v3612_v53 = vpop.f32.mrb[2].mxu1 }
 0x3fa   : > { %v9114_v54 = vadd.f32 %v3386_v52, %v11827_v38  ;;  %v9146_v55 = vadd.f32 %v3612_v53, %v11830_v40  ;;  %v3388_v56 = vpop.f32.mrb[3].mxu0  ;;  %v3614_v57 = vpop.f32.mrb[3].mxu1  ;;  %v3687_v61 = vmax.f32 %v9112_v45, 0.0  ;;  %v3689_v62 = vmax.f32 %v9144_v46, 0.0 }
 0x3fb   : > { %v9115_v59 = vadd.f32 %v3388_v56, %v11833_v41  ;;  %v9147_v60 = vadd.f32 %v3614_v57, %v11836_v42  ;;  %v3688_v1 = vmax.f32 %v9113_v50, 0.0  ;;  %v3690_v2 = vmax.f32 %v9145_v51, 0.0 }
 0x3fc   : > { %v3691_v63 = vmax.f32 %v9114_v54, 0.0  ;;  %v3693_v0 = vmax.f32 %v9146_v55, 0.0  ;;  %v10163_v54 = vld [vmem:[#allocation9 + $0x240] ss:$16 sps:$4 sm:$0xff]   ;;  %v10166_v55 = vld [vmem:[#allocation9 + $0x248] ss:$16 sps:$4 sm:$0xff]  }
 0x3fd   : > { %v3692_v11 = vmax.f32 %v9115_v59, 0.0  ;;  %v3694_v3 = vmax.f32 %v9147_v60, 0.0 }
 0x3fe   : > { %v3751_v39 = vpack.c.bf16 %v3691_v63, %v3687_v61  ;;  %v11846_v5 = vpack.c.bf16 %v3693_v0, %v3689_v62  ;;  %v10171_v61 = vld [vmem:[#allocation9 + $0x264] ss:$16 sps:$4 sm:$0xff]   ;;  %v10174_v62 = vld [vmem:[#allocation9 + $0x26c] ss:$16 sps:$4 sm:$0xff]  }
 0x3ff   : > { %v3752_v6 = vpack.c.bf16 %v3692_v11, %v3688_v1  ;;  %v11848_v7 = vpack.c.bf16 %v3694_v3, %v3690_v2  ;;  %v3392_v8 = vpop.f32.mrb[4].mxu0  ;;  %v3618_v9 = vpop.f32.mrb[4].mxu1 }
 0x400   : > { %v9116_v13 = vadd.f32 %v3392_v8, %v11827_v38  ;;  %v9148_v14 = vadd.f32 %v3618_v9, %v11830_v40  ;;  %v3394_v21 = vpop.f32.mrb[5].mxu0  ;;  %v3620_v15 = vpop.f32.mrb[5].mxu1 }
 0x401   : > { %v9117_v19 = vadd.f32 %v3394_v21, %v11833_v41  ;;  %v9149_v20 = vadd.f32 %v3620_v15, %v11836_v42  ;;  %v3396_v58 = vpop.f32.mrb[6].mxu0  ;;  %v3622_v22 = vpop.f32.mrb[6].mxu1  ;;  %4605 = vmatprep.mubr.bf16.mxu0 %v3752_v6  ;;  %4831 = vmatprep.mubr.bf16.mxu1 %v3752_v6 }
 0x402   : > { %v9118_v24 = vadd.f32 %v3396_v58, %v11827_v38  ;;  %v9150_v25 = vadd.f32 %v3622_v22, %v11830_v40  ;;  %v3398_v26 = vpop.f32.mrb[7].mxu0  ;;  %v3624_v27 = vpop.f32.mrb[7].mxu1  ;;  %4606 = vmatmul.mubr.bf16.vlgmr.msra.gmra.mrb[32].mxu0 %v3751_v39  ;;  %4832 = vmatmul.mubr.bf16.vlgmr.msra.gmra.mrb[32].mxu1 %v3751_v39  ;;  %v3695_v32 = vmax.f32 %v9116_v13, 0.0  ;;  %v3697_v33 = vmax.f32 %v9148_v14, 0.0  ;;  %v10177_v13 = vld [vmem:[#allocation9 + $0x284] ss:$16 sps:$4 sm:$0xff]  }
 0x403   : > { %v9119_v28 = vadd.f32 %v3398_v26, %v11833_v41  ;;  %v9151_v29 = vadd.f32 %v3624_v27, %v11836_v42  ;;  %4687 = vmatpush1.bf16.msra.mxu0 %v10151_v10  ;;  %4913 = vmatpush1.bf16.msra.mxu1 %v10154_v12  ;;  %v3696_v43 = vmax.f32 %v9117_v19, 0.0  ;;  %v3698_v44 = vmax.f32 %v9149_v20, 0.0  ;;  %v10169_v10 = vld [vmem:[#allocation9 + $0x260] ss:$16 sps:$4 sm:$0xff]   ;;  %v10172_v12 = vld [vmem:[#allocation9 + $0x268] ss:$16 sps:$4 sm:$0xff]  }
 0x404   : > { %v3699_v35 = vmax.f32 %v9118_v24, 0.0  ;;  %v3701_v36 = vmax.f32 %v9150_v25, 0.0  ;;  %4688 = vmatprep.subr.bf16.mxu0 %v10159_v17  ;;  %4914 = vmatprep.subr.bf16.mxu1 %v10162_v18  ;;  %v10180_v18 = vld [vmem:[#allocation9 + $0x28c] ss:$16 sps:$4 sm:$0xff]  }
 0x405   : > { %v3700_v45 = vmax.f32 %v9119_v28, 0.0  ;;  %v3702_v46 = vmax.f32 %v9151_v29, 0.0 }
 0x406   : > { %v3755_v47 = vpack.c.bf16 %v3699_v35, %v3695_v32  ;;  %v11858_v48 = vpack.c.bf16 %v3701_v36, %v3697_v33  ;;  %v10183_v36 = vld [vmem:[#allocation9 + $0x2a4] ss:$16 sps:$4 sm:$0xff]  }
 0x407   : > { %v3756_v50 = vpack.c.bf16 %v3700_v45, %v3696_v43  ;;  %v11860_v51 = vpack.c.bf16 %v3702_v46, %v3698_v44  ;;  %v3402_v52 = vpop.f32.mrb[8].mxu0  ;;  %v3628_v53 = vpop.f32.mrb[8].mxu1  ;;  %4689 = vmatpush1.bf16.msra.mxu0 %v10157_v30  ;;  %4915 = vmatpush1.bf16.msra.mxu1 %v10160_v4  ;;  %v10175_v30 = vld [vmem:[#allocation9 + $0x280] ss:$16 sps:$4 sm:$0xff]   ;;  %v10178_v4 = vld [vmem:[#allocation9 + $0x288] ss:$16 sps:$4 sm:$0xff]  }
 0x408   : > { %v9120_v56 = vadd.f32 %v3402_v52, %v11827_v38  ;;  %v9152_v57 = vadd.f32 %v3628_v53, %v11830_v40  ;;  %v3404_v59 = vpop.f32.mrb[9].mxu0  ;;  %v3630_v60 = vpop.f32.mrb[9].mxu1  ;;  %4690 = vmatprep.subr.bf16.mxu0 %v10165_v31  ;;  %4916 = vmatprep.subr.bf16.mxu1 %v10168_v37  ;;  %v10186_v37 = vld [vmem:[#allocation9 + $0x2ac] ss:$16 sps:$4 sm:$0xff]  }
 0x409   : > { %v9121_v63 = vadd.f32 %v3404_v59, %v11833_v41  ;;  %v9153_v0 = vadd.f32 %v3630_v60, %v11836_v42  ;;  %v3406_v1 = vpop.f32.mrb[10].mxu0  ;;  %v3632_v2 = vpop.f32.mrb[10].mxu1  ;;  %4615 = vmatprep.mubr.bf16.mxu0 %v3756_v50  ;;  %4841 = vmatprep.mubr.bf16.mxu1 %v3756_v50  ;;  %v10189_v59 = vld [vmem:[#allocation9 + $0x2c4] ss:$16 sps:$4 sm:$0xff]  }
 0x40a   : > { %v9122_v11 = vadd.f32 %v3406_v1, %v11827_v38  ;;  %v9154_v3 = vadd.f32 %v3632_v2, %v11830_v40  ;;  %v3408_v39 = vpop.f32.mrb[11].mxu0  ;;  %v3634_v6 = vpop.f32.mrb[11].mxu1  ;;  %4616 = vmatmul.mubr.bf16.gmra.mrb[36].mxu0 %v3755_v47  ;;  %4842 = vmatmul.mubr.bf16.gmra.mrb[36].mxu1 %v3755_v47  ;;  %v3703_v14 = vmax.f32 %v9120_v56, 0.0  ;;  %v3705_v21 = vmax.f32 %v9152_v57, 0.0  ;;  %v10181_v56 = vld [vmem:[#allocation9 + $0x2a0] ss:$16 sps:$4 sm:$0xff]  }
 0x40b   : > { %v9123_v8 = vadd.f32 %v3408_v39, %v11833_v41  ;;  %v9155_v9 = vadd.f32 %v3634_v6, %v11836_v42  ;;  %4691 = vmatpush1.bf16.msra.mxu0 %v10163_v54  ;;  %4917 = vmatpush1.bf16.msra.mxu1 %v10166_v55  ;;  %v3704_v19 = vmax.f32 %v9121_v63, 0.0  ;;  %v3706_v20 = vmax.f32 %v9153_v0, 0.0  ;;  %v10184_v57 = vld [vmem:[#allocation9 + $0x2a8] ss:$16 sps:$4 sm:$0xff]   ;;  %v10192_v0 = vld [vmem:[#allocation9 + $0x2cc] ss:$16 sps:$4 sm:$0xff]  }
 0x40c   : > { %v3707_v15 = vmax.f32 %v9122_v11, 0.0  ;;  %v3709_v17 = vmax.f32 %v9154_v3, 0.0  ;;  %4692 = vmatprep.subr.bf16.mxu0 %v10171_v61  ;;  %4918 = vmatprep.subr.bf16.mxu1 %v10174_v62 }
 0x40d   : > { %v3708_v58 = vmax.f32 %v9123_v8, 0.0  ;;  %v3710_v22 = vmax.f32 %v9155_v9, 0.0 }
 0x40e   : > { %v3759_v24 = vpack.c.bf16 %v3707_v15, %v3703_v14  ;;  %v11870_v25 = vpack.c.bf16 %v3709_v17, %v3705_v21  ;;  %v10190_v14 = vld [vmem:[#allocation9 + $0x2c8] ss:$16 sps:$4 sm:$0xff]  }
 0x40f   : > { %v3760_v26 = vpack.c.bf16 %v3708_v58, %v3704_v19  ;;  %v11872_v27 = vpack.c.bf16 %v3710_v22, %v3706_v20  ;;  %v3412_v28 = vpop.f32.mrb[12].mxu0  ;;  %v3638_v29 = vpop.f32.mrb[12].mxu1  ;;  %4693 = vmatpush1.bf16.msra.mxu0 %v10169_v10  ;;  %4919 = vmatpush1.bf16.msra.mxu1 %v10172_v12  ;;  %v10195_v19 = vld [vmem:[#allocation9 + $0x2e4] ss:$16 sps:$4 sm:$0xff]   ;;  %v10198_v20 = vld [vmem:[#allocation9 + $0x2ec] ss:$16 sps:$4 sm:$0xff]  }
 0x410   : > { %v9124_v31 = vadd.f32 %v3412_v28, %v11827_v38  ;;  %v9156_v32 = vadd.f32 %v3638_v29, %v11830_v40  ;;  %v3414_v33 = vpop.f32.mrb[13].mxu0  ;;  %v3640_v35 = vpop.f32.mrb[13].mxu1  ;;  %4694 = vmatprep.subr.bf16.mxu0 %v10177_v13  ;;  %4920 = vmatprep.subr.bf16.mxu1 %v10180_v18  ;;  %v10187_v13 = vld [vmem:[#allocation9 + $0x2c0] ss:$16 sps:$4 sm:$0xff]  }
 0x411   : > { %v9125_v43 = vadd.f32 %v3414_v33, %v11833_v41  ;;  %v9157_v44 = vadd.f32 %v3640_v35, %v11836_v42  ;;  %v3416_v45 = vpop.f32.mrb[14].mxu0  ;;  %v3642_v46 = vpop.f32.mrb[14].mxu1  ;;  %4625 = vmatprep.mubr.bf16.mxu0 %v3760_v26  ;;  %4851 = vmatprep.mubr.bf16.mxu1 %v3760_v26  ;;  %v10193_v33 = vld [vmem:[#allocation9 + $0x2e0] ss:$16 sps:$4 sm:$0xff]   ;;  %v10196_v35 = vld [vmem:[#allocation9 + $0x2e8] ss:$16 sps:$4 sm:$0xff]  }
 0x412   : > { %v9126_v47 = vadd.f32 %v3416_v45, %v11827_v38  ;;  %v9158_v50 = vadd.f32 %v3642_v46, %v11830_v40  ;;  %v3418_v52 = vpop.f32.mrb[15].mxu0  ;;  %v3644_v53 = vpop.f32.mrb[15].mxu1  ;;  %4626 = vmatmul.mubr.bf16.gmra.mrb[40].mxu0 %v3759_v24  ;;  %4852 = vmatmul.mubr.bf16.gmra.mrb[40].mxu1 %v3759_v24  ;;  %v3711_v60 = vmax.f32 %v9124_v31, 0.0  ;;  %v3713_v61 = vmax.f32 %v9156_v32, 0.0  ;;  %v10204_v46 = vld [vmem:[#allocation9 + $0x30c] ss:$16 sps:$4 sm:$0xff]  }
 0x413   : > { %v9127_v54 = vadd.f32 %v3418_v52, %v11833_v41  ;;  %v9159_v55 = vadd.f32 %v3644_v53, %v11836_v42  ;;  %4695 = vmatpush1.bf16.msra.mxu0 %v10175_v30  ;;  %4921 = vmatpush1.bf16.msra.mxu1 %v10178_v4  ;;  %v3712_v1 = vmax.f32 %v9125_v43, 0.0  ;;  %v3714_v2 = vmax.f32 %v9157_v44, 0.0 }
 0x414   : > { %v3715_v62 = vmax.f32 %v9126_v47, 0.0  ;;  %v3717_v63 = vmax.f32 %v9158_v50, 0.0  ;;  %4696 = vmatprep.subr.bf16.mxu0 %v10183_v36  ;;  %4922 = vmatprep.subr.bf16.mxu1 %v10186_v37  ;;  %v10201_v36 = vld [vmem:[#allocation9 + $0x304] ss:$16 sps:$4 sm:$0xff]  }
 0x415   : > { %v3716_v11 = vmax.f32 %v9127_v54, 0.0  ;;  %v3718_v3 = vmax.f32 %v9159_v55, 0.0 }
 0x416   : > { %v3763_v39 = vpack.c.bf16 %v3715_v62, %v3711_v60  ;;  %v11882_v6 = vpack.c.bf16 %v3717_v63, %v3713_v61  ;;  %v10199_v61 = vld [vmem:[#allocation9 + $0x300] ss:$16 sps:$4 sm:$0xff]   ;;  %v10202_v62 = vld [vmem:[#allocation9 + $0x308] ss:$16 sps:$4 sm:$0xff]  }
 0x417   : > { %v3764_v8 = vpack.c.bf16 %v3716_v11, %v3712_v1  ;;  %v11884_v9 = vpack.c.bf16 %v3718_v3, %v3714_v2  ;;  %v3422_v10 = vpop.f32.mrb[16].mxu0  ;;  %v3648_v12 = vpop.f32.mrb[16].mxu1  ;;  %4697 = vmatpush1.bf16.msra.mxu0 %v10181_v56  ;;  %4923 = vmatpush1.bf16.msra.mxu1 %v10184_v57  ;;  %v10207_v11 = vld [vmem:[#allocation9 + $0x324] ss:$16 sps:$4 sm:$0xff]   ;;  %v10210_v3 = vld [vmem:[#allocation9 + $0x32c] ss:$16 sps:$4 sm:$0xff]  }
 0x418   : > { %v9128_v21 = vadd.f32 %v3422_v10, %v11827_v38  ;;  %v9160_v15 = vadd.f32 %v3648_v12, %v11830_v40  ;;  %v3424_v17 = vpop.f32.mrb[17].mxu0  ;;  %v3650_v18 = vpop.f32.mrb[17].mxu1  ;;  %4698 = vmatprep.subr.bf16.mxu0 %v10189_v59  ;;  %4924 = vmatprep.subr.bf16.mxu1 %v10192_v0 }
 0x419   : > { %v9129_v58 = vadd.f32 %v3424_v17, %v11833_v41  ;;  %v9161_v22 = vadd.f32 %v3650_v18, %v11836_v42  ;;  %v3426_v24 = vpop.f32.mrb[18].mxu0  ;;  %v3652_v26 = vpop.f32.mrb[18].mxu1  ;;  %4635 = vmatprep.mubr.bf16.mxu0 %v3764_v8  ;;  %4861 = vmatprep.mubr.bf16.mxu1 %v3764_v8 }
 0x41a   : > { %v9130_v28 = vadd.f32 %v3426_v24, %v11827_v38  ;;  %v9162_v29 = vadd.f32 %v3652_v26, %v11830_v40  ;;  %v3428_v30 = vpop.f32.mrb[19].mxu0  ;;  %v3654_v4 = vpop.f32.mrb[19].mxu1  ;;  %4636 = vmatmul.mubr.bf16.gmra.mrb[44].mxu0 %v3763_v39  ;;  %4862 = vmatmul.mubr.bf16.gmra.mrb[44].mxu1 %v3763_v39  ;;  %v3719_v37 = vmax.f32 %v9128_v21, 0.0  ;;  %v3721_v43 = vmax.f32 %v9160_v15, 0.0 }
 0x41b   : > { %v9131_v31 = vadd.f32 %v3428_v30, %v11833_v41  ;;  %v9163_v32 = vadd.f32 %v3654_v4, %v11836_v42  ;;  %4699 = vmatpush1.bf16.msra.mxu0 %v10187_v13  ;;  %4925 = vmatpush1.bf16.msra.mxu1 %v10190_v14  ;;  %v3720_v47 = vmax.f32 %v9129_v58, 0.0  ;;  %v3722_v50 = vmax.f32 %v9161_v22, 0.0  ;;  %v10213_v58 = vld [vmem:[#allocation9 + $0x344] ss:$16 sps:$4 sm:$0xff]  }
 0x41c   : > { %v3723_v44 = vmax.f32 %v9130_v28, 0.0  ;;  %v3725_v45 = vmax.f32 %v9162_v29, 0.0  ;;  %4700 = vmatprep.subr.bf16.mxu0 %v10195_v19  ;;  %4926 = vmatprep.subr.bf16.mxu1 %v10198_v20  ;;  %v10205_v19 = vld [vmem:[#allocation9 + $0x320] ss:$16 sps:$4 sm:$0xff]   ;;  %v10208_v20 = vld [vmem:[#allocation9 + $0x328] ss:$16 sps:$4 sm:$0xff]  }
 0x41d   : > { %v3724_v52 = vmax.f32 %v9131_v31, 0.0  ;;  %v3726_v53 = vmax.f32 %v9163_v32, 0.0  ;;  %v10216_v29 = vld [vmem:[#allocation9 + $0x34c] ss:$16 sps:$4 sm:$0xff]  }
 0x41e   : > { %v3767_v54 = vpack.c.bf16 %v3723_v44, %v3719_v37  ;;  %v11894_v55 = vpack.c.bf16 %v3725_v45, %v3721_v43  ;;  %v10211_v45 = vld [vmem:[#allocation9 + $0x340] ss:$16 sps:$4 sm:$0xff]  }
 0x41f   : > { %v3768_v56 = vpack.c.bf16 %v3724_v52, %v3720_v47  ;;  %v11896_v57 = vpack.c.bf16 %v3726_v53, %v3722_v50  ;;  %v3432_v59 = vpop.f32.mrb[20].mxu0  ;;  %v3658_v60 = vpop.f32.mrb[20].mxu1  ;;  %4701 = vmatpush1.bf16.msra.mxu0 %v10193_v33  ;;  %4927 = vmatpush1.bf16.msra.mxu1 %v10196_v35 }
 0x420   : > { %v9132_v63 = vadd.f32 %v3432_v59, %v11827_v38  ;;  %v9164_v0 = vadd.f32 %v3658_v60, %v11830_v40  ;;  %v3434_v1 = vpop.f32.mrb[21].mxu0  ;;  %v3660_v2 = vpop.f32.mrb[21].mxu1  ;;  %4702 = vmatprep.subr.bf16.mxu0 %v10201_v36  ;;  %4928 = vmatprep.subr.bf16.mxu1 %v10204_v46  ;;  %v10214_v46 = vld [vmem:[#allocation9 + $0x348] ss:$16 sps:$4 sm:$0xff]  }
 0x421   : > { %v9133_v39 = vadd.f32 %v3434_v1, %v11833_v41  ;;  %v9165_v8 = vadd.f32 %v3660_v2, %v11836_v42  ;;  %v3436_v10 = vpop.f32.mrb[22].mxu0  ;;  %v3662_v12 = vpop.f32.mrb[22].mxu1  ;;  %4645 = vmatprep.mubr.bf16.mxu0 %v3768_v56  ;;  %4871 = vmatprep.mubr.bf16.mxu1 %v3768_v56  ;;  %v10222_v56 = vld [vmem:[#allocation9 + $0x36c] ss:$16 sps:$4 sm:$0xff]  }
 0x422   : > { %v9134_v13 = vadd.f32 %v3436_v10, %v11827_v38  ;;  %v9166_v14 = vadd.f32 %v3662_v12, %v11830_v40  ;;  %v3438_v21 = vpop.f32.mrb[23].mxu0  ;;  %v3664_v15 = vpop.f32.mrb[23].mxu1  ;;  %4646 = vmatmul.mubr.bf16.gmra.mrb[48].mxu0 %v3767_v54  ;;  %4872 = vmatmul.mubr.bf16.gmra.mrb[48].mxu1 %v3767_v54  ;;  %v3727_v22 = vmax.f32 %v9132_v63, 0.0  ;;  %v3729_v24 = vmax.f32 %v9164_v0, 0.0  ;;  %v10219_v54 = vld [vmem:[#allocation9 + $0x364] ss:$16 sps:$4 sm:$0xff]  }
 0x423   : > { %v9135_v17 = vadd.f32 %v3438_v21, %v11833_v41  ;;  %v9167_v18 = vadd.f32 %v3664_v15, %v11836_v42  ;;  %4703 = vmatpush1.bf16.msra.mxu0 %v10199_v61  ;;  %4929 = vmatpush1.bf16.msra.mxu1 %v10202_v62  ;;  %v3728_v30 = vmax.f32 %v9133_v39, 0.0  ;;  %v3730_v4 = vmax.f32 %v9165_v8, 0.0  ;;  %v10217_v39 = vld [vmem:[#allocation9 + $0x360] ss:$16 sps:$4 sm:$0xff]   ;;  %v10220_v8 = vld [vmem:[#allocation9 + $0x368] ss:$16 sps:$4 sm:$0xff]  }
 0x424   : > { %v3731_v26 = vmax.f32 %v9134_v13, 0.0  ;;  %v3733_v28 = vmax.f32 %v9166_v14, 0.0  ;;  %4704 = vmatprep.subr.bf16.mxu0 %v10207_v11  ;;  %4930 = vmatprep.subr.bf16.mxu1 %v10210_v3  ;;  %v10225_v10 = vld [vmem:[#allocation9 + $0x384] ss:$16 sps:$4 sm:$0xff]   ;;  %v10228_v15 = vld [vmem:[#allocation9 + $0x38c] ss:$16 sps:$4 sm:$0xff]  }
 0x425   : > { %v3732_v31 = vmax.f32 %v9135_v17, 0.0  ;;  %v3734_v32 = vmax.f32 %v9167_v18, 0.0 }
 0x426   : > { %v3771_v33 = vpack.c.bf16 %v3731_v26, %v3727_v22  ;;  %v11906_v35 = vpack.c.bf16 %v3733_v28, %v3729_v24 }
 0x427   : > { %v3772_v36 = vpack.c.bf16 %v3732_v31, %v3728_v30  ;;  %v11908_v37 = vpack.c.bf16 %v3734_v32, %v3730_v4  ;;  %v3442_v43 = vpop.f32.mrb[24].mxu0  ;;  %v3668_v44 = vpop.f32.mrb[24].mxu1  ;;  %4705 = vmatpush1.bf16.msra.mxu0 %v10205_v19  ;;  %4931 = vmatpush1.bf16.msra.mxu1 %v10208_v20  ;;  %v10223_v30 = vld [vmem:[#allocation9 + $0x380] ss:$16 sps:$4 sm:$0xff]   ;;  %v10226_v4 = vld [vmem:[#allocation9 + $0x388] ss:$16 sps:$4 sm:$0xff]  }
 0x428   : > { %v9136_v47 = vadd.f32 %v3442_v43, %v11827_v38  ;;  %v9168_v50 = vadd.f32 %v3668_v44, %v11830_v40  ;;  %v3444_v52 = vpop.f32.mrb[25].mxu0  ;;  %v3670_v53 = vpop.f32.mrb[25].mxu1  ;;  %4706 = vmatprep.subr.bf16.mxu0 %v10213_v58  ;;  %4932 = vmatprep.subr.bf16.mxu1 %v10216_v29  ;;  %v10231_v43 = vld [vmem:[#allocation9 + $0x3a4] ss:$16 sps:$4 sm:$0xff]   ;;  %v10234_v44 = vld [vmem:[#allocation9 + $0x3ac] ss:$16 sps:$4 sm:$0xff]  }
 0x429   : > { %v9137_v59 = vadd.f32 %v3444_v52, %v11833_v41  ;;  %v9169_v60 = vadd.f32 %v3670_v53, %v11836_v42  ;;  %v3446_v61 = vpop.f32.mrb[26].mxu0  ;;  %v3672_v62 = vpop.f32.mrb[26].mxu1  ;;  %4655 = vmatprep.mubr.bf16.mxu0 %v3772_v36  ;;  %4881 = vmatprep.mubr.bf16.mxu1 %v3772_v36 }
 0x42a   : > { %v9138_v63 = vadd.f32 %v3446_v61, %v11827_v38  ;;  %v9170_v0 = vadd.f32 %v3672_v62, %v11830_v40  ;;  %v3448_v1 = vpop.f32.mrb[27].mxu0  ;;  %v3674_v2 = vpop.f32.mrb[27].mxu1  ;;  %4656 = vmatmul.mubr.bf16.gmra.mrb[52].mxu0 %v3771_v33  ;;  %4882 = vmatmul.mubr.bf16.gmra.mrb[52].mxu1 %v3771_v33  ;;  %v3735_v12 = vmax.f32 %v9136_v47, 0.0  ;;  %v3737_v13 = vmax.f32 %v9168_v50, 0.0  ;;  %v10229_v61 = vld [vmem:[#allocation9 + $0x3a0] ss:$16 sps:$4 sm:$0xff]  }
 0x42b   : > { %v9139_v11 = vadd.f32 %v3448_v1, %v11833_v41  ;;  %v9171_v3 = vadd.f32 %v3674_v2, %v11836_v42  ;;  %4707 = vmatpush1.bf16.msra.mxu0 %v10211_v45  ;;  %4933 = vmatpush1.bf16.msra.mxu1 %v10214_v46  ;;  %v3736_v17 = vmax.f32 %v9137_v59, 0.0  ;;  %v3738_v18 = vmax.f32 %v9169_v60, 0.0  ;;  %v10232_v62 = vld [vmem:[#allocation9 + $0x3a8] ss:$16 sps:$4 sm:$0xff]  }
 0x42c   : > { %v3739_v14 = vmax.f32 %v9138_v63, 0.0  ;;  %v3741_v21 = vmax.f32 %v9170_v0, 0.0  ;;  %4708 = vmatprep.subr.bf16.mxu0 %v10219_v54  ;;  %4934 = vmatprep.subr.bf16.mxu1 %v10222_v56  ;;  %v10237_v63 = vld [vmem:[#allocation9 + $0x3c4] ss:$16 sps:$4 sm:$0xff]  }
 0x42d   : > { %v3740_v19 = vmax.f32 %v9139_v11, 0.0  ;;  %v3742_v20 = vmax.f32 %v9171_v3, 0.0 }
 0x42e   : > { %v3775_v58 = vpack.c.bf16 %v3739_v14, %v3735_v12  ;;  %v11918_v22 = vpack.c.bf16 %v3741_v21, %v3737_v13  ;;  %v10235_v13 = vld [vmem:[#allocation9 + $0x3c0] ss:$16 sps:$4 sm:$0xff]   ;;  %v10238_v14 = vld [vmem:[#allocation9 + $0x3c8] ss:$16 sps:$4 sm:$0xff]   ;;  %v10243_v21 = vld [vmem:[#allocation9 + $0x3e4] ss:$16 sps:$4 sm:$0xff]  }
 0x42f   : > { %v3776_v24 = vpack.c.bf16 %v3740_v19, %v3736_v17  ;;  %v11920_v26 = vpack.c.bf16 %v3742_v20, %v3738_v18  ;;  %v3452_v28 = vpop.f32.mrb[28].mxu0  ;;  %v3678_v29 = vpop.f32.mrb[28].mxu1  ;;  %4709 = vmatpush1.bf16.msra.mxu0 %v10217_v39  ;;  %4935 = vmatpush1.bf16.msra.mxu1 %v10220_v8  ;;  %v10241_v17 = vld [vmem:[#allocation9 + $0x3e0] ss:$16 sps:$4 sm:$0xff]   ;;  %v10244_v18 = vld [vmem:[#allocation9 + $0x3e8] ss:$16 sps:$4 sm:$0xff]  }
 0x430   : > { %v9140_v31 = vadd.f32 %v3452_v28, %v11827_v38  ;;  %v9172_v32 = vadd.f32 %v3678_v29, %v11830_v40  ;;  %v3454_v33 = vpop.f32.mrb[29].mxu0  ;;  %v3680_v36 = vpop.f32.mrb[29].mxu1  ;;  %4710 = vmatprep.subr.bf16.mxu0 %v10225_v10  ;;  %4936 = vmatprep.subr.bf16.mxu1 %v10228_v15  ;;  %v10246_v15 = vld [vmem:[#allocation9 + $0x3ec] ss:$16 sps:$4 sm:$0xff]   ;;  %v10247_v19 = vld [vmem:[#allocation11 + $0x40] sm:$0xff]  }
 0x431   : > { %v9141_v45 = vadd.f32 %v3454_v33, %v11833_v41  ;;  %v9173_v46 = vadd.f32 %v3680_v36, %v11836_v42  ;;  %v3456_v47 = vpop.f32.mrb[30].mxu0  ;;  %v3682_v50 = vpop.f32.mrb[30].mxu1  ;;  %4665 = vmatprep.mubr.bf16.mxu0 %v3776_v24  ;;  %4891 = vmatprep.mubr.bf16.mxu1 %v3776_v24  ;;  %v10249_v20 = vld [vmem:[#allocation11 + $0xc0] sm:$0xff]   ;;  %v10251_v28 = vld [vmem:[#allocation11 + $0x48] sm:$0xff]   ;;  %v10258_v33 = vld [vmem:[#allocation11 + $0x90] sm:$0xff]  }
 0x432   : > { %v9142_v52 = vadd.f32 %v3456_v47, %v11827_v38  ;;  %v9174_v53 = vadd.f32 %v3682_v50, %v11830_v40  ;;  %v3458_v54 = vpop.f32.mrb[31].mxu0  ;;  %v3684_v56 = vpop.f32.mrb[31].mxu1  ;;  %4666 = vmatmul.mubr.bf16.gmra.mrb[56].mxu0 %v3775_v58  ;;  %4892 = vmatmul.mubr.bf16.gmra.mrb[56].mxu1 %v3775_v58  ;;  %v3743_v0 = vmax.f32 %v9140_v31, 0.0  ;;  %v3745_v1 = vmax.f32 %v9172_v32, 0.0  ;;  %v10240_v38 = vld [vmem:[#allocation9 + $0x3cc] ss:$16 sps:$4 sm:$0xff]  }
 0x433   : > { %v9143_v59 = vadd.f32 %v3458_v54, %v11833_v41  ;;  %v9175_v60 = vadd.f32 %v3684_v56, %v11836_v42  ;;  %4711 = vmatpush1.bf16.msra.mxu0 %v10223_v30  ;;  %4937 = vmatpush1.bf16.msra.mxu1 %v10226_v4  ;;  %v3744_v40 = vmax.f32 %v9141_v45, 0.0  ;;  %v3746_v3 = vmax.f32 %v9173_v46, 0.0  ;;  %v10248_v58 = vld [vmem:[#allocation11] sm:$0xff]   ;;  %v10253_v29 = vld [vmem:[#allocation11 + $0xc8] sm:$0xff]   ;;  %v10255_v4 = vld [vmem:[#allocation11 + $0x50] sm:$0xff]  }
 0x434   : > { %v3747_v2 = vmax.f32 %v9142_v52, 0.0  ;;  %v3749_v11 = vmax.f32 %v9174_v53, 0.0  ;;  %4712 = vmatprep.subr.bf16.mxu0 %v10231_v43  ;;  %4938 = vmatprep.subr.bf16.mxu1 %v10234_v44  ;;  %v10250_v24 = vld [vmem:[#allocation11 + $0x80] sm:$0xff]   ;;  %v10254_v30 = vld [vmem:[#allocation11 + $0x88] sm:$0xff]   ;;  %v10257_v31 = vld [vmem:[#allocation11 + $0xd0] sm:$0xff]  }
 0x435   : > { %v3748_v39 = vmax.f32 %v9143_v59, 0.0  ;;  %v3750_v8 = vmax.f32 %v9175_v60, 0.0  ;;  %v10256_v32 = vld [vmem:[#allocation11 + $0x10] sm:$0xff]   ;;  %v10259_v36 = vld [vmem:[#allocation11 + $0x58] sm:$0xff]   ;;  %v10263_v44 = vld [vmem:[#allocation11 + $0x60] sm:$0xff]  }
 0x436   : > { %v3779_v10 = vpack.c.bf16 %v3747_v2, %v3743_v0  ;;  %v11930_v41 = vpack.c.bf16 %v3749_v11, %v3745_v1  ;;  %v10262_v43 = vld [vmem:[#allocation11 + $0x98] sm:$0xff]   ;;  %v10265_v45 = vld [vmem:[#allocation11 + $0xe0] sm:$0xff]   ;;  %v10267_v50 = vld [vmem:[#allocation11 + $0x68] sm:$0xff]  }
 0x437   : > { %v3780_v42 = vpack.c.bf16 %v3748_v39, %v3744_v40  ;;  %v11932_v12 = vpack.c.bf16 %v3750_v8, %v3746_v3  ;;  %4713 = vmatpush1.bf16.msra.mxu0 %v10229_v61  ;;  %4939 = vmatpush1.bf16.msra.mxu1 %v10232_v62  ;;  %v10264_v46 = vld [vmem:[#allocation11 + $0x20] sm:$0xff]   ;;  %v10270_v52 = vld [vmem:[#allocation11 + $0xa8] sm:$0xff]   ;;  %v10271_v53 = vld [vmem:[#allocation11 + $0x70] sm:$0xff]  }
 0x438   : > { %4714 = vmatprep.subr.bf16.mxu0 %v10237_v63  ;;  %4940 = vmatprep.subr.bf16.mxu1 %v10240_v38  ;;  %v10266_v47 = vld [vmem:[#allocation11 + $0xa0] sm:$0xff]   ;;  %v10273_v54 = vld [vmem:[#allocation11 + $0xf0] sm:$0xff]  }
 0x439   : > { %4675 = vmatprep.mubr.bf16.mxu0 %v3780_v42  ;;  %4901 = vmatprep.mubr.bf16.mxu1 %v3780_v42  ;;  %v10272_v56 = vld [vmem:[#allocation11 + $0x30] sm:$0xff]  }
 0x43a   : > { %4676 = vmatmul.mubr.bf16.gmra.mrb[60].mxu0 %v3779_v10  ;;  %4902 = vmatmul.mubr.bf16.gmra.mrb[60].mxu1 %v3779_v10  ;;  %v10274_v59 = vld [vmem:[#allocation11 + $0xb0] sm:$0xff]  }
 0x43b   : > { %4715 = vmatpush1.bf16.msra.mxu0 %v10235_v13  ;;  %4718 = vmatprep.mubr.bf16.mxu0 %v11848_v7 }
 0x43c   : > { %4941 = vmatpush1.bf16.msra.mxu1 %v10238_v14  ;;  %4944 = vmatprep.mubr.bf16.mxu1 %v11848_v7  ;;  %v10252_v7 = vld [vmem:[#allocation11 + $0x8] sm:$0xff]  }
 0x43d   : > { %4716 = vmatprep.subr.bf16.mxu0 %v10243_v21  ;;  %4942 = vmatprep.subr.bf16.mxu1 %v10246_v15 }
 0x43f   : > { %4717 = vmatpush1.bf16.msra.mxu0 %v10241_v17 }
 0x440   : > { %4943 = vmatpush1.bf16.msra.mxu1 %v10244_v18  ;;  %8920 = vmatprep.subr.bf16.mxu0 %v10247_v19 }
 0x441   : > { %8984 = vmatprep.subr.bf16.mxu1 %v10249_v20 }
 0x442   : > { %4719 = vmatmul.mubr.bf16.vlgmr.msra.gmra.mrb[32].mxu0 %v11846_v5 }
 0x443   : > { %4945 = vmatmul.mubr.bf16.vlgmr.msra.gmra.mrb[32].mxu1 %v11846_v5  ;;  %4728 = vmatprep.mubr.bf16.mxu0 %v11860_v51  ;;  %v10261_v5 = vld [vmem:[#allocation11 + $0xd8] sm:$0xff]  }
 0x444   : > { %4954 = vmatprep.mubr.bf16.mxu1 %v11860_v51  ;;  %8921 = vmatpush3.bf16.msra.mxu0 %v10248_v58  ;;  %v10260_v51 = vld [vmem:[#allocation11 + $0x18] sm:$0xff]  }
 0x445   : > { %8985 = vmatpush3.bf16.msra.mxu1 %v10250_v24  ;;  %8922 = vmatprep.subr.bf16.mxu0 %v10251_v28 }
 0x446   : > { %8986 = vmatprep.subr.bf16.mxu1 %v10253_v29  ;;  %v10279_v29 = vld [vmem:[#allocation12] ss:$16 sps:$4 sm:$0xff]  }
 0x448   : > { %8923 = vmatpush3.bf16.msra.mxu0 %v10252_v7 }
 0x449   : > { %8987 = vmatpush3.bf16.msra.mxu1 %v10254_v30  ;;  %8924 = vmatprep.subr.bf16.mxu0 %v10255_v4 }
 0x44a   : > { %4729 = vmatmul.mubr.bf16.gmra.mrb[36].mxu0 %v11858_v48  ;;  %8988 = vmatprep.subr.bf16.mxu1 %v10257_v31 }
 0x44b   : > { %4955 = vmatmul.mubr.bf16.gmra.mrb[36].mxu1 %v11858_v48  ;;  %4738 = vmatprep.mubr.bf16.mxu0 %v11872_v27  ;;  %v10269_v48 = vld [vmem:[#allocation11 + $0xe8] sm:$0xff]  }
 0x44c   : > { %4964 = vmatprep.mubr.bf16.mxu1 %v11872_v27  ;;  %8925 = vmatpush3.bf16.msra.mxu0 %v10256_v32  ;;  %v10268_v27 = vld [vmem:[#allocation11 + $0x28] sm:$0xff]   ;;  %v10284_v32 = vld [vmem:[#allocation12 + $0x24] ss:$16 sps:$4 sm:$0xff]  }
 0x44d   : > { %8989 = vmatpush3.bf16.msra.mxu1 %v10258_v33  ;;  %8926 = vmatprep.subr.bf16.mxu0 %v10259_v36  ;;  %v10294_v33 = vld [vmem:[#allocation12 + $0x8] ss:$16 sps:$4 sm:$0xff]  }
 0x44e   : > { %8990 = vmatprep.subr.bf16.mxu1 %v10261_v5 }
 0x450   : > { %8927 = vmatpush3.bf16.msra.mxu0 %v10260_v51 }
 0x451   : > { %8991 = vmatpush3.bf16.msra.mxu1 %v10262_v43  ;;  %8928 = vmatprep.subr.bf16.mxu0 %v10263_v44  ;;  %v10299_v44 = vld [vmem:[#allocation12 + $0x2c] ss:$16 sps:$4 sm:$0xff]  }
 0x452   : > { %4739 = vmatmul.mubr.bf16.gmra.mrb[40].mxu0 %v11870_v25  ;;  %8992 = vmatprep.subr.bf16.mxu1 %v10265_v45 }
 0x453   : > { %4965 = vmatmul.mubr.bf16.gmra.mrb[40].mxu1 %v11870_v25  ;;  %4748 = vmatprep.mubr.bf16.mxu0 %v11884_v9  ;;  %v10275_v25 = vld [vmem:[#allocation11 + $0x78] sm:$0xff]  }
 0x454   : > { %4974 = vmatprep.mubr.bf16.mxu1 %v11884_v9  ;;  %8929 = vmatpush3.bf16.msra.mxu0 %v10264_v46  ;;  %v10276_v9 = vld [vmem:[#allocation11 + $0x38] sm:$0xff]  }
 0x455   : > { %8993 = vmatpush3.bf16.msra.mxu1 %v10266_v47  ;;  %8930 = vmatprep.subr.bf16.mxu0 %v10267_v50 }
 0x456   : > { %8994 = vmatprep.subr.bf16.mxu1 %v10269_v48 }
 0x458   : > { %8931 = vmatpush3.bf16.msra.mxu0 %v10268_v27 }
 0x459   : > { %8995 = vmatpush3.bf16.msra.mxu1 %v10270_v52  ;;  %8932 = vmatprep.subr.bf16.mxu0 %v10271_v53 }
 0x45a   : > { %4749 = vmatmul.mubr.bf16.gmra.mrb[44].mxu0 %v11882_v6  ;;  %8996 = vmatprep.subr.bf16.mxu1 %v10273_v54 }
 0x45b   : > { %4975 = vmatmul.mubr.bf16.gmra.mrb[44].mxu1 %v11882_v6  ;;  %4758 = vmatprep.mubr.bf16.mxu0 %v11896_v57  ;;  %v10277_v6 = vld [vmem:[#allocation11 + $0xf8] sm:$0xff]  }
 0x45c   : > { %4984 = vmatprep.mubr.bf16.mxu1 %v11896_v57  ;;  %8933 = vmatpush3.bf16.msra.mxu0 %v10272_v56  ;;  %v10281_v57 = vld [vmem:[#allocation12 + $0x4] ss:$16 sps:$4 sm:$0xff]   ;;  %v10282_v56 = vld [vmem:[#allocation12 + $0x20] ss:$16 sps:$4 sm:$0xff]  }
 0x45d   : > { %8997 = vmatpush3.bf16.msra.mxu1 %v10274_v59  ;;  %8934 = vmatprep.subr.bf16.mxu0 %v10275_v25 }
 0x45e   : > { %8998 = vmatprep.subr.bf16.mxu1 %v10277_v6  ;;  %v10287_v6 = vld [vmem:[#allocation12 + $0x44] ss:$16 sps:$4 sm:$0xff]  }
 0x460   : > { %8935 = vmatpush3.bf16.msra.mxu0 %v10276_v9  ;;  %v10297_v9 = vld [vmem:[#allocation12 + $0x28] ss:$16 sps:$4 sm:$0xff]  }
 0x461   : > { %5816 = vmatprep.subr.bf16.mxu0 %v10281_v57 }
 0x462   : > { %4759 = vmatmul.mubr.bf16.gmra.mrb[48].mxu0 %v11894_v55 }
 0x463   : > { %4985 = vmatmul.mubr.bf16.gmra.mrb[48].mxu1 %v11894_v55  ;;  %4768 = vmatprep.mubr.bf16.mxu0 %v11908_v37  ;;  %v10278_v55 = vld [vmem:[#allocation11 + $0xb8] sm:$0xff]  }
 0x464   : > { %4994 = vmatprep.mubr.bf16.mxu1 %v11908_v37  ;;  %8999 = vmatpush3.bf16.msra.mxu1 %v10278_v55  ;;  %v3911_v37 = vld [vmem:[%s13454_s4] sm:$0xf] }
 0x465   : > { %v11976_v60 = vrot.slane %v3911_v37, %v11776_v49  ;;  %v11979_v62 = vrot.slane %v3911_v37, %v11783_v23 }
 0x46a   : > { %4769 = vmatmul.mubr.bf16.gmra.mrb[52].mxu0 %v11906_v35 }
 0x46b   : > { %4995 = vmatmul.mubr.bf16.gmra.mrb[52].mxu1 %v11906_v35  ;;  %4778 = vmatprep.mubr.bf16.mxu0 %v11920_v26  ;;  %v10296_v35 = vld [vmem:[#allocation12 + $0xc] ss:$16 sps:$4 sm:$0xff]  }
 0x46c   : > { %5004 = vmatprep.mubr.bf16.mxu1 %v11920_v26  ;;  %5929 = vmatprep.subr.bf16.mxu1 %v10296_v35  ;;  %v11973_v26 = vrot.slane %v3911_v37, %v11741_v34 }
 0x472   : > { %4779 = vmatmul.mubr.bf16.gmra.mrb[56].mxu0 %v11918_v22 }
 0x473   : > { %5005 = vmatmul.mubr.bf16.gmra.mrb[56].mxu1 %v11918_v22  ;;  %4788 = vmatprep.mubr.bf16.mxu0 %v11932_v12  ;;  %v11970_v22 = vrot.slane %v3911_v37, %v11727_v16  ;;  %v10305_v37 = vld [vmem:[#allocation12 + $0x4c] ss:$16 sps:$4 sm:$0xff]  }
 0x474   : > { %5014 = vmatprep.mubr.bf16.mxu1 %v11932_v12 }
 0x47a   : > { %4789 = vmatmul.mubr.bf16.gmra.mrb[60].mxu0 %v11930_v41 }
 0x47b   : > { %5015 = vmatmul.mubr.bf16.gmra.mrb[60].mxu1 %v11930_v41 }
 0x515   : > { %v4720_v61 = vpop.f32.mrb[32].mxu0 }
 0x516   : > { %v4946_v63 = vpop.f32.mrb[32].mxu1  ;;  %v4722_v0 = vpop.f32.mrb[33].mxu0  ;;  %v11985_v38 = vadd.f32 %v4720_v61, %v11973_v26 }
 0x517   : > { %v11982_v1 = vadd.f32 %v4722_v0, %v11970_v22  ;;  %v4948_v2 = vpop.f32.mrb[33].mxu1  ;;  %v4724_v11 = vpop.f32.mrb[34].mxu0  ;;  %v11994_v10 = vadd.f32 %v4946_v63, %v11979_v62 }
 0x518   : > { %v11988_v40 = vadd.f32 %v4948_v2, %v11976_v60  ;;  %v11991_v3 = vadd.f32 %v4724_v11, %v11973_v26  ;;  %v4950_v39 = vpop.f32.mrb[34].mxu1  ;;  %v4726_v8 = vpop.f32.mrb[35].mxu0  ;;  %v13315_v18 = vmax.f32 %v11985_v38, 0.0 }
 0x519   : > { %v11997_v41 = vadd.f32 %v4950_v39, %v11979_v62  ;;  %v12000_v42 = vadd.f32 %v4726_v8, %v11970_v22  ;;  %v4952_v12 = vpop.f32.mrb[35].mxu1  ;;  %v13314_v21 = vmax.f32 %v11982_v1, 0.0  ;;  %v13298_v58 = vmax.f32 %v11994_v10, 0.0  ;;  %v10285_v8 = vld [vmem:[#allocation12 + $0x40] ss:$16 sps:$4 sm:$0xff]  }
 0x51a   : > { %v13318_v13 = vmax.f32 %v11991_v3, 0.0  ;;  %v12004_v14 = vadd.f32 %v4952_v12, %v11976_v60  ;;  %v13301_v19 = vmax.f32 %v11988_v40, 0.0 }
 0x51b   : > { %v13289_v15 = vmax.f32 %v11997_v41, 0.0  ;;  %v13313_v17 = vmax.f32 %v12000_v42, 0.0 }
 0x51c   : > { %v13304_v20 = vmax.f32 %v12004_v14, 0.0  ;;  %v5089_v7 = vpack.c.bf16 %v13318_v13, %v13315_v18 }
 0x51d   : > { %v5090_v24 = vpack.c.bf16 %v13313_v17, %v13314_v21  ;;  %v4730_v28 = vpop.f32.mrb[36].mxu0  ;;  %v5091_v36 = vpack.c.bf16 %v13289_v15, %v13298_v58  ;;  %v10312_v15 = vld [vmem:[#allocation12 + $0x88] ss:$16 sps:$4 sm:$0xff]  }
 0x51e   : > { %v5092_v30 = vpack.c.bf16 %v13304_v20, %v13301_v19  ;;  %v4956_v4 = vpop.f32.mrb[36].mxu1  ;;  %v4732_v31 = vpop.f32.mrb[37].mxu0  ;;  %v12033_v45 = vadd.f32 %v4730_v28, %v11973_v26 }
 0x51f   : > { %v12030_v5 = vadd.f32 %v4732_v31, %v11970_v22  ;;  %v4958_v51 = vpop.f32.mrb[37].mxu1  ;;  %v4734_v43 = vpop.f32.mrb[38].mxu0  ;;  %5416 = vmatprep.mubr.bf16.mxu0 %v5090_v24  ;;  %v12042_v27 = vadd.f32 %v4956_v4, %v11979_v62 }
 0x520   : > { %v12036_v46 = vadd.f32 %v4958_v51, %v11976_v60  ;;  %v12039_v47 = vadd.f32 %v4734_v43, %v11973_v26  ;;  %v4960_v50 = vpop.f32.mrb[38].mxu1  ;;  %5513 = vmatprep.mubr.bf16.mxu1 %v5092_v30  ;;  %v4736_v48 = vpop.f32.mrb[39].mxu0  ;;  %5417 = vmatmul.mubr.bf16.vlgmr.msra.gmra.mrb[64].mxu0 %v5089_v7  ;;  %v13311_v61 = vmax.f32 %v12033_v45, 0.0  ;;  %v10290_v7 = vld [vmem:[#allocation12 + $0x64] ss:$16 sps:$4 sm:$0xff]  }
 0x521   : > { %v12045_v52 = vadd.f32 %v4960_v50, %v11979_v62  ;;  %v12048_v53 = vadd.f32 %v4736_v48, %v11970_v22  ;;  %v4962_v54 = vpop.f32.mrb[39].mxu1  ;;  %5514 = vmatmul.mubr.bf16.vlgmr.msra.gmra.mrb[64].mxu1 %v5091_v36  ;;  %5817 = vmatpush1.bf16.msra.mxu0 %v10279_v29  ;;  %v13300_v55 = vmax.f32 %v12030_v5, 0.0  ;;  %v13286_v2 = vmax.f32 %v12042_v27, 0.0  ;;  %v10303_v30 = vld [vmem:[#allocation12 + $0x48] ss:$16 sps:$4 sm:$0xff]  }
 0x522   : > { %v13312_v59 = vmax.f32 %v12039_v47, 0.0  ;;  %v12052_v25 = vadd.f32 %v4962_v54, %v11976_v60  ;;  %5818 = vmatprep.subr.bf16.mxu0 %v10284_v32  ;;  %5930 = vmatpush1.bf16.msra.mxu1 %v10294_v33  ;;  %v13288_v63 = vmax.f32 %v12036_v46, 0.0  ;;  %v10308_v36 = vld [vmem:[#allocation12 + $0x6c] ss:$16 sps:$4 sm:$0xff]  }
 0x523   : > { %13455 = vst [vmem:[#allocation26_spill] sm:$0xff] %v12045_v52  ;;  %v13285_v57 = vmax.f32 %v12045_v52, 0.0  ;;  %v13299_v35 = vmax.f32 %v12048_v53, 0.0  ;;  %5931 = vmatprep.subr.bf16.mxu1 %v10299_v44 }
 0x524   : > { %v13287_v0 = vmax.f32 %v12052_v25, 0.0  ;;  %v5093_v12 = vpack.c.bf16 %v13312_v59, %v13311_v61 }
 0x525   : > { %v5094_v11 = vpack.c.bf16 %v13299_v35, %v13300_v55  ;;  %v4740_v39 = vpop.f32.mrb[40].mxu0  ;;  %5819 = vmatpush1.bf16.msra.mxu0 %v10282_v56  ;;  %v5095_v4 = vpack.c.bf16 %v13285_v57, %v13286_v2 }
 0x526   : > { %v5096_v24 = vpack.c.bf16 %v13287_v0, %v13288_v63  ;;  %v4966_v28 = vpop.f32.mrb[40].mxu1  ;;  %v4742_v29 = vpop.f32.mrb[41].mxu0  ;;  %5820 = vmatprep.subr.bf16.mxu0 %v10287_v6  ;;  %5932 = vmatpush1.bf16.msra.mxu1 %v10297_v9  ;;  %v12081_v51 = vadd.f32 %v4740_v39, %v11973_v26  ;;  %v10302_v63 = vld [vmem:[#allocation12 + $0xa4] ss:$16 sps:$4 sm:$0xff]  }
 0x527   : > { %v12078_v31 = vadd.f32 %v4742_v29, %v11970_v22  ;;  %v4968_v32 = vpop.f32.mrb[41].mxu1  ;;  %v4744_v33 = vpop.f32.mrb[42].mxu0  ;;  %5424 = vmatprep.mubr.bf16.mxu0 %v5094_v11  ;;  %5933 = vmatprep.subr.bf16.mxu1 %v10305_v37  ;;  %v12090_v54 = vadd.f32 %v4966_v28, %v11979_v62  ;;  %v10288_v37 = vld [vmem:[#allocation12 + $0x60] ss:$16 sps:$4 sm:$0xff]  }
 0x528   : > { %v12084_v43 = vadd.f32 %v4968_v32, %v11976_v60  ;;  %v12087_v44 = vadd.f32 %v4744_v33, %v11973_v26  ;;  %v4970_v50 = vpop.f32.mrb[42].mxu1  ;;  %5521 = vmatprep.mubr.bf16.mxu1 %v5096_v24  ;;  %v4746_v48 = vpop.f32.mrb[43].mxu0  ;;  %5425 = vmatmul.mubr.bf16.gmra.mrb[68].mxu0 %v5093_v12  ;;  %v10293_v12 = vld [vmem:[#allocation12 + $0x84] ss:$16 sps:$4 sm:$0xff]   ;;  %v10306_v24 = vld [vmem:[#allocation12 + $0x68] ss:$16 sps:$4 sm:$0xff]  }
 0x529   : > { %13457 = vst [vmem:[#allocation28_spill] sm:$0xff] %v12090_v54  ;;  %v12093_v56 = vadd.f32 %v4970_v50, %v11979_v62  ;;  %v12096_v6 = vadd.f32 %v4746_v48, %v11970_v22  ;;  %v4972_v9 = vpop.f32.mrb[43].mxu1  ;;  %5522 = vmatmul.mubr.bf16.gmra.mrb[68].mxu1 %v5095_v4  ;;  %5821 = vmatpush1.bf16.msra.mxu0 %v10285_v8  ;;  %v13291_v28 = vmax.f32 %v12078_v31, 0.0  ;;  %v10314_v33 = vld [vmem:[#allocation12 + $0x8c] ss:$16 sps:$4 sm:$0xff]   ;;  %v13295_v8 = vmax.f32 %v12081_v51, 0.0 }
 0x52a   : > { %13456 = vst [vmem:[#allocation27_spill] sm:$0xff] %v12084_v43  ;;  %v13292_v11 = vmax.f32 %v12087_v44, 0.0  ;;  %v12100_v39 = vadd.f32 %v4972_v9, %v11976_v60  ;;  %5822 = vmatprep.subr.bf16.mxu0 %v10290_v7  ;;  %5934 = vmatpush1.bf16.msra.mxu1 %v10303_v30  ;;  %v13294_v4 = vmax.f32 %v12084_v43, 0.0  ;;  %v13297_v48 = vmax.f32 %v12090_v54, 0.0  ;;  %v10291_v9 = vld [vmem:[#allocation12 + $0x80] ss:$16 sps:$4 sm:$0xff]  }
 0x52b   : > { %13458 = vst [vmem:[#allocation29_spill] sm:$0xff] %v12093_v56  ;;  %v13296_v29 = vmax.f32 %v12093_v56, 0.0  ;;  %v13290_v32 = vmax.f32 %v12096_v6, 0.0  ;;  %5935 = vmatprep.subr.bf16.mxu1 %v10308_v36 }
 0x52c   : > { %13459 = vst [vmem:[#allocation30_spill] sm:$0xff] %v12100_v39  ;;  %v13293_v50 = vmax.f32 %v12100_v39, 0.0  ;;  %v5097_v36 = vpack.c.bf16 %v13292_v11, %v13295_v8 }
 0x52d   : > { %v5098_v7 = vpack.c.bf16 %v13290_v32, %v13291_v28  ;;  %v4750_v30 = vpop.f32.mrb[44].mxu0  ;;  %5823 = vmatpush1.bf16.msra.mxu0 %v10288_v37  ;;  %v5099_v37 = vpack.c.bf16 %v13296_v29, %v13297_v48 }
 0x52e   : > { %v5100_v57 = vpack.c.bf16 %v13293_v50, %v13294_v4  ;;  %v4976_v2 = vpop.f32.mrb[44].mxu1  ;;  %v4752_v0 = vpop.f32.mrb[45].mxu0  ;;  %5824 = vmatprep.subr.bf16.mxu0 %v10293_v12  ;;  %5936 = vmatpush1.bf16.msra.mxu1 %v10306_v24  ;;  %v12129_v50 = vadd.f32 %v4750_v30, %v11973_v26 }
 0x52f   : > { %v12126_v32 = vadd.f32 %v4752_v0, %v11970_v22  ;;  %v4978_v28 = vpop.f32.mrb[45].mxu1  ;;  %v4754_v11 = vpop.f32.mrb[46].mxu0  ;;  %5432 = vmatprep.mubr.bf16.mxu0 %v5098_v7  ;;  %5937 = vmatprep.subr.bf16.mxu1 %v10314_v33  ;;  %v12138_v0 = vadd.f32 %v4976_v2, %v11979_v62 }
 0x530   : > { %13461 = vst [vmem:[#allocation32_spill] sm:$0xff] %v12129_v50  ;;  %v12132_v12 = vadd.f32 %v4978_v28, %v11976_v60  ;;  %v12135_v24 = vadd.f32 %v4754_v11, %v11973_v26  ;;  %v4980_v4 = vpop.f32.mrb[46].mxu1  ;;  %5529 = vmatprep.mubr.bf16.mxu1 %v5100_v57  ;;  %v4756_v8 = vpop.f32.mrb[47].mxu0  ;;  %5433 = vmatmul.mubr.bf16.gmra.mrb[72].mxu0 %v5097_v36  ;;  %v10300_v28 = vld [vmem:[#allocation12 + $0xa0] ss:$16 sps:$4 sm:$0xff]  }
 0x531   : > { %13460 = vst [vmem:[#allocation31_spill] sm:$0xff] %v12126_v32  ;;  %13464 = vst [vmem:[#allocation35_spill] sm:$0xff] %v12138_v0  ;;  %v12141_v29 = vadd.f32 %v4980_v4, %v11979_v62  ;;  %v12144_v33 = vadd.f32 %v4756_v8, %v11970_v22  ;;  %v4982_v7 = vpop.f32.mrb[47].mxu1  ;;  %5530 = vmatmul.mubr.bf16.gmra.mrb[72].mxu1 %v5099_v37  ;;  %5825 = vmatpush1.bf16.msra.mxu0 %v10291_v9  ;;  %v10311_v57 = vld [vmem:[#allocation12 + $0xc4] ss:$16 sps:$4 sm:$0xff]   ;;  %v13303_v2 = vmax.f32 %v12126_v32, 0.0 }
 0x532   : > { %13462 = vst [vmem:[#allocation33_spill] sm:$0xff] %v12132_v12  ;;  %13463 = vst [vmem:[#allocation34_spill] sm:$0xff] %v12135_v24  ;;  %v13305_v11 = vmax.f32 %v12135_v24, 0.0  ;;  %v12148_v30 = vadd.f32 %v4982_v7, %v11976_v60  ;;  %5826 = vmatprep.subr.bf16.mxu0 %v10302_v63  ;;  %5938 = vmatpush1.bf16.msra.mxu1 %v10312_v15  ;;  %v13306_v8 = vmax.f32 %v12129_v50, 0.0  ;;  %v13308_v37 = vmax.f32 %v12132_v12, 0.0 }
 0x533   : > { %13465 = vst [vmem:[#allocation36_spill] sm:$0xff] %v12141_v29  ;;  %13466 = vst [vmem:[#allocation37_spill] sm:$0xff] %v12144_v33  ;;  %v13309_v4 = vmax.f32 %v12141_v29, 0.0  ;;  %v13302_v36 = vmax.f32 %v12144_v33, 0.0  ;;  %v13310_v48 = vmax.f32 %v12138_v0, 0.0  ;;  %v13505_v24 = vmax.f32 %v11991_v3, 0.0 }
 0x534   : > { %13467 = vst [vmem:[#allocation38_spill] sm:$0xff] %v12148_v30  ;;  %v13307_v9 = vmax.f32 %v12148_v30, 0.0  ;;  %v10309_v7 = vld [vmem:[#allocation12 + $0xc0] ss:$16 sps:$4 sm:$0xff]   ;;  %v5101_v58 = vpack.c.bf16 %v13305_v11, %v13306_v8 }
 0x535   : > { %v5102_v63 = vpack.c.bf16 %v13302_v36, %v13303_v2  ;;  %v4760_v15 = vpop.f32.mrb[48].mxu0  ;;  %5827 = vmatpush1.bf16.msra.mxu0 %v10300_v28  ;;  %v5103_v36 = vpack.c.bf16 %v13309_v4, %v13310_v48 }
 0x536   : > { %v5104_v35 = vpack.c.bf16 %v13307_v9, %v13308_v37  ;;  %v4986_v55 = vpop.f32.mrb[48].mxu1  ;;  %v4762_v19 = vpop.f32.mrb[49].mxu0  ;;  %5828 = vmatprep.subr.bf16.mxu0 %v10311_v57  ;;  %v12177_v11 = vadd.f32 %v4760_v15, %v11973_v26 }
 0x537   : > { %v12174_v28 = vadd.f32 %v4762_v19, %v11970_v22  ;;  %v4988_v2 = vpop.f32.mrb[49].mxu1  ;;  %v4764_v20 = vpop.f32.mrb[50].mxu0  ;;  %5440 = vmatprep.mubr.bf16.mxu0 %v5102_v63  ;;  %v12186_v4 = vadd.f32 %v4986_v55, %v11979_v62 }
 0x538   : > { %13469 = vst [vmem:[#allocation40_spill] sm:$0xff] %v12177_v11  ;;  %v12180_v8 = vadd.f32 %v4988_v2, %v11976_v60  ;;  %v12183_v9 = vadd.f32 %v4764_v20, %v11973_v26  ;;  %v4990_v57 = vpop.f32.mrb[50].mxu1  ;;  %5537 = vmatprep.mubr.bf16.mxu1 %v5104_v35  ;;  %v4766_v37 = vpop.f32.mrb[51].mxu0  ;;  %5441 = vmatmul.mubr.bf16.gmra.mrb[76].mxu0 %v5101_v58 }
 0x539   : > { %13468 = vst [vmem:[#allocation39_spill] sm:$0xff] %v12174_v28  ;;  %13472 = vst [vmem:[#allocation43_spill] sm:$0xff] %v12186_v4  ;;  %v12189_v19 = vadd.f32 %v4990_v57, %v11979_v62  ;;  %v12192_v63 = vadd.f32 %v4766_v37, %v11970_v22  ;;  %v4992_v15 = vpop.f32.mrb[51].mxu1  ;;  %5538 = vmatmul.mubr.bf16.gmra.mrb[76].mxu1 %v5103_v36  ;;  %5829 = vmatpush1.bf16.msra.mxu0 %v10309_v7  ;;  %v13317_v35 = vmax.f32 %v12174_v28, 0.0 }
 0x53a   : > { %13470 = vst [vmem:[#allocation41_spill] sm:$0xff] %v12180_v8  ;;  %13471 = vst [vmem:[#allocation42_spill] sm:$0xff] %v12183_v9  ;;  %v13319_v2 = vmax.f32 %v12183_v9, 0.0  ;;  %v12196_v20 = vadd.f32 %v4992_v15, %v11976_v60  ;;  %v13320_v57 = vmax.f32 %v12177_v11, 0.0  ;;  %v13322_v48 = vmax.f32 %v12180_v8, 0.0 }
 0x53b   : > { %13473 = vst [vmem:[#allocation44_spill] sm:$0xff] %v12189_v19  ;;  %13474 = vst [vmem:[#allocation45_spill] sm:$0xff] %v12192_v63  ;;  %v13324_v58 = vmax.f32 %v12189_v19, 0.0  ;;  %v13316_v55 = vmax.f32 %v12192_v63, 0.0  ;;  %v13325_v36 = vmax.f32 %v12186_v4, 0.0 }
 0x53c   : > { %13475 = vst [vmem:[#allocation46_spill] sm:$0xff] %v12196_v20  ;;  %v13321_v37 = vmax.f32 %v12196_v20, 0.0  ;;  %v5105_v61 = vpack.c.bf16 %v13319_v2, %v13320_v57 }
 0x53d   : > { %v5106_v7 = vpack.c.bf16 %v13316_v55, %v13317_v35  ;;  %v4770_v15 = vpop.f32.mrb[52].mxu0  ;;  %v5107_v18 = vpack.c.bf16 %v13324_v58, %v13325_v36 }
 0x53e   : > { %v5108_v59 = vpack.c.bf16 %v13321_v37, %v13322_v48  ;;  %v4996_v17 = vpop.f32.mrb[52].mxu1  ;;  %v4772_v21 = vpop.f32.mrb[53].mxu0  ;;  %v12225_v2 = vadd.f32 %v4770_v15, %v11973_v26 }
 0x53f   : > { %v12222_v55 = vadd.f32 %v4772_v21, %v11970_v22  ;;  %v4998_v35 = vpop.f32.mrb[53].mxu1  ;;  %v4774_v13 = vpop.f32.mrb[54].mxu0  ;;  %5448 = vmatprep.mubr.bf16.mxu0 %v5106_v7  ;;  %v12234_v58 = vadd.f32 %v4996_v17, %v11979_v62 }
 0x540   : > { %13477 = vst [vmem:[#allocation48_spill] sm:$0xff] %v12225_v2  ;;  %v12228_v57 = vadd.f32 %v4998_v35, %v11976_v60  ;;  %v12231_v37 = vadd.f32 %v4774_v13, %v11973_v26  ;;  %v5000_v48 = vpop.f32.mrb[54].mxu1  ;;  %5545 = vmatprep.mubr.bf16.mxu1 %v5108_v59  ;;  %v4776_v20 = vpop.f32.mrb[55].mxu0  ;;  %5449 = vmatmul.mubr.bf16.gmra.mrb[80].mxu0 %v5105_v61  ;;  %v13336_v36 = vmax.f32 %v12225_v2, 0.0 }
 0x541   : > { %13476 = vst [vmem:[#allocation47_spill] sm:$0xff] %v12222_v55  ;;  %13480 = vst [vmem:[#allocation51_spill] sm:$0xff] %v12234_v58  ;;  %v12237_v21 = vadd.f32 %v5000_v48, %v11979_v62  ;;  %v12240_v7 = vadd.f32 %v4776_v20, %v11970_v22  ;;  %v5002_v15 = vpop.f32.mrb[55].mxu1  ;;  %5546 = vmatmul.mubr.bf16.gmra.mrb[80].mxu1 %v5107_v18  ;;  %v13333_v59 = vmax.f32 %v12222_v55, 0.0  ;;  %v13340_v8 = vmax.f32 %v12234_v58, 0.0 }
 0x542   : > { %13478 = vst [vmem:[#allocation49_spill] sm:$0xff] %v12228_v57  ;;  %13479 = vst [vmem:[#allocation50_spill] sm:$0xff] %v12231_v37  ;;  %v13335_v35 = vmax.f32 %v12231_v37, 0.0  ;;  %v12244_v13 = vadd.f32 %v5002_v15, %v11976_v60  ;;  %v13338_v48 = vmax.f32 %v12228_v57, 0.0 }
 0x543   : > { %13481 = vst [vmem:[#allocation52_spill] sm:$0xff] %v12237_v21  ;;  %13482 = vst [vmem:[#allocation53_spill] sm:$0xff] %v12240_v7  ;;  %v13332_v17 = vmax.f32 %v12240_v7, 0.0  ;;  %v13484_v55 = vmax.f32 %v12237_v21, 0.0 }
 0x544   : > { %13483 = vst [vmem:[#allocation54_spill] sm:$0xff] %v12244_v13  ;;  %v13337_v20 = vmax.f32 %v12244_v13, 0.0  ;;  %v5109_v61 = vpack.c.bf16 %v13335_v35, %v13336_v36 }
 0x545   : > { %v5110_v18 = vpack.c.bf16 %v13332_v17, %v13333_v59  ;;  %v4780_v15 = vpop.f32.mrb[56].mxu0  ;;  %v5111_v4 = vpack.c.bf16 %v13484_v55, %v13340_v8 }
 0x546   : > { %v5112_v63 = vpack.c.bf16 %v13337_v20, %v13338_v48  ;;  %v5006_v28 = vpop.f32.mrb[56].mxu1  ;;  %v4782_v19 = vpop.f32.mrb[57].mxu0  ;;  %v12273_v35 = vadd.f32 %v4780_v15, %v11973_v26 }
 0x547   : > { %v12270_v17 = vadd.f32 %v4782_v19, %v11970_v22  ;;  %v5008_v59 = vpop.f32.mrb[57].mxu1  ;;  %v4784_v7 = vpop.f32.mrb[58].mxu0  ;;  %5456 = vmatprep.mubr.bf16.mxu0 %v5110_v18  ;;  %v12282_v55 = vadd.f32 %v5006_v28, %v11979_v62 }
 0x548   : > { %13486 = vst [vmem:[#allocation56_spill] sm:$0xff] %v12273_v35  ;;  %v12276_v36 = vadd.f32 %v5008_v59, %v11976_v60  ;;  %v12279_v20 = vadd.f32 %v4784_v7, %v11973_v26  ;;  %v5010_v48 = vpop.f32.mrb[58].mxu1  ;;  %5553 = vmatprep.mubr.bf16.mxu1 %v5112_v63  ;;  %v4786_v13 = vpop.f32.mrb[59].mxu0  ;;  %5457 = vmatmul.mubr.bf16.gmra.mrb[84].mxu0 %v5109_v61  ;;  %v13351_v8 = vmax.f32 %v12273_v35, 0.0  ;;  %v10339_v35 = vld [vmem:[#allocation14 + $0x40] ss:$16 sps:$4 sm:$0xff]  }
 0x549   : > { %13485 = vst [vmem:[#allocation55_spill] sm:$0xff] %v12270_v17  ;;  %13489 = vst [vmem:[#allocation59_spill] sm:$0xff] %v12282_v55  ;;  %v12285_v19 = vadd.f32 %v5010_v48, %v11979_v62  ;;  %v12288_v18 = vadd.f32 %v4786_v13, %v11970_v22  ;;  %v5012_v15 = vpop.f32.mrb[59].mxu1  ;;  %5554 = vmatmul.mubr.bf16.gmra.mrb[84].mxu1 %v5111_v4  ;;  %v13348_v63 = vmax.f32 %v12270_v17, 0.0  ;;  %v13357_v57 = vmax.f32 %v12282_v55, 0.0 }
 0x54a   : > { %13487 = vst [vmem:[#allocation57_spill] sm:$0xff] %v12276_v36  ;;  %13488 = vst [vmem:[#allocation58_spill] sm:$0xff] %v12279_v20  ;;  %v13350_v59 = vmax.f32 %v12279_v20, 0.0  ;;  %v12292_v7 = vadd.f32 %v5012_v15, %v11976_v60  ;;  %v13353_v48 = vmax.f32 %v12276_v36, 0.0 }
 0x54b   : > { %13490 = vst [vmem:[#allocation60_spill] sm:$0xff] %v12285_v19  ;;  %13491 = vst [vmem:[#allocation61_spill] sm:$0xff] %v12288_v18  ;;  %v13347_v28 = vmax.f32 %v12288_v18, 0.0  ;;  %v13493_v17 = vmax.f32 %v12285_v19, 0.0 }
 0x54c   : > { %13492 = vst [vmem:[#allocation62_spill] sm:$0xff] %v12292_v7  ;;  %v13352_v13 = vmax.f32 %v12292_v7, 0.0  ;;  %v5113_v61 = vpack.c.bf16 %v13350_v59, %v13351_v8 }
 0x54d   : > { %v5114_v4 = vpack.c.bf16 %v13347_v28, %v13348_v63  ;;  %v4790_v15 = vpop.f32.mrb[60].mxu0  ;;  %v5115_v2 = vpack.c.bf16 %v13493_v17, %v13357_v57  ;;  %v10323_v57 = vld [vmem:[#allocation12 + $0xcc] ss:$16 sps:$4 sm:$0xff]  }
 0x54e   : > { %v5116_v21 = vpack.c.bf16 %v13352_v13, %v13353_v48  ;;  %v5016_v58 = vpop.f32.mrb[60].mxu1  ;;  %v4792_v37 = vpop.f32.mrb[61].mxu0  ;;  %v12321_v59 = vadd.f32 %v4790_v15, %v11973_v26 }
 0x54f   : > { %v12318_v28 = vadd.f32 %v4792_v37, %v11970_v22  ;;  %v5018_v63 = vpop.f32.mrb[61].mxu1  ;;  %v4794_v18 = vpop.f32.mrb[62].mxu0  ;;  %5464 = vmatprep.mubr.bf16.mxu0 %v5114_v4  ;;  %v12330_v17 = vadd.f32 %v5016_v58, %v11979_v62 }
 0x550   : > { %13495 = vst [vmem:[#allocation64_spill] sm:$0xff] %v12321_v59  ;;  %v12324_v8 = vadd.f32 %v5018_v63, %v11976_v60  ;;  %v12327_v13 = vadd.f32 %v4794_v18, %v11973_v26  ;;  %v5020_v48 = vpop.f32.mrb[62].mxu1  ;;  %5561 = vmatprep.mubr.bf16.mxu1 %v5116_v21  ;;  %v4796_v7 = vpop.f32.mrb[63].mxu0  ;;  %5465 = vmatmul.mubr.bf16.gmra.mrb[88].mxu0 %v5113_v61  ;;  %v13359_v61 = vmax.f32 %v12321_v59, 0.0 }
 0x551   : > { %13494 = vst [vmem:[#allocation63_spill] sm:$0xff] %v12318_v28  ;;  %13498 = vst [vmem:[#allocation67_spill] sm:$0xff] %v12330_v17  ;;  %v12333_v37 = vadd.f32 %v5020_v48, %v11979_v62  ;;  %v12336_v4 = vadd.f32 %v4796_v7, %v11970_v22  ;;  %v5022_v15 = vpop.f32.mrb[63].mxu1  ;;  %5562 = vmatmul.mubr.bf16.gmra.mrb[88].mxu1 %v5115_v2  ;;  %v13356_v21 = vmax.f32 %v12318_v28, 0.0  ;;  %v13364_v7 = vmax.f32 %v12330_v17, 0.0 }
 0x552   : > { %13496 = vst [vmem:[#allocation65_spill] sm:$0xff] %v12324_v8  ;;  %13497 = vst [vmem:[#allocation66_spill] sm:$0xff] %v12327_v13  ;;  %v13358_v63 = vmax.f32 %v12327_v13, 0.0  ;;  %v12340_v26 = vadd.f32 %v5022_v15, %v11976_v60  ;;  %v13362_v62 = vmax.f32 %v12324_v8, 0.0 }
 0x553   : > { %13499 = vst [vmem:[#allocation68_spill] sm:$0xff] %v12333_v37  ;;  %13500 = vst [vmem:[#allocation69_spill] sm:$0xff] %v12336_v4  ;;  %v13363_v18 = vmax.f32 %v12333_v37, 0.0  ;;  %v13355_v58 = vmax.f32 %v12336_v4, 0.0 }
 0x554   : > { %13501 = vst [vmem:[#allocation70_spill] sm:$0xff] %v12340_v26  ;;  %v13361_v22 = vmax.f32 %v12340_v26, 0.0  ;;  %v5117_v2 = vpack.c.bf16 %v13358_v63, %v13359_v61  ;;  %v10321_v63 = vld [vmem:[#allocation12 + $0xc8] ss:$16 sps:$4 sm:$0xff]   ;;  %v10320_v61 = vld [vmem:[#allocation12 + $0xe4] ss:$16 sps:$4 sm:$0xff]  }
 0x555   : > { %v5118_v60 = vpack.c.bf16 %v13355_v58, %v13356_v21  ;;  %v5119_v15 = vpack.c.bf16 %v13363_v18, %v13364_v7  ;;  %v10317_v58 = vld [vmem:[#allocation12 + $0xac] ss:$16 sps:$4 sm:$0xff]   ;;  %v10315_v21 = vld [vmem:[#allocation12 + $0xa8] ss:$16 sps:$4 sm:$0xff]   ;;  %5830 = vmatprep.subr.bf16.mxu0 %v10320_v61 }
 0x556   : > { %v5120_v48 = vpack.c.bf16 %v13361_v22, %v13362_v62  ;;  %5939 = vmatprep.subr.bf16.mxu1 %v10317_v58  ;;  %v10326_v26 = vld [vmem:[#allocation12 + $0xec] ss:$16 sps:$4 sm:$0xff]   ;;  %v10318_v22 = vld [vmem:[#allocation12 + $0xe0] ss:$16 sps:$4 sm:$0xff]   ;;  %v10324_v62 = vld [vmem:[#allocation12 + $0xe8] ss:$16 sps:$4 sm:$0xff]  }
 0x557   : > { %5472 = vmatprep.mubr.bf16.mxu0 %v5118_v60  ;;  %5940 = vmatpush1.bf16.msra.mxu1 %v10315_v21  ;;  %v13365_v60 = vmov 0   ;;  %v10332_v58 = vld [vmem:[#allocation14 + $0xc] ss:$16 sps:$4 sm:$0xff]  }
 0x558   : > { %5569 = vmatprep.mubr.bf16.mxu1 %v5120_v48  ;;  %5473 = vmatmul.mubr.bf16.gmra.mrb[92].mxu0 %v5117_v2  ;;  %v10329_v2 = vld [vmem:[#allocation14 + $0x4] ss:$16 sps:$4 sm:$0xff]  }
 0x559   : > { %5570 = vmatmul.mubr.bf16.gmra.mrb[92].mxu1 %v5119_v15  ;;  %5941 = vmatprep.subr.bf16.mxu1 %v10323_v57 }
 0x55a   : > { %5831 = vmatpush1.bf16.msra.mxu0 %v10318_v22  ;;  %5848 = vmatprep.mubr.bf16.mxu0 %v13365_v60 }
 0x55b   : > { %5942 = vmatpush1.bf16.msra.mxu1 %v10321_v63  ;;  %5961 = vmatprep.mubr.bf16.mxu1 %v13365_v60  ;;  %v12370_v63 = vld [vmem:[%s13502_s23] ss:$0 sm:$0xff] }
 0x55c   : > { %5943 = vmatprep.subr.bf16.mxu1 %v10326_v26  ;;  %7312 = vmatprep.subr.bf16.mxu0 %v10329_v2 }
 0x55f   : > { %5944 = vmatpush1.bf16.msra.mxu1 %v10324_v62 }
 0x560   : > { %7538 = vmatprep.subr.bf16.mxu1 %v10332_v58 }
 0x5f3   : > { %v8936_v21 = vpop.f32.mrb[64].mxu0 }
 0x5f4   : > { %v9000_v57 = vpop.f32.mrb[64].mxu1  ;;  %v8937_v61 = vpop.f32.mrb[65].mxu0 }
 0x5f5   : > { %v8938_v26 = vadd.f32 %v8937_v61, %v8936_v21  ;;  %v9001_v22 = vpop.f32.mrb[65].mxu1  ;;  %v8939_v62 = vpop.f32.mrb[66].mxu0 }
 0x5f6   : > { %v9002_v48 = vadd.f32 %v9001_v22, %v9000_v57  ;;  %v9003_v15 = vpop.f32.mrb[66].mxu1  ;;  %v8940_v18 = vpop.f32.mrb[67].mxu0 }
 0x5f7   : > { %v5419_v7 = vadd.f32 %v8938_v26, %v12370_v63  ;;  %v8941_v60 = vadd.f32 %v8940_v18, %v8939_v62  ;;  %v9004_v8 = vpop.f32.mrb[67].mxu1  ;;  %v10330_v62 = vld [vmem:[#allocation14 + $0x8] ss:$16 sps:$4 sm:$0xff]  }
 0x5f8   : > { %v9005_v2 = vadd.f32 %v9004_v8, %v9003_v15 }
 0x5f9   : > { %v5516_v58 = vadd.f32 %v9002_v48, %v5419_v7  ;;  %v5422_v4 = vadd.f32 %v8941_v60, %v12370_v63  ;;  %v10327_v7 = vld [vmem:[#allocation14] ss:$16 sps:$4 sm:$0xff]   ;;  %v10338_v48 = vld [vmem:[#allocation14 + $0x2c] ss:$16 sps:$4 sm:$0xff]  }
 0x5fb   : > { %v5519_v28 = vadd.f32 %v9005_v2, %v5422_v4  ;;  %v8942_v37 = vpop.f32.mrb[68].mxu0  ;;  %v5578_v59 = vmax.f32 %v5516_v58, 0.0  ;;  %v10335_v4 = vld [vmem:[#allocation14 + $0x24] ss:$16 sps:$4 sm:$0xff]   ;;  %v10344_v58 = vld [vmem:[#allocation14 + $0x4c] ss:$16 sps:$4 sm:$0xff]  }
 0x5fc   : > { %v9006_v17 = vpop.f32.mrb[68].mxu1  ;;  %v8943_v13 = vpop.f32.mrb[69].mxu0 }
 0x5fd   : > { %v5579_v36 = vmax.f32 %v5519_v28, 0.0  ;;  %v8944_v21 = vadd.f32 %v8943_v13, %v8942_v37  ;;  %v9007_v61 = vpop.f32.mrb[69].mxu1  ;;  %v8945_v19 = vpop.f32.mrb[70].mxu0  ;;  %v13503_v28 = vmov 0   ;;  %v10341_v37 = vld [vmem:[#allocation14 + $0x44] ss:$16 sps:$4 sm:$0xff]  }
 0x5fe   : > { %v9008_v57 = vadd.f32 %v9007_v61, %v9006_v17  ;;  %v9009_v22 = vpop.f32.mrb[70].mxu1  ;;  %v8946_v55 = vpop.f32.mrb[71].mxu0 }
 0x5ff   : > { %v5594_v20 = vpack.c.bf16 %v5579_v36, %v5578_v59  ;;  %v5427_v18 = vadd.f32 %v8944_v21, %v12370_v63  ;;  %v8947_v26 = vadd.f32 %v8946_v55, %v8945_v19  ;;  %v9010_v8 = vpop.f32.mrb[71].mxu1  ;;  %v10333_v55 = vld [vmem:[#allocation14 + $0x20] ss:$16 sps:$4 sm:$0xff]   ;;  %v10336_v19 = vld [vmem:[#allocation14 + $0x28] ss:$16 sps:$4 sm:$0xff]  }
 0x600   : > { %v9011_v60 = vadd.f32 %v9010_v8, %v9009_v22 }
 0x601   : > { %v5524_v15 = vadd.f32 %v9008_v57, %v5427_v18  ;;  %v5430_v2 = vadd.f32 %v8947_v26, %v12370_v63  ;;  %5849 = vmatmul.mubr.bf16.vlgmr.msra.gmra.mrb[96].mxu0 %v5594_v20  ;;  %5962 = vmatmul.mubr.bf16.vlgmr.msra.gmra.mrb[96].mxu1 %v5594_v20 }
 0x602   : > { %5858 = vmatprep.mubr.bf16.mxu0 %v13503_v28  ;;  %5971 = vmatprep.mubr.bf16.mxu1 %v13503_v28 }
 0x603   : > { %v5527_v13 = vadd.f32 %v9011_v60, %v5430_v2  ;;  %v8948_v36 = vpop.f32.mrb[72].mxu0  ;;  %7313 = vmatpush1.bf16.msra.mxu0 %v10327_v7  ;;  %7539 = vmatpush1.bf16.msra.mxu1 %v10330_v62  ;;  %v5580_v21 = vmax.f32 %v5524_v15, 0.0  ;;  %v10347_v15 = vld [vmem:[#allocation14 + $0x64] ss:$16 sps:$4 sm:$0xff]  }
 0x604   : > { %v9012_v59 = vpop.f32.mrb[72].mxu1  ;;  %v8949_v17 = vpop.f32.mrb[73].mxu0  ;;  %7314 = vmatprep.subr.bf16.mxu0 %v10335_v4  ;;  %7540 = vmatprep.subr.bf16.mxu1 %v10338_v48  ;;  %v10342_v4 = vld [vmem:[#allocation14 + $0x48] ss:$16 sps:$4 sm:$0xff]  }
 0x605   : > { %v5581_v61 = vmax.f32 %v5527_v13, 0.0  ;;  %v8950_v57 = vadd.f32 %v8949_v17, %v8948_v36  ;;  %v9013_v20 = vpop.f32.mrb[73].mxu1  ;;  %v8951_v22 = vpop.f32.mrb[74].mxu0  ;;  %v10350_v13 = vld [vmem:[#allocation14 + $0x6c] ss:$16 sps:$4 sm:$0xff]  }
 0x606   : > { %v9014_v18 = vadd.f32 %v9013_v20, %v9012_v59  ;;  %v9015_v26 = vpop.f32.mrb[74].mxu1  ;;  %v8952_v8 = vpop.f32.mrb[75].mxu0 }
 0x607   : > { %v5435_v60 = vadd.f32 %v8950_v57, %v12370_v63  ;;  %v8953_v7 = vadd.f32 %v8952_v8, %v8951_v22  ;;  %v9016_v62 = vpop.f32.mrb[75].mxu1  ;;  %v5595_v2 = vpack.c.bf16 %v5581_v61, %v5580_v21  ;;  %7315 = vmatpush1.bf16.msra.mxu0 %v10333_v55  ;;  %7541 = vmatpush1.bf16.msra.mxu1 %v10336_v19  ;;  %v10345_v55 = vld [vmem:[#allocation14 + $0x60] ss:$16 sps:$4 sm:$0xff]   ;;  %v10348_v19 = vld [vmem:[#allocation14 + $0x68] ss:$16 sps:$4 sm:$0xff]  }
 0x608   : > { %v9017_v48 = vadd.f32 %v9016_v62, %v9015_v26  ;;  %7316 = vmatprep.subr.bf16.mxu0 %v10341_v37  ;;  %7542 = vmatprep.subr.bf16.mxu1 %v10344_v58  ;;  %v10353_v58 = vld [vmem:[#allocation14 + $0x84] ss:$16 sps:$4 sm:$0xff]   ;;  %v10356_v57 = vld [vmem:[#allocation14 + $0x8c] ss:$16 sps:$4 sm:$0xff]  }
 0x609   : > { %v5532_v36 = vadd.f32 %v9014_v18, %v5435_v60  ;;  %v5438_v17 = vadd.f32 %v8953_v7, %v12370_v63  ;;  %5859 = vmatmul.mubr.bf16.gmra.mrb[100].mxu0 %v5595_v2  ;;  %5972 = vmatmul.mubr.bf16.gmra.mrb[100].mxu1 %v5595_v2 }
 0x60a   : > { %5868 = vmatprep.mubr.bf16.mxu0 %v13503_v28  ;;  %5981 = vmatprep.mubr.bf16.mxu1 %v13503_v28 }
 0x60b   : > { %v5535_v59 = vadd.f32 %v9017_v48, %v5438_v17  ;;  %v8954_v21 = vpop.f32.mrb[76].mxu0  ;;  %7317 = vmatpush1.bf16.msra.mxu0 %v10339_v35  ;;  %7543 = vmatpush1.bf16.msra.mxu1 %v10342_v4  ;;  %v5582_v20 = vmax.f32 %v5532_v36, 0.0  ;;  %v10351_v17 = vld [vmem:[#allocation14 + $0x80] ss:$16 sps:$4 sm:$0xff]   ;;  %v10359_v36 = vld [vmem:[#allocation14 + $0xa4] ss:$16 sps:$4 sm:$0xff]  }
 0x60c   : > { %v9018_v61 = vpop.f32.mrb[76].mxu1  ;;  %v8955_v37 = vpop.f32.mrb[77].mxu0  ;;  %7318 = vmatprep.subr.bf16.mxu0 %v10347_v15  ;;  %7544 = vmatprep.subr.bf16.mxu1 %v10350_v13  ;;  %v10354_v15 = vld [vmem:[#allocation14 + $0x88] ss:$16 sps:$4 sm:$0xff]  }
 0x60d   : > { %v5583_v22 = vmax.f32 %v5535_v59, 0.0  ;;  %v8956_v18 = vadd.f32 %v8955_v37, %v8954_v21  ;;  %v9019_v26 = vpop.f32.mrb[77].mxu1  ;;  %v8957_v8 = vpop.f32.mrb[78].mxu0  ;;  %v10362_v59 = vld [vmem:[#allocation14 + $0xac] ss:$16 sps:$4 sm:$0xff]  }
 0x60e   : > { %v9020_v60 = vadd.f32 %v9019_v26, %v9018_v61  ;;  %v9021_v7 = vpop.f32.mrb[78].mxu1  ;;  %v8958_v62 = vpop.f32.mrb[79].mxu0 }
 0x60f   : > { %v5443_v2 = vadd.f32 %v8956_v18, %v12370_v63  ;;  %v8959_v35 = vadd.f32 %v8958_v62, %v8957_v8  ;;  %v9022_v4 = vpop.f32.mrb[79].mxu1  ;;  %v5596_v48 = vpack.c.bf16 %v5583_v22, %v5582_v20  ;;  %7319 = vmatpush1.bf16.msra.mxu0 %v10345_v55  ;;  %7545 = vmatpush1.bf16.msra.mxu1 %v10348_v19  ;;  %v10357_v55 = vld [vmem:[#allocation14 + $0xa0] ss:$16 sps:$4 sm:$0xff]   ;;  %v10360_v19 = vld [vmem:[#allocation14 + $0xa8] ss:$16 sps:$4 sm:$0xff]  }
 0x610   : > { %v9023_v13 = vadd.f32 %v9022_v4, %v9021_v7  ;;  %7320 = vmatprep.subr.bf16.mxu0 %v10353_v58  ;;  %7546 = vmatprep.subr.bf16.mxu1 %v10356_v57  ;;  %v10365_v57 = vld [vmem:[#allocation14 + $0xc4] ss:$16 sps:$4 sm:$0xff]   ;;  %v10368_v18 = vld [vmem:[#allocation14 + $0xcc] ss:$16 sps:$4 sm:$0xff]  }
 0x611   : > { %v5540_v21 = vadd.f32 %v9020_v60, %v5443_v2  ;;  %v5446_v37 = vadd.f32 %v8959_v35, %v12370_v63  ;;  %5869 = vmatmul.mubr.bf16.gmra.mrb[104].mxu0 %v5596_v48  ;;  %5982 = vmatmul.mubr.bf16.gmra.mrb[104].mxu1 %v5596_v48 }
 0x612   : > { %5878 = vmatprep.mubr.bf16.mxu0 %v13503_v28  ;;  %5991 = vmatprep.mubr.bf16.mxu1 %v13503_v28 }
 0x613   : > { %v5543_v61 = vadd.f32 %v9023_v13, %v5446_v37  ;;  %v8960_v20 = vpop.f32.mrb[80].mxu0  ;;  %7321 = vmatpush1.bf16.msra.mxu0 %v10351_v17  ;;  %7547 = vmatpush1.bf16.msra.mxu1 %v10354_v15  ;;  %v5584_v26 = vmax.f32 %v5540_v21, 0.0  ;;  %v10363_v37 = vld [vmem:[#allocation14 + $0xc0] ss:$16 sps:$4 sm:$0xff]  }
 0x614   : > { %v9024_v22 = vpop.f32.mrb[80].mxu1  ;;  %v8961_v58 = vpop.f32.mrb[81].mxu0  ;;  %7322 = vmatprep.subr.bf16.mxu0 %v10359_v36  ;;  %7548 = vmatprep.subr.bf16.mxu1 %v10362_v59  ;;  %v10366_v36 = vld [vmem:[#allocation14 + $0xc8] ss:$16 sps:$4 sm:$0xff]  }
 0x615   : > { %v5585_v8 = vmax.f32 %v5543_v61, 0.0  ;;  %v8962_v60 = vadd.f32 %v8961_v58, %v8960_v20  ;;  %v9025_v7 = vpop.f32.mrb[81].mxu1  ;;  %v8963_v62 = vpop.f32.mrb[82].mxu0 }
 0x616   : > { %v9026_v2 = vadd.f32 %v9025_v7, %v9024_v22  ;;  %v9027_v35 = vpop.f32.mrb[82].mxu1  ;;  %v8964_v4 = vpop.f32.mrb[83].mxu0 }
 0x617   : > { %v5451_v48 = vadd.f32 %v8962_v60, %v12370_v63  ;;  %v8965_v17 = vadd.f32 %v8964_v4, %v8963_v62  ;;  %v9028_v15 = vpop.f32.mrb[83].mxu1  ;;  %v5597_v13 = vpack.c.bf16 %v5585_v8, %v5584_v26  ;;  %7323 = vmatpush1.bf16.msra.mxu0 %v10357_v55  ;;  %7549 = vmatpush1.bf16.msra.mxu1 %v10360_v19 }
 0x618   : > { %v9029_v59 = vadd.f32 %v9028_v15, %v9027_v35  ;;  %7324 = vmatprep.subr.bf16.mxu0 %v10365_v57  ;;  %7550 = vmatprep.subr.bf16.mxu1 %v10368_v18 }
 0x619   : > { %v5548_v21 = vadd.f32 %v9026_v2, %v5451_v48  ;;  %v5454_v61 = vadd.f32 %v8965_v17, %v12370_v63  ;;  %5879 = vmatmul.mubr.bf16.gmra.mrb[108].mxu0 %v5597_v13  ;;  %5992 = vmatmul.mubr.bf16.gmra.mrb[108].mxu1 %v5597_v13 }
 0x61a   : > { %5888 = vmatprep.mubr.bf16.mxu0 %v13503_v28  ;;  %6001 = vmatprep.mubr.bf16.mxu1 %v13503_v28 }
 0x61b   : > { %v5551_v20 = vadd.f32 %v9029_v59, %v5454_v61  ;;  %v8966_v22 = vpop.f32.mrb[84].mxu0  ;;  %7325 = vmatpush1.bf16.msra.mxu0 %v10363_v37  ;;  %7551 = vmatpush1.bf16.msra.mxu1 %v10366_v36  ;;  %v5586_v58 = vmax.f32 %v5548_v21, 0.0 }
 0x61c   : > { %v9030_v55 = vpop.f32.mrb[84].mxu1  ;;  %v8967_v19 = vpop.f32.mrb[85].mxu0 }
 0x61d   : > { %v5587_v26 = vmax.f32 %v5551_v20, 0.0  ;;  %v8968_v8 = vadd.f32 %v8967_v19, %v8966_v22  ;;  %v9031_v57 = vpop.f32.mrb[85].mxu1  ;;  %v8969_v18 = vpop.f32.mrb[86].mxu0 }
 0x61e   : > { %v9032_v60 = vadd.f32 %v9031_v57, %v9030_v55  ;;  %v9033_v7 = vpop.f32.mrb[86].mxu1  ;;  %v8970_v62 = vpop.f32.mrb[87].mxu0 }
 0x61f   : > { %v5459_v2 = vadd.f32 %v8968_v8, %v12370_v63  ;;  %v8971_v35 = vadd.f32 %v8970_v62, %v8969_v18  ;;  %v9034_v4 = vpop.f32.mrb[87].mxu1  ;;  %v5598_v48 = vpack.c.bf16 %v5587_v26, %v5586_v58 }
 0x620   : > { %v9035_v17 = vadd.f32 %v9034_v4, %v9033_v7 }
 0x621   : > { %v5556_v15 = vadd.f32 %v9032_v60, %v5459_v2  ;;  %v5462_v13 = vadd.f32 %v8971_v35, %v12370_v63  ;;  %5889 = vmatmul.mubr.bf16.gmra.mrb[112].mxu0 %v5598_v48  ;;  %6002 = vmatmul.mubr.bf16.gmra.mrb[112].mxu1 %v5598_v48 }
 0x622   : > { %5898 = vmatprep.mubr.bf16.mxu0 %v13503_v28  ;;  %6011 = vmatprep.mubr.bf16.mxu1 %v13503_v28 }
 0x623   : > { %v5559_v37 = vadd.f32 %v9035_v17, %v5462_v13  ;;  %v8972_v36 = vpop.f32.mrb[88].mxu0  ;;  %v5588_v61 = vmax.f32 %v5556_v15, 0.0 }
 0x624   : > { %v9036_v59 = vpop.f32.mrb[88].mxu1  ;;  %v8973_v21 = vpop.f32.mrb[89].mxu0 }
 0x625   : > { %v5589_v20 = vmax.f32 %v5559_v37, 0.0  ;;  %v8974_v22 = vadd.f32 %v8973_v21, %v8972_v36  ;;  %v9037_v55 = vpop.f32.mrb[89].mxu1  ;;  %v8975_v19 = vpop.f32.mrb[90].mxu0 }
 0x626   : > { %v9038_v58 = vadd.f32 %v9037_v55, %v9036_v59  ;;  %v9039_v26 = vpop.f32.mrb[90].mxu1  ;;  %v8976_v8 = vpop.f32.mrb[91].mxu0 }
 0x627   : > { %v5467_v57 = vadd.f32 %v8974_v22, %v12370_v63  ;;  %v8977_v18 = vadd.f32 %v8976_v8, %v8975_v19  ;;  %v9040_v60 = vpop.f32.mrb[91].mxu1  ;;  %v5599_v7 = vpack.c.bf16 %v5589_v20, %v5588_v61 }
 0x628   : > { %v9041_v62 = vadd.f32 %v9040_v60, %v9039_v26 }
 0x629   : > { %v5564_v2 = vadd.f32 %v9038_v58, %v5467_v57  ;;  %v5470_v35 = vadd.f32 %v8977_v18, %v12370_v63  ;;  %5899 = vmatmul.mubr.bf16.gmra.mrb[116].mxu0 %v5599_v7  ;;  %6012 = vmatmul.mubr.bf16.gmra.mrb[116].mxu1 %v5599_v7 }
 0x62a   : > { %5908 = vmatprep.mubr.bf16.mxu0 %v13503_v28  ;;  %6021 = vmatprep.mubr.bf16.mxu1 %v13503_v28 }
 0x62b   : > { %v5567_v4 = vadd.f32 %v9041_v62, %v5470_v35  ;;  %v8978_v48 = vpop.f32.mrb[92].mxu0  ;;  %v5590_v13 = vmax.f32 %v5564_v2, 0.0  ;;  %v10371_v35 = vld [vmem:[#allocation14 + $0xe4] ss:$16 sps:$4 sm:$0xff]  }
 0x62c   : > { %v9042_v17 = vpop.f32.mrb[92].mxu1  ;;  %v8979_v15 = vpop.f32.mrb[93].mxu0  ;;  %7326 = vmatprep.subr.bf16.mxu0 %v10371_v35  ;;  %v10405_v35 = vld [vmem:[#allocation14 + $0x1a0] ss:$16 sps:$4 sm:$0xff]  }
 0x62d   : > { %v5591_v37 = vmax.f32 %v5567_v4, 0.0  ;;  %v8980_v36 = vadd.f32 %v8979_v15, %v8978_v48  ;;  %v9043_v59 = vpop.f32.mrb[93].mxu1  ;;  %v8981_v21 = vpop.f32.mrb[94].mxu0  ;;  %v10374_v4 = vld [vmem:[#allocation14 + $0xec] ss:$16 sps:$4 sm:$0xff]  }
 0x62e   : > { %v9044_v61 = vadd.f32 %v9043_v59, %v9042_v17  ;;  %v9045_v20 = vpop.f32.mrb[94].mxu1  ;;  %v8982_v22 = vpop.f32.mrb[95].mxu0  ;;  %v10369_v48 = vld [vmem:[#allocation14 + $0xe0] ss:$16 sps:$4 sm:$0xff]   ;;  %v10372_v17 = vld [vmem:[#allocation14 + $0xe8] ss:$16 sps:$4 sm:$0xff]   ;;  %7552 = vmatprep.subr.bf16.mxu1 %v10374_v4 }
 0x62f   : > { %v5475_v55 = vadd.f32 %v8980_v36, %v12370_v63  ;;  %v8983_v19 = vadd.f32 %v8982_v22, %v8981_v21  ;;  %v9046_v58 = vpop.f32.mrb[95].mxu1  ;;  %v5600_v26 = vpack.c.bf16 %v5591_v37, %v5590_v13  ;;  %7327 = vmatpush1.bf16.msra.mxu0 %v10369_v48  ;;  %7553 = vmatpush1.bf16.msra.mxu1 %v10372_v17  ;;  %v10380_v15 = vld [vmem:[#allocation14 + $0x10c] ss:$16 sps:$4 sm:$0xff]   ;;  %v10375_v13 = vld [vmem:[#allocation14 + $0x100] ss:$16 sps:$4 sm:$0xff]  }
 0x630   : > { %v9047_v8 = vadd.f32 %v9046_v58, %v9045_v20  ;;  %v10378_v37 = vld [vmem:[#allocation14 + $0x108] ss:$16 sps:$4 sm:$0xff]   ;;  %7554 = vmatprep.subr.bf16.mxu1 %v10380_v15  ;;  %v10386_v36 = vld [vmem:[#allocation14 + $0x12c] ss:$16 sps:$4 sm:$0xff]   ;;  %v10381_v59 = vld [vmem:[#allocation14 + $0x120] ss:$16 sps:$4 sm:$0xff]  }
 0x631   : > { %v5572_v57 = vadd.f32 %v9044_v61, %v5475_v55  ;;  %v5478_v18 = vadd.f32 %v8983_v19, %v12370_v63  ;;  %5909 = vmatmul.mubr.bf16.gmra.mrb[120].mxu0 %v5600_v26  ;;  %6022 = vmatmul.mubr.bf16.gmra.mrb[120].mxu1 %v5600_v26  ;;  %v10377_v63 = vld [vmem:[#allocation14 + $0x104] ss:$16 sps:$4 sm:$0xff]   ;;  %v10384_v21 = vld [vmem:[#allocation14 + $0x128] ss:$16 sps:$4 sm:$0xff]   ;;  %v10392_v20 = vld [vmem:[#allocation14 + $0x14c] ss:$16 sps:$4 sm:$0xff]  }
 0x632   : > { %5918 = vmatprep.mubr.bf16.mxu0 %v13503_v28  ;;  %6031 = vmatprep.mubr.bf16.mxu1 %v13503_v28  ;;  %v10383_v28 = vld [vmem:[#allocation14 + $0x124] ss:$16 sps:$4 sm:$0xff]   ;;  %v10387_v22 = vld [vmem:[#allocation14 + $0x140] ss:$16 sps:$4 sm:$0xff]   ;;  %v10390_v55 = vld [vmem:[#allocation14 + $0x148] ss:$16 sps:$4 sm:$0xff]  }
 0x633   : > { %v5575_v60 = vadd.f32 %v9047_v8, %v5478_v18  ;;  %v5592_v7 = vmax.f32 %v5572_v57, 0.0  ;;  %7328 = vmatprep.subr.bf16.mxu0 %v10377_v63  ;;  %7555 = vmatpush1.bf16.msra.mxu1 %v10378_v37  ;;  %v10389_v61 = vld [vmem:[#allocation14 + $0x144] ss:$16 sps:$4 sm:$0xff]   ;;  %v10398_v58 = vld [vmem:[#allocation14 + $0x16c] ss:$16 sps:$4 sm:$0xff]  }
 0x634   : > { %7329 = vmatpush1.bf16.msra.mxu0 %v10375_v13  ;;  %7556 = vmatprep.subr.bf16.mxu1 %v10386_v36  ;;  %v10395_v19 = vld [vmem:[#allocation14 + $0x164] ss:$16 sps:$4 sm:$0xff]   ;;  %v10393_v26 = vld [vmem:[#allocation14 + $0x160] ss:$16 sps:$4 sm:$0xff]   ;;  %v10396_v8 = vld [vmem:[#allocation14 + $0x168] ss:$16 sps:$4 sm:$0xff]  }
 0x635   : > { %v5593_v62 = vmax.f32 %v5575_v60, 0.0  ;;  %7330 = vmatprep.subr.bf16.mxu0 %v10383_v28  ;;  %v10401_v57 = vld [vmem:[#allocation14 + $0x184] ss:$16 sps:$4 sm:$0xff]   ;;  %v10404_v18 = vld [vmem:[#allocation14 + $0x18c] ss:$16 sps:$4 sm:$0xff]  }
 0x636   : > { %v10399_v60 = vld [vmem:[#allocation14 + $0x180] ss:$16 sps:$4 sm:$0xff]   ;;  %v10408_v4 = vld [vmem:[#allocation14 + $0x1a8] ss:$16 sps:$4 sm:$0xff]   ;;  %v10413_v48 = vld [vmem:[#allocation14 + $0x1c4] ss:$16 sps:$4 sm:$0xff]  }
 0x637   : > { %v5601_v2 = vpack.c.bf16 %v5593_v62, %v5592_v7  ;;  %7557 = vmatpush1.bf16.msra.mxu1 %v10384_v21  ;;  %v10402_v7 = vld [vmem:[#allocation14 + $0x188] ss:$16 sps:$4 sm:$0xff]   ;;  %v10407_v62 = vld [vmem:[#allocation14 + $0x1a4] ss:$16 sps:$4 sm:$0xff]   ;;  %v10416_v17 = vld [vmem:[#allocation14 + $0x1cc] ss:$16 sps:$4 sm:$0xff]  }
 0x638   : > { %7331 = vmatpush1.bf16.msra.mxu0 %v10381_v59  ;;  %7558 = vmatprep.subr.bf16.mxu1 %v10392_v20  ;;  %v10411_v63 = vld [vmem:[#allocation14 + $0x1c0] ss:$16 sps:$4 sm:$0xff]   ;;  %v10414_v15 = vld [vmem:[#allocation14 + $0x1c8] ss:$16 sps:$4 sm:$0xff]   ;;  %v10419_v13 = vld [vmem:[#allocation14 + $0x1e4] ss:$16 sps:$4 sm:$0xff]  }
 0x639   : > { %5919 = vmatmul.mubr.bf16.gmra.mrb[124].mxu0 %v5601_v2  ;;  %6032 = vmatmul.mubr.bf16.gmra.mrb[124].mxu1 %v5601_v2  ;;  %v10410_v2 = vld [vmem:[#allocation14 + $0x1ac] ss:$16 sps:$4 sm:$0xff]   ;;  %v10417_v28 = vld [vmem:[#allocation14 + $0x1e0] ss:$16 sps:$4 sm:$0xff]   ;;  %v10420_v36 = vld [vmem:[#allocation14 + $0x1e8] ss:$16 sps:$4 sm:$0xff]  }
 0x63a   : > { %7332 = vmatprep.subr.bf16.mxu0 %v10389_v61  ;;  %v10422_v37 = vld [vmem:[#allocation14 + $0x1ec] ss:$16 sps:$4 sm:$0xff]   ;;  %v10425_v59 = vld [vmem:[#allocation14 + $0x204] ss:$16 sps:$4 sm:$0xff]   ;;  %v5634_v61 = vld [vmem:[%s13504_s25] sm:$0xf] }
 0x63b   : > { %7559 = vmatpush1.bf16.msra.mxu1 %v10390_v55  ;;  %v10428_v21 = vld [vmem:[#allocation14 + $0x20c] ss:$16 sps:$4 sm:$0xff]   ;;  %v12406_v20 = vrot.slane %v5634_v61, %v11741_v34  ;;  %v12412_v55 = vrot.slane %v5634_v61, %v11727_v16 }
 0x63c   : > { %7333 = vmatpush1.bf16.msra.mxu0 %v10387_v22  ;;  %7560 = vmatprep.subr.bf16.mxu1 %v10398_v58  ;;  %v12409_v22 = vrot.slane %v5634_v61, %v11783_v23 }
 0x63d   : > { %7334 = vmatprep.subr.bf16.mxu0 %v10395_v19  ;;  %v12415_v19 = vrot.slane %v5634_v61, %v11776_v49 }
 0x63f   : > { %7561 = vmatpush1.bf16.msra.mxu1 %v10396_v8 }
 0x640   : > { %7335 = vmatpush1.bf16.msra.mxu0 %v10393_v26  ;;  %7562 = vmatprep.subr.bf16.mxu1 %v10404_v18 }
 0x641   : > { %7336 = vmatprep.subr.bf16.mxu0 %v10401_v57 }
 0x643   : > { %7563 = vmatpush1.bf16.msra.mxu1 %v10402_v7 }
 0x644   : > { %7337 = vmatpush1.bf16.msra.mxu0 %v10399_v60  ;;  %7564 = vmatprep.subr.bf16.mxu1 %v10410_v2 }
 0x645   : > { %7338 = vmatprep.subr.bf16.mxu0 %v10407_v62 }
 0x647   : > { %7565 = vmatpush1.bf16.msra.mxu1 %v10408_v4 }
 0x648   : > { %7339 = vmatpush1.bf16.msra.mxu0 %v10405_v35  ;;  %7566 = vmatprep.subr.bf16.mxu1 %v10416_v17 }
 0x649   : > { %7340 = vmatprep.subr.bf16.mxu0 %v10413_v48 }
 0x64b   : > { %7567 = vmatpush1.bf16.msra.mxu1 %v10414_v15 }
 0x64c   : > { %7341 = vmatpush1.bf16.msra.mxu0 %v10411_v63  ;;  %7568 = vmatprep.subr.bf16.mxu1 %v10422_v37 }
 0x64d   : > { %7342 = vmatprep.subr.bf16.mxu0 %v10419_v13 }
 0x64f   : > { %7569 = vmatpush1.bf16.msra.mxu1 %v10420_v36 }
 0x650   : > { %7343 = vmatpush1.bf16.msra.mxu0 %v10417_v28  ;;  %7651 = vmatprep.subr.bf16.mxu1 %v10428_v21 }
 0x651   : > { %7425 = vmatprep.subr.bf16.mxu0 %v10425_v59 }
 0x6d4   : > { %v5850_v58 = vpop.f32.mrb[96].mxu0  ;;  %v5963_v26 = vpop.f32.mrb[96].mxu1 }
 0x6d5   : > { %v5851_v8 = vadd.f32 %v5850_v58, %v12406_v20  ;;  %v5964_v57 = vadd.f32 %v5963_v26, %v12409_v22  ;;  %v5852_v18 = vpop.f32.mrb[97].mxu0  ;;  %v5965_v60 = vpop.f32.mrb[97].mxu1 }
 0x6d6   : > { %v5853_v7 = vadd.f32 %v5852_v18, %v12412_v55  ;;  %v5966_v62 = vadd.f32 %v5965_v60, %v12415_v19  ;;  %v5854_v2 = vpop.f32.mrb[98].mxu0  ;;  %v5967_v35 = vpop.f32.mrb[98].mxu1 }
 0x6d7   : > { %v8721_v4 = vmul.f32 -1.442695, %v5851_v8  ;;  %v8723_v48 = vmul.f32 -1.442695, %v5964_v57  ;;  %v5855_v17 = vadd.f32 %v5854_v2, %v12406_v20  ;;  %v5968_v63 = vadd.f32 %v5967_v35, %v12409_v22  ;;  %v5856_v15 = vpop.f32.mrb[99].mxu0  ;;  %v5969_v13 = vpop.f32.mrb[99].mxu1 }
 0x6d8   : > { %v8722_v37 = vmul.f32 -1.442695, %v5853_v7  ;;  %v8724_v28 = vmul.f32 -1.442695, %v5966_v62  ;;  %v5857_v36 = vadd.f32 %v5856_v15, %v12412_v55  ;;  %v5970_v59 = vadd.f32 %v5969_v13, %v12415_v19 }
 0x6d9   : > { %10519 = vpow2.f32 %v8721_v4  ;;  %v8725_v21 = vmul.f32 -1.442695, %v5855_v17  ;;  %v8727_v61 = vmul.f32 -1.442695, %v5968_v63 }
 0x6da   : > { %10521 = vpow2.f32 %v8723_v48  ;;  %v8726_v58 = vmul.f32 -1.442695, %v5857_v36  ;;  %v8728_v26 = vmul.f32 -1.442695, %v5970_v59 }
 0x6db   : > { %10523 = vpow2.f32 %v8722_v37 }
 0x6dc   : > { %10525 = vpow2.f32 %v8724_v28  ;;  %v5860_v8 = vpop.f32.mrb[100].mxu0  ;;  %v5973_v57 = vpop.f32.mrb[100].mxu1 }
 0x6dd   : > { %10527 = vpow2.f32 %v8725_v21  ;;  %v5861_v18 = vadd.f32 %v5860_v8, %v12406_v20  ;;  %v5974_v60 = vadd.f32 %v5973_v57, %v12409_v22  ;;  %v5862_v7 = vpop.f32.mrb[101].mxu0  ;;  %v5975_v62 = vpop.f32.mrb[101].mxu1 }
 0x6de   : > { %10529 = vpow2.f32 %v8727_v61  ;;  %v5863_v2 = vadd.f32 %v5862_v7, %v12412_v55  ;;  %v5976_v35 = vadd.f32 %v5975_v62, %v12415_v19  ;;  %v5864_v4 = vpop.f32.mrb[102].mxu0  ;;  %v5977_v48 = vpop.f32.mrb[102].mxu1 }
 0x6df   : > { %10531 = vpow2.f32 %v8726_v58  ;;  %v8729_v17 = vmul.f32 -1.442695, %v5861_v18  ;;  %v8731_v63 = vmul.f32 -1.442695, %v5974_v60  ;;  %v5865_v15 = vadd.f32 %v5864_v4, %v12406_v20  ;;  %v5866_v13 = vpop.f32.mrb[103].mxu0  ;;  %v5979_v37 = vpop.f32.mrb[103].mxu1 }
 0x6e0   : > { %10533 = vpow2.f32 %v8728_v26  ;;  %v8730_v28 = vmul.f32 -1.442695, %v5863_v2  ;;  %v8732_v36 = vmul.f32 -1.442695, %v5976_v35 }
 0x6e1   : > { %10535 = vpow2.f32 %v8729_v17  ;;  %v8733_v59 = vmul.f32 -1.442695, %v5865_v15 }
 0x6e2   : > { %10537 = vpow2.f32 %v8731_v63 }
 0x6e3   : > { %v10520_v21 = vpop.eup %10519  ;;  %10539 = vpow2.f32 %v8730_v28 }
 0x6e4   : > { %v10522_v61 = vpop.eup %10521  ;;  %v6234_v8 = vadd.f32 1.0, %v10520_v21  ;;  %10541 = vpow2.f32 %v8732_v36  ;;  %v5870_v57 = vpop.f32.mrb[104].mxu0 }
 0x6e5   : > { %v5983_v7 = vpop.f32.mrb[104].mxu1  ;;  %v10524_v58 = vpop.eup %10523  ;;  %v6236_v18 = vadd.f32 1.0, %v10522_v61  ;;  %10543 = vpow2.f32 %v8733_v59 }
 0x6e6   : > { %v5872_v60 = vpop.f32.mrb[105].mxu0  ;;  %v5985_v62 = vpop.f32.mrb[105].mxu1  ;;  %10545 = vrcp.f32 %v6234_v8  ;;  %v6235_v26 = vadd.f32 1.0, %v10524_v58  ;;  %v5978_v58 = vadd.f32 %v5977_v48, %v12409_v22 }
 0x6e7   : > { %v10526_v4 = vpop.eup %10525  ;;  %v5874_v2 = vpop.f32.mrb[106].mxu0  ;;  %10547 = vrcp.f32 %v6236_v18 }
 0x6e8   : > { %v5987_v35 = vpop.f32.mrb[106].mxu1  ;;  %v10528_v17 = vpop.eup %10527  ;;  %v6237_v63 = vadd.f32 1.0, %v10526_v4  ;;  %10549 = vrcp.f32 %v6235_v26  ;;  %v5867_v4 = vadd.f32 %v5866_v13, %v12412_v55  ;;  %v5875_v32 = vadd.f32 %v5874_v2, %v12406_v20 }
 0x6e9   : > { %v5876_v15 = vpop.f32.mrb[107].mxu0  ;;  %v10530_v28 = vpop.eup %10529  ;;  %v6238_v21 = vadd.f32 1.0, %v10528_v17 }
 0x6ea   : > { %v5989_v36 = vpop.f32.mrb[107].mxu1  ;;  %v10532_v49 = vpop.eup %10531  ;;  %10551 = vrcp.f32 %v6237_v63  ;;  %v6240_v16 = vadd.f32 1.0, %v10530_v28  ;;  %v5980_v63 = vadd.f32 %v5979_v37, %v12415_v19  ;;  %v5877_v0 = vadd.f32 %v5876_v15, %v12412_v55 }
 0x6eb   : > { %v10534_v61 = vpop.eup %10533  ;;  %10553 = vrcp.f32 %v6238_v21  ;;  %v6239_v59 = vadd.f32 1.0, %v10532_v49  ;;  %v5871_v21 = vadd.f32 %v5870_v57, %v12406_v20  ;;  %v5873_v57 = vadd.f32 %v5872_v60, %v12412_v55 }
 0x6ec   : > { %v10536_v23 = vpop.eup %10535  ;;  %10555 = vrcp.f32 %v6240_v16  ;;  %v6241_v8 = vadd.f32 1.0, %v10534_v61  ;;  %v5880_v9 = vpop.f32.mrb[108].mxu0  ;;  %v5990_v2 = vadd.f32 %v5989_v36, %v12415_v19 }
 0x6ed   : > { %v10538_v34 = vpop.eup %10537  ;;  %10557 = vrcp.f32 %v6239_v59  ;;  %v6242_v18 = vadd.f32 1.0, %v10536_v23  ;;  %v5993_v28 = vpop.f32.mrb[108].mxu1  ;;  %v8735_v59 = vmul.f32 -1.442695, %v5978_v58  ;;  %v5986_v58 = vadd.f32 %v5985_v62, %v12415_v19 }
 0x6ee   : > { %v10540_v26 = vpop.eup %10539  ;;  %10559 = vrcp.f32 %v6241_v8  ;;  %v6244_v17 = vadd.f32 1.0, %v10538_v34  ;;  %v12433_v11 = vpop.f32.mrb[109].mxu0  ;;  %v5984_v34 = vadd.f32 %v5983_v7, %v12409_v22  ;;  %v8737_v7 = vmul.f32 -1.442695, %v5871_v21 }
 0x6ef   : > { %v10542_v49 = vpop.eup %10541  ;;  %10561 = vrcp.f32 %v6242_v18  ;;  %v6243_v16 = vadd.f32 1.0, %v10540_v26  ;;  %v12436_v48 = vpop.f32.mrb[109].mxu1  ;;  %v8734_v26 = vmul.f32 -1.442695, %v5867_v4  ;;  %v5988_v4 = vadd.f32 %v5987_v35, %v12409_v22 }
 0x6f0   : > { %v12438_v61 = vpop.f32.mrb[110].mxu0  ;;  %v10544_v23 = vpop.eup %10543  ;;  %10563 = vrcp.f32 %v6244_v17  ;;  %v6245_v13 = vadd.f32 1.0, %v10542_v49  ;;  %v8736_v17 = vmul.f32 -1.442695, %v5980_v63  ;;  %v8740_v21 = vmul.f32 -1.442695, %v5986_v58 }
 0x6f1   : > { %v12441_v8 = vpop.f32.mrb[110].mxu1  ;;  %v12443_v37 = vpop.f32.mrb[111].mxu0  ;;  %10565 = vrcp.f32 %v6243_v16  ;;  %v6246_v18 = vadd.f32 1.0, %v10544_v23  ;;  %v8739_v16 = vmul.f32 -1.442695, %v5984_v34 }
 0x6f2   : > { %v10546_v30 = vpop.eup %10545  ;;  %v12446_v12 = vpop.f32.mrb[111].mxu1  ;;  %10567 = vrcp.f32 %v6245_v13  ;;  %v8738_v23 = vmul.f32 -1.442695, %v5873_v57  ;;  %v8743_v36 = vmul.f32 -1.442695, %v5988_v4 }
 0x6f3   : > { %v12448_v33 = vpop.eup %10547  ;;  %10569 = vrcp.f32 %v6246_v18  ;;  %v8744_v3 = vmul.f32 -1.442695, %v5990_v2  ;;  %v10426_v2 = vld [vmem:[#allocation14 + $0x208] ss:$16 sps:$4 sm:$0xff]  }
 0x6f4   : > { %v10550_v49 = vpop.eup %10549  ;;  %10571 = vpow2.f32 %v8735_v59  ;;  %v12456_v13 = vpop.f32.mrb[112].mxu0  ;;  %v5881_v59 = vadd.f32 %v5880_v9, %v12406_v20  ;;  %v5994_v9 = vadd.f32 %v5993_v28, %v12409_v22  ;;  %v13508_v28 = vmax.f32 %v11982_v1, 0.0 }
 0x6f5   : > { %v12452_v29 = vpop.eup %10551  ;;  %10573 = vpow2.f32 %v8734_v26  ;;  %v12458_v63 = vpop.f32.mrb[112].mxu1  ;;  %v8741_v26 = vmul.f32 -1.442695, %v5875_v32  ;;  %v8742_v32 = vmul.f32 -1.442695, %v5877_v0 }
 0x6f6   : > { %v10554_v60 = vpop.eup %10553  ;;  %10575 = vpow2.f32 %v8736_v17  ;;  %v12464_v34 = vpop.f32.mrb[113].mxu0  ;;  %v6427_v4 = vmul.f32 %v10550_v49, %v13508_v28 }
 0x6f7   : > { %v12460_v62 = vpop.eup %10555  ;;  %v12466_v35 = vpop.f32.mrb[113].mxu1  ;;  %10577 = vpow2.f32 %v8737_v7  ;;  %v6430_v50 = vmul.f32 %v10554_v60, %v13505_v24  ;;  %v13507_v7 = vmax.f32 %v11985_v38, 0.0  ;;  %v8745_v24 = vmul.f32 -1.442695, %v5881_v59 }
 0x6f8   : > { %v10558_v18 = vpop.eup %10557  ;;  %v12468_v15 = vpop.f32.mrb[114].mxu0  ;;  %10579 = vpow2.f32 %v8739_v16  ;;  %v13509_v60 = vmax.f32 %v12000_v42, 0.0  ;;  %v8747_v38 = vmul.f32 -1.442695, %v5994_v9 }
 0x6f9   : > { %v12470_v57 = vpop.f32.mrb[114].mxu1  ;;  %v12474_v17 = vpop.eup %10559  ;;  %10581 = vpow2.f32 %v8738_v23  ;;  %v6426_v39 = vmul.f32 %v10546_v30, %v13507_v7 }
 0x6fa   : > { %v12477_v58 = vpop.f32.mrb[115].mxu0  ;;  %v12479_v56 = vpop.f32.mrb[115].mxu1  ;;  %10583 = vpow2.f32 %v8740_v21  ;;  %v10423_v21 = vld [vmem:[#allocation14 + $0x200] ss:$16 sps:$4 sm:$0xff]  }
 0x6fb   : > { %13506 = vst [vmem:[#allocation71_spill] sm:$0xff] %v12479_v56  ;;  %v12481_v54 = vpop.eup %10561  ;;  %10585 = vpow2.f32 %v8741_v26  ;;  %v6431_v56 = vmul.f32 %v10558_v18, %v13509_v60  ;;  %v6490_v52 = vpack.c.bf16 %v6430_v50, %v6426_v39  ;;  %v10431_v39 = vld [vmem:[#allocation14 + $0x224] ss:$16 sps:$4 sm:$0xff]   ;;  %v10434_v50 = vld [vmem:[#allocation14 + $0x22c] ss:$16 sps:$4 sm:$0xff]   ;;  %v5996_v60 = vadd.f32 %v12436_v48, %v12415_v19 }
 0x6fc   : > { %v12485_v43 = vpop.eup %10563  ;;  %10587 = vpow2.f32 %v8743_v36  ;;  %v5900_v59 = vpop.f32.mrb[116].mxu0 }
 0x6fd   : > { %v12487_v16 = vpop.eup %10565  ;;  %10589 = vpow2.f32 %v8742_v32  ;;  %v6491_v30 = vpack.c.bf16 %v6431_v56, %v6427_v4  ;;  %v12495_v7 = vpop.f32.mrb[116].mxu1  ;;  %v12498_v1 = vadd.f32 %v5900_v59, %v12406_v20  ;;  %v5883_v56 = vadd.f32 %v12433_v11, %v12412_v55 }
 0x6fe   : > { %v12493_v23 = vpop.eup %10567  ;;  %10591 = vpow2.f32 %v8744_v3  ;;  %v5902_v42 = vpop.f32.mrb[117].mxu0 }
 0x6ff   : > { %v10570_v0 = vpop.eup %10569  ;;  %13510 = vst [vmem:[#allocation72_spill] sm:$0xff] %v12498_v1  ;;  %v12500_v49 = vpop.f32.mrb[117].mxu1  ;;  %10593 = vpow2.f32 %v8745_v24  ;;  %7344 = vmatprep.mubr.bf16.mxu0 %v6491_v30  ;;  %7570 = vmatprep.mubr.bf16.mxu1 %v6491_v30  ;;  %v12505_v9 = vadd.f32 %v5902_v42, %v12412_v55  ;;  %v10429_v30 = vld [vmem:[#allocation14 + $0x220] ss:$16 sps:$4 sm:$0xff]  }
 0x700   : > { %v10572_v26 = vpop.eup %10571  ;;  %v5904_v32 = vpop.f32.mrb[118].mxu0  ;;  %10595 = vpow2.f32 %v8747_v38  ;;  %7345 = vmatmul.mubr.bf16.vlgmr.msra.gmra.mrb[128].mxu0 %v6490_v52  ;;  %7571 = vmatmul.mubr.bf16.vlgmr.msra.gmra.mrb[128].mxu1 %v6490_v52  ;;  %v13513_v52 = vmax.f32 %v12039_v47, 0.0 }
 0x701   : > { %v10574_v18 = vpop.eup %10573  ;;  %v6248_v36 = vadd.f32 1.0, %v10572_v26  ;;  %13511 = vst [vmem:[#allocation73_spill] sm:$0xff] %v12505_v9  ;;  %v12507_v3 = vpop.f32.mrb[118].mxu1  ;;  %7426 = vmatpush1.bf16.msra.mxu0 %v10423_v21  ;;  %7652 = vmatpush1.bf16.msra.mxu1 %v10426_v2  ;;  %v10432_v26 = vld [vmem:[#allocation14 + $0x228] ss:$16 sps:$4 sm:$0xff]   ;;  %v12514_v38 = vadd.f32 %v5904_v32, %v12406_v20  ;;  %v13515_v32 = vmax.f32 %v12033_v45, 0.0 }
 0x702   : > { %v10576_v28 = vpop.eup %10575  ;;  %v6247_v4 = vadd.f32 1.0, %v10574_v18  ;;  %v5906_v24 = vpop.f32.mrb[119].mxu0  ;;  %7427 = vmatprep.subr.bf16.mxu0 %v10431_v39  ;;  %7653 = vmatprep.subr.bf16.mxu1 %v10434_v50  ;;  %v6438_v48 = vmul.f32 %v10570_v0, %v13513_v52  ;;  %v10437_v18 = vld [vmem:[#allocation14 + $0x244] ss:$16 sps:$4 sm:$0xff]   ;;  %v12518_v2 = vmul.f32 -1.442695, %v5883_v56  ;;  %v5885_v56 = vadd.f32 %v12438_v61, %v12406_v20 }
 0x703   : > { %v10578_v59 = vpop.eup %10577  ;;  %10597 = vrcp.f32 %v6248_v36  ;;  %v6249_v11 = vadd.f32 1.0, %v10576_v28  ;;  %v12511_v42 = vpop.f32.mrb[119].mxu1  ;;  %v10440_v36 = vld [vmem:[#allocation14 + $0x24c] ss:$16 sps:$4 sm:$0xff]   ;;  %v12523_v50 = vmul.f32 -1.442695, %v5996_v60  ;;  %v6434_v47 = vmul.f32 %v12481_v54, %v13515_v32 }
 0x704   : > { %13512 = vst [vmem:[#allocation74_spill] sm:$0xff] %v12511_v42  ;;  %v10580_v9 = vpop.eup %10579  ;;  %10599 = vrcp.f32 %v6247_v4  ;;  %v6250_v1 = vadd.f32 1.0, %v10578_v59  ;;  %v12521_v42 = vadd.f32 %v5906_v24, %v12412_v55  ;;  %v10435_v0 = vld [vmem:[#allocation14 + $0x240] ss:$16 sps:$4 sm:$0xff]   ;;  %v5910_v24 = vpop.f32.mrb[120].mxu0 }
 0x705   : > { %v10582_v28 = vpop.eup %10581  ;;  %10601 = vrcp.f32 %v6249_v11  ;;  %v6252_v21 = vadd.f32 1.0, %v10580_v9  ;;  %v5998_v9 = vadd.f32 %v12441_v8, %v12409_v22  ;;  %7428 = vmatpush1.bf16.msra.mxu0 %v10429_v30  ;;  %7654 = vmatpush1.bf16.msra.mxu1 %v10432_v26  ;;  %v10443_v60 = vld [vmem:[#allocation14 + $0x264] ss:$16 sps:$4 sm:$0xff]   ;;  %v12535_v54 = vadd.f32 %v5910_v24, %v12406_v20  ;;  %v5912_v61 = vpop.f32.mrb[121].mxu0  ;;  %v10444_v24 = vld [vmem:[#allocation14 + $0x268] ss:$16 sps:$4 sm:$0xff]  }
 0x706   : > { %13514 = vst [vmem:[#allocation75_spill] sm:$0xff] %v12521_v42  ;;  %v10584_v4 = vpop.eup %10583  ;;  %10603 = vrcp.f32 %v6250_v1  ;;  %v6251_v39 = vadd.f32 1.0, %v10582_v28  ;;  %v10438_v1 = vld [vmem:[#allocation14 + $0x248] ss:$16 sps:$4 sm:$0xff]   ;;  %v12532_v28 = vpack.c.bf16 %v6438_v48, %v6434_v47  ;;  %7429 = vmatprep.subr.bf16.mxu0 %v10437_v18  ;;  %7655 = vmatprep.subr.bf16.mxu1 %v10440_v36  ;;  %v5887_v26 = vadd.f32 %v12443_v37, %v12412_v55  ;;  %v10441_v18 = vld [vmem:[#allocation14 + $0x260] ss:$16 sps:$4 sm:$0xff]  }
 0x707   : > { %v10586_v59 = vpop.eup %10585  ;;  %10605 = vrcp.f32 %v6252_v21  ;;  %v6253_v52 = vadd.f32 1.0, %v10584_v4  ;;  %13516 = vst [vmem:[#allocation76_spill] sm:$0xff] %v12535_v54  ;;  %v12537_v21 = vpop.f32.mrb[120].mxu1  ;;  %v10446_v4 = vld [vmem:[#allocation14 + $0x26c] ss:$16 sps:$4 sm:$0xff]  }
 0x708   : > { %v10588_v11 = vpop.eup %10587  ;;  %10607 = vrcp.f32 %v6251_v39  ;;  %v6254_v45 = vadd.f32 1.0, %v10586_v59  ;;  %13517 = vst [vmem:[#allocation77_spill] sm:$0xff] %v12537_v21  ;;  %v12542_v39 = vadd.f32 %v5912_v61, %v12412_v55  ;;  %v12544_v48 = vpop.f32.mrb[121].mxu1  ;;  %v6000_v59 = vadd.f32 %v12446_v12, %v12415_v19  ;;  %v10452_v42 = vld [vmem:[#allocation14 + $0x28c] ss:$16 sps:$4 sm:$0xff]  }
 0x709   : > { %v10590_v8 = vpop.eup %10589  ;;  %10609 = vrcp.f32 %v6253_v52  ;;  %v6256_v30 = vadd.f32 1.0, %v10588_v11  ;;  %13519 = vst [vmem:[#allocation79_spill] sm:$0xff] %v12544_v48  ;;  %v5914_v36 = vpop.f32.mrb[122].mxu0  ;;  %v13521_v11 = vmax.f32 %v12004_v14, 0.0  ;;  %v8749_v48 = vmul.f32 -1.442695, %v5885_v56  ;;  %7430 = vmatpush1.bf16.msra.mxu0 %v10435_v0  ;;  %7656 = vmatpush1.bf16.msra.mxu1 %v10438_v1 }
 0x70a   : > { %13518 = vst [vmem:[#allocation78_spill] sm:$0xff] %v12542_v39  ;;  %v10592_v32 = vpop.eup %10591  ;;  %10611 = vrcp.f32 %v6254_v45  ;;  %v6255_v47 = vadd.f32 1.0, %v10590_v8  ;;  %v12548_v54 = vpop.f32.mrb[122].mxu1  ;;  %v8751_v21 = vmul.f32 -1.442695, %v5998_v9  ;;  %7431 = vmatprep.subr.bf16.mxu0 %v10443_v60  ;;  %7657 = vmatprep.subr.bf16.mxu1 %v10446_v4  ;;  %v5891_v4 = vadd.f32 %v12456_v13, %v12406_v20 }
 0x70b   : > { %13520 = vst [vmem:[#allocation80_spill] sm:$0xff] %v12548_v54  ;;  %v5916_v52 = vpop.f32.mrb[123].mxu0  ;;  %v6433_v37 = vmul.f32 %v12474_v17, %v13521_v11  ;;  %v10594_v61 = vpop.eup %10593  ;;  %10613 = vrcp.f32 %v6256_v30  ;;  %v6257_v39 = vadd.f32 1.0, %v10592_v32  ;;  %v12556_v54 = vadd.f32 %v5914_v36, %v12406_v20  ;;  %v10449_v14 = vld [vmem:[#allocation14 + $0x284] ss:$16 sps:$4 sm:$0xff]  }
 0x70c   : > { %v12553_v45 = vpop.f32.mrb[123].mxu1  ;;  %v10596_v8 = vpop.eup %10595  ;;  %10615 = vrcp.f32 %v6255_v47  ;;  %v6258_v12 = vadd.f32 1.0, %v10594_v61  ;;  %v13522_v17 = vmax.f32 %v11988_v40, 0.0  ;;  %v8750_v9 = vmul.f32 -1.442695, %v5887_v26 }
 0x70d   : > { %v12561_v56 = vpop.eup %10597  ;;  %10617 = vrcp.f32 %v6257_v39  ;;  %v6260_v0 = vadd.f32 1.0, %v10596_v8  ;;  %v12564_v1 = vadd.f32 %v5916_v52, %v12412_v55  ;;  %v8752_v60 = vmul.f32 -1.442695, %v6000_v59  ;;  %7432 = vmatpush1.bf16.msra.mxu0 %v10441_v18  ;;  %7658 = vmatpush1.bf16.msra.mxu1 %v10444_v24  ;;  %v5920_v59 = vpop.f32.mrb[124].mxu0  ;;  %v10450_v61 = vld [vmem:[#allocation14 + $0x288] ss:$16 sps:$4 sm:$0xff]  }
 0x70e   : > { %v6429_v30 = vmul.f32 %v12452_v29, %v13522_v17  ;;  %v10600_v32 = vpop.eup %10599  ;;  %10619 = vrcp.f32 %v6258_v12  ;;  %v6004_v40 = vadd.f32 %v12458_v63, %v12409_v22  ;;  %v13523_v29 = vmax.f32 %v12030_v5, 0.0  ;;  %v12579_v11 = vpop.f32.mrb[124].mxu1  ;;  %v10447_v5 = vld [vmem:[#allocation14 + $0x280] ss:$16 sps:$4 sm:$0xff]   ;;  %7433 = vmatprep.subr.bf16.mxu0 %v10449_v14  ;;  %7659 = vmatprep.subr.bf16.mxu1 %v10452_v42  ;;  %v10455_v8 = vld [vmem:[#allocation14 + $0x2a4] ss:$16 sps:$4 sm:$0xff]  }
 0x70f   : > { %v12570_v47 = vpop.eup %10601  ;;  %10621 = vrcp.f32 %v6260_v0  ;;  %v13524_v39 = vmax.f32 %v12048_v53, 0.0  ;;  %v6006_v63 = vadd.f32 %v12466_v35, %v12415_v19  ;;  %v12587_v53 = vadd.f32 %v5920_v59, %v12406_v20  ;;  %v12589_v18 = vpop.f32.mrb[125].mxu1  ;;  %v10458_v0 = vld [vmem:[#allocation14 + $0x2ac] ss:$16 sps:$4 sm:$0xff]   ;;  %v10453_v59 = vld [vmem:[#allocation14 + $0x2a0] ss:$16 sps:$4 sm:$0xff]  }
 0x710   : > { %v12568_v36 = vpack.c.bf16 %v6433_v37, %v6429_v30  ;;  %v6435_v26 = vmul.f32 %v12487_v16, %v13523_v29  ;;  %v10604_v13 = vpop.eup %10603  ;;  %10623 = vpow2.f32 %v12518_v2  ;;  %v5893_v37 = vadd.f32 %v12464_v34, %v12412_v55  ;;  %v5922_v16 = vpop.f32.mrb[125].mxu0 }
 0x711   : > { %v6439_v52 = vmul.f32 %v10600_v32, %v13524_v39  ;;  %v12591_v24 = vpop.eup %10605  ;;  %10625 = vpow2.f32 %v12523_v50  ;;  %v5895_v2 = vadd.f32 %v12468_v15, %v12406_v20  ;;  %v12597_v35 = vadd.f32 %v5922_v16, %v12412_v55  ;;  %v5924_v42 = vpop.f32.mrb[126].mxu0  ;;  %7434 = vmatpush1.bf16.msra.mxu0 %v10447_v5  ;;  %7660 = vmatpush1.bf16.msra.mxu1 %v10450_v61 }
 0x712   : > { %v12599_v12 = vpop.f32.mrb[126].mxu1  ;;  %v10608_v14 = vpop.eup %10607  ;;  %10627 = vpow2.f32 %v8749_v48  ;;  %v8753_v17 = vmul.f32 -1.442695, %v5891_v4  ;;  %v6008_v30 = vadd.f32 %v12470_v57, %v12409_v22  ;;  %v5897_v50 = vadd.f32 %v12477_v58, %v12412_v55  ;;  %7435 = vmatprep.subr.bf16.mxu0 %v10455_v8  ;;  %7661 = vmatprep.subr.bf16.mxu1 %v10458_v0 }
 0x713   : > { %v6495_v34 = vpack.c.bf16 %v6439_v52, %v6435_v26  ;;  %v5926_v15 = vpop.f32.mrb[127].mxu0  ;;  %v12605_v32 = vpop.f32.mrb[127].mxu1  ;;  %10629 = vpow2.f32 %v8751_v21  ;;  %v8755_v26 = vmul.f32 -1.442695, %v6004_v40  ;;  %v12608_v39 = vadd.f32 %v5924_v42, %v12406_v20 }
 0x714   : > { %v10610_v29 = vpop.eup %10609  ;;  %v13525_v48 = vmax.f32 %v11994_v10, 0.0  ;;  %10631 = vpow2.f32 %v8750_v9  ;;  %v8754_v52 = vmul.f32 -1.442695, %v5893_v37  ;;  %v8756_v58 = vmul.f32 -1.442695, %v6006_v63 }
 0x715   : > { %7354 = vmatprep.mubr.bf16.mxu0 %v6495_v34  ;;  %7580 = vmatprep.mubr.bf16.mxu1 %v6495_v34  ;;  %v10612_v57 = vpop.eup %10611  ;;  %v12616_v21 = vadd.f32 %v5926_v15, %v12412_v55  ;;  %10633 = vpow2.f32 %v8752_v60  ;;  %v8757_v20 = vmul.f32 -1.442695, %v5895_v2  ;;  %v13526_v16 = vmax.f32 %v12081_v51, 0.0  ;;  %v10456_v9 = vld [vmem:[#allocation14 + $0x2a8] ss:$16 sps:$4 sm:$0xff]  }
 0x716   : > { %v6428_v4 = vmul.f32 %v12448_v33, %v13525_v48  ;;  %7355 = vmatmul.mubr.bf16.gmra.mrb[132].mxu0 %v12532_v28  ;;  %7581 = vmatmul.mubr.bf16.gmra.mrb[132].mxu1 %v12532_v28  ;;  %v10614_v40 = vpop.eup %10613  ;;  %v13527_v33 = vmax.f32 %v12087_v44, 0.0  ;;  %v10461_v37 = vld [vmem:[#allocation14 + $0x2c4] ss:$16 sps:$4 sm:$0xff]   ;;  %10635 = vpow2.f32 %v8753_v17  ;;  %v8759_v28 = vmul.f32 -1.442695, %v6008_v30 }
 0x717   : > { %v6442_v10 = vmul.f32 %v10604_v13, %v13526_v16  ;;  %v10616_v63 = vpop.eup %10615  ;;  %v8758_v42 = vmul.f32 -1.442695, %v5897_v50  ;;  %v10464_v55 = vld [vmem:[#allocation14 + $0x2cc] ss:$16 sps:$4 sm:$0xff]   ;;  %v13528_v60 = vmax.f32 %v11997_v41, 0.0  ;;  %10637 = vpow2.f32 %v8755_v26  ;;  %7436 = vmatpush1.bf16.msra.mxu0 %v10453_v59  ;;  %7662 = vmatpush1.bf16.msra.mxu1 %v10456_v9 }
 0x718   : > { %v6446_v34 = vmul.f32 %v10612_v57, %v13527_v33  ;;  %v10618_v51 = vpop.eup %10617  ;;  %v13529_v44 = vmax.f32 %v12078_v31, 0.0  ;;  %v13530_v5 = vmax.f32 %v12096_v6, 0.0  ;;  %10639 = vpow2.f32 %v8754_v52  ;;  %v10459_v6 = vld [vmem:[#allocation14 + $0x2c0] ss:$16 sps:$4 sm:$0xff]   ;;  %7437 = vmatprep.subr.bf16.mxu0 %v10461_v37  ;;  %7663 = vmatprep.subr.bf16.mxu1 %v10464_v55 }
 0x719   : > { %v6432_v2 = vmul.f32 %v12460_v62, %v13528_v60  ;;  %v12629_v48 = vpop.eup %10619  ;;  %v13531_v8 = vmax.f32 %v12036_v46, 0.0  ;;  %v13532_v62 = vmax.f32 %v12052_v25, 0.0  ;;  %10641 = vpow2.f32 %v8756_v58  ;;  %v10467_v46 = vld [vmem:[#allocation14 + $0x2e4] ss:$16 sps:$4 sm:$0xff]   ;;  %v10470_v25 = vld [vmem:[#allocation14 + $0x2ec] ss:$16 sps:$4 sm:$0xff]  }
 0x71a   : > { %v6443_v13 = vmul.f32 %v10608_v14, %v13529_v44  ;;  %v6447_v61 = vmul.f32 %v10616_v63, %v13530_v5  ;;  %v6498_v15 = vpack.c.bf16 %v6446_v34, %v6442_v10  ;;  %v12639_v50 = vpop.eup %10621  ;;  %v10462_v14 = vld [vmem:[#allocation14 + $0x2c8] ss:$16 sps:$4 sm:$0xff]   ;;  %v13533_v0 = vmax.f32 %v12042_v27, 0.0  ;;  %v13538_v27 = vld [vmem:[#allocation30_spill] sm:$0xff]  ;;  %v13540_v34 = vld [vmem:[#allocation28_spill] sm:$0xff] }
 0x71b   : > { %v12631_v17 = vpack.c.bf16 %v6432_v2, %v6428_v4  ;;  %v6437_v41 = vmul.f32 %v12493_v23, %v13531_v8  ;;  %v6441_v30 = vmul.f32 %v12570_v47, %v13532_v62  ;;  %v10624_v4 = vpop.eup %10623  ;;  %10643 = vpow2.f32 %v8757_v20  ;;  %v13534_v47 = vld [vmem:[#allocation26_spill] sm:$0xff]  ;;  %v13536_v58 = vld [vmem:[#allocation27_spill] sm:$0xff]  ;;  %7438 = vmatpush1.bf16.msra.mxu0 %v10459_v6  ;;  %7664 = vmatpush1.bf16.msra.mxu1 %v10462_v14 }
 0x71c   : > { %v6499_v31 = vpack.c.bf16 %v6447_v61, %v6443_v13  ;;  %v6436_v26 = vmul.f32 %v12485_v43, %v13533_v0  ;;  %v13535_v57 = vmax.f32 %v13534_v47, 0.0  ;;  %v13537_v59 = vmax.f32 %v13536_v58, 0.0  ;;  %v10626_v10 = vpop.eup %10625  ;;  %v10468_v13 = vld [vmem:[#allocation14 + $0x2e8] ss:$16 sps:$4 sm:$0xff]   ;;  %7439 = vmatprep.subr.bf16.mxu0 %v10467_v46  ;;  %7665 = vmatprep.subr.bf16.mxu1 %v10470_v25  ;;  %v10471_v14 = vld [vmem:[#allocation14 + $0x300] ss:$16 sps:$4 sm:$0xff]  }
 0x71d   : > { %v12644_v23 = vpack.c.bf16 %v6441_v30, %v6437_v41  ;;  %v6259_v33 = vadd.f32 1.0, %v10624_v4  ;;  %10645 = vpow2.f32 %v8759_v28  ;;  %v13539_v43 = vmax.f32 %v13538_v27, 0.0  ;;  %v10628_v63 = vpop.eup %10627  ;;  %v10474_v0 = vld [vmem:[#allocation14 + $0x308] ss:$16 sps:$4 sm:$0xff]   ;;  %v10479_v47 = vld [vmem:[#allocation14 + $0x324] ss:$16 sps:$4 sm:$0xff]  }
 0x71e   : > { %v6440_v52 = vmul.f32 %v12561_v56, %v13535_v57  ;;  %v6445_v16 = vmul.f32 %v10610_v29, %v13537_v59  ;;  %7364 = vmatprep.mubr.bf16.mxu0 %v6499_v31  ;;  %7590 = vmatprep.mubr.bf16.mxu1 %v6499_v31  ;;  %v13541_v9 = vmax.f32 %v13540_v34, 0.0  ;;  %v6261_v55 = vadd.f32 1.0, %v10626_v10  ;;  %v13542_v29 = vld [vmem:[#allocation29_spill] sm:$0xff]  ;;  %v10630_v28 = vpop.eup %10629  ;;  %v13544_v46 = vld [vmem:[#allocation71_spill] sm:$0xff]  ;;  %v10477_v27 = vld [vmem:[#allocation14 + $0x320] ss:$16 sps:$4 sm:$0xff]  }
 0x71f   : > { %v6449_v20 = vmul.f32 %v10618_v51, %v13539_v43  ;;  %10647 = vpow2.f32 %v8758_v42  ;;  %7365 = vmatmul.mubr.bf16.gmra.mrb[136].mxu0 %v6498_v15  ;;  %7591 = vmatmul.mubr.bf16.gmra.mrb[136].mxu1 %v6498_v15  ;;  %v13543_v60 = vmax.f32 %v13542_v29, 0.0  ;;  %v6262_v44 = vadd.f32 1.0, %v10628_v63  ;;  %v10465_v51 = vld [vmem:[#allocation14 + $0x2e0] ss:$16 sps:$4 sm:$0xff]   ;;  %v10473_v42 = vld [vmem:[#allocation14 + $0x304] ss:$16 sps:$4 sm:$0xff]  }
 0x720   : > { %v6444_v37 = vmul.f32 %v12591_v24, %v13541_v9  ;;  %v12656_v56 = vpack.c.bf16 %v6440_v52, %v6436_v26  ;;  %10649 = vrcp.f32 %v6259_v33  ;;  %v10632_v24 = vpop.eup %10631  ;;  %v6264_v61 = vadd.f32 1.0, %v10630_v28  ;;  %v10476_v15 = vld [vmem:[#allocation14 + $0x30c] ss:$16 sps:$4 sm:$0xff]   ;;  %7440 = vmatpush1.bf16.msra.mxu0 %v10465_v51  ;;  %7666 = vmatpush1.bf16.msra.mxu1 %v10468_v13  ;;  %v10480_v9 = vld [vmem:[#allocation14 + $0x328] ss:$16 sps:$4 sm:$0xff]  }
 0x721   : > { %v6448_v2 = vmul.f32 %v10614_v40, %v13543_v60  ;;  %v12660_v5 = vpack.c.bf16 %v6449_v20, %v6445_v16  ;;  %10651 = vrcp.f32 %v6261_v55  ;;  %v10634_v41 = vpop.eup %10633  ;;  %v6263_v40 = vadd.f32 1.0, %v10632_v24  ;;  %7441 = vmatprep.subr.bf16.mxu0 %v10473_v42  ;;  %7667 = vmatprep.subr.bf16.mxu1 %v10476_v15  ;;  %v10482_v57 = vld [vmem:[#allocation14 + $0x32c] ss:$16 sps:$4 sm:$0xff]  }
 0x722   : > { %10653 = vrcp.f32 %v6262_v44  ;;  %v10636_v62 = vpop.eup %10635  ;;  %v6265_v30 = vadd.f32 1.0, %v10634_v41  ;;  %v6010_v25 = vadd.f32 %v13544_v46, %v12415_v19  ;;  %v6014_v10 = vadd.f32 %v12495_v7, %v12409_v22  ;;  %v10488_v7 = vld [vmem:[#allocation14 + $0x34c] ss:$16 sps:$4 sm:$0xff]   ;;  %v10483_v44 = vld [vmem:[#allocation14 + $0x340] ss:$16 sps:$4 sm:$0xff]  }
 0x723   : > { %v12662_v8 = vpack.c.bf16 %v6448_v2, %v6444_v37  ;;  %10655 = vrcp.f32 %v6264_v61  ;;  %v10638_v31 = vpop.eup %10637  ;;  %v6266_v6 = vadd.f32 1.0, %v10636_v62  ;;  %v6016_v33 = vadd.f32 %v12500_v49, %v12415_v19  ;;  %v10485_v37 = vld [vmem:[#allocation14 + $0x344] ss:$16 sps:$4 sm:$0xff]   ;;  %v13546_v13 = vld [vmem:[#allocation73_spill] sm:$0xff] }
 0x724   : > { %10657 = vrcp.f32 %v6263_v40  ;;  %v10640_v26 = vpop.eup %10639  ;;  %v6268_v4 = vadd.f32 1.0, %v10638_v31  ;;  %v6018_v34 = vadd.f32 %v12507_v3, %v12409_v22  ;;  %7442 = vmatpush1.bf16.msra.mxu0 %v10471_v14  ;;  %7668 = vmatpush1.bf16.msra.mxu1 %v10474_v0  ;;  %v8760_v29 = vmul.f32 -1.442695, %v6010_v25  ;;  %v13545_v2 = vld [vmem:[#allocation72_spill] sm:$0xff]  ;;  %v13547_v40 = vld [vmem:[#allocation74_spill] sm:$0xff] }
 0x725   : > { %10659 = vrcp.f32 %v6265_v30  ;;  %v10642_v52 = vpop.eup %10641  ;;  %v6267_v58 = vadd.f32 1.0, %v10640_v26  ;;  %7443 = vmatprep.subr.bf16.mxu0 %v10479_v47  ;;  %7669 = vmatprep.subr.bf16.mxu1 %v10482_v57  ;;  %v8761_v28 = vmul.f32 -1.442695, %v13545_v2  ;;  %v8763_v3 = vmul.f32 -1.442695, %v6014_v10  ;;  %v13549_v0 = vld [vmem:[#allocation32_spill] sm:$0xff] }
 0x726   : > { %10661 = vrcp.f32 %v6266_v6  ;;  %v10644_v59 = vpop.eup %10643  ;;  %v6269_v16 = vadd.f32 1.0, %v10642_v52  ;;  %v8762_v24 = vmul.f32 -1.442695, %v13546_v13  ;;  %v8764_v61 = vmul.f32 -1.442695, %v6016_v33  ;;  %v13548_v6 = vld [vmem:[#allocation75_spill] sm:$0xff] }
 0x727   : > { %10663 = vrcp.f32 %v6268_v4  ;;  %v10646_v43 = vpop.eup %10645  ;;  %v6270_v20 = vadd.f32 1.0, %v10644_v59  ;;  %v8765_v15 = vmul.f32 -1.442695, %v12514_v38  ;;  %v8767_v41 = vmul.f32 -1.442695, %v6018_v34  ;;  %v13551_v46 = vld [vmem:[#allocation34_spill] sm:$0xff] }
 0x728   : > { %10665 = vrcp.f32 %v6267_v58  ;;  %v6272_v55 = vadd.f32 1.0, %v10646_v43  ;;  %v6020_v62 = vadd.f32 %v13547_v40, %v12415_v19  ;;  %7444 = vmatpush1.bf16.msra.mxu0 %v10477_v27  ;;  %7670 = vmatpush1.bf16.msra.mxu1 %v10480_v9  ;;  %v10486_v30 = vld [vmem:[#allocation14 + $0x348] ss:$16 sps:$4 sm:$0xff]   ;;  %v8766_v14 = vmul.f32 -1.442695, %v13548_v6  ;;  %v13556_v27 = vld [vmem:[#allocation36_spill] sm:$0xff] }
 0x729   : > { %v10648_v63 = vpop.eup %10647  ;;  %10667 = vrcp.f32 %v6269_v16  ;;  %v13550_v26 = vmax.f32 %v13549_v0, 0.0  ;;  %v13552_v25 = vmax.f32 %v13551_v46, 0.0  ;;  %7445 = vmatprep.subr.bf16.mxu0 %v10485_v37  ;;  %7671 = vmatprep.subr.bf16.mxu1 %v10488_v7  ;;  %v10491_v38 = vld [vmem:[#allocation14 + $0x364] ss:$16 sps:$4 sm:$0xff]   ;;  %v10494_v57 = vld [vmem:[#allocation14 + $0x36c] ss:$16 sps:$4 sm:$0xff]  }
 0x72a   : > { %v10650_v60 = vpop.eup %10649  ;;  %10669 = vrcp.f32 %v6270_v20  ;;  %v6271_v49 = vadd.f32 1.0, %v10648_v63  ;;  %v13553_v58 = vld [vmem:[#allocation77_spill] sm:$0xff]  ;;  %v13554_v16 = vld [vmem:[#allocation35_spill] sm:$0xff]  ;;  %v13557_v43 = vmax.f32 %v13556_v27, 0.0  ;;  %v8768_v6 = vmul.f32 -1.442695, %v6020_v62 }
 0x72b   : > { %v10652_v51 = vpop.eup %10651  ;;  %10671 = vrcp.f32 %v6272_v55  ;;  %v6450_v4 = vmul.f32 %v12629_v48, %v13550_v26  ;;  %v6024_v59 = vadd.f32 %v13553_v58, %v12409_v22  ;;  %v13555_v10 = vmax.f32 %v13554_v16, 0.0  ;;  %v13558_v34 = vld [vmem:[#allocation31_spill] sm:$0xff]  ;;  %v13560_v63 = vld [vmem:[#allocation37_spill] sm:$0xff]  ;;  %v10497_v46 = vld [vmem:[#allocation14 + $0x384] ss:$16 sps:$4 sm:$0xff]  }
 0x72c   : > { %v10654_v42 = vpop.eup %10653  ;;  %10673 = vrcp.f32 %v6271_v49  ;;  %v13559_v9 = vmax.f32 %v13558_v34, 0.0  ;;  %v13561_v55 = vmax.f32 %v13560_v63, 0.0  ;;  %7446 = vmatpush1.bf16.msra.mxu0 %v10483_v44  ;;  %7672 = vmatpush1.bf16.msra.mxu1 %v10486_v30  ;;  %v13562_v2 = vld [vmem:[#allocation33_spill] sm:$0xff]  ;;  %v13567_v30 = vld [vmem:[#allocation76_spill] sm:$0xff]  ;;  %v13568_v58 = vld [vmem:[#allocation78_spill] sm:$0xff] }
 0x72d   : > { %v10656_v31 = vpop.eup %10655  ;;  %10675 = vpow2.f32 %v8760_v29  ;;  %v6454_v47 = vmul.f32 %v10654_v42, %v13552_v25  ;;  %v6452_v33 = vmul.f32 %v12639_v50, %v13555_v10  ;;  %v13564_v50 = vld [vmem:[#allocation38_spill] sm:$0xff]  ;;  %7447 = vmatprep.subr.bf16.mxu0 %v10491_v38  ;;  %7673 = vmatprep.subr.bf16.mxu1 %v10494_v57  ;;  %v10500_v25 = vld [vmem:[#allocation14 + $0x38c] ss:$16 sps:$4 sm:$0xff]   ;;  %v8770_v38 = vmul.f32 -1.442695, %v13568_v58  ;;  %v13569_v16 = vld [vmem:[#allocation40_spill] sm:$0xff] }
 0x72e   : > { %v10658_v52 = vpop.eup %10657  ;;  %10677 = vpow2.f32 %v8761_v28  ;;  %v6456_v20 = vmul.f32 %v10656_v31, %v13557_v43  ;;  %v6451_v37 = vmul.f32 %v10650_v60, %v13559_v9  ;;  %v13563_v28 = vmax.f32 %v13562_v2, 0.0  ;;  %v13566_v60 = vld [vmem:[#allocation79_spill] sm:$0xff]  ;;  %v13571_v27 = vld [vmem:[#allocation42_spill] sm:$0xff] }
 0x72f   : > { %v10660_v48 = vpop.eup %10659  ;;  %10679 = vpow2.f32 %v8763_v3  ;;  %v6455_v29 = vmul.f32 %v10658_v52, %v13561_v55  ;;  %v6502_v7 = vpack.c.bf16 %v6454_v47, %v6450_v4  ;;  %v13565_v42 = vmax.f32 %v13564_v50, 0.0  ;;  %v10489_v4 = vld [vmem:[#allocation14 + $0x360] ss:$16 sps:$4 sm:$0xff]   ;;  %v10506_v34 = vld [vmem:[#allocation14 + $0x3ac] ss:$16 sps:$4 sm:$0xff]  }
 0x730   : > { %v10662_v49 = vpop.eup %10661  ;;  %10681 = vpow2.f32 %v8762_v24  ;;  %v6453_v13 = vmul.f32 %v10652_v51, %v13563_v28  ;;  %v12698_v31 = vpack.c.bf16 %v6456_v20, %v6452_v33  ;;  %v6026_v0 = vadd.f32 %v13566_v60, %v12415_v19  ;;  %v10492_v24 = vld [vmem:[#allocation14 + $0x368] ss:$16 sps:$4 sm:$0xff]   ;;  %7448 = vmatpush1.bf16.msra.mxu0 %v10489_v4  ;;  %v13575_v55 = vld [vmem:[#allocation44_spill] sm:$0xff] }
 0x731   : > { %v6457_v40 = vmul.f32 %v10660_v48, %v13565_v42  ;;  %v10664_v3 = vpop.eup %10663  ;;  %10683 = vpow2.f32 %v8764_v61  ;;  %v6503_v26 = vpack.c.bf16 %v6455_v29, %v6451_v37  ;;  %v8769_v51 = vmul.f32 -1.442695, %v13567_v30  ;;  %7674 = vmatpush1.bf16.msra.mxu1 %v10492_v24  ;;  %7449 = vmatprep.subr.bf16.mxu0 %v10497_v46  ;;  %v13573_v9 = vld [vmem:[#allocation43_spill] sm:$0xff]  ;;  %v13579_v50 = vld [vmem:[#allocation45_spill] sm:$0xff]  ;;  %v10501_v30 = vld [vmem:[#allocation14 + $0x3a0] ss:$16 sps:$4 sm:$0xff]  }
 0x732   : > { %v10666_v44 = vpop.eup %10665  ;;  %10685 = vpow2.f32 %v8765_v15  ;;  %v8771_v61 = vmul.f32 -1.442695, %v6024_v59  ;;  %v8772_v15 = vmul.f32 -1.442695, %v6026_v0  ;;  %v13570_v10 = vmax.f32 %v13569_v16, 0.0  ;;  %7675 = vmatprep.subr.bf16.mxu1 %v10500_v25  ;;  %v13577_v2 = vld [vmem:[#allocation39_spill] sm:$0xff] }
 0x733   : > { %v12703_v47 = vpack.c.bf16 %v6457_v40, %v6453_v13  ;;  %v12705_v52 = vpop.eup %10667  ;;  %10687 = vpow2.f32 %v8767_v41  ;;  %7374 = vmatprep.mubr.bf16.mxu0 %v6503_v26  ;;  %7600 = vmatprep.mubr.bf16.mxu1 %v6503_v26  ;;  %v13572_v43 = vmax.f32 %v13571_v27, 0.0  ;;  %v10495_v41 = vld [vmem:[#allocation14 + $0x380] ss:$16 sps:$4 sm:$0xff]   ;;  %v10498_v59 = vld [vmem:[#allocation14 + $0x388] ss:$16 sps:$4 sm:$0xff]   ;;  %v13574_v37 = vmax.f32 %v13573_v9, 0.0 }
 0x734   : > { %v10670_v62 = vpop.eup %10669  ;;  %10689 = vpow2.f32 %v8766_v14  ;;  %7375 = vmatmul.mubr.bf16.gmra.mrb[140].mxu0 %v6502_v7  ;;  %7601 = vmatmul.mubr.bf16.gmra.mrb[140].mxu1 %v6502_v7  ;;  %v6458_v33 = vmul.f32 %v10662_v49, %v13570_v10  ;;  %v10503_v14 = vld [vmem:[#allocation14 + $0x3a4] ss:$16 sps:$4 sm:$0xff]   ;;  %v13576_v29 = vmax.f32 %v13575_v55, 0.0  ;;  %v13578_v28 = vmax.f32 %v13577_v2, 0.0  ;;  %v10507_v10 = vld [vmem:[#allocation14 + $0x3c0] ss:$16 sps:$4 sm:$0xff]  }
 0x735   : > { %v10672_v57 = vpop.eup %10671  ;;  %10691 = vpow2.f32 %v8768_v6  ;;  %v6462_v20 = vmul.f32 %v10670_v62, %v13572_v43  ;;  %v6460_v63 = vmul.f32 %v10664_v3, %v13574_v37  ;;  %v13580_v42 = vmax.f32 %v13579_v50, 0.0  ;;  %7450 = vmatpush1.bf16.msra.mxu0 %v10495_v41  ;;  %7676 = vmatpush1.bf16.msra.mxu1 %v10498_v59  ;;  %v10509_v25 = vld [vmem:[#allocation14 + $0x3c4] ss:$16 sps:$4 sm:$0xff]   ;;  %v10518_v41 = vld [vmem:[#allocation14 + $0x3ec] ss:$16 sps:$4 sm:$0xff]  }
 0x736   : > { %v10674_v48 = vpop.eup %10673  ;;  %10693 = vpow2.f32 %v8769_v51  ;;  %v6464_v7 = vmul.f32 %v10672_v57, %v13576_v29  ;;  %v6459_v13 = vmul.f32 %v10666_v44, %v13578_v28  ;;  %v10504_v51 = vld [vmem:[#allocation14 + $0x3a8] ss:$16 sps:$4 sm:$0xff]   ;;  %7451 = vmatprep.subr.bf16.mxu0 %v10503_v14  ;;  %7677 = vmatprep.subr.bf16.mxu1 %v10506_v34  ;;  %v13581_v9 = vld [vmem:[#allocation80_spill] sm:$0xff]  ;;  %v6030_v28 = vadd.f32 %v12553_v45, %v12415_v19 }
 0x737   : > { %v10676_v49 = vpop.eup %10675  ;;  %10695 = vpow2.f32 %v8771_v61  ;;  %v6463_v40 = vmul.f32 %v10674_v48, %v13580_v42  ;;  %v6506_v6 = vpack.c.bf16 %v6462_v20, %v6458_v33  ;;  %v10512_v61 = vld [vmem:[#allocation14 + $0x3cc] ss:$16 sps:$4 sm:$0xff]   ;;  %v10510_v33 = vld [vmem:[#allocation14 + $0x3c8] ss:$16 sps:$4 sm:$0xff]   ;;  %v10515_v20 = vld [vmem:[#allocation14 + $0x3e4] ss:$16 sps:$4 sm:$0xff]   ;;  %v6028_v37 = vadd.f32 %v13581_v9, %v12409_v22 }
 0x738   : > { %v10678_v60 = vpop.eup %10677  ;;  %v6273_v0 = vadd.f32 1.0, %v10676_v49  ;;  %10697 = vpow2.f32 %v8770_v38  ;;  %v12720_v26 = vpack.c.bf16 %v6464_v7, %v6460_v63  ;;  %v10513_v29 = vld [vmem:[#allocation14 + $0x3e0] ss:$16 sps:$4 sm:$0xff]   ;;  %v10516_v7 = vld [vmem:[#allocation14 + $0x3e8] ss:$16 sps:$4 sm:$0xff]  }
 0x739   : > { %v10680_v4 = vpop.eup %10679  ;;  %v6274_v24 = vadd.f32 1.0, %v10678_v60  ;;  %10699 = vpow2.f32 %v8772_v15  ;;  %v6507_v3 = vpack.c.bf16 %v6463_v40, %v6459_v13  ;;  %7452 = vmatpush1.bf16.msra.mxu0 %v10501_v30  ;;  %7678 = vmatpush1.bf16.msra.mxu1 %v10504_v51  ;;  %v8773_v42 = vmul.f32 -1.442695, %v12556_v54  ;;  %v13582_v45 = vld [vmem:[#allocation41_spill] sm:$0xff]  ;;  %v13584_v54 = vld [vmem:[#allocation46_spill] sm:$0xff] }
 0x73a   : > { %v10682_v46 = vpop.eup %10681  ;;  %10701 = vrcp.f32 %v6273_v0  ;;  %v6276_v44 = vadd.f32 1.0, %v10680_v4  ;;  %7453 = vmatprep.subr.bf16.mxu0 %v10509_v25  ;;  %7679 = vmatprep.subr.bf16.mxu1 %v10512_v61  ;;  %v8774_v60 = vmul.f32 -1.442695, %v12564_v1  ;;  %v6034_v0 = vadd.f32 %v12579_v11, %v12409_v22 }
 0x73b   : > { %v10684_v62 = vpop.eup %10683  ;;  %10703 = vrcp.f32 %v6274_v24  ;;  %v6275_v58 = vadd.f32 1.0, %v10682_v46  ;;  %7384 = vmatprep.mubr.bf16.mxu0 %v6507_v3  ;;  %7610 = vmatprep.mubr.bf16.mxu1 %v6507_v3  ;;  %v6036_v24 = vadd.f32 %v12589_v18, %v12415_v19  ;;  %v13583_v3 = vmax.f32 %v13582_v45, 0.0 }
 0x73c   : > { %v10686_v38 = vpop.eup %10685  ;;  %10705 = vrcp.f32 %v6276_v44  ;;  %v6277_v57 = vadd.f32 1.0, %v10684_v62  ;;  %7385 = vmatmul.mubr.bf16.gmra.mrb[144].mxu0 %v6506_v6  ;;  %7611 = vmatmul.mubr.bf16.gmra.mrb[144].mxu1 %v6506_v6  ;;  %v8775_v6 = vmul.f32 -1.442695, %v6028_v37  ;;  %v13585_v51 = vmax.f32 %v13584_v54, 0.0 }
 0x73d   : > { %v10688_v15 = vpop.eup %10687  ;;  %10707 = vrcp.f32 %v6275_v58  ;;  %v6278_v16 = vadd.f32 1.0, %v10686_v38  ;;  %7454 = vmatpush1.bf16.msra.mxu0 %v10507_v10  ;;  %7680 = vmatpush1.bf16.msra.mxu1 %v10510_v33  ;;  %v6461_v30 = vmul.f32 %v12705_v52, %v13583_v3  ;;  %v8776_v1 = vmul.f32 -1.442695, %v6030_v28  ;;  %v13586_v10 = vld [vmem:[#allocation48_spill] sm:$0xff] }
 0x73e   : > { %v10690_v27 = vpop.eup %10689  ;;  %10709 = vrcp.f32 %v6277_v57  ;;  %v6280_v43 = vadd.f32 1.0, %v10688_v15  ;;  %7455 = vmatprep.subr.bf16.mxu0 %v10515_v20  ;;  %7681 = vmatprep.subr.bf16.mxu1 %v10518_v41  ;;  %v6038_v11 = vadd.f32 %v12599_v12, %v12409_v22  ;;  %v8777_v61 = vmul.f32 -1.442695, %v12587_v53 }
 0x73f   : > { %v10692_v59 = vpop.eup %10691  ;;  %10711 = vrcp.f32 %v6278_v16  ;;  %v6279_v48 = vadd.f32 1.0, %v10690_v27  ;;  %v8779_v58 = vmul.f32 -1.442695, %v6034_v0  ;;  %v8778_v52 = vmul.f32 -1.442695, %v12597_v35  ;;  %v13588_v27 = vld [vmem:[#allocation50_spill] sm:$0xff] }
 0x740   : > { %v10694_v14 = vpop.eup %10693  ;;  %10713 = vrcp.f32 %v6280_v43  ;;  %v6281_v34 = vadd.f32 1.0, %v10692_v59  ;;  %v8780_v57 = vmul.f32 -1.442695, %v6036_v24  ;;  %v8781_v15 = vmul.f32 -1.442695, %v12608_v39  ;;  %v13590_v59 = vld [vmem:[#allocation51_spill] sm:$0xff] }
 0x741   : > { %v10696_v63 = vpop.eup %10695  ;;  %10715 = vrcp.f32 %v6279_v48  ;;  %v6282_v55 = vadd.f32 1.0, %v10694_v14  ;;  %7456 = vmatpush1.bf16.msra.mxu0 %v10513_v29  ;;  %7682 = vmatpush1.bf16.msra.mxu1 %v10516_v7  ;;  %v6040_v16 = vadd.f32 %v12605_v32, %v12415_v19  ;;  %v8783_v12 = vmul.f32 -1.442695, %v6038_v11  ;;  %v13592_v39 = vld [vmem:[#allocation52_spill] sm:$0xff]  ;;  %v13594_v32 = vld [vmem:[#allocation47_spill] sm:$0xff] }
 0x742   : > { %v10698_v49 = vpop.eup %10697  ;;  %10717 = vrcp.f32 %v6281_v34  ;;  %v6284_v2 = vadd.f32 1.0, %v10696_v63  ;;  %v13587_v53 = vmax.f32 %v13586_v10, 0.0  ;;  %v13589_v43 = vmax.f32 %v13588_v27, 0.0 }
 0x743   : > { %v10700_v13 = vpop.eup %10699  ;;  %v6283_v50 = vadd.f32 1.0, %v10698_v49  ;;  %10719 = vrcp.f32 %v6282_v55  ;;  %v8782_v35 = vmul.f32 -1.442695, %v12616_v21  ;;  %v13591_v48 = vmax.f32 %v13590_v59, 0.0  ;;  %v13596_v55 = vld [vmem:[#allocation53_spill] sm:$0xff]  ;;  %v13600_v21 = vld [vmem:[#allocation54_spill] sm:$0xff] }
 0x744   : > { %v10702_v40 = vpop.eup %10701  ;;  %10721 = vrcp.f32 %v6284_v2  ;;  %v13593_v34 = vmax.f32 %v13592_v39, 0.0  ;;  %v13595_v37 = vmax.f32 %v13594_v32, 0.0  ;;  %v13597_v29 = vmax.f32 %v13596_v55, 0.0  ;;  %v13598_v2 = vld [vmem:[#allocation49_spill] sm:$0xff] }
 0x745   : > { %v10704_v4 = vpop.eup %10703  ;;  %v6465_v46 = vmul.f32 %v10702_v40, %v13585_v51  ;;  %10723 = vrcp.f32 %v6283_v50  ;;  %v13599_v28 = vmax.f32 %v13598_v2, 0.0  ;;  %v8784_v0 = vmul.f32 -1.442695, %v6040_v16 }
 0x746   : > { %v10706_v44 = vpop.eup %10705  ;;  %10725 = vpow2.f32 %v8773_v42  ;;  %v6466_v33 = vmul.f32 %v10704_v4, %v13587_v53  ;;  %v13601_v42 = vmax.f32 %v13600_v21, 0.0  ;;  %v6285_v45 = vadd.f32 1.0, %v10700_v13 }
 0x747   : > { %v10708_v25 = vpop.eup %10707  ;;  %v12740_v18 = vpack.c.bf16 %v6465_v46, %v6461_v30  ;;  %10727 = vpow2.f32 %v8775_v6  ;;  %v6468_v14 = vmul.f32 %v10706_v44, %v13591_v48  ;;  %v13602_v48 = vld [vmem:[#allocation56_spill] sm:$0xff] }
 0x748   : > { %v10710_v62 = vpop.eup %10709  ;;  %10729 = vpow2.f32 %v8774_v60  ;;  %v6467_v63 = vmul.f32 %v10708_v25, %v13595_v37  ;;  %v13606_v37 = vld [vmem:[#allocation59_spill] sm:$0xff] }
 0x749   : > { %v10712_v38 = vpop.eup %10711  ;;  %10731 = vpow2.f32 %v8776_v1  ;;  %v6469_v50 = vmul.f32 %v10710_v62, %v13599_v28  ;;  %v13610_v28 = vld [vmem:[#allocation55_spill] sm:$0xff] }
 0x74a   : > { %v10714_v22 = vpop.eup %10713  ;;  %v6470_v20 = vmul.f32 %v10712_v38, %v13589_v43  ;;  %10733 = vpow2.f32 %v8777_v61 }
 0x74b   : > { %v10716_v41 = vpop.eup %10715  ;;  %v6472_v9 = vmul.f32 %v10714_v22, %v13593_v34  ;;  %10735 = vpow2.f32 %v8779_v58  ;;  %v13604_v34 = vld [vmem:[#allocation58_spill] sm:$0xff] }
 0x74c   : > { %v10718_v19 = vpop.eup %10717  ;;  %v6471_v7 = vmul.f32 %v10716_v41, %v13597_v29  ;;  %v6510_v49 = vpack.c.bf16 %v6470_v20, %v6466_v33  ;;  %10737 = vpow2.f32 %v8778_v52  ;;  %v13608_v29 = vld [vmem:[#allocation60_spill] sm:$0xff] }
 0x74d   : > { %v6473_v40 = vmul.f32 %v10718_v19, %v13601_v42  ;;  %v12763_v6 = vpack.c.bf16 %v6472_v9, %v6468_v14  ;;  %v10720_v60 = vpop.eup %10719  ;;  %10739 = vpow2.f32 %v8780_v57  ;;  %v13603_v14 = vmax.f32 %v13602_v48, 0.0  ;;  %v13612_v42 = vld [vmem:[#allocation61_spill] sm:$0xff] }
 0x74e   : > { %v6511_v4 = vpack.c.bf16 %v6471_v7, %v6467_v63  ;;  %v10722_v24 = vpop.eup %10721  ;;  %10741 = vpow2.f32 %v8781_v15  ;;  %v13605_v9 = vmax.f32 %v13604_v34, 0.0  ;;  %v13607_v63 = vmax.f32 %v13606_v37, 0.0 }
 0x74f   : > { %v12765_v3 = vpack.c.bf16 %v6473_v40, %v6469_v50  ;;  %v10724_v30 = vpop.eup %10723  ;;  %10743 = vpow2.f32 %v8783_v12  ;;  %v6474_v39 = vmul.f32 %v10720_v60, %v13603_v14  ;;  %v13609_v7 = vmax.f32 %v13608_v29, 0.0  ;;  %v13614_v60 = vld [vmem:[#allocation57_spill] sm:$0xff] }
 0x750   : > { %7394 = vmatprep.mubr.bf16.mxu0 %v6511_v4  ;;  %7620 = vmatprep.mubr.bf16.mxu1 %v6511_v4  ;;  %v10726_v54 = vpop.eup %10725  ;;  %10745 = vpow2.f32 %v8782_v35  ;;  %v6476_v55 = vmul.f32 %v10722_v24, %v13607_v63  ;;  %v13611_v50 = vmax.f32 %v13610_v28, 0.0  ;;  %v13613_v40 = vmax.f32 %v13612_v42, 0.0  ;;  %v13628_v14 = vld [vmem:[#allocation69_spill] sm:$0xff]  ;;  %v13632_v63 = vld [vmem:[#allocation70_spill] sm:$0xff] }
 0x751   : > { %7395 = vmatmul.mubr.bf16.gmra.mrb[148].mxu0 %v6510_v49  ;;  %7621 = vmatmul.mubr.bf16.gmra.mrb[148].mxu1 %v6510_v49  ;;  %v10728_v51 = vpop.eup %10727  ;;  %v6286_v46 = vadd.f32 1.0, %v10726_v54  ;;  %10747 = vpow2.f32 %v8784_v0  ;;  %v13615_v54 = vmax.f32 %v13614_v60, 0.0 }
 0x752   : > { %v10730_v44 = vpop.eup %10729  ;;  %10749 = vrcp.f32 %v6285_v45  ;;  %v6288_v1 = vadd.f32 1.0, %v10728_v51  ;;  %v6475_v21 = vmul.f32 %v10724_v30, %v13611_v50 }
 0x753   : > { %v10732_v11 = vpop.eup %10731  ;;  %10751 = vrcp.f32 %v6286_v46  ;;  %v6287_v13 = vadd.f32 1.0, %v10730_v44  ;;  %v13616_v46 = vld [vmem:[#allocation62_spill] sm:$0xff] }
 0x754   : > { %v10734_v25 = vpop.eup %10733  ;;  %10753 = vrcp.f32 %v6288_v1  ;;  %v6289_v61 = vadd.f32 1.0, %v10732_v11  ;;  %v13617_v44 = vmax.f32 %v13616_v46, 0.0 }
 0x755   : > { %v10736_v62 = vpop.eup %10735  ;;  %10755 = vrcp.f32 %v6287_v13  ;;  %v6290_v58 = vadd.f32 1.0, %v10734_v25 }
 0x756   : > { %v10738_v52 = vpop.eup %10737  ;;  %10757 = vrcp.f32 %v6289_v61  ;;  %v6292_v38 = vadd.f32 1.0, %v10736_v62 }
 0x757   : > { %v10740_v57 = vpop.eup %10739  ;;  %10759 = vrcp.f32 %v6290_v58  ;;  %v6291_v15 = vadd.f32 1.0, %v10738_v52  ;;  %v13618_v52 = vld [vmem:[#allocation64_spill] sm:$0xff] }
 0x758   : > { %v10742_v16 = vpop.eup %10741  ;;  %10761 = vrcp.f32 %v6292_v38  ;;  %v6293_v22 = vadd.f32 1.0, %v10740_v57  ;;  %v13619_v38 = vmax.f32 %v13618_v52, 0.0 }
 0x759   : > { %v10744_v12 = vpop.eup %10743  ;;  %10763 = vrcp.f32 %v6291_v15  ;;  %v6294_v10 = vadd.f32 1.0, %v10742_v16  ;;  %v13620_v15 = vld [vmem:[#allocation66_spill] sm:$0xff] }
 0x75a   : > { %v10746_v53 = vpop.eup %10745  ;;  %10765 = vrcp.f32 %v6293_v22  ;;  %v6296_v33 = vadd.f32 1.0, %v10744_v12  ;;  %v13621_v16 = vmax.f32 %v13620_v15, 0.0 }
 0x75b   : > { %v10748_v27 = vpop.eup %10747  ;;  %10767 = vrcp.f32 %v6294_v10  ;;  %v6295_v43 = vadd.f32 1.0, %v10746_v53  ;;  %v13622_v10 = vld [vmem:[#allocation67_spill] sm:$0xff] }
 0x75c   : > { %v10750_v20 = vpop.eup %10749  ;;  %10769 = vrcp.f32 %v6296_v33  ;;  %v6297_v41 = vadd.f32 1.0, %v10748_v27  ;;  %v13623_v53 = vmax.f32 %v13622_v10, 0.0  ;;  %v13624_v27 = vld [vmem:[#allocation68_spill] sm:$0xff] }
 0x75d   : > { %v10752_v35 = vpop.eup %10751  ;;  %10771 = vrcp.f32 %v6295_v43  ;;  %v6477_v51 = vmul.f32 %v10750_v20, %v13615_v54  ;;  %v13625_v43 = vmax.f32 %v13624_v27, 0.0 }
 0x75e   : > { %v10754_v59 = vpop.eup %10753  ;;  %10773 = vrcp.f32 %v6297_v41  ;;  %v6478_v19 = vmul.f32 %v10752_v35, %v13605_v9  ;;  %v13626_v35 = vld [vmem:[#allocation63_spill] sm:$0xff] }
 0x75f   : > { %v10756_v32 = vpop.eup %10755  ;;  %v6480_v49 = vmul.f32 %v10754_v59, %v13609_v7  ;;  %v13627_v59 = vmax.f32 %v13626_v35, 0.0 }
 0x760   : > { %v10758_v2 = vpop.eup %10757  ;;  %v6479_v0 = vmul.f32 %v10756_v32, %v13613_v40  ;;  %v6514_v4 = vpack.c.bf16 %v6478_v19, %v6474_v39  ;;  %v13629_v39 = vmax.f32 %v13628_v14, 0.0  ;;  %v13630_v19 = vld [vmem:[#allocation65_spill] sm:$0xff] }
 0x761   : > { %v10760_v45 = vpop.eup %10759  ;;  %v6481_v1 = vmul.f32 %v10758_v2, %v13617_v44  ;;  %v6516_v11 = vpack.c.bf16 %v6480_v49, %v6476_v55  ;;  %v13631_v32 = vmax.f32 %v13630_v19, 0.0  ;;  %v13633_v55 = vmax.f32 %v13632_v63, 0.0 }
 0x762   : > { %v10762_v24 = vpop.eup %10761  ;;  %v6515_v13 = vpack.c.bf16 %v6479_v0, %v6475_v21  ;;  %v6482_v57 = vmul.f32 %v10760_v45, %v13619_v38 }
 0x763   : > { %v10764_v25 = vpop.eup %10763  ;;  %v6517_v61 = vpack.c.bf16 %v6481_v1, %v6477_v51  ;;  %v6484_v33 = vmul.f32 %v10762_v24, %v13623_v53 }
 0x764   : > { %v10766_v62 = vpop.eup %10765  ;;  %7404 = vmatprep.mubr.bf16.mxu0 %v6515_v13  ;;  %7630 = vmatprep.mubr.bf16.mxu1 %v6515_v13  ;;  %v6483_v48 = vmul.f32 %v10764_v25, %v13627_v59 }
 0x765   : > { %v10768_v30 = vpop.eup %10767  ;;  %7405 = vmatmul.mubr.bf16.gmra.mrb[152].mxu0 %v6514_v4  ;;  %7631 = vmatmul.mubr.bf16.gmra.mrb[152].mxu1 %v6514_v4  ;;  %v6485_v37 = vmul.f32 %v10766_v62, %v13631_v32 }
 0x766   : > { %v10770_v58 = vpop.eup %10769  ;;  %v6486_v22 = vmul.f32 %v10768_v30, %v13621_v16 }
 0x767   : > { %v10772_v12 = vpop.eup %10771  ;;  %v6488_v20 = vmul.f32 %v10770_v58, %v13625_v43 }
 0x768   : > { %v10774_v41 = vpop.eup %10773  ;;  %v6487_v34 = vmul.f32 %v10772_v12, %v13629_v39  ;;  %v6518_v9 = vpack.c.bf16 %v6486_v22, %v6482_v57 }
 0x769   : > { %v6489_v29 = vmul.f32 %v10774_v41, %v13633_v55  ;;  %v6520_v7 = vpack.c.bf16 %v6488_v20, %v6484_v33 }
 0x76a   : > { %v6519_v49 = vpack.c.bf16 %v6487_v34, %v6483_v48 }
 0x76b   : > { %v6521_v2 = vpack.c.bf16 %v6489_v29, %v6485_v37 }
 0x76c   : > { %7414 = vmatprep.mubr.bf16.mxu0 %v6519_v49  ;;  %7640 = vmatprep.mubr.bf16.mxu1 %v6519_v49 }
 0x76d   : > { %7415 = vmatmul.mubr.bf16.gmra.mrb[156].mxu0 %v6518_v9  ;;  %7641 = vmatmul.mubr.bf16.gmra.mrb[156].mxu1 %v6518_v9 }
 0x76e   : > { %7457 = vmatprep.mubr.bf16.mxu0 %v12568_v36  ;;  %7683 = vmatprep.mubr.bf16.mxu1 %v12568_v36  ;;  %v6650_v36 = vld [vmem:[%s13634_s13] sm:$0xf] }
 0x775   : > { %7458 = vmatmul.mubr.bf16.vlgmr.msra.gmra.mrb[128].mxu0 %v12631_v17  ;;  %7684 = vmatmul.mubr.bf16.vlgmr.msra.gmra.mrb[128].mxu1 %v12631_v17  ;;  %v13635_v17 = vld [vmem:[#allocation23_spill] sm:$0xff] }
 0x776   : > { %7467 = vmatprep.mubr.bf16.mxu0 %v12644_v23  ;;  %7693 = vmatprep.mubr.bf16.mxu1 %v12644_v23  ;;  %v12827_v23 = vrot.slane %v6650_v36, %v13635_v17 }
 0x77d   : > { %7468 = vmatmul.mubr.bf16.gmra.mrb[132].mxu0 %v12656_v56  ;;  %7694 = vmatmul.mubr.bf16.gmra.mrb[132].mxu1 %v12656_v56  ;;  %v13636_v56 = vld [vmem:[#allocation25_spill] sm:$0xff] }
 0x77e   : > { %7477 = vmatprep.mubr.bf16.mxu0 %v12660_v5  ;;  %7703 = vmatprep.mubr.bf16.mxu1 %v12660_v5  ;;  %v12830_v5 = vrot.slane %v6650_v36, %v13636_v56 }
 0x785   : > { %7478 = vmatmul.mubr.bf16.gmra.mrb[136].mxu0 %v12662_v8  ;;  %7704 = vmatmul.mubr.bf16.gmra.mrb[136].mxu1 %v12662_v8  ;;  %v13637_v8 = vld [vmem:[#allocation22_spill] sm:$0xff] }
 0x786   : > { %7487 = vmatprep.mubr.bf16.mxu0 %v12703_v47  ;;  %7713 = vmatprep.mubr.bf16.mxu1 %v12703_v47 }
 0x78d   : > { %7488 = vmatmul.mubr.bf16.gmra.mrb[140].mxu0 %v12698_v31  ;;  %7714 = vmatmul.mubr.bf16.gmra.mrb[140].mxu1 %v12698_v31  ;;  %v12833_v31 = vrot.slane %v6650_v36, %v13637_v8 }
 0x78e   : > { %7497 = vmatprep.mubr.bf16.mxu0 %v12740_v18  ;;  %7723 = vmatprep.mubr.bf16.mxu1 %v12740_v18  ;;  %v13638_v18 = vld [vmem:[#allocation24_spill] sm:$0xff] }
 0x795   : > { %7498 = vmatmul.mubr.bf16.gmra.mrb[144].mxu0 %v12720_v26  ;;  %7724 = vmatmul.mubr.bf16.gmra.mrb[144].mxu1 %v12720_v26 }
 0x796   : > { %7507 = vmatprep.mubr.bf16.mxu0 %v12765_v3  ;;  %7733 = vmatprep.mubr.bf16.mxu1 %v12765_v3 }
 0x79d   : > { %7508 = vmatmul.mubr.bf16.gmra.mrb[148].mxu0 %v12763_v6  ;;  %7734 = vmatmul.mubr.bf16.gmra.mrb[148].mxu1 %v12763_v6  ;;  %v12836_v6 = vrot.slane %v6650_v36, %v13638_v18 }
 0x79e   : > { %7517 = vmatprep.mubr.bf16.mxu0 %v6517_v61  ;;  %7743 = vmatprep.mubr.bf16.mxu1 %v6517_v61 }
 0x7a5   : > { %7518 = vmatmul.mubr.bf16.gmra.mrb[152].mxu0 %v6516_v11  ;;  %7744 = vmatmul.mubr.bf16.gmra.mrb[152].mxu1 %v6516_v11 }
 0x7a6   : > { %7527 = vmatprep.mubr.bf16.mxu0 %v6521_v2  ;;  %7753 = vmatprep.mubr.bf16.mxu1 %v6521_v2 }
 0x7ad   : > { %7528 = vmatmul.mubr.bf16.gmra.mrb[156].mxu0 %v6520_v7  ;;  %7754 = vmatmul.mubr.bf16.gmra.mrb[156].mxu1 %v6520_v7 }
 0x848   : > { %v7459_v47 = vpop.f32.mrb[128].mxu0  ;;  %v7685_v26 = vpop.f32.mrb[128].mxu1 }
 0x849   : > { %v12839_v3 = vadd.f32 %v7459_v47, %v12827_v23  ;;  %v7461_v28 = vpop.f32.mrb[129].mxu0  ;;  %v7687_v50 = vpop.f32.mrb[129].mxu1  ;;  %v12842_v21 = vadd.f32 %v7685_v26, %v12830_v5 }
 0x84a   : > { %v12845_v42 = vadd.f32 %v7461_v28, %v12833_v31  ;;  %v7463_v40 = vpop.f32.mrb[130].mxu0  ;;  %v7689_v0 = vpop.f32.mrb[130].mxu1  ;;  %v12855_v46 = vadd.f32 %v7687_v50, %v12836_v6 }
 0x84b   : > { %v7764_v4 = vmul.f32 %v12839_v3, %v12839_v3  ;;  %v12850_v45 = vadd.f32 %v7463_v40, %v12827_v23  ;;  %v7465_v60 = vpop.f32.mrb[131].mxu0  ;;  %v7691_v54 = vpop.f32.mrb[131].mxu1  ;;  %v12858_v44 = vadd.f32 %v7689_v0, %v12830_v5  ;;  %v7766_v24 = vmul.f32 %v12842_v21, %v12842_v21 }
 0x84c   : > { %v7765_v51 = vmul.f32 %v12845_v42, %v12845_v42  ;;  %v12861_v1 = vadd.f32 %v7465_v60, %v12833_v31  ;;  %v12870_v61 = vadd.f32 %v7691_v54, %v12836_v6  ;;  %v7767_v38 = vmul.f32 %v12855_v46, %v12855_v46 }
 0x84d   : > { %v7768_v11 = vmul.f32 %v12850_v45, %v12850_v45  ;;  %v7770_v62 = vmul.f32 %v12858_v44, %v12858_v44 }
 0x84e   : > { %v7769_v13 = vmul.f32 %v12861_v1, %v12861_v1  ;;  %v7828_v25 = vadd.f32 %v7765_v51, %v7764_v4  ;;  %v7771_v20 = vmul.f32 %v12870_v61, %v12870_v61 }
 0x850   : > { %v7833_v30 = vadd.f32 %v7769_v13, %v7768_v11  ;;  %v7469_v58 = vpop.f32.mrb[132].mxu0  ;;  %v7695_v52 = vpop.f32.mrb[132].mxu1  ;;  %v7829_v57 = vadd.f32 %v7828_v25, %v7766_v24 }
 0x851   : > { %v12877_v15 = vadd.f32 %v7469_v58, %v12827_v23  ;;  %v7471_v16 = vpop.f32.mrb[133].mxu0  ;;  %v7697_v22 = vpop.f32.mrb[133].mxu1  ;;  %v12880_v12 = vadd.f32 %v7695_v52, %v12830_v5 }
 0x852   : > { %v12883_v10 = vadd.f32 %v7471_v16, %v12833_v31  ;;  %v7473_v53 = vpop.f32.mrb[134].mxu0  ;;  %v7699_v33 = vpop.f32.mrb[134].mxu1  ;;  %v7830_v27 = vadd.f32 %v7829_v57, %v7767_v38  ;;  %v7834_v43 = vadd.f32 %v7833_v30, %v7770_v62  ;;  %v12895_v39 = vadd.f32 %v7697_v22, %v12836_v6 }
 0x853   : > { %v7772_v41 = vmul.f32 %v12877_v15, %v12877_v15  ;;  %v12890_v35 = vadd.f32 %v7473_v53, %v12827_v23  ;;  %v7475_v59 = vpop.f32.mrb[135].mxu0  ;;  %v7701_v48 = vpop.f32.mrb[135].mxu1  ;;  %v12898_v34 = vadd.f32 %v7699_v33, %v12830_v5  ;;  %v7774_v32 = vmul.f32 %v12880_v12, %v12880_v12 }
 0x854   : > { %v7773_v14 = vmul.f32 %v12883_v10, %v12883_v10  ;;  %v12901_v9 = vadd.f32 %v7475_v59, %v12833_v31  ;;  %7831 = vadd.xlane.f32.xlu0 %v7830_v27  ;;  %v7835_v63 = vadd.f32 %v7834_v43, %v7771_v20  ;;  %v12910_v29 = vadd.f32 %v7701_v48, %v12836_v6 }
 0x855   : > { %v7776_v19 = vmul.f32 %v12890_v35, %v12890_v35  ;;  %v7778_v7 = vmul.f32 %v12898_v34, %v12898_v34  ;;  %v7775_v17 = vmul.f32 %v12895_v39, %v12895_v39 }
 0x856   : > { %v7777_v37 = vmul.f32 %v12901_v9, %v12901_v9  ;;  %v7838_v55 = vadd.f32 %v7773_v14, %v7772_v41  ;;  %v7779_v60 = vmul.f32 %v12910_v29, %v12910_v29 }
 0x858   : > { %v7843_v49 = vadd.f32 %v7777_v37, %v7776_v19  ;;  %v7479_v2 = vpop.f32.mrb[136].mxu0  ;;  %v7705_v36 = vpop.f32.mrb[136].mxu1  ;;  %7836 = vadd.xlane.f32.xlu0 %v7835_v63  ;;  %v7839_v56 = vadd.f32 %v7838_v55, %v7774_v32 }
 0x859   : > { %v12917_v8 = vadd.f32 %v7479_v2, %v12827_v23  ;;  %v7481_v47 = vpop.f32.mrb[137].mxu0  ;;  %v7707_v26 = vpop.f32.mrb[137].mxu1  ;;  %v12920_v18 = vadd.f32 %v7705_v36, %v12830_v5 }
 0x85a   : > { %v12923_v28 = vadd.f32 %v7481_v47, %v12833_v31  ;;  %v7483_v50 = vpop.f32.mrb[138].mxu0  ;;  %v7709_v40 = vpop.f32.mrb[138].mxu1  ;;  %v7840_v0 = vadd.f32 %v7839_v56, %v7775_v17  ;;  %v7844_v4 = vadd.f32 %v7843_v49, %v7778_v7  ;;  %v12935_v25 = vadd.f32 %v7707_v26, %v12836_v6 }
 0x85b   : > { %v7780_v54 = vmul.f32 %v12917_v8, %v12917_v8  ;;  %v12930_v51 = vadd.f32 %v7483_v50, %v12827_v23  ;;  %v7485_v11 = vpop.f32.mrb[139].mxu0  ;;  %v7711_v24 = vpop.f32.mrb[139].mxu1  ;;  %v12938_v62 = vadd.f32 %v7709_v40, %v12830_v5  ;;  %v7782_v52 = vmul.f32 %v12920_v18, %v12920_v18 }
 0x85c   : > { %v7781_v13 = vmul.f32 %v12923_v28, %v12923_v28  ;;  %v12941_v30 = vadd.f32 %v7485_v11, %v12833_v31  ;;  %7841 = vadd.xlane.f32.xlu1 %v7840_v0  ;;  %v7845_v16 = vadd.f32 %v7844_v4, %v7779_v60  ;;  %v12950_v22 = vadd.f32 %v7711_v24, %v12836_v6 }
 0x85d   : > { %v7784_v58 = vmul.f32 %v12930_v51, %v12930_v51  ;;  %v7783_v53 = vmul.f32 %v12935_v25, %v12935_v25  ;;  %v7786_v33 = vmul.f32 %v12938_v62, %v12938_v62 }
 0x85e   : > { %v7848_v38 = vadd.f32 %v7781_v13, %v7780_v54  ;;  %v7785_v57 = vmul.f32 %v12941_v30, %v12941_v30  ;;  %v7787_v49 = vmul.f32 %v12950_v22, %v12950_v22 }
 0x860   : > { %v7853_v27 = vadd.f32 %v7785_v57, %v7784_v58  ;;  %v7489_v43 = vpop.f32.mrb[140].mxu0  ;;  %v7715_v20 = vpop.f32.mrb[140].mxu1  ;;  %7846 = vadd.xlane.f32.xlu1 %v7845_v16  ;;  %v7849_v41 = vadd.f32 %v7848_v38, %v7782_v52 }
 0x861   : > { %v12957_v59 = vadd.f32 %v7489_v43, %v12827_v23  ;;  %v7491_v48 = vpop.f32.mrb[141].mxu0  ;;  %v7717_v14 = vpop.f32.mrb[141].mxu1  ;;  %v12960_v19 = vadd.f32 %v7715_v20, %v12830_v5 }
 0x862   : > { %v12963_v32 = vadd.f32 %v7491_v48, %v12833_v31  ;;  %v7493_v37 = vpop.f32.mrb[142].mxu0  ;;  %v7719_v63 = vpop.f32.mrb[142].mxu1  ;;  %v7850_v55 = vadd.f32 %v7849_v41, %v7783_v53  ;;  %v7854_v7 = vadd.f32 %v7853_v27, %v7786_v33  ;;  %v12975_v26 = vadd.f32 %v7717_v14, %v12836_v6 }
 0x863   : > { %v7788_v2 = vmul.f32 %v12957_v59, %v12957_v59  ;;  %v12970_v36 = vadd.f32 %v7493_v37, %v12827_v23  ;;  %v7495_v17 = vpop.f32.mrb[143].mxu0  ;;  %v7721_v56 = vpop.f32.mrb[143].mxu1  ;;  %v12978_v50 = vadd.f32 %v7719_v63, %v12830_v5  ;;  %v7790_v60 = vmul.f32 %v12960_v19, %v12960_v19 }
 0x864   : > { %v7789_v47 = vmul.f32 %v12963_v32, %v12963_v32  ;;  %v12981_v40 = vadd.f32 %v7495_v17, %v12833_v31  ;;  %7851 = vadd.xlane.f32.xlu0 %v7850_v55  ;;  %v7855_v4 = vadd.f32 %v7854_v7, %v7787_v49  ;;  %v12990_v24 = vadd.f32 %v7721_v56, %v12836_v6 }
 0x865   : > { %v7792_v0 = vmul.f32 %v12970_v36, %v12970_v36  ;;  %v7791_v13 = vmul.f32 %v12975_v26, %v12975_v26  ;;  %v7794_v58 = vmul.f32 %v12978_v50, %v12978_v50 }
 0x866   : > { %v7858_v54 = vadd.f32 %v7789_v47, %v7788_v2  ;;  %v7793_v11 = vmul.f32 %v12981_v40, %v12981_v40  ;;  %7856 = vadd.xlane.f32.xlu1 %v7855_v4  ;;  %v7795_v63 = vmul.f32 %v12990_v24, %v12990_v24 }
 0x868   : > { %v7863_v52 = vadd.f32 %v7793_v11, %v7792_v0  ;;  %v7499_v38 = vpop.f32.mrb[144].mxu0  ;;  %v7725_v57 = vpop.f32.mrb[144].mxu1  ;;  %v7859_v16 = vadd.f32 %v7858_v54, %v7790_v60 }
 0x869   : > { %v12997_v53 = vadd.f32 %v7499_v38, %v12827_v23  ;;  %v7501_v33 = vpop.f32.mrb[145].mxu0  ;;  %v7727_v27 = vpop.f32.mrb[145].mxu1  ;;  %v13000_v43 = vadd.f32 %v7725_v57, %v12830_v5 }
 0x86a   : > { %v13003_v20 = vadd.f32 %v7501_v33, %v12833_v31  ;;  %v7503_v41 = vpop.f32.mrb[146].mxu0  ;;  %v7729_v48 = vpop.f32.mrb[146].mxu1  ;;  %v7860_v14 = vadd.f32 %v7859_v16, %v7791_v13  ;;  %v7864_v37 = vadd.f32 %v7863_v52, %v7794_v58  ;;  %v13015_v56 = vadd.f32 %v7727_v27, %v12836_v6 }
 0x86b   : > { %v7796_v55 = vmul.f32 %v12997_v53, %v12997_v53  ;;  %v13010_v7 = vadd.f32 %v7503_v41, %v12827_v23  ;;  %v7505_v49 = vpop.f32.mrb[147].mxu0  ;;  %v7731_v2 = vpop.f32.mrb[147].mxu1  ;;  %v13018_v47 = vadd.f32 %v7729_v48, %v12830_v5  ;;  %v7798_v54 = vmul.f32 %v13000_v43, %v13000_v43 }
 0x86c   : > { %v7797_v17 = vmul.f32 %v13003_v20, %v13003_v20  ;;  %v13021_v0 = vadd.f32 %v7505_v49, %v12833_v31  ;;  %7861 = vadd.xlane.f32.xlu0 %v7860_v14  ;;  %v7865_v60 = vadd.f32 %v7864_v37, %v7795_v63  ;;  %v13030_v58 = vadd.f32 %v7731_v2, %v12836_v6 }
 0x86d   : > { %v7800_v4 = vmul.f32 %v13010_v7, %v13010_v7  ;;  %v7799_v52 = vmul.f32 %v13015_v56, %v13015_v56  ;;  %v7802_v38 = vmul.f32 %v13018_v47, %v13018_v47 }
 0x86e   : > { %v7868_v11 = vadd.f32 %v7797_v17, %v7796_v55  ;;  %v7801_v13 = vmul.f32 %v13021_v0, %v13021_v0  ;;  %13639 = vst [vmem:[#allocation26_spill] sm:$0xff] %v13030_v58  ;;  %7866 = vadd.xlane.f32.xlu1 %v7865_v60 }
 0x870   : > { %v7873_v57 = vadd.f32 %v7801_v13, %v7800_v4  ;;  %v7509_v16 = vpop.f32.mrb[148].mxu0  ;;  %v7735_v33 = vpop.f32.mrb[148].mxu1  ;;  %v7869_v27 = vadd.f32 %v7868_v11, %v7798_v54  ;;  %v7803_v4 = vmul.f32 %v13030_v58, %v13030_v58 }
 0x871   : > { %v13037_v41 = vadd.f32 %v7509_v16, %v12827_v23  ;;  %v7511_v48 = vpop.f32.mrb[149].mxu0  ;;  %v7737_v14 = vpop.f32.mrb[149].mxu1  ;;  %v13040_v37 = vadd.f32 %v7735_v33, %v12830_v5 }
 0x872   : > { %v13043_v63 = vadd.f32 %v7511_v48, %v12833_v31  ;;  %v7513_v55 = vpop.f32.mrb[150].mxu0  ;;  %v7739_v49 = vpop.f32.mrb[150].mxu1  ;;  %v7870_v2 = vadd.f32 %v7869_v27, %v7799_v52  ;;  %v7874_v17 = vadd.f32 %v7873_v57, %v7802_v38  ;;  %v13055_v33 = vadd.f32 %v7737_v14, %v12836_v6 }
 0x873   : > { %13640 = vst [vmem:[#allocation27_spill] sm:$0xff] %v13037_v41  ;;  %13641 = vst [vmem:[#allocation30_spill] sm:$0xff] %v13040_v37  ;;  %v7804_v60 = vmul.f32 %v13037_v41, %v13037_v41  ;;  %v13050_v54 = vadd.f32 %v7513_v55, %v12827_v23  ;;  %v7515_v11 = vpop.f32.mrb[151].mxu0  ;;  %v7741_v13 = vpop.f32.mrb[151].mxu1  ;;  %v13058_v52 = vadd.f32 %v7739_v49, %v12830_v5 }
 0x874   : > { %13642 = vst [vmem:[#allocation28_spill] sm:$0xff] %v13043_v63  ;;  %v7805_v16 = vmul.f32 %v13043_v63, %v13043_v63  ;;  %13644 = vst [vmem:[#allocation71_spill] sm:$0xff] %v13055_v33  ;;  %v13061_v38 = vadd.f32 %v7515_v11, %v12833_v31  ;;  %7871 = vadd.xlane.f32.xlu0 %v7870_v2  ;;  %v7875_v27 = vadd.f32 %v7874_v17, %v7803_v4 }
 0x875   : > { %13643 = vst [vmem:[#allocation29_spill] sm:$0xff] %v13050_v54  ;;  %13645 = vst [vmem:[#allocation72_spill] sm:$0xff] %v13058_v52  ;;  %v7808_v57 = vmul.f32 %v13050_v54, %v13050_v54  ;;  %v7806_v48 = vmul.f32 %v13040_v37, %v13040_v37  ;;  %v13070_v14 = vadd.f32 %v7741_v13, %v12836_v6 }
 0x876   : > { %13646 = vst [vmem:[#allocation73_spill] sm:$0xff] %v13061_v38  ;;  %v7878_v55 = vadd.f32 %v7805_v16, %v7804_v60  ;;  %v7809_v63 = vmul.f32 %v13061_v38, %v13061_v38  ;;  %7876 = vadd.xlane.f32.xlu1 %v7875_v27  ;;  %v7807_v49 = vmul.f32 %v13055_v33, %v13055_v33 }
 0x877   : > { %13647 = vst [vmem:[#allocation74_spill] sm:$0xff] %v13070_v14  ;;  %v7810_v2 = vmul.f32 %v13058_v52, %v13058_v52 }
 0x878   : > { %v7883_v11 = vadd.f32 %v7809_v63, %v7808_v57  ;;  %v7519_v54 = vpop.f32.mrb[152].mxu0  ;;  %v7745_v17 = vpop.f32.mrb[152].mxu1  ;;  %v7879_v4 = vadd.f32 %v7878_v55, %v7806_v48  ;;  %v7811_v63 = vmul.f32 %v13070_v14, %v13070_v14 }
 0x879   : > { %v13077_v37 = vadd.f32 %v7519_v54, %v12827_v23  ;;  %v7521_v60 = vpop.f32.mrb[153].mxu0  ;;  %v7747_v16 = vpop.f32.mrb[153].mxu1  ;;  %v13080_v38 = vadd.f32 %v7745_v17, %v12830_v5 }
 0x87a   : > { %v13083_v13 = vadd.f32 %v7521_v60, %v12833_v31  ;;  %v7523_v27 = vpop.f32.mrb[154].mxu0  ;;  %v7749_v33 = vpop.f32.mrb[154].mxu1  ;;  %v7880_v41 = vadd.f32 %v7879_v4, %v7807_v49  ;;  %v7884_v58 = vadd.f32 %v7883_v11, %v7810_v2  ;;  %v13095_v60 = vadd.f32 %v7747_v16, %v12836_v6 }
 0x87b   : > { %13648 = vst [vmem:[#allocation75_spill] sm:$0xff] %v13077_v37  ;;  %13649 = vst [vmem:[#allocation32_spill] sm:$0xff] %v13080_v38  ;;  %v7812_v57 = vmul.f32 %v13077_v37, %v13077_v37  ;;  %v13090_v54 = vadd.f32 %v7523_v27, %v12827_v23  ;;  %v7525_v48 = vpop.f32.mrb[155].mxu0  ;;  %v7751_v55 = vpop.f32.mrb[155].mxu1  ;;  %v13098_v49 = vadd.f32 %v7749_v33, %v12830_v5 }
 0x87c   : > { %13650 = vst [vmem:[#allocation34_spill] sm:$0xff] %v13083_v13  ;;  %v7813_v17 = vmul.f32 %v13083_v13, %v13083_v13  ;;  %13652 = vst [vmem:[#allocation35_spill] sm:$0xff] %v13095_v60  ;;  %v13101_v2 = vadd.f32 %v7525_v48, %v12833_v31  ;;  %7881 = vadd.xlane.f32.xlu0 %v7880_v41  ;;  %v7885_v4 = vadd.f32 %v7884_v58, %v7811_v63 }
 0x87d   : > { %13651 = vst [vmem:[#allocation77_spill] sm:$0xff] %v13090_v54  ;;  %v7816_v11 = vmul.f32 %v13090_v54, %v13090_v54  ;;  %v7814_v27 = vmul.f32 %v13080_v38, %v13080_v38  ;;  %v13110_v16 = vadd.f32 %v7751_v55, %v12836_v6  ;;  %v7815_v33 = vmul.f32 %v13095_v60, %v13095_v60 }
 0x87e   : > { %13653 = vst [vmem:[#allocation36_spill] sm:$0xff] %v13101_v2  ;;  %v7888_v37 = vadd.f32 %v7813_v17, %v7812_v57  ;;  %v7817_v13 = vmul.f32 %v13101_v2, %v13101_v2  ;;  %7886 = vadd.xlane.f32.xlu1 %v7885_v4  ;;  %v7818_v41 = vmul.f32 %v13098_v49, %v13098_v49 }
 0x880   : > { %v7893_v48 = vadd.f32 %v7817_v13, %v7816_v11  ;;  %v7529_v54 = vpop.f32.mrb[156].mxu0  ;;  %v7755_v58 = vpop.f32.mrb[156].mxu1  ;;  %v7889_v63 = vadd.f32 %v7888_v37, %v7814_v27  ;;  %v7819_v13 = vmul.f32 %v13110_v16, %v13110_v16 }
 0x881   : > { %v13117_v38 = vadd.f32 %v7529_v54, %v12827_v23  ;;  %v7531_v57 = vpop.f32.mrb[157].mxu0  ;;  %v7757_v17 = vpop.f32.mrb[157].mxu1  ;;  %v13120_v2 = vadd.f32 %v7755_v58, %v12830_v5 }
 0x882   : > { %v13123_v55 = vadd.f32 %v7531_v57, %v12833_v31  ;;  %v7533_v4 = vpop.f32.mrb[158].mxu0  ;;  %v7759_v60 = vpop.f32.mrb[158].mxu1  ;;  %v7890_v14 = vadd.f32 %v7889_v63, %v7815_v33  ;;  %v7894_v52 = vadd.f32 %v7893_v48, %v7818_v41  ;;  %v13135_v57 = vadd.f32 %v7757_v17, %v12836_v6 }
 0x883   : > { %v7820_v37 = vmul.f32 %v13117_v38, %v13117_v38  ;;  %v13130_v54 = vadd.f32 %v7533_v4, %v12827_v23  ;;  %v7535_v11 = vpop.f32.mrb[159].mxu0  ;;  %v7761_v27 = vpop.f32.mrb[159].mxu1  ;;  %v13138_v33 = vadd.f32 %v7759_v60, %v12830_v5  ;;  %v7822_v63 = vmul.f32 %v13120_v2, %v13120_v2 }
 0x884   : > { %13654 = vst [vmem:[#allocation31_spill] sm:$0xff] %v13123_v55  ;;  %v7821_v58 = vmul.f32 %v13123_v55, %v13123_v55  ;;  %v13141_v41 = vadd.f32 %v7535_v11, %v12833_v31  ;;  %7891 = vadd.xlane.f32.xlu0 %v7890_v14  ;;  %v7895_v23 = vadd.f32 %v7894_v52, %v7819_v13 }
 0x885   : > { %13655 = vst [vmem:[#allocation37_spill] sm:$0xff] %v13130_v54  ;;  %13656 = vst [vmem:[#allocation33_spill] sm:$0xff] %v13138_v33  ;;  %v7824_v48 = vmul.f32 %v13130_v54, %v13130_v54  ;;  %v13150_v17 = vadd.f32 %v7761_v27, %v12836_v6  ;;  %v7823_v5 = vmul.f32 %v13135_v57, %v13135_v57 }
 0x886   : > { %13657 = vst [vmem:[#allocation38_spill] sm:$0xff] %v13141_v41  ;;  %v7898_v4 = vadd.f32 %v7821_v58, %v7820_v37  ;;  %v7825_v55 = vmul.f32 %v13141_v41, %v13141_v41  ;;  %7896 = vadd.xlane.f32.xlu1 %v7895_v23  ;;  %v7826_v31 = vmul.f32 %v13138_v33, %v13138_v33 }
 0x887   : > { %v7827_v52 = vmul.f32 %v13150_v17, %v13150_v17 }
 0x888   : > { %v7903_v14 = vadd.f32 %v7825_v55, %v7824_v48  ;;  %v7899_v60 = vadd.f32 %v7898_v4, %v7822_v63 }
 0x88a   : > { %v7900_v13 = vadd.f32 %v7899_v60, %v7823_v5  ;;  %v7904_v37 = vadd.f32 %v7903_v14, %v7826_v31 }
 0x88c   : > { %7901 = vadd.xlane.f32.xlu0 %v7900_v13  ;;  %v7905_v11 = vadd.f32 %v7904_v37, %v7827_v52 }
 0x88e   : > { %7906 = vadd.xlane.f32.xlu1 %v7905_v11 }
 0x8e1   : > { %v7832_v58 = vpop.xlane.xlu0 %7831 }
 0x8e2   : > { %v7908_v6 = vmax.f32 %v7832_v58, 1e-24 }
 0x8e4   : > { %10775 = vrsqrt.f32 %v7908_v6 }
 0x8e5   : > { %v7837_v27 = vpop.xlane.xlu0 %7836 }
 0x8e6   : > { %v7909_v23 = vmax.f32 %v7837_v27, 1e-24 }
 0x8e8   : > { %10777 = vrsqrt.f32 %v7909_v23 }
 0x8e9   : > { %v7842_v41 = vpop.xlane.xlu1 %7841 }
 0x8ea   : > { %v7910_v54 = vmax.f32 %v7842_v41, 1e-24 }
 0x8ec   : > { %10779 = vrsqrt.f32 %v7910_v54 }
 0x8ed   : > { %v7847_v33 = vpop.xlane.xlu1 %7846 }
 0x8ee   : > { %v10776_v55 = vpop.eup %10775  ;;  %v7911_v48 = vmax.f32 %v7847_v33, 1e-24 }
 0x8ef   : > { %v7940_v63 = vmul.f32 %v10776_v55, %v12839_v3  ;;  %v7941_v4 = vmul.f32 %v10776_v55, %v12845_v42  ;;  %v7942_v5 = vmul.f32 %v10776_v55, %v12842_v21  ;;  %v7943_v31 = vmul.f32 %v10776_v55, %v12855_v46 }
 0x8f0   : > { %10781 = vrsqrt.f32 %v7911_v48 }
 0x8f1   : > { %8004 = vst [vmem:[#allocation15] sm:$0xff] %v7940_v63  ;;  %8005 = vst [vmem:[#allocation15 + $0x8] sm:$0xff] %v7941_v4  ;;  %v7852_v14 = vpop.xlane.xlu0 %7851 }
 0x8f2   : > { %8006 = vst [vmem:[#allocation15 + $0x10] sm:$0xff] %v7942_v5  ;;  %8007 = vst [vmem:[#allocation15 + $0x18] sm:$0xff] %v7943_v31  ;;  %v10778_v60 = vpop.eup %10777  ;;  %v7912_v41 = vmax.f32 %v7852_v14, 1e-24 }
 0x8f3   : > { %v7944_v54 = vmul.f32 %v10778_v60, %v12850_v45  ;;  %v7945_v33 = vmul.f32 %v10778_v60, %v12861_v1  ;;  %v7946_v3 = vmul.f32 %v10778_v60, %v12858_v44  ;;  %v7947_v42 = vmul.f32 %v10778_v60, %v12870_v61  ;;  %v7857_v21 = vpop.xlane.xlu1 %7856 }
 0x8f4   : > { %10783 = vrsqrt.f32 %v7912_v41  ;;  %v7913_v46 = vmax.f32 %v7857_v21, 1e-24 }
 0x8f5   : > { %8008 = vst [vmem:[#allocation15 + $0x20] sm:$0xff] %v7944_v54  ;;  %8009 = vst [vmem:[#allocation15 + $0x28] sm:$0xff] %v7945_v33 }
 0x8f6   : > { %8010 = vst [vmem:[#allocation15 + $0x30] sm:$0xff] %v7946_v3  ;;  %8011 = vst [vmem:[#allocation15 + $0x38] sm:$0xff] %v7947_v42  ;;  %v10780_v52 = vpop.eup %10779  ;;  %10785 = vrsqrt.f32 %v7913_v46 }
 0x8f7   : > { %v7948_v13 = vmul.f32 %v10780_v52, %v12877_v15  ;;  %v7949_v37 = vmul.f32 %v10780_v52, %v12883_v10  ;;  %v7950_v45 = vmul.f32 %v10780_v52, %v12880_v12  ;;  %v7951_v1 = vmul.f32 %v10780_v52, %v12895_v39 }
 0x8f9   : > { %8012 = vst [vmem:[#allocation15 + $0x40] sm:$0xff] %v7948_v13  ;;  %8013 = vst [vmem:[#allocation15 + $0x48] sm:$0xff] %v7949_v37  ;;  %v7862_v44 = vpop.xlane.xlu0 %7861  ;;  %v13658_v13 = vld [vmem:[#allocation26_spill] sm:$0xff] }
 0x8fa   : > { %8014 = vst [vmem:[#allocation15 + $0x50] sm:$0xff] %v7950_v45  ;;  %8015 = vst [vmem:[#allocation15 + $0x58] sm:$0xff] %v7951_v1  ;;  %v10782_v61 = vpop.eup %10781  ;;  %v7914_v11 = vmax.f32 %v7862_v44, 1e-24  ;;  %v13659_v45 = vld [vmem:[#allocation27_spill] sm:$0xff]  ;;  %v13660_v44 = vld [vmem:[#allocation28_spill] sm:$0xff] }
 0x8fb   : > { %v7952_v58 = vmul.f32 %v10782_v61, %v12890_v35  ;;  %v7953_v6 = vmul.f32 %v10782_v61, %v12901_v9  ;;  %v7954_v15 = vmul.f32 %v10782_v61, %v12898_v34  ;;  %v7955_v10 = vmul.f32 %v10782_v61, %v12910_v29  ;;  %v7867_v12 = vpop.xlane.xlu1 %7866 }
 0x8fc   : > { %10787 = vrsqrt.f32 %v7914_v11  ;;  %v7915_v39 = vmax.f32 %v7867_v12, 1e-24  ;;  %v13661_v11 = vld [vmem:[#allocation30_spill] sm:$0xff] }
 0x8fd   : > { %8016 = vst [vmem:[#allocation15 + $0x60] sm:$0xff] %v7952_v58  ;;  %8017 = vst [vmem:[#allocation15 + $0x68] sm:$0xff] %v7953_v6  ;;  %v13662_v58 = vld [vmem:[#allocation71_spill] sm:$0xff] }
 0x8fe   : > { %8018 = vst [vmem:[#allocation15 + $0x70] sm:$0xff] %v7954_v15  ;;  %8019 = vst [vmem:[#allocation15 + $0x78] sm:$0xff] %v7955_v10  ;;  %v10784_v27 = vpop.eup %10783  ;;  %10789 = vrsqrt.f32 %v7915_v39  ;;  %v13663_v10 = vld [vmem:[#allocation29_spill] sm:$0xff] }
 0x8ff   : > { %v7956_v23 = vmul.f32 %v10784_v27, %v12917_v8  ;;  %v7957_v55 = vmul.f32 %v10784_v27, %v12923_v28  ;;  %v7958_v35 = vmul.f32 %v10784_v27, %v12920_v18  ;;  %v7959_v9 = vmul.f32 %v10784_v27, %v12935_v25  ;;  %v13664_v39 = vld [vmem:[#allocation73_spill] sm:$0xff] }
 0x900   : > { %v10786_v29 = vpop.eup %10785 }
 0x901   : > { %8020 = vst [vmem:[#allocation15 + $0x80] sm:$0xff] %v7956_v23  ;;  %8021 = vst [vmem:[#allocation15 + $0x88] sm:$0xff] %v7957_v55  ;;  %v7872_v34 = vpop.xlane.xlu0 %7871  ;;  %v7960_v63 = vmul.f32 %v10786_v29, %v12930_v51  ;;  %v7961_v4 = vmul.f32 %v10786_v29, %v12941_v30  ;;  %v7962_v8 = vmul.f32 %v10786_v29, %v12938_v62  ;;  %v13665_v23 = vld [vmem:[#allocation72_spill] sm:$0xff] }
 0x902   : > { %8022 = vst [vmem:[#allocation15 + $0x90] sm:$0xff] %v7958_v35  ;;  %8023 = vst [vmem:[#allocation15 + $0x98] sm:$0xff] %v7959_v9  ;;  %v7916_v48 = vmax.f32 %v7872_v34, 1e-24  ;;  %v7963_v28 = vmul.f32 %v10786_v29, %v12950_v22  ;;  %v13666_v35 = vld [vmem:[#allocation74_spill] sm:$0xff] }
 0x903   : > { %v7877_v18 = vpop.xlane.xlu1 %7876  ;;  %8024 = vst [vmem:[#allocation15 + $0xa0] sm:$0xff] %v7960_v63  ;;  %8025 = vst [vmem:[#allocation15 + $0xa8] sm:$0xff] %v7961_v4  ;;  %v13667_v63 = vld [vmem:[#allocation75_spill] sm:$0xff] }
 0x904   : > { %10791 = vrsqrt.f32 %v7916_v48  ;;  %8026 = vst [vmem:[#allocation15 + $0xb0] sm:$0xff] %v7962_v8  ;;  %8027 = vst [vmem:[#allocation15 + $0xb8] sm:$0xff] %v7963_v28  ;;  %v7917_v25 = vmax.f32 %v7877_v18, 1e-24  ;;  %v13668_v8 = vld [vmem:[#allocation34_spill] sm:$0xff]  ;;  %v13669_v18 = vld [vmem:[#allocation32_spill] sm:$0xff] }
 0x906   : > { %v10788_v5 = vpop.eup %10787  ;;  %10793 = vrsqrt.f32 %v7917_v25 }
 0x907   : > { %v7964_v31 = vmul.f32 %v10788_v5, %v12957_v59  ;;  %v7965_v14 = vmul.f32 %v10788_v5, %v12963_v32  ;;  %v7966_v51 = vmul.f32 %v10788_v5, %v12960_v19  ;;  %v7967_v30 = vmul.f32 %v10788_v5, %v12975_v26  ;;  %v13670_v5 = vld [vmem:[#allocation35_spill] sm:$0xff] }
 0x908   : > { %v10790_v22 = vpop.eup %10789 }
 0x909   : > { %8028 = vst [vmem:[#allocation15 + $0xc0] sm:$0xff] %v7964_v31  ;;  %8029 = vst [vmem:[#allocation15 + $0xc8] sm:$0xff] %v7965_v14  ;;  %v7882_v62 = vpop.xlane.xlu0 %7881  ;;  %v7968_v41 = vmul.f32 %v10790_v22, %v12970_v36  ;;  %v7969_v54 = vmul.f32 %v10790_v22, %v12981_v40  ;;  %v7970_v59 = vmul.f32 %v10790_v22, %v12978_v50 }
 0x90a   : > { %8030 = vst [vmem:[#allocation15 + $0xd0] sm:$0xff] %v7966_v51  ;;  %8031 = vst [vmem:[#allocation15 + $0xd8] sm:$0xff] %v7967_v30  ;;  %v7918_v60 = vmax.f32 %v7882_v62, 1e-24  ;;  %v7971_v32 = vmul.f32 %v10790_v22, %v12990_v24  ;;  %v13671_v51 = vld [vmem:[#allocation77_spill] sm:$0xff]  ;;  %v13672_v62 = vld [vmem:[#allocation36_spill] sm:$0xff] }
 0x90b   : > { %v7887_v19 = vpop.xlane.xlu1 %7886  ;;  %8032 = vst [vmem:[#allocation15 + $0xe0] sm:$0xff] %v7968_v41  ;;  %8033 = vst [vmem:[#allocation15 + $0xe8] sm:$0xff] %v7969_v54 }
 0x90c   : > { %10795 = vrsqrt.f32 %v7918_v60  ;;  %8034 = vst [vmem:[#allocation15 + $0xf0] sm:$0xff] %v7970_v59  ;;  %8035 = vst [vmem:[#allocation15 + $0xf8] sm:$0xff] %v7971_v32  ;;  %v7919_v26 = vmax.f32 %v7887_v19, 1e-24  ;;  %v13673_v32 = vld [vmem:[#allocation31_spill] sm:$0xff] }
 0x90e   : > { %v10792_v33 = vpop.eup %10791  ;;  %10797 = vrsqrt.f32 %v7919_v26 }
 0x90f   : > { %v7972_v3 = vmul.f32 %v10792_v33, %v12997_v53  ;;  %v7973_v42 = vmul.f32 %v10792_v33, %v13003_v20  ;;  %v7974_v36 = vmul.f32 %v10792_v33, %v13000_v43  ;;  %v7975_v40 = vmul.f32 %v10792_v33, %v13015_v56 }
 0x910   : > { %v10794_v24 = vpop.eup %10793 }
 0x911   : > { %8036 = vst [vmem:[#allocation15 + $0x100] sm:$0xff] %v7972_v3  ;;  %8037 = vst [vmem:[#allocation15 + $0x108] sm:$0xff] %v7973_v42  ;;  %v7892_v50 = vpop.xlane.xlu0 %7891  ;;  %v7976_v46 = vmul.f32 %v10794_v24, %v13010_v7  ;;  %v7977_v52 = vmul.f32 %v10794_v24, %v13021_v0  ;;  %v7978_v53 = vmul.f32 %v10794_v24, %v13018_v47  ;;  %v13675_v42 = vld [vmem:[#allocation38_spill] sm:$0xff] }
 0x912   : > { %8038 = vst [vmem:[#allocation15 + $0x110] sm:$0xff] %v7974_v36  ;;  %8039 = vst [vmem:[#allocation15 + $0x118] sm:$0xff] %v7975_v40  ;;  %v7920_v21 = vmax.f32 %v7892_v50, 1e-24  ;;  %v7979_v20 = vmul.f32 %v10794_v24, %v13658_v13  ;;  %v13676_v40 = vld [vmem:[#allocation33_spill] sm:$0xff] }
 0x913   : > { %v7897_v43 = vpop.xlane.xlu1 %7896  ;;  %8040 = vst [vmem:[#allocation15 + $0x120] sm:$0xff] %v7976_v46  ;;  %8041 = vst [vmem:[#allocation15 + $0x128] sm:$0xff] %v7977_v52 }
 0x914   : > { %10799 = vrsqrt.f32 %v7920_v21  ;;  %8042 = vst [vmem:[#allocation15 + $0x130] sm:$0xff] %v7978_v53  ;;  %8043 = vst [vmem:[#allocation15 + $0x138] sm:$0xff] %v7979_v20  ;;  %v7921_v56 = vmax.f32 %v7897_v43, 1e-24 }
 0x916   : > { %v10796_v37 = vpop.eup %10795  ;;  %10801 = vrsqrt.f32 %v7921_v56 }
 0x917   : > { %v7980_v1 = vmul.f32 %v10796_v37, %v13659_v45  ;;  %v7981_v61 = vmul.f32 %v10796_v37, %v13660_v44  ;;  %v7982_v7 = vmul.f32 %v10796_v37, %v13661_v11  ;;  %v7983_v0 = vmul.f32 %v10796_v37, %v13662_v58 }
 0x918   : > { %v10798_v6 = vpop.eup %10797 }
 0x919   : > { %8044 = vst [vmem:[#allocation15 + $0x140] sm:$0xff] %v7980_v1  ;;  %8045 = vst [vmem:[#allocation15 + $0x148] sm:$0xff] %v7981_v61  ;;  %v7902_v47 = vpop.xlane.xlu0 %7901  ;;  %v7984_v12 = vmul.f32 %v10798_v6, %v13663_v10  ;;  %v7985_v27 = vmul.f32 %v10798_v6, %v13664_v39  ;;  %v7986_v55 = vmul.f32 %v10798_v6, %v13665_v23 }
 0x91a   : > { %8046 = vst [vmem:[#allocation15 + $0x150] sm:$0xff] %v7982_v7  ;;  %8047 = vst [vmem:[#allocation15 + $0x158] sm:$0xff] %v7983_v0  ;;  %v7922_v15 = vmax.f32 %v7902_v47, 1e-24  ;;  %v7987_v9 = vmul.f32 %v10798_v6, %v13666_v35 }
 0x91b   : > { %v7907_v34 = vpop.xlane.xlu1 %7906  ;;  %8048 = vst [vmem:[#allocation15 + $0x160] sm:$0xff] %v7984_v12  ;;  %8049 = vst [vmem:[#allocation15 + $0x168] sm:$0xff] %v7985_v27 }
 0x91c   : > { %10803 = vrsqrt.f32 %v7922_v15  ;;  %v7923_v29 = vmax.f32 %v7907_v34, 1e-24  ;;  %8050 = vst [vmem:[#allocation15 + $0x170] sm:$0xff] %v7986_v55  ;;  %8051 = vst [vmem:[#allocation15 + $0x178] sm:$0xff] %v7987_v9 }
 0x91e   : > { %v10800_v48 = vpop.eup %10799  ;;  %10805 = vrsqrt.f32 %v7923_v29 }
 0x91f   : > { %v7988_v4 = vmul.f32 %v10800_v48, %v13667_v63  ;;  %v7989_v28 = vmul.f32 %v10800_v48, %v13668_v8  ;;  %v7990_v25 = vmul.f32 %v10800_v48, %v13669_v18  ;;  %v7991_v31 = vmul.f32 %v10800_v48, %v13670_v5 }
 0x920   : > { %v10802_v14 = vpop.eup %10801 }
 0x921   : > { %8052 = vst [vmem:[#allocation15 + $0x180] sm:$0xff] %v7988_v4  ;;  %8053 = vst [vmem:[#allocation15 + $0x188] sm:$0xff] %v7989_v28  ;;  %v7992_v30 = vmul.f32 %v10802_v14, %v13671_v51  ;;  %v7993_v22 = vmul.f32 %v10802_v14, %v13672_v62  ;;  %v7994_v60 = vmul.f32 %v10802_v14, %v13098_v49  ;;  %v13674_v49 = vld [vmem:[#allocation37_spill] sm:$0xff] }
 0x922   : > { %8054 = vst [vmem:[#allocation15 + $0x190] sm:$0xff] %v7990_v25  ;;  %8055 = vst [vmem:[#allocation15 + $0x198] sm:$0xff] %v7991_v31  ;;  %v7995_v41 = vmul.f32 %v10802_v14, %v13110_v16 }
 0x923   : > { %8056 = vst [vmem:[#allocation15 + $0x1a0] sm:$0xff] %v7992_v30  ;;  %8057 = vst [vmem:[#allocation15 + $0x1a8] sm:$0xff] %v7993_v22 }
 0x924   : > { %8058 = vst [vmem:[#allocation15 + $0x1b0] sm:$0xff] %v7994_v60  ;;  %8059 = vst [vmem:[#allocation15 + $0x1b8] sm:$0xff] %v7995_v41 }
 0x926   : > { %v10804_v54 = vpop.eup %10803 }
 0x927   : > { %v7996_v59 = vmul.f32 %v10804_v54, %v13117_v38  ;;  %v7997_v19 = vmul.f32 %v10804_v54, %v13673_v32  ;;  %v7998_v26 = vmul.f32 %v10804_v54, %v13120_v2  ;;  %v7999_v33 = vmul.f32 %v10804_v54, %v13135_v57 }
 0x928   : > { %v10806_v3 = vpop.eup %10805 }
 0x929   : > { %8060 = vst [vmem:[#allocation15 + $0x1c0] sm:$0xff] %v7996_v59  ;;  %8061 = vst [vmem:[#allocation15 + $0x1c8] sm:$0xff] %v7997_v19  ;;  %v8000_v16 = vmul.f32 %v10806_v3, %v13674_v49  ;;  %v8001_v36 = vmul.f32 %v10806_v3, %v13675_v42  ;;  %v8002_v50 = vmul.f32 %v10806_v3, %v13676_v40 }
 0x92a   : > { %8062 = vst [vmem:[#allocation15 + $0x1d0] sm:$0xff] %v7998_v26  ;;  %8063 = vst [vmem:[#allocation15 + $0x1d8] sm:$0xff] %v7999_v33  ;;  %v8003_v24 = vmul.f32 %v10806_v3, %v13150_v17 }
 0x92b   : > { %8064 = vst [vmem:[#allocation15 + $0x1e0] sm:$0xff] %v8000_v16  ;;  %8065 = vst [vmem:[#allocation15 + $0x1e8] sm:$0xff] %v8001_v36 }
 0x92c   : > { %8066 = vst [vmem:[#allocation15 + $0x1f0] sm:$0xff] %v8002_v50  ;;  %8067 = vst [vmem:[#allocation15 + $0x1f8] sm:$0xff] %v8003_v24 }
 0x92d PF: > { %p9558_p8 = scmp.eq.s32.totalorder %s11221_s14, 1  ;;  %s11119_s18 = smov [#allocation15]  }
 0x92e   : > { %s8078_s0 = sshll.u32 %s11119_s18, 4  ;;  %s8079_s0 = int_to_ptr.vmem [resolvable:$true] %s8078_s0 }
 0x92f   : > { %s11007_s5 = scalar_lea.vmem %s8079_s0, 8192  ;;  %p11014_p3 = scmp.lt.s32.totalorder %s8079_s0, %s8079_s0 }
 0x930   : > { %p11008_p11 = scmp.ne.s32.totalorder %s8079_s0, %s11007_s5  ;;  %p11015_p9 = scmp.lt.s32.totalorder %s11007_s5, %s11007_s5 }
 0x932   : > { %p11009_p4 = pnand %p11008_p11, %p9558_p8  ;;  %p11016_p7 = por %p11015_p9, %p11014_p3 }
 0x934   : > { %p11010_p5 = pneg %p11009_p4 }
 0x936   : > { %p11017_p12 = pnand %p11016_p7, %p11010_p5 }
 0x938   : > { %11020 = shalt.err (!%p11017_p12)
}
 0x939   : > { %s13677_s16 = sld [smem:[#allocation91_spill]] }
 0x93f   : > { %s11021_s21 = scalar_lea.hbm %s13677_s16, 8192 }
 0x940   : > { %p11022_p13 = scmp.ne.s32.totalorder %s13677_s16, %s11021_s21  ;;  %p11027_p6 = scmp.lt.u32.totalorder %s11021_s21, %s13677_s16 }
 0x942   : > { %p11023_p0 = pnand %p11022_p13, %p9558_p8 }
 0x944   : > { %p11024_p2 = pneg %p11023_p0 }
 0x946   : > { %p11029_p10 = pnand %p11027_p6, %p11024_p2 }
 0x948   : > { %11032 = shalt.err (!%p11029_p10)
}
 0x949   : > { %s11120_s4 = smov 512   ;;  %s11121_s3 = smov 32  }
 0x94a   : > { %9521 = dma.vmem_to_hbm [thread:$0]  (%p9558_p8), %s8079_s0, 8192, %s13677_s16, [#allocation5], %s11120_s4, %s11120_s4, %s11121_s3  }
 0x94b   : > { %11078 = dma.done.wait (%p9558_p8), [#allocation5], 8192  }
 0x94c   : > { %11080 = vsyncadd (%p9558_p8), [#allocation5], 4294959104 }
 0x94d PF: > { %s32_s30 = sadd.s32 1, %s11103_s30   ;;  %s13678_s25 = smov %s11087_s26 }
 0x94e   : > { %p29_p1 = scmp.ge.s32.totalorder %s32_s30, 4   ;;  %s13679_s26 = smov %s11091_s27 }
 0x94f   : > { %s13680_s27 = smov %s11386_s17  ;;  %s13681_s28 = smov %s11099_s29 }
 0x950   : > { %s13682_s29 = smov %s13684_s10  ;;  %31 = sbr.rel (!%p29_p1) target bundleno = 21 (0x15), region = 151 }
 0x957   :  { %8094 = vsyncpa [#allocation4], 1 }
 0x958   :  { %8096 = vsyncpa [#allocation4 + $0x1], 1 }
 0x959   :  { %8097 = vsyncpa [#allocation7], 1 }
 0x95a   :  { %8099 = vsyncpa [#allocation7 + $0x1], 1 }
 0x95b   :  { %8100 = vsyncpa [#allocation10], 1 }
 0x95c   :  { %8101 = vsyncpa [#allocation13], 1 }
 0x95d   :  { %8102 = vsyncpa [#allocation5], 1 }
 0x95e   :  { %8104 = vsyncpa [#allocation5 + $0x1], 1 }

</bundles_post_ra>
